<compile_context>
chip_gen: v5e
topology: v5e:2x2
jax: 0.10.0
libtpu: 0.0.40
codegen_flags: <defaults>
</compile_context>

<pallas_src>
import functools

import jax
import jax.numpy as jnp
from jax import lax
from jax.experimental import pallas as pl
from jax.experimental.pallas import tpu as pltpu


def _round_up(x, m):
    return ((x + m - 1) // m) * m


def _pick_tile(d, cands):
    """Largest candidate tile that evenly divides the (already padded) dim d."""
    for t in cands:
        if d % t == 0:
            return t
    return d


def _m_tiling(m):
    """Adaptive M tiling: one >=8-row block for small M, 128-row tiles otherwise."""
    if m <= 128:
        t = _round_up(m, 8)
        return t, t
    return 128, _round_up(m, 128)


# ----------------------------------------------------------------------------
# Pallas kernels
# ----------------------------------------------------------------------------
def _fused_matmul_kernel(a_ref, b_ref, bias_ref, *rest, use_res, use_relu):
    """o = relu?((A @ B) + bias (+ residual)); A/B bf16, f32 accumulator/epilogue."""
    if use_res:
        res_ref, o_ref, acc_ref = rest
    else:
        o_ref, acc_ref = rest

    k = pl.program_id(2)

    @pl.when(k == 0)
    def _():
        acc_ref[...] = jnp.zeros_like(acc_ref)

    acc_ref[...] += jnp.dot(a_ref[...], b_ref[...],
                            preferred_element_type=jnp.float32)

    @pl.when(k == pl.num_programs(2) - 1)
    def _():
        out = acc_ref[...] + bias_ref[...]          # f32 epilogue (v5e-safe)
        if use_res:
            out = out + res_ref[...].astype(jnp.float32)
        if use_relu:
            out = jnp.maximum(out, 0.0)
        o_ref[...] = out.astype(o_ref.dtype)


def _maxpool_kernel(x_ref, o_ref):
    """MaxPool2d(3, stride=2, pad=1).

    x_ref: (1, Ho+1, 2, Wo+1, 2C) pair-packed, -inf padded input (one image).
    o_ref: (1, Ho, Wo, C).  Only unit-stride slices are needed.
    """
    Ho, Wo, C = o_ref.shape[1], o_ref.shape[2], o_ref.shape[3]

    def body(h, carry):
        r0 = x_ref[0, h, 0]           # input rows 2h      -> (Wo+1, 2C)
        r1 = x_ref[0, h, 1]           # input rows 2h + 1
        r2 = x_ref[0, h + 1, 0]       # input rows 2h + 2
        rm = jnp.maximum(jnp.maximum(r0, r1), r2)
        c0 = rm[:Wo, :C]              # input cols 2w
        c1 = rm[:Wo, C:]              # input cols 2w + 1
        c2 = rm[1:, :C]               # input cols 2w + 2
        o_ref[0, h] = jnp.maximum(jnp.maximum(c0, c1), c2)
        return carry

    lax.fori_loop(0, Ho, body, 0)


def _global_mean_kernel(x_ref, o_ref):
    """Global average pool: x (1, HW, C) -> o (1, 1, C), mean in f32."""
    o_ref[0] = jnp.mean(x_ref[0].astype(jnp.float32), axis=0,
                        keepdims=True).astype(o_ref.dtype)


# ----------------------------------------------------------------------------
# pallas_call wrappers
# ----------------------------------------------------------------------------
def fused_matmul(a, w_p, bias_p, residual=None, relu=True,
                 out_dtype=jnp.bfloat16):
    """a: [M, K] bf16 (unpadded), w_p: [Kp, Np] bf16 (pre-padded, BN folded),
    bias_p: [1, Np] f32, residual: [M, N<=Np] bf16 or None.  Returns [Mp, Np]."""
    M, K = a.shape
    Kp, Np = w_p.shape
    TM, Mp = _m_tiling(M)
    TK = _pick_tile(Kp, (512, 256, 128))
    TN = _pick_tile(Np, (256, 128))

    if (Mp, Kp) != (M, K):
        a_p = jnp.zeros((Mp, Kp), jnp.bfloat16).at[:M, :K].set(a)
    else:
        a_p = a

    inputs = [a_p, w_p, bias_p]
    in_specs = [
        pl.BlockSpec((TM, TK), lambda i, j, k: (i, k)),
        pl.BlockSpec((TK, TN), lambda i, j, k: (k, j)),
        pl.BlockSpec((1, TN), lambda i, j, k: (0, j)),
    ]
    use_res = residual is not None
    if use_res:
        rM, rN = residual.shape
        if (Mp, Np) != (rM, rN):
            r_p = jnp.zeros((Mp, Np), jnp.bfloat16).at[:rM, :rN].set(residual)
        else:
            r_p = residual
        inputs.append(r_p)
        in_specs.append(pl.BlockSpec((TM, TN), lambda i, j, k: (i, j)))

    kernel = functools.partial(_fused_matmul_kernel,
                               use_res=use_res, use_relu=relu)
    out_bytes = Mp * Np * jnp.dtype(out_dtype).itemsize
    cost = pl.CostEstimate(
        flops=2 * Mp * Np * Kp,
        transcendentals=0,
        bytes_accessed=(2 * Mp * Kp + 2 * Kp * Np + 4 * Np + out_bytes
                        + (2 * Mp * Np if use_res else 0)))

    return pl.pallas_call(
        kernel,
        out_shape=jax.ShapeDtypeStruct((Mp, Np), out_dtype),
        grid_spec=pltpu.PrefetchScalarGridSpec(
            num_scalar_prefetch=0,
            grid=(Mp // TM, Np // TN, Kp // TK),
            in_specs=in_specs,
            out_specs=pl.BlockSpec((TM, TN), lambda i, j, k: (i, j)),
            scratch_shapes=[pltpu.VMEM((TM, TN), jnp.float32)],
        ),
        compiler_params=pltpu.CompilerParams(
            dimension_semantics=("parallel", "parallel", "arbitrary")),
        cost_estimate=cost,
    )(*inputs)


def _im2col(x, kh, kw, stride, pad):
    """x: [B, H, W, C] bf16 -> patches [B*Ho*Wo, kh*kw*C] bf16 (plain-JAX glue)."""
    # TODO(synk): fuse the kh*kw window walk into the matmul K-grid (shifted
    # activation views / manual DMA) to remove the remaining im2col HBM traffic.
    if pad > 0:
        x = jnp.pad(x, ((0, 0), (pad, pad), (pad, pad), (0, 0)))
    B, H, W, C = x.shape
    Ho = (H - kh) // stride + 1
    Wo = (W - kw) // stride + 1
    if kh == 1 and kw == 1 and stride == 1:
        return x.reshape(B * Ho * Wo, C), Ho, Wo
    cols = []
    for i in range(kh):
        for j in range(kw):
            cols.append(x[:, i:i + stride * (Ho - 1) + 1:stride,
                          j:j + stride * (Wo - 1) + 1:stride, :])
    patches = jnp.stack(cols, axis=3)            # [B, Ho, Wo, kh*kw, C]
    return patches.reshape(B * Ho * Wo, kh * kw * C), Ho, Wo


def conv_apply(x, layer, kh, kw, stride, pad, cout,
               relu=True, residual=None, out_dtype=jnp.bfloat16):
    """Conv2d (BN folded into packed weight) + bias (+residual) (+ReLU)."""
    B = x.shape[0]
    patches, Ho, Wo = _im2col(x, kh, kw, stride, pad)
    res2 = residual.reshape(B * Ho * Wo, cout) if residual is not None else None
    out = fused_matmul(patches, layer["w"], layer["bias"],
                       residual=res2, relu=relu, out_dtype=out_dtype)
    M = B * Ho * Wo
    return out[:M, :cout].reshape(B, Ho, Wo, cout)


def maxpool_3x3_s2(x):
    """MaxPool2d(kernel_size=3, stride=2, padding=1) on NHWC input (H, W even)."""
    B, H, W, C = x.shape
    Ho, Wo = H // 2, W // 2
    xp = jnp.pad(x, ((0, 0), (1, 1), (1, 1), (0, 0)),
                 constant_values=float("-inf"))
    # Pair-pack H and W (free reshape): last dim becomes 2*C (=128 for C=64),
    # so the kernel only needs unit-stride slices + half-lane selects.
    xr = xp.reshape(B, Ho + 1, 2, Wo + 1, 2 * C)
    return pl.pallas_call(
        _maxpool_kernel,
        out_shape=jax.ShapeDtypeStruct((B, Ho, Wo, C), x.dtype),
        grid_spec=pltpu.PrefetchScalarGridSpec(
            num_scalar_prefetch=0,
            grid=(B,),
            in_specs=[pl.BlockSpec((1, Ho + 1, 2, Wo + 1, 2 * C),
                                   lambda b: (b, 0, 0, 0, 0))],
            out_specs=pl.BlockSpec((1, Ho, Wo, C), lambda b: (b, 0, 0, 0)),
        ),
        compiler_params=pltpu.CompilerParams(
            dimension_semantics=("parallel",)),
    )(xr)


def global_avgpool(x):
    """AdaptiveAvgPool2d((1, 1)) on NHWC input -> [B, C]."""
    B, H, W, C = x.shape
    xr = x.reshape(B, H * W, C)
    out = pl.pallas_call(
        _global_mean_kernel,
        out_shape=jax.ShapeDtypeStruct((B, 1, C), x.dtype),
        grid_spec=pltpu.PrefetchScalarGridSpec(
            num_scalar_prefetch=0,
            grid=(B,),
            in_specs=[pl.BlockSpec((1, H * W, C), lambda b: (b, 0, 0))],
            out_specs=pl.BlockSpec((1, 1, C), lambda b: (b, 0, 0)),
        ),
        compiler_params=pltpu.CompilerParams(
            dimension_semantics=("parallel",)),
    )(xr)
    return out.reshape(B, C)


# ----------------------------------------------------------------------------
# Parameter construction (deterministic, synthetic) + one-time packing
# ----------------------------------------------------------------------------
def _conv_init(key, kh, kw, cin, cout):
    fan_in = kh * kw * cin
    return jax.random.normal(key, (kh, kw, cin, cout), jnp.float32) * (2.0 / fan_in) ** 0.5


def _bn_init(key, c):
    k1, k2, k3, k4 = jax.random.split(key, 4)
    gamma = 1.0 + 0.1 * jax.random.normal(k1, (c,), jnp.float32)
    beta = 0.1 * jax.random.normal(k2, (c,), jnp.float32)
    mean = 0.1 * jax.random.normal(k3, (c,), jnp.float32)
    var = 0.5 + jax.random.uniform(k4, (c,), jnp.float32)
    return (gamma, beta, mean, var)


def build_params(key):
    keys = iter(jax.random.split(key, 128))
    params = {
        "conv1_w": _conv_init(next(keys), 7, 7, 3, 64),
        "bn1": _bn_init(next(keys), 64),
        "layers": [],
    }
    in_c = 64
    for out_c, stride in [(64, 1), (128, 2), (256, 2), (512, 2)]:
        blocks = []
        for b in range(2):
            s = stride if b == 0 else 1
            blk = {
                "conv1_w": _conv_init(next(keys), 3, 3, in_c, out_c),
                "bn1": _bn_init(next(keys), out_c),
                "conv2_w": _conv_init(next(keys), 3, 3, out_c, out_c),
                "bn2": _bn_init(next(keys), out_c),
            }
            if s != 1 or in_c != out_c:
                blk["down_w"] = _conv_init(next(keys), 1, 1, in_c, out_c)
                blk["down_bn"] = _bn_init(next(keys), out_c)
            blocks.append(blk)
            in_c = out_c
        params["layers"].append(blocks)
    params["fc_w"] = 0.05 * jax.random.normal(next(keys), (512, 1), jnp.float32)
    params["fc_b"] = 0.05 * jax.random.normal(next(keys), (1,), jnp.float32)
    return params


def _pack_conv(w, bn):
    """Fold BN scale into the conv weight, flatten to [K, N], zero-pad to tile
    multiples and pre-cast to bf16.  Done once, outside the forward pass."""
    kh, kw, cin, cout = w.shape
    gamma, beta, mean, var = bn
    scale = gamma * lax.rsqrt(var + 1e-5)
    bias = beta - mean * scale
    w2 = (w * scale[None, None, None, :]).reshape(kh * kw * cin, cout)
    K, N = w2.shape
    Kp, Np = _round_up(K, 128), _round_up(N, 128)
    w_p = jnp.zeros((Kp, Np), jnp.bfloat16).at[:K, :N].set(w2.astype(jnp.bfloat16))
    b_p = jnp.zeros((1, Np), jnp.float32).at[0, :N].set(bias)
    return {"w": w_p, "bias": b_p}


def _pack_linear(w, b):
    K, N = w.shape
    Kp, Np = _round_up(K, 128), _round_up(N, 128)
    w_p = jnp.zeros((Kp, Np), jnp.bfloat16).at[:K, :N].set(w.astype(jnp.bfloat16))
    b_p = jnp.zeros((1, Np), jnp.float32).at[0, :N].set(b)
    return {"w": w_p, "bias": b_p}


def prepare_params(raw):
    """One-time packing (BN fold, reshape, pad, bf16 cast) -> arrays-only pytree."""
    prep = {
        "conv1": _pack_conv(raw["conv1_w"], raw["bn1"]),
        "layers": [],
        "fc": _pack_linear(raw["fc_w"], raw["fc_b"]),
    }
    for blocks in raw["layers"]:
        pblocks = []
        for blk in blocks:
            pblk = {
                "conv1": _pack_conv(blk["conv1_w"], blk["bn1"]),
                "conv2": _pack_conv(blk["conv2_w"], blk["bn2"]),
            }
            if "down_w" in blk:
                pblk["down"] = _pack_conv(blk["down_w"], blk["down_bn"])
            pblocks.append(pblk)
        prep["layers"].append(pblocks)
    return prep


# ----------------------------------------------------------------------------
# Forward pass
# ----------------------------------------------------------------------------
def basic_block(x, blk, stride, out_c):
    identity = x
    out = conv_apply(x, blk["conv1"], 3, 3, stride, 1, out_c, relu=True)
    if "down" in blk:
        identity = conv_apply(x, blk["down"], 1, 1, stride, 0, out_c, relu=False)
    # conv2 + bn2 + residual-add + relu fused in one Pallas matmul epilogue.
    out = conv_apply(out, blk["conv2"], 3, 3, 1, 1, out_c, relu=True,
                     residual=identity)
    return out


def resnet18_forward(prep, x_nchw):
    # layout: NCHW (PyTorch) -> NHWC internally; hidden activations in bf16.
    x = jnp.transpose(x_nchw, (0, 2, 3, 1)).astype(jnp.bfloat16)
    x = conv_apply(x, prep["conv1"], 7, 7, 2, 3, 64, relu=True)
    x = maxpool_3x3_s2(x)
    for blocks, (out_c, stride) in zip(prep["layers"],
                                       [(64, 1), (128, 2), (256, 2), (512, 2)]):
        for bi, blk in enumerate(blocks):
            x = basic_block(x, blk, stride if bi == 0 else 1, out_c)
    feat = global_avgpool(x)                     # resnet18.fc == Identity -> [B, 512]
    B = feat.shape[0]
    # logistic_regression: Linear(512, 1) (bias-only epilogue, f32 logits).
    logits = fused_matmul(feat, prep["fc"]["w"], prep["fc"]["bias"],
                          residual=None, relu=False, out_dtype=jnp.float32)
    return logits[:B, :1]                        # [B, 1]


# TODO(synk): torchvision preprocessing transforms (Resize(224)/ToTensor) are
# data-loading utilities, not part of Module.forward, and are not implemented.

if __name__ == "__main__":
    root = jax.random.PRNGKey(0)
    kp, kx = jax.random.split(root)
    raw_params = build_params(kp)
    prep = prepare_params(raw_params)            # one-time weight packing
    x = jax.random.normal(kx, (2, 3, 32, 32), jnp.float32)  # NCHW

    fwd = jax.jit(resnet18_forward)
    out = fwd(prep, x)
    out = jax.block_until_ready(out)

    assert out.shape == (2, 1), out.shape
    assert out.dtype == jnp.float32
    print("KERNEL_OK")
</pallas_src>

<mosaic_0001>
module attributes {stable_mosaic.version = 11 : i64} {
  func.func @_fused_matmul_kernel(%arg0: i32, %arg1: i32, %arg2: i32, %arg3: memref<128x256xbf16, #tpu.memory_space<vmem>>, %arg4: memref<256x128xbf16, #tpu.memory_space<vmem>>, %arg5: memref<1x128xf32, #tpu.memory_space<vmem>>, %arg6: memref<128x128xbf16, #tpu.memory_space<vmem>>, %arg7: memref<128x128xf32, #tpu.memory_space<vmem>>) attributes {dimension_semantics = [#tpu.dimension_semantics<parallel>, #tpu.dimension_semantics<parallel>, #tpu.dimension_semantics<arbitrary>], iteration_bounds = array<i64: 4, 1, 1>, scalar_prefetch = 0 : i64, scratch_operands = 1 : i64, tpu.core_type = #tpu.core_type<tc>, window_params = [{transform_indices = @transform_0, window_bounds = array<i64: 128, 256>}, {transform_indices = @transform_1, window_bounds = array<i64: 256, 128>}, {transform_indices = @transform_2, window_bounds = array<i64: 1, 128>}, {transform_indices = @transform_3, window_bounds = array<i64: 128, 128>}]} {
    %c0_i32 = arith.constant 0 : i32
    %0 = arith.cmpi eq, %arg2, %c0_i32 : i32
    %1 = arith.extui %0 : i1 to i32
    %c0_i32_0 = arith.constant 0 : i32
    %2 = arith.cmpi ne, %1, %c0_i32_0 : i32
    scf.if %2 {
      %cst_10 = arith.constant 0.000000e+00 : f32
      %12 = vector.broadcast %cst_10 : f32 to vector<128x128xf32>
      %c0_11 = arith.constant 0 : index
      %c0_12 = arith.constant 0 : index
      %13 = vector.load %arg7[%c0_11, %c0_12] : memref<128x128xf32, #tpu.memory_space<vmem>>, vector<128x128xf32>
      tpu.vector_store %arg7[%c0_11, %c0_12], %12 {strides = array<i32>} : memref<128x128xf32, #tpu.memory_space<vmem>>, vector<128x128xf32>,
    } else {
    }
    %c0 = arith.constant 0 : index
    %c0_1 = arith.constant 0 : index
    %3 = vector.load %arg7[%c0, %c0_1] : memref<128x128xf32, #tpu.memory_space<vmem>>, vector<128x128xf32>
    %c0_2 = arith.constant 0 : index
    %c0_3 = arith.constant 0 : index
    %4 = vector.load %arg3[%c0_2, %c0_3] : memref<128x256xbf16, #tpu.memory_space<vmem>>, vector<128x256xbf16>
    %c0_4 = arith.constant 0 : index
    %c0_5 = arith.constant 0 : index
    %5 = vector.load %arg4[%c0_4, %c0_5] : memref<256x128xbf16, #tpu.memory_space<vmem>>, vector<256x128xbf16>
    %cst = arith.constant dense<0.000000e+00> : vector<128x128xf32>
    %6 = tpu.matmul %4, %5, %cst {dimension_numbers = #tpu.dot_dimension_numbers<[1], [0], [0], [1], [0, 0, 1, 1], [], []>} : vector<128x256xbf16>, vector<256x128xbf16>, vector<128x128xf32> -> vector<128x128xf32>
    %7 = arith.addf %3, %6 : vector<128x128xf32>
    %c0_6 = arith.constant 0 : index
    %c0_7 = arith.constant 0 : index
    %8 = vector.load %arg7[%c0_6, %c0_7] : memref<128x128xf32, #tpu.memory_space<vmem>>, vector<128x128xf32>
    tpu.vector_store %arg7[%c0_6, %c0_7], %7 {strides = array<i32>} : memref<128x128xf32, #tpu.memory_space<vmem>>, vector<128x128xf32>,
    %c0_i32_8 = arith.constant 0 : i32
    %9 = arith.cmpi eq, %arg2, %c0_i32_8 : i32
    %10 = arith.extui %9 : i1 to i32
    %c0_i32_9 = arith.constant 0 : i32
    %11 = arith.cmpi ne, %10, %c0_i32_9 : i32
    scf.if %11 {
      %c0_10 = arith.constant 0 : index
      %c0_11 = arith.constant 0 : index
      %12 = vector.load %arg7[%c0_10, %c0_11] : memref<128x128xf32, #tpu.memory_space<vmem>>, vector<128x128xf32>
      %c0_12 = arith.constant 0 : index
      %c0_13 = arith.constant 0 : index
      %13 = vector.load %arg5[%c0_12, %c0_13] : memref<1x128xf32, #tpu.memory_space<vmem>>, vector<1x128xf32>
      %14 = vector.broadcast %13 : vector<1x128xf32> to vector<128x128xf32>
      %15 = arith.addf %12, %14 : vector<128x128xf32>
      %cst_14 = arith.constant 0.000000e+00 : f32
      %16 = vector.broadcast %cst_14 : f32 to vector<128x128xf32>
      %17 = arith.maximumf %15, %16 : vector<128x128xf32>
      %18 = arith.truncf %17 : vector<128x128xf32> to vector<128x128xbf16>
      %c0_15 = arith.constant 0 : index
      %c0_16 = arith.constant 0 : index
      %19 = vector.load %arg6[%c0_15, %c0_16] : memref<128x128xbf16, #tpu.memory_space<vmem>>, vector<128x128xbf16>
      tpu.vector_store %arg6[%c0_15, %c0_16], %18 {strides = array<i32>} : memref<128x128xbf16, #tpu.memory_space<vmem>>, vector<128x128xbf16>,
    } else {
    }
    return
  }
  func.func @transform_0(%arg0: i32, %arg1: i32, %arg2: i32) -> (i32, i32) {
    %c0_i32 = arith.constant 0 : i32
    return %arg0, %arg2 : i32, i32
  }
  func.func @transform_1(%arg0: i32, %arg1: i32, %arg2: i32) -> (i32, i32) {
    %c0_i32 = arith.constant 0 : i32
    return %arg2, %arg1 : i32, i32
  }
  func.func @transform_2(%arg0: i32, %arg1: i32, %arg2: i32) -> (i32, i32) {
    %c0_i32 = arith.constant 0 : i32
    %c0_i32_0 = arith.constant 0 : i32
    return %c0_i32, %arg1 : i32, i32
  }
  func.func @transform_3(%arg0: i32, %arg1: i32, %arg2: i32) -> (i32, i32) {
    %c0_i32 = arith.constant 0 : i32
    return %arg0, %arg1 : i32, i32
  }
}

module attributes {stable_mosaic.version = 11 : i64} {
  func.func @_maxpool_kernel(%arg0: i32, %arg1: memref<1x9x2x9x128xbf16, #tpu.memory_space<vmem>>, %arg2: memref<1x8x8x64xbf16, #tpu.memory_space<vmem>>) attributes {dimension_semantics = [#tpu.dimension_semantics<parallel>], iteration_bounds = array<i64: 2>, scalar_prefetch = 0 : i64, scratch_operands = 0 : i64, tpu.core_type = #tpu.core_type<tc>, window_params = [{transform_indices = @transform_0, window_bounds = array<i64: 1, 9, 2, 9, 128>}, {transform_indices = @transform_1, window_bounds = array<i64: 1, 8, 8, 64>}]} {
    %c0_i32 = arith.constant 0 : i32
    %c8_i32 = arith.constant 8 : i32
    %0 = arith.addi %c0_i32, %c8_i32 : i32
    %c1_i32 = arith.constant 1 : i32
    scf.for %arg3 = %c0_i32 to %0 step %c1_i32  : i32 {
      %c0 = arith.constant 0 : index
      %1 = arith.index_cast %arg3 : i32 to index
      %c0_1 = arith.constant 0 : index
      %c0_2 = arith.constant 0 : index
      %c0_3 = arith.constant 0 : index
      %2 = vector.load %arg1[%c0, %1, %c0_1, %c0_2, %c0_3] : memref<1x9x2x9x128xbf16, #tpu.memory_space<vmem>>, vector<1x1x1x9x128xbf16>
      %3 = vector.shape_cast %2 : vector<1x1x1x9x128xbf16> to vector<9x128xbf16>
      %c0_4 = arith.constant 0 : index
      %4 = arith.index_cast %arg3 : i32 to index
      %c1 = arith.constant 1 : index
      %c0_5 = arith.constant 0 : index
      %c0_6 = arith.constant 0 : index
      %5 = vector.load %arg1[%c0_4, %4, %c1, %c0_5, %c0_6] : memref<1x9x2x9x128xbf16, #tpu.memory_space<vmem>>, vector<1x1x1x9x128xbf16>
      %6 = vector.shape_cast %5 : vector<1x1x1x9x128xbf16> to vector<9x128xbf16>
      %c1_i32_7 = arith.constant 1 : i32
      %7 = arith.addi %arg3, %c1_i32_7 : i32
      %c0_8 = arith.constant 0 : index
      %8 = arith.index_cast %7 : i32 to index
      %c0_9 = arith.constant 0 : index
      %c0_10 = arith.constant 0 : index
      %c0_11 = arith.constant 0 : index
      %9 = vector.load %arg1[%c0_8, %8, %c0_9, %c0_10, %c0_11] : memref<1x9x2x9x128xbf16, #tpu.memory_space<vmem>>, vector<1x1x1x9x128xbf16>
      %10 = vector.shape_cast %9 : vector<1x1x1x9x128xbf16> to vector<9x128xbf16>
      %11 = arith.maximumf %3, %6 : vector<9x128xbf16>
      %12 = arith.maximumf %11, %10 : vector<9x128xbf16>
      %13 = vector.extract_strided_slice %12 {offsets = [0, 0], sizes = [8, 64], strides = [1, 1]} : vector<9x128xbf16> to vector<8x64xbf16>
      %14 = vector.extract_strided_slice %12 {offsets = [0, 64], sizes = [8, 64], strides = [1, 1]} : vector<9x128xbf16> to vector<8x64xbf16>
      %15 = vector.extract_strided_slice %12 {offsets = [1, 0], sizes = [8, 64], strides = [1, 1]} : vector<9x128xbf16> to vector<8x64xbf16>
      %16 = arith.maximumf %13, %14 : vector<8x64xbf16>
      %17 = arith.maximumf %16, %15 : vector<8x64xbf16>
      %c0_12 = arith.constant 0 : index
      %18 = arith.index_cast %arg3 : i32 to index
      %c0_13 = arith.constant 0 : index
      %c0_14 = arith.constant 0 : index
      %19 = vector.load %arg2[%c0_12, %18, %c0_13, %c0_14] : memref<1x8x8x64xbf16, #tpu.memory_space<vmem>>, vector<1x1x8x64xbf16>
      %20 = vector.shape_cast %19 : vector<1x1x8x64xbf16> to vector<8x64xbf16>
      %21 = vector.shape_cast %17 : vector<8x64xbf16> to vector<1x1x8x64xbf16>
      tpu.vector_store %arg2[%c0_12, %18, %c0_13, %c0_14], %21 {strides = array<i32>} : memref<1x8x8x64xbf16, #tpu.memory_space<vmem>>, vector<1x1x8x64xbf16>,
    }
    %c8_i32_0 = arith.constant 8 : i32
    return
  }
  func.func @transform_0(%arg0: i32) -> (i32, i32, i32, i32, i32) {
    %c0_i32 = arith.constant 0 : i32
    %c0_i32_0 = arith.constant 0 : i32
    %c0_i32_1 = arith.constant 0 : i32
    %c0_i32_2 = arith.constant 0 : i32
    %c0_i32_3 = arith.constant 0 : i32
    return %arg0, %c0_i32, %c0_i32_0, %c0_i32_1, %c0_i32_2 : i32, i32, i32, i32, i32
  }
  func.func @transform_1(%arg0: i32) -> (i32, i32, i32, i32) {
    %c0_i32 = arith.constant 0 : i32
    %c0_i32_0 = arith.constant 0 : i32
    %c0_i32_1 = arith.constant 0 : i32
    %c0_i32_2 = arith.constant 0 : i32
    return %arg0, %c0_i32, %c0_i32_0, %c0_i32_1 : i32, i32, i32, i32
  }
}

module attributes {stable_mosaic.version = 11 : i64} {
  func.func @_fused_matmul_kernel(%arg0: i32, %arg1: i32, %arg2: i32, %arg3: memref<128x128xbf16, #tpu.memory_space<vmem>>, %arg4: memref<128x128xbf16, #tpu.memory_space<vmem>>, %arg5: memref<1x128xf32, #tpu.memory_space<vmem>>, %arg6: memref<128x128xbf16, #tpu.memory_space<vmem>>, %arg7: memref<128x128xf32, #tpu.memory_space<vmem>>) attributes {dimension_semantics = [#tpu.dimension_semantics<parallel>, #tpu.dimension_semantics<parallel>, #tpu.dimension_semantics<arbitrary>], iteration_bounds = array<i64: 1, 1, 5>, scalar_prefetch = 0 : i64, scratch_operands = 1 : i64, tpu.core_type = #tpu.core_type<tc>, window_params = [{transform_indices = @transform_0, window_bounds = array<i64: 128, 128>}, {transform_indices = @transform_1, window_bounds = array<i64: 128, 128>}, {transform_indices = @transform_2, window_bounds = array<i64: 1, 128>}, {transform_indices = @transform_3, window_bounds = array<i64: 128, 128>}]} {
    %c0_i32 = arith.constant 0 : i32
    %0 = arith.cmpi eq, %arg2, %c0_i32 : i32
    %1 = arith.extui %0 : i1 to i32
    %c0_i32_0 = arith.constant 0 : i32
    %2 = arith.cmpi ne, %1, %c0_i32_0 : i32
    scf.if %2 {
      %cst_9 = arith.constant 0.000000e+00 : f32
      %12 = vector.broadcast %cst_9 : f32 to vector<128x128xf32>
      %c0_10 = arith.constant 0 : index
      %c0_11 = arith.constant 0 : index
      %13 = vector.load %arg7[%c0_10, %c0_11] : memref<128x128xf32, #tpu.memory_space<vmem>>, vector<128x128xf32>
      tpu.vector_store %arg7[%c0_10, %c0_11], %12 {strides = array<i32>} : memref<128x128xf32, #tpu.memory_space<vmem>>, vector<128x128xf32>,
    } else {
    }
    %c0 = arith.constant 0 : index
    %c0_1 = arith.constant 0 : index
    %3 = vector.load %arg7[%c0, %c0_1] : memref<128x128xf32, #tpu.memory_space<vmem>>, vector<128x128xf32>
    %c0_2 = arith.constant 0 : index
    %c0_3 = arith.constant 0 : index
    %4 = vector.load %arg3[%c0_2, %c0_3] : memref<128x128xbf16, #tpu.memory_space<vmem>>, vector<128x128xbf16>
    %c0_4 = arith.constant 0 : index
    %c0_5 = arith.constant 0 : index
    %5 = vector.load %arg4[%c0_4, %c0_5] : memref<128x128xbf16, #tpu.memory_space<vmem>>, vector<128x128xbf16>
    %cst = arith.constant dense<0.000000e+00> : vector<128x128xf32>
    %6 = tpu.matmul %4, %5, %cst {dimension_numbers = #tpu.dot_dimension_numbers<[1], [0], [0], [1], [0, 0, 1, 1], [], []>} : vector<128x128xbf16>, vector<128x128xbf16>, vector<128x128xf32> -> vector<128x128xf32>
    %7 = arith.addf %3, %6 : vector<128x128xf32>
    %c0_6 = arith.constant 0 : index
    %c0_7 = arith.constant 0 : index
    %8 = vector.load %arg7[%c0_6, %c0_7] : memref<128x128xf32, #tpu.memory_space<vmem>>, vector<128x128xf32>
    tpu.vector_store %arg7[%c0_6, %c0_7], %7 {strides = array<i32>} : memref<128x128xf32, #tpu.memory_space<vmem>>, vector<128x128xf32>,
    %c4_i32 = arith.constant 4 : i32
    %9 = arith.cmpi eq, %arg2, %c4_i32 : i32
    %10 = arith.extui %9 : i1 to i32
    %c0_i32_8 = arith.constant 0 : i32
    %11 = arith.cmpi ne, %10, %c0_i32_8 : i32
    scf.if %11 {
      %c0_9 = arith.constant 0 : index
      %c0_10 = arith.constant 0 : index
      %12 = vector.load %arg7[%c0_9, %c0_10] : memref<128x128xf32, #tpu.memory_space<vmem>>, vector<128x128xf32>
      %c0_11 = arith.constant 0 : index
      %c0_12 = arith.constant 0 : index
      %13 = vector.load %arg5[%c0_11, %c0_12] : memref<1x128xf32, #tpu.memory_space<vmem>>, vector<1x128xf32>
      %14 = vector.broadcast %13 : vector<1x128xf32> to vector<128x128xf32>
      %15 = arith.addf %12, %14 : vector<128x128xf32>
      %cst_13 = arith.constant 0.000000e+00 : f32
      %16 = vector.broadcast %cst_13 : f32 to vector<128x128xf32>
      %17 = arith.maximumf %15, %16 : vector<128x128xf32>
      %18 = arith.truncf %17 : vector<128x128xf32> to vector<128x128xbf16>
      %c0_14 = arith.constant 0 : index
      %c0_15 = arith.constant 0 : index
      %19 = vector.load %arg6[%c0_14, %c0_15] : memref<128x128xbf16, #tpu.memory_space<vmem>>, vector<128x128xbf16>
      tpu.vector_store %arg6[%c0_14, %c0_15], %18 {strides = array<i32>} : memref<128x128xbf16, #tpu.memory_space<vmem>>, vector<128x128xbf16>,
    } else {
    }
    return
  }
  func.func @transform_0(%arg0: i32, %arg1: i32, %arg2: i32) -> (i32, i32) {
    %c0_i32 = arith.constant 0 : i32
    return %arg0, %arg2 : i32, i32
  }
  func.func @transform_1(%arg0: i32, %arg1: i32, %arg2: i32) -> (i32, i32) {
    %c0_i32 = arith.constant 0 : i32
    return %arg2, %arg1 : i32, i32
  }
  func.func @transform_2(%arg0: i32, %arg1: i32, %arg2: i32) -> (i32, i32) {
    %c0_i32 = arith.constant 0 : i32
    %c0_i32_0 = arith.constant 0 : i32
    return %c0_i32, %arg1 : i32, i32
  }
  func.func @transform_3(%arg0: i32, %arg1: i32, %arg2: i32) -> (i32, i32) {
    %c0_i32 = arith.constant 0 : i32
    return %arg0, %arg1 : i32, i32
  }
}

module attributes {stable_mosaic.version = 11 : i64} {
  func.func @_fused_matmul_kernel(%arg0: i32, %arg1: i32, %arg2: i32, %arg3: memref<128x128xbf16, #tpu.memory_space<vmem>>, %arg4: memref<128x128xbf16, #tpu.memory_space<vmem>>, %arg5: memref<1x128xf32, #tpu.memory_space<vmem>>, %arg6: memref<128x128xbf16, #tpu.memory_space<vmem>>, %arg7: memref<128x128xbf16, #tpu.memory_space<vmem>>, %arg8: memref<128x128xf32, #tpu.memory_space<vmem>>) attributes {dimension_semantics = [#tpu.dimension_semantics<parallel>, #tpu.dimension_semantics<parallel>, #tpu.dimension_semantics<arbitrary>], iteration_bounds = array<i64: 1, 1, 5>, scalar_prefetch = 0 : i64, scratch_operands = 1 : i64, tpu.core_type = #tpu.core_type<tc>, window_params = [{transform_indices = @transform_0, window_bounds = array<i64: 128, 128>}, {transform_indices = @transform_1, window_bounds = array<i64: 128, 128>}, {transform_indices = @transform_2, window_bounds = array<i64: 1, 128>}, {transform_indices = @transform_3, window_bounds = array<i64: 128, 128>}, {transform_indices = @transform_4, window_bounds = array<i64: 128, 128>}]} {
    %c0_i32 = arith.constant 0 : i32
    %0 = arith.cmpi eq, %arg2, %c0_i32 : i32
    %1 = arith.extui %0 : i1 to i32
    %c0_i32_0 = arith.constant 0 : i32
    %2 = arith.cmpi ne, %1, %c0_i32_0 : i32
    scf.if %2 {
      %cst_9 = arith.constant 0.000000e+00 : f32
      %12 = vector.broadcast %cst_9 : f32 to vector<128x128xf32>
      %c0_10 = arith.constant 0 : index
      %c0_11 = arith.constant 0 : index
      %13 = vector.load %arg8[%c0_10, %c0_11] : memref<128x128xf32, #tpu.memory_space<vmem>>, vector<128x128xf32>
      tpu.vector_store %arg8[%c0_10, %c0_11], %12 {strides = array<i32>} : memref<128x128xf32, #tpu.memory_space<vmem>>, vector<128x128xf32>,
    } else {
    }
    %c0 = arith.constant 0 : index
    %c0_1 = arith.constant 0 : index
    %3 = vector.load %arg8[%c0, %c0_1] : memref<128x128xf32, #tpu.memory_space<vmem>>, vector<128x128xf32>
    %c0_2 = arith.constant 0 : index
    %c0_3 = arith.constant 0 : index
    %4 = vector.load %arg3[%c0_2, %c0_3] : memref<128x128xbf16, #tpu.memory_space<vmem>>, vector<128x128xbf16>
    %c0_4 = arith.constant 0 : index
    %c0_5 = arith.constant 0 : index
    %5 = vector.load %arg4[%c0_4, %c0_5] : memref<128x128xbf16, #tpu.memory_space<vmem>>, vector<128x128xbf16>
    %cst = arith.constant dense<0.000000e+00> : vector<128x128xf32>
    %6 = tpu.matmul %4, %5, %cst {dimension_numbers = #tpu.dot_dimension_numbers<[1], [0], [0], [1], [0, 0, 1, 1], [], []>} : vector<128x128xbf16>, vector<128x128xbf16>, vector<128x128xf32> -> vector<128x128xf32>
    %7 = arith.addf %3, %6 : vector<128x128xf32>
    %c0_6 = arith.constant 0 : index
    %c0_7 = arith.constant 0 : index
    %8 = vector.load %arg8[%c0_6, %c0_7] : memref<128x128xf32, #tpu.memory_space<vmem>>, vector<128x128xf32>
    tpu.vector_store %arg8[%c0_6, %c0_7], %7 {strides = array<i32>} : memref<128x128xf32, #tpu.memory_space<vmem>>, vector<128x128xf32>,
    %c4_i32 = arith.constant 4 : i32
    %9 = arith.cmpi eq, %arg2, %c4_i32 : i32
    %10 = arith.extui %9 : i1 to i32
    %c0_i32_8 = arith.constant 0 : i32
    %11 = arith.cmpi ne, %10, %c0_i32_8 : i32
    scf.if %11 {
      %c0_9 = arith.constant 0 : index
      %c0_10 = arith.constant 0 : index
      %12 = vector.load %arg8[%c0_9, %c0_10] : memref<128x128xf32, #tpu.memory_space<vmem>>, vector<128x128xf32>
      %c0_11 = arith.constant 0 : index
      %c0_12 = arith.constant 0 : index
      %13 = vector.load %arg5[%c0_11, %c0_12] : memref<1x128xf32, #tpu.memory_space<vmem>>, vector<1x128xf32>
      %14 = vector.broadcast %13 : vector<1x128xf32> to vector<128x128xf32>
      %15 = arith.addf %12, %14 : vector<128x128xf32>
      %c0_13 = arith.constant 0 : index
      %c0_14 = arith.constant 0 : index
      %16 = vector.load %arg6[%c0_13, %c0_14] : memref<128x128xbf16, #tpu.memory_space<vmem>>, vector<128x128xbf16>
      %17 = arith.extf %16 : vector<128x128xbf16> to vector<128x128xf32>
      %18 = arith.addf %15, %17 : vector<128x128xf32>
      %cst_15 = arith.constant 0.000000e+00 : f32
      %19 = vector.broadcast %cst_15 : f32 to vector<128x128xf32>
      %20 = arith.maximumf %18, %19 : vector<128x128xf32>
      %21 = arith.truncf %20 : vector<128x128xf32> to vector<128x128xbf16>
      %c0_16 = arith.constant 0 : index
      %c0_17 = arith.constant 0 : index
      %22 = vector.load %arg7[%c0_16, %c0_17] : memref<128x128xbf16, #tpu.memory_space<vmem>>, vector<128x128xbf16>
      tpu.vector_store %arg7[%c0_16, %c0_17], %21 {strides = array<i32>} : memref<128x128xbf16, #tpu.memory_space<vmem>>, vector<128x128xbf16>,
    } else {
    }
    return
  }
  func.func @transform_0(%arg0: i32, %arg1: i32, %arg2: i32) -> (i32, i32) {
    %c0_i32 = arith.constant 0 : i32
    return %arg0, %arg2 : i32, i32
  }
  func.func @transform_1(%arg0: i32, %arg1: i32, %arg2: i32) -> (i32, i32) {
    %c0_i32 = arith.constant 0 : i32
    return %arg2, %arg1 : i32, i32
  }
  func.func @transform_2(%arg0: i32, %arg1: i32, %arg2: i32) -> (i32, i32) {
    %c0_i32 = arith.constant 0 : i32
    %c0_i32_0 = arith.constant 0 : i32
    return %c0_i32, %arg1 : i32, i32
  }
  func.func @transform_3(%arg0: i32, %arg1: i32, %arg2: i32) -> (i32, i32) {
    %c0_i32 = arith.constant 0 : i32
    return %arg0, %arg1 : i32, i32
  }
  func.func @transform_4(%arg0: i32, %arg1: i32, %arg2: i32) -> (i32, i32) {
    %c0_i32 = arith.constant 0 : i32
    return %arg0, %arg1 : i32, i32
  }
}

module attributes {stable_mosaic.version = 11 : i64} {
  func.func @_fused_matmul_kernel(%arg0: i32, %arg1: i32, %arg2: i32, %arg3: memref<32x128xbf16, #tpu.memory_space<vmem>>, %arg4: memref<128x128xbf16, #tpu.memory_space<vmem>>, %arg5: memref<1x128xf32, #tpu.memory_space<vmem>>, %arg6: memref<32x128xbf16, #tpu.memory_space<vmem>>, %arg7: memref<32x128xf32, #tpu.memory_space<vmem>>) attributes {dimension_semantics = [#tpu.dimension_semantics<parallel>, #tpu.dimension_semantics<parallel>, #tpu.dimension_semantics<arbitrary>], iteration_bounds = array<i64: 1, 1, 5>, scalar_prefetch = 0 : i64, scratch_operands = 1 : i64, tpu.core_type = #tpu.core_type<tc>, window_params = [{transform_indices = @transform_0, window_bounds = array<i64: 32, 128>}, {transform_indices = @transform_1, window_bounds = array<i64: 128, 128>}, {transform_indices = @transform_2, window_bounds = array<i64: 1, 128>}, {transform_indices = @transform_3, window_bounds = array<i64: 32, 128>}]} {
    %c0_i32 = arith.constant 0 : i32
    %0 = arith.cmpi eq, %arg2, %c0_i32 : i32
    %1 = arith.extui %0 : i1 to i32
    %c0_i32_0 = arith.constant 0 : i32
    %2 = arith.cmpi ne, %1, %c0_i32_0 : i32
    scf.if %2 {
      %cst_9 = arith.constant 0.000000e+00 : f32
      %12 = vector.broadcast %cst_9 : f32 to vector<32x128xf32>
      %c0_10 = arith.constant 0 : index
      %c0_11 = arith.constant 0 : index
      %13 = vector.load %arg7[%c0_10, %c0_11] : memref<32x128xf32, #tpu.memory_space<vmem>>, vector<32x128xf32>
      tpu.vector_store %arg7[%c0_10, %c0_11], %12 {strides = array<i32>} : memref<32x128xf32, #tpu.memory_space<vmem>>, vector<32x128xf32>,
    } else {
    }
    %c0 = arith.constant 0 : index
    %c0_1 = arith.constant 0 : index
    %3 = vector.load %arg7[%c0, %c0_1] : memref<32x128xf32, #tpu.memory_space<vmem>>, vector<32x128xf32>
    %c0_2 = arith.constant 0 : index
    %c0_3 = arith.constant 0 : index
    %4 = vector.load %arg3[%c0_2, %c0_3] : memref<32x128xbf16, #tpu.memory_space<vmem>>, vector<32x128xbf16>
    %c0_4 = arith.constant 0 : index
    %c0_5 = arith.constant 0 : index
    %5 = vector.load %arg4[%c0_4, %c0_5] : memref<128x128xbf16, #tpu.memory_space<vmem>>, vector<128x128xbf16>
    %cst = arith.constant dense<0.000000e+00> : vector<32x128xf32>
    %6 = tpu.matmul %4, %5, %cst {dimension_numbers = #tpu.dot_dimension_numbers<[1], [0], [0], [1], [0, 0, 1, 1], [], []>} : vector<32x128xbf16>, vector<128x128xbf16>, vector<32x128xf32> -> vector<32x128xf32>
    %7 = arith.addf %3, %6 : vector<32x128xf32>
    %c0_6 = arith.constant 0 : index
    %c0_7 = arith.constant 0 : index
    %8 = vector.load %arg7[%c0_6, %c0_7] : memref<32x128xf32, #tpu.memory_space<vmem>>, vector<32x128xf32>
    tpu.vector_store %arg7[%c0_6, %c0_7], %7 {strides = array<i32>} : memref<32x128xf32, #tpu.memory_space<vmem>>, vector<32x128xf32>,
    %c4_i32 = arith.constant 4 : i32
    %9 = arith.cmpi eq, %arg2, %c4_i32 : i32
    %10 = arith.extui %9 : i1 to i32
    %c0_i32_8 = arith.constant 0 : i32
    %11 = arith.cmpi ne, %10, %c0_i32_8 : i32
    scf.if %11 {
      %c0_9 = arith.constant 0 : index
      %c0_10 = arith.constant 0 : index
      %12 = vector.load %arg7[%c0_9, %c0_10] : memref<32x128xf32, #tpu.memory_space<vmem>>, vector<32x128xf32>
      %c0_11 = arith.constant 0 : index
      %c0_12 = arith.constant 0 : index
      %13 = vector.load %arg5[%c0_11, %c0_12] : memref<1x128xf32, #tpu.memory_space<vmem>>, vector<1x128xf32>
      %14 = vector.broadcast %13 : vector<1x128xf32> to vector<32x128xf32>
      %15 = arith.addf %12, %14 : vector<32x128xf32>
      %cst_13 = arith.constant 0.000000e+00 : f32
      %16 = vector.broadcast %cst_13 : f32 to vector<32x128xf32>
      %17 = arith.maximumf %15, %16 : vector<32x128xf32>
      %18 = arith.truncf %17 : vector<32x128xf32> to vector<32x128xbf16>
      %c0_14 = arith.constant 0 : index
      %c0_15 = arith.constant 0 : index
      %19 = vector.load %arg6[%c0_14, %c0_15] : memref<32x128xbf16, #tpu.memory_space<vmem>>, vector<32x128xbf16>
      tpu.vector_store %arg6[%c0_14, %c0_15], %18 {strides = array<i32>} : memref<32x128xbf16, #tpu.memory_space<vmem>>, vector<32x128xbf16>,
    } else {
    }
    return
  }
  func.func @transform_0(%arg0: i32, %arg1: i32, %arg2: i32) -> (i32, i32) {
    %c0_i32 = arith.constant 0 : i32
    return %arg0, %arg2 : i32, i32
  }
  func.func @transform_1(%arg0: i32, %arg1: i32, %arg2: i32) -> (i32, i32) {
    %c0_i32 = arith.constant 0 : i32
    return %arg2, %arg1 : i32, i32
  }
  func.func @transform_2(%arg0: i32, %arg1: i32, %arg2: i32) -> (i32, i32) {
    %c0_i32 = arith.constant 0 : i32
    %c0_i32_0 = arith.constant 0 : i32
    return %c0_i32, %arg1 : i32, i32
  }
  func.func @transform_3(%arg0: i32, %arg1: i32, %arg2: i32) -> (i32, i32) {
    %c0_i32 = arith.constant 0 : i32
    return %arg0, %arg1 : i32, i32
  }
}

module attributes {stable_mosaic.version = 11 : i64} {
  func.func @_fused_matmul_kernel(%arg0: i32, %arg1: i32, %arg2: i32, %arg3: memref<32x128xbf16, #tpu.memory_space<vmem>>, %arg4: memref<128x128xbf16, #tpu.memory_space<vmem>>, %arg5: memref<1x128xf32, #tpu.memory_space<vmem>>, %arg6: memref<32x128xbf16, #tpu.memory_space<vmem>>, %arg7: memref<32x128xf32, #tpu.memory_space<vmem>>) attributes {dimension_semantics = [#tpu.dimension_semantics<parallel>, #tpu.dimension_semantics<parallel>, #tpu.dimension_semantics<arbitrary>], iteration_bounds = array<i64: 1, 1, 1>, scalar_prefetch = 0 : i64, scratch_operands = 1 : i64, tpu.core_type = #tpu.core_type<tc>, window_params = [{transform_indices = @transform_0, window_bounds = array<i64: 32, 128>}, {transform_indices = @transform_1, window_bounds = array<i64: 128, 128>}, {transform_indices = @transform_2, window_bounds = array<i64: 1, 128>}, {transform_indices = @transform_3, window_bounds = array<i64: 32, 128>}]} {
    %c0_i32 = arith.constant 0 : i32
    %0 = arith.cmpi eq, %arg2, %c0_i32 : i32
    %1 = arith.extui %0 : i1 to i32
    %c0_i32_0 = arith.constant 0 : i32
    %2 = arith.cmpi ne, %1, %c0_i32_0 : i32
    scf.if %2 {
      %cst_10 = arith.constant 0.000000e+00 : f32
      %12 = vector.broadcast %cst_10 : f32 to vector<32x128xf32>
      %c0_11 = arith.constant 0 : index
      %c0_12 = arith.constant 0 : index
      %13 = vector.load %arg7[%c0_11, %c0_12] : memref<32x128xf32, #tpu.memory_space<vmem>>, vector<32x128xf32>
      tpu.vector_store %arg7[%c0_11, %c0_12], %12 {strides = array<i32>} : memref<32x128xf32, #tpu.memory_space<vmem>>, vector<32x128xf32>,
    } else {
    }
    %c0 = arith.constant 0 : index
    %c0_1 = arith.constant 0 : index
    %3 = vector.load %arg7[%c0, %c0_1] : memref<32x128xf32, #tpu.memory_space<vmem>>, vector<32x128xf32>
    %c0_2 = arith.constant 0 : index
    %c0_3 = arith.constant 0 : index
    %4 = vector.load %arg3[%c0_2, %c0_3] : memref<32x128xbf16, #tpu.memory_space<vmem>>, vector<32x128xbf16>
    %c0_4 = arith.constant 0 : index
    %c0_5 = arith.constant 0 : index
    %5 = vector.load %arg4[%c0_4, %c0_5] : memref<128x128xbf16, #tpu.memory_space<vmem>>, vector<128x128xbf16>
    %cst = arith.constant dense<0.000000e+00> : vector<32x128xf32>
    %6 = tpu.matmul %4, %5, %cst {dimension_numbers = #tpu.dot_dimension_numbers<[1], [0], [0], [1], [0, 0, 1, 1], [], []>} : vector<32x128xbf16>, vector<128x128xbf16>, vector<32x128xf32> -> vector<32x128xf32>
    %7 = arith.addf %3, %6 : vector<32x128xf32>
    %c0_6 = arith.constant 0 : index
    %c0_7 = arith.constant 0 : index
    %8 = vector.load %arg7[%c0_6, %c0_7] : memref<32x128xf32, #tpu.memory_space<vmem>>, vector<32x128xf32>
    tpu.vector_store %arg7[%c0_6, %c0_7], %7 {strides = array<i32>} : memref<32x128xf32, #tpu.memory_space<vmem>>, vector<32x128xf32>,
    %c0_i32_8 = arith.constant 0 : i32
    %9 = arith.cmpi eq, %arg2, %c0_i32_8 : i32
    %10 = arith.extui %9 : i1 to i32
    %c0_i32_9 = arith.constant 0 : i32
    %11 = arith.cmpi ne, %10, %c0_i32_9 : i32
    scf.if %11 {
      %c0_10 = arith.constant 0 : index
      %c0_11 = arith.constant 0 : index
      %12 = vector.load %arg7[%c0_10, %c0_11] : memref<32x128xf32, #tpu.memory_space<vmem>>, vector<32x128xf32>
      %c0_12 = arith.constant 0 : index
      %c0_13 = arith.constant 0 : index
      %13 = vector.load %arg5[%c0_12, %c0_13] : memref<1x128xf32, #tpu.memory_space<vmem>>, vector<1x128xf32>
      %14 = vector.broadcast %13 : vector<1x128xf32> to vector<32x128xf32>
      %15 = arith.addf %12, %14 : vector<32x128xf32>
      %16 = arith.truncf %15 : vector<32x128xf32> to vector<32x128xbf16>
      %c0_14 = arith.constant 0 : index
      %c0_15 = arith.constant 0 : index
      %17 = vector.load %arg6[%c0_14, %c0_15] : memref<32x128xbf16, #tpu.memory_space<vmem>>, vector<32x128xbf16>
      tpu.vector_store %arg6[%c0_14, %c0_15], %16 {strides = array<i32>} : memref<32x128xbf16, #tpu.memory_space<vmem>>, vector<32x128xbf16>,
    } else {
    }
    return
  }
  func.func @transform_0(%arg0: i32, %arg1: i32, %arg2: i32) -> (i32, i32) {
    %c0_i32 = arith.constant 0 : i32
    return %arg0, %arg2 : i32, i32
  }
  func.func @transform_1(%arg0: i32, %arg1: i32, %arg2: i32) -> (i32, i32) {
    %c0_i32 = arith.constant 0 : i32
    return %arg2, %arg1 : i32, i32
  }
  func.func @transform_2(%arg0: i32, %arg1: i32, %arg2: i32) -> (i32, i32) {
    %c0_i32 = arith.constant 0 : i32
    %c0_i32_0 = arith.constant 0 : i32
    return %c0_i32, %arg1 : i32, i32
  }
  func.func @transform_3(%arg0: i32, %arg1: i32, %arg2: i32) -> (i32, i32) {
    %c0_i32 = arith.constant 0 : i32
    return %arg0, %arg1 : i32, i32
  }
}

module attributes {stable_mosaic.version = 11 : i64} {
  func.func @_fused_matmul_kernel(%arg0: i32, %arg1: i32, %arg2: i32, %arg3: memref<32x128xbf16, #tpu.memory_space<vmem>>, %arg4: memref<128x128xbf16, #tpu.memory_space<vmem>>, %arg5: memref<1x128xf32, #tpu.memory_space<vmem>>, %arg6: memref<32x128xbf16, #tpu.memory_space<vmem>>, %arg7: memref<32x128xbf16, #tpu.memory_space<vmem>>, %arg8: memref<32x128xf32, #tpu.memory_space<vmem>>) attributes {dimension_semantics = [#tpu.dimension_semantics<parallel>, #tpu.dimension_semantics<parallel>, #tpu.dimension_semantics<arbitrary>], iteration_bounds = array<i64: 1, 1, 9>, scalar_prefetch = 0 : i64, scratch_operands = 1 : i64, tpu.core_type = #tpu.core_type<tc>, window_params = [{transform_indices = @transform_0, window_bounds = array<i64: 32, 128>}, {transform_indices = @transform_1, window_bounds = array<i64: 128, 128>}, {transform_indices = @transform_2, window_bounds = array<i64: 1, 128>}, {transform_indices = @transform_3, window_bounds = array<i64: 32, 128>}, {transform_indices = @transform_4, window_bounds = array<i64: 32, 128>}]} {
    %c0_i32 = arith.constant 0 : i32
    %0 = arith.cmpi eq, %arg2, %c0_i32 : i32
    %1 = arith.extui %0 : i1 to i32
    %c0_i32_0 = arith.constant 0 : i32
    %2 = arith.cmpi ne, %1, %c0_i32_0 : i32
    scf.if %2 {
      %cst_9 = arith.constant 0.000000e+00 : f32
      %12 = vector.broadcast %cst_9 : f32 to vector<32x128xf32>
      %c0_10 = arith.constant 0 : index
      %c0_11 = arith.constant 0 : index
      %13 = vector.load %arg8[%c0_10, %c0_11] : memref<32x128xf32, #tpu.memory_space<vmem>>, vector<32x128xf32>
      tpu.vector_store %arg8[%c0_10, %c0_11], %12 {strides = array<i32>} : memref<32x128xf32, #tpu.memory_space<vmem>>, vector<32x128xf32>,
    } else {
    }
    %c0 = arith.constant 0 : index
    %c0_1 = arith.constant 0 : index
    %3 = vector.load %arg8[%c0, %c0_1] : memref<32x128xf32, #tpu.memory_space<vmem>>, vector<32x128xf32>
    %c0_2 = arith.constant 0 : index
    %c0_3 = arith.constant 0 : index
    %4 = vector.load %arg3[%c0_2, %c0_3] : memref<32x128xbf16, #tpu.memory_space<vmem>>, vector<32x128xbf16>
    %c0_4 = arith.constant 0 : index
    %c0_5 = arith.constant 0 : index
    %5 = vector.load %arg4[%c0_4, %c0_5] : memref<128x128xbf16, #tpu.memory_space<vmem>>, vector<128x128xbf16>
    %cst = arith.constant dense<0.000000e+00> : vector<32x128xf32>
    %6 = tpu.matmul %4, %5, %cst {dimension_numbers = #tpu.dot_dimension_numbers<[1], [0], [0], [1], [0, 0, 1, 1], [], []>} : vector<32x128xbf16>, vector<128x128xbf16>, vector<32x128xf32> -> vector<32x128xf32>
    %7 = arith.addf %3, %6 : vector<32x128xf32>
    %c0_6 = arith.constant 0 : index
    %c0_7 = arith.constant 0 : index
    %8 = vector.load %arg8[%c0_6, %c0_7] : memref<32x128xf32, #tpu.memory_space<vmem>>, vector<32x128xf32>
    tpu.vector_store %arg8[%c0_6, %c0_7], %7 {strides = array<i32>} : memref<32x128xf32, #tpu.memory_space<vmem>>, vector<32x128xf32>,
    %c8_i32 = arith.constant 8 : i32
    %9 = arith.cmpi eq, %arg2, %c8_i32 : i32
    %10 = arith.extui %9 : i1 to i32
    %c0_i32_8 = arith.constant 0 : i32
    %11 = arith.cmpi ne, %10, %c0_i32_8 : i32
    scf.if %11 {
      %c0_9 = arith.constant 0 : index
      %c0_10 = arith.constant 0 : index
      %12 = vector.load %arg8[%c0_9, %c0_10] : memref<32x128xf32, #tpu.memory_space<vmem>>, vector<32x128xf32>
      %c0_11 = arith.constant 0 : index
      %c0_12 = arith.constant 0 : index
      %13 = vector.load %arg5[%c0_11, %c0_12] : memref<1x128xf32, #tpu.memory_space<vmem>>, vector<1x128xf32>
      %14 = vector.broadcast %13 : vector<1x128xf32> to vector<32x128xf32>
      %15 = arith.addf %12, %14 : vector<32x128xf32>
      %c0_13 = arith.constant 0 : index
      %c0_14 = arith.constant 0 : index
      %16 = vector.load %arg6[%c0_13, %c0_14] : memref<32x128xbf16, #tpu.memory_space<vmem>>, vector<32x128xbf16>
      %17 = arith.extf %16 : vector<32x128xbf16> to vector<32x128xf32>
      %18 = arith.addf %15, %17 : vector<32x128xf32>
      %cst_15 = arith.constant 0.000000e+00 : f32
      %19 = vector.broadcast %cst_15 : f32 to vector<32x128xf32>
      %20 = arith.maximumf %18, %19 : vector<32x128xf32>
      %21 = arith.truncf %20 : vector<32x128xf32> to vector<32x128xbf16>
      %c0_16 = arith.constant 0 : index
      %c0_17 = arith.constant 0 : index
      %22 = vector.load %arg7[%c0_16, %c0_17] : memref<32x128xbf16, #tpu.memory_space<vmem>>, vector<32x128xbf16>
      tpu.vector_store %arg7[%c0_16, %c0_17], %21 {strides = array<i32>} : memref<32x128xbf16, #tpu.memory_space<vmem>>, vector<32x128xbf16>,
    } else {
    }
    return
  }
  func.func @transform_0(%arg0: i32, %arg1: i32, %arg2: i32) -> (i32, i32) {
    %c0_i32 = arith.constant 0 : i32
    return %arg0, %arg2 : i32, i32
  }
  func.func @transform_1(%arg0: i32, %arg1: i32, %arg2: i32) -> (i32, i32) {
    %c0_i32 = arith.constant 0 : i32
    return %arg2, %arg1 : i32, i32
  }
  func.func @transform_2(%arg0: i32, %arg1: i32, %arg2: i32) -> (i32, i32) {
    %c0_i32 = arith.constant 0 : i32
    %c0_i32_0 = arith.constant 0 : i32
    return %c0_i32, %arg1 : i32, i32
  }
  func.func @transform_3(%arg0: i32, %arg1: i32, %arg2: i32) -> (i32, i32) {
    %c0_i32 = arith.constant 0 : i32
    return %arg0, %arg1 : i32, i32
  }
  func.func @transform_4(%arg0: i32, %arg1: i32, %arg2: i32) -> (i32, i32) {
    %c0_i32 = arith.constant 0 : i32
    return %arg0, %arg1 : i32, i32
  }
}

module attributes {stable_mosaic.version = 11 : i64} {
  func.func @_fused_matmul_kernel(%arg0: i32, %arg1: i32, %arg2: i32, %arg3: memref<32x128xbf16, #tpu.memory_space<vmem>>, %arg4: memref<128x128xbf16, #tpu.memory_space<vmem>>, %arg5: memref<1x128xf32, #tpu.memory_space<vmem>>, %arg6: memref<32x128xbf16, #tpu.memory_space<vmem>>, %arg7: memref<32x128xf32, #tpu.memory_space<vmem>>) attributes {dimension_semantics = [#tpu.dimension_semantics<parallel>, #tpu.dimension_semantics<parallel>, #tpu.dimension_semantics<arbitrary>], iteration_bounds = array<i64: 1, 1, 9>, scalar_prefetch = 0 : i64, scratch_operands = 1 : i64, tpu.core_type = #tpu.core_type<tc>, window_params = [{transform_indices = @transform_0, window_bounds = array<i64: 32, 128>}, {transform_indices = @transform_1, window_bounds = array<i64: 128, 128>}, {transform_indices = @transform_2, window_bounds = array<i64: 1, 128>}, {transform_indices = @transform_3, window_bounds = array<i64: 32, 128>}]} {
    %c0_i32 = arith.constant 0 : i32
    %0 = arith.cmpi eq, %arg2, %c0_i32 : i32
    %1 = arith.extui %0 : i1 to i32
    %c0_i32_0 = arith.constant 0 : i32
    %2 = arith.cmpi ne, %1, %c0_i32_0 : i32
    scf.if %2 {
      %cst_9 = arith.constant 0.000000e+00 : f32
      %12 = vector.broadcast %cst_9 : f32 to vector<32x128xf32>
      %c0_10 = arith.constant 0 : index
      %c0_11 = arith.constant 0 : index
      %13 = vector.load %arg7[%c0_10, %c0_11] : memref<32x128xf32, #tpu.memory_space<vmem>>, vector<32x128xf32>
      tpu.vector_store %arg7[%c0_10, %c0_11], %12 {strides = array<i32>} : memref<32x128xf32, #tpu.memory_space<vmem>>, vector<32x128xf32>,
    } else {
    }
    %c0 = arith.constant 0 : index
    %c0_1 = arith.constant 0 : index
    %3 = vector.load %arg7[%c0, %c0_1] : memref<32x128xf32, #tpu.memory_space<vmem>>, vector<32x128xf32>
    %c0_2 = arith.constant 0 : index
    %c0_3 = arith.constant 0 : index
    %4 = vector.load %arg3[%c0_2, %c0_3] : memref<32x128xbf16, #tpu.memory_space<vmem>>, vector<32x128xbf16>
    %c0_4 = arith.constant 0 : index
    %c0_5 = arith.constant 0 : index
    %5 = vector.load %arg4[%c0_4, %c0_5] : memref<128x128xbf16, #tpu.memory_space<vmem>>, vector<128x128xbf16>
    %cst = arith.constant dense<0.000000e+00> : vector<32x128xf32>
    %6 = tpu.matmul %4, %5, %cst {dimension_numbers = #tpu.dot_dimension_numbers<[1], [0], [0], [1], [0, 0, 1, 1], [], []>} : vector<32x128xbf16>, vector<128x128xbf16>, vector<32x128xf32> -> vector<32x128xf32>
    %7 = arith.addf %3, %6 : vector<32x128xf32>
    %c0_6 = arith.constant 0 : index
    %c0_7 = arith.constant 0 : index
    %8 = vector.load %arg7[%c0_6, %c0_7] : memref<32x128xf32, #tpu.memory_space<vmem>>, vector<32x128xf32>
    tpu.vector_store %arg7[%c0_6, %c0_7], %7 {strides = array<i32>} : memref<32x128xf32, #tpu.memory_space<vmem>>, vector<32x128xf32>,
    %c8_i32 = arith.constant 8 : i32
    %9 = arith.cmpi eq, %arg2, %c8_i32 : i32
    %10 = arith.extui %9 : i1 to i32
    %c0_i32_8 = arith.constant 0 : i32
    %11 = arith.cmpi ne, %10, %c0_i32_8 : i32
    scf.if %11 {
      %c0_9 = arith.constant 0 : index
      %c0_10 = arith.constant 0 : index
      %12 = vector.load %arg7[%c0_9, %c0_10] : memref<32x128xf32, #tpu.memory_space<vmem>>, vector<32x128xf32>
      %c0_11 = arith.constant 0 : index
      %c0_12 = arith.constant 0 : index
      %13 = vector.load %arg5[%c0_11, %c0_12] : memref<1x128xf32, #tpu.memory_space<vmem>>, vector<1x128xf32>
      %14 = vector.broadcast %13 : vector<1x128xf32> to vector<32x128xf32>
      %15 = arith.addf %12, %14 : vector<32x128xf32>
      %cst_13 = arith.constant 0.000000e+00 : f32
      %16 = vector.broadcast %cst_13 : f32 to vector<32x128xf32>
      %17 = arith.maximumf %15, %16 : vector<32x128xf32>
      %18 = arith.truncf %17 : vector<32x128xf32> to vector<32x128xbf16>
      %c0_14 = arith.constant 0 : index
      %c0_15 = arith.constant 0 : index
      %19 = vector.load %arg6[%c0_14, %c0_15] : memref<32x128xbf16, #tpu.memory_space<vmem>>, vector<32x128xbf16>
      tpu.vector_store %arg6[%c0_14, %c0_15], %18 {strides = array<i32>} : memref<32x128xbf16, #tpu.memory_space<vmem>>, vector<32x128xbf16>,
    } else {
    }
    return
  }
  func.func @transform_0(%arg0: i32, %arg1: i32, %arg2: i32) -> (i32, i32) {
    %c0_i32 = arith.constant 0 : i32
    return %arg0, %arg2 : i32, i32
  }
  func.func @transform_1(%arg0: i32, %arg1: i32, %arg2: i32) -> (i32, i32) {
    %c0_i32 = arith.constant 0 : i32
    return %arg2, %arg1 : i32, i32
  }
  func.func @transform_2(%arg0: i32, %arg1: i32, %arg2: i32) -> (i32, i32) {
    %c0_i32 = arith.constant 0 : i32
    %c0_i32_0 = arith.constant 0 : i32
    return %c0_i32, %arg1 : i32, i32
  }
  func.func @transform_3(%arg0: i32, %arg1: i32, %arg2: i32) -> (i32, i32) {
    %c0_i32 = arith.constant 0 : i32
    return %arg0, %arg1 : i32, i32
  }
}

module attributes {stable_mosaic.version = 11 : i64} {
  func.func @_fused_matmul_kernel(%arg0: i32, %arg1: i32, %arg2: i32, %arg3: memref<8x128xbf16, #tpu.memory_space<vmem>>, %arg4: memref<128x256xbf16, #tpu.memory_space<vmem>>, %arg5: memref<1x256xf32, #tpu.memory_space<vmem>>, %arg6: memref<8x256xbf16, #tpu.memory_space<vmem>>, %arg7: memref<8x256xf32, #tpu.memory_space<vmem>>) attributes {dimension_semantics = [#tpu.dimension_semantics<parallel>, #tpu.dimension_semantics<parallel>, #tpu.dimension_semantics<arbitrary>], iteration_bounds = array<i64: 1, 1, 9>, scalar_prefetch = 0 : i64, scratch_operands = 1 : i64, tpu.core_type = #tpu.core_type<tc>, window_params = [{transform_indices = @transform_0, window_bounds = array<i64: 8, 128>}, {transform_indices = @transform_1, window_bounds = array<i64: 128, 256>}, {transform_indices = @transform_2, window_bounds = array<i64: 1, 256>}, {transform_indices = @transform_3, window_bounds = array<i64: 8, 256>}]} {
    %c0_i32 = arith.constant 0 : i32
    %0 = arith.cmpi eq, %arg2, %c0_i32 : i32
    %1 = arith.extui %0 : i1 to i32
    %c0_i32_0 = arith.constant 0 : i32
    %2 = arith.cmpi ne, %1, %c0_i32_0 : i32
    scf.if %2 {
      %cst_9 = arith.constant 0.000000e+00 : f32
      %12 = vector.broadcast %cst_9 : f32 to vector<8x256xf32>
      %c0_10 = arith.constant 0 : index
      %c0_11 = arith.constant 0 : index
      %13 = vector.load %arg7[%c0_10, %c0_11] : memref<8x256xf32, #tpu.memory_space<vmem>>, vector<8x256xf32>
      tpu.vector_store %arg7[%c0_10, %c0_11], %12 {strides = array<i32>} : memref<8x256xf32, #tpu.memory_space<vmem>>, vector<8x256xf32>,
    } else {
    }
    %c0 = arith.constant 0 : index
    %c0_1 = arith.constant 0 : index
    %3 = vector.load %arg7[%c0, %c0_1] : memref<8x256xf32, #tpu.memory_space<vmem>>, vector<8x256xf32>
    %c0_2 = arith.constant 0 : index
    %c0_3 = arith.constant 0 : index
    %4 = vector.load %arg3[%c0_2, %c0_3] : memref<8x128xbf16, #tpu.memory_space<vmem>>, vector<8x128xbf16>
    %c0_4 = arith.constant 0 : index
    %c0_5 = arith.constant 0 : index
    %5 = vector.load %arg4[%c0_4, %c0_5] : memref<128x256xbf16, #tpu.memory_space<vmem>>, vector<128x256xbf16>
    %cst = arith.constant dense<0.000000e+00> : vector<8x256xf32>
    %6 = tpu.matmul %4, %5, %cst {dimension_numbers = #tpu.dot_dimension_numbers<[1], [0], [0], [1], [0, 0, 1, 1], [], []>} : vector<8x128xbf16>, vector<128x256xbf16>, vector<8x256xf32> -> vector<8x256xf32>
    %7 = arith.addf %3, %6 : vector<8x256xf32>
    %c0_6 = arith.constant 0 : index
    %c0_7 = arith.constant 0 : index
    %8 = vector.load %arg7[%c0_6, %c0_7] : memref<8x256xf32, #tpu.memory_space<vmem>>, vector<8x256xf32>
    tpu.vector_store %arg7[%c0_6, %c0_7], %7 {strides = array<i32>} : memref<8x256xf32, #tpu.memory_space<vmem>>, vector<8x256xf32>,
    %c8_i32 = arith.constant 8 : i32
    %9 = arith.cmpi eq, %arg2, %c8_i32 : i32
    %10 = arith.extui %9 : i1 to i32
    %c0_i32_8 = arith.constant 0 : i32
    %11 = arith.cmpi ne, %10, %c0_i32_8 : i32
    scf.if %11 {
      %c0_9 = arith.constant 0 : index
      %c0_10 = arith.constant 0 : index
      %12 = vector.load %arg7[%c0_9, %c0_10] : memref<8x256xf32, #tpu.memory_space<vmem>>, vector<8x256xf32>
      %c0_11 = arith.constant 0 : index
      %c0_12 = arith.constant 0 : index
      %13 = vector.load %arg5[%c0_11, %c0_12] : memref<1x256xf32, #tpu.memory_space<vmem>>, vector<1x256xf32>
      %14 = vector.broadcast %13 : vector<1x256xf32> to vector<8x256xf32>
      %15 = arith.addf %12, %14 : vector<8x256xf32>
      %cst_13 = arith.constant 0.000000e+00 : f32
      %16 = vector.broadcast %cst_13 : f32 to vector<8x256xf32>
      %17 = arith.maximumf %15, %16 : vector<8x256xf32>
      %18 = arith.truncf %17 : vector<8x256xf32> to vector<8x256xbf16>
      %c0_14 = arith.constant 0 : index
      %c0_15 = arith.constant 0 : index
      %19 = vector.load %arg6[%c0_14, %c0_15] : memref<8x256xbf16, #tpu.memory_space<vmem>>, vector<8x256xbf16>
      tpu.vector_store %arg6[%c0_14, %c0_15], %18 {strides = array<i32>} : memref<8x256xbf16, #tpu.memory_space<vmem>>, vector<8x256xbf16>,
    } else {
    }
    return
  }
  func.func @transform_0(%arg0: i32, %arg1: i32, %arg2: i32) -> (i32, i32) {
    %c0_i32 = arith.constant 0 : i32
    return %arg0, %arg2 : i32, i32
  }
  func.func @transform_1(%arg0: i32, %arg1: i32, %arg2: i32) -> (i32, i32) {
    %c0_i32 = arith.constant 0 : i32
    return %arg2, %arg1 : i32, i32
  }
  func.func @transform_2(%arg0: i32, %arg1: i32, %arg2: i32) -> (i32, i32) {
    %c0_i32 = arith.constant 0 : i32
    %c0_i32_0 = arith.constant 0 : i32
    return %c0_i32, %arg1 : i32, i32
  }
  func.func @transform_3(%arg0: i32, %arg1: i32, %arg2: i32) -> (i32, i32) {
    %c0_i32 = arith.constant 0 : i32
    return %arg0, %arg1 : i32, i32
  }
}

module attributes {stable_mosaic.version = 11 : i64} {
  func.func @_fused_matmul_kernel(%arg0: i32, %arg1: i32, %arg2: i32, %arg3: memref<8x256xbf16, #tpu.memory_space<vmem>>, %arg4: memref<256x256xbf16, #tpu.memory_space<vmem>>, %arg5: memref<1x256xf32, #tpu.memory_space<vmem>>, %arg6: memref<8x256xbf16, #tpu.memory_space<vmem>>, %arg7: memref<8x256xbf16, #tpu.memory_space<vmem>>, %arg8: memref<8x256xf32, #tpu.memory_space<vmem>>) attributes {dimension_semantics = [#tpu.dimension_semantics<parallel>, #tpu.dimension_semantics<parallel>, #tpu.dimension_semantics<arbitrary>], iteration_bounds = array<i64: 1, 1, 9>, scalar_prefetch = 0 : i64, scratch_operands = 1 : i64, tpu.core_type = #tpu.core_type<tc>, window_params = [{transform_indices = @transform_0, window_bounds = array<i64: 8, 256>}, {transform_indices = @transform_1, window_bounds = array<i64: 256, 256>}, {transform_indices = @transform_2, window_bounds = array<i64: 1, 256>}, {transform_indices = @transform_3, window_bounds = array<i64: 8, 256>}, {transform_indices = @transform_4, window_bounds = array<i64: 8, 256>}]} {
    %c0_i32 = arith.constant 0 : i32
    %0 = arith.cmpi eq, %arg2, %c0_i32 : i32
    %1 = arith.extui %0 : i1 to i32
    %c0_i32_0 = arith.constant 0 : i32
    %2 = arith.cmpi ne, %1, %c0_i32_0 : i32
    scf.if %2 {
      %cst_9 = arith.constant 0.000000e+00 : f32
      %12 = vector.broadcast %cst_9 : f32 to vector<8x256xf32>
      %c0_10 = arith.constant 0 : index
      %c0_11 = arith.constant 0 : index
      %13 = vector.load %arg8[%c0_10, %c0_11] : memref<8x256xf32, #tpu.memory_space<vmem>>, vector<8x256xf32>
      tpu.vector_store %arg8[%c0_10, %c0_11], %12 {strides = array<i32>} : memref<8x256xf32, #tpu.memory_space<vmem>>, vector<8x256xf32>,
    } else {
    }
    %c0 = arith.constant 0 : index
    %c0_1 = arith.constant 0 : index
    %3 = vector.load %arg8[%c0, %c0_1] : memref<8x256xf32, #tpu.memory_space<vmem>>, vector<8x256xf32>
    %c0_2 = arith.constant 0 : index
    %c0_3 = arith.constant 0 : index
    %4 = vector.load %arg3[%c0_2, %c0_3] : memref<8x256xbf16, #tpu.memory_space<vmem>>, vector<8x256xbf16>
    %c0_4 = arith.constant 0 : index
    %c0_5 = arith.constant 0 : index
    %5 = vector.load %arg4[%c0_4, %c0_5] : memref<256x256xbf16, #tpu.memory_space<vmem>>, vector<256x256xbf16>
    %cst = arith.constant dense<0.000000e+00> : vector<8x256xf32>
    %6 = tpu.matmul %4, %5, %cst {dimension_numbers = #tpu.dot_dimension_numbers<[1], [0], [0], [1], [0, 0, 1, 1], [], []>} : vector<8x256xbf16>, vector<256x256xbf16>, vector<8x256xf32> -> vector<8x256xf32>
    %7 = arith.addf %3, %6 : vector<8x256xf32>
    %c0_6 = arith.constant 0 : index
    %c0_7 = arith.constant 0 : index
    %8 = vector.load %arg8[%c0_6, %c0_7] : memref<8x256xf32, #tpu.memory_space<vmem>>, vector<8x256xf32>
    tpu.vector_store %arg8[%c0_6, %c0_7], %7 {strides = array<i32>} : memref<8x256xf32, #tpu.memory_space<vmem>>, vector<8x256xf32>,
    %c8_i32 = arith.constant 8 : i32
    %9 = arith.cmpi eq, %arg2, %c8_i32 : i32
    %10 = arith.extui %9 : i1 to i32
    %c0_i32_8 = arith.constant 0 : i32
    %11 = arith.cmpi ne, %10, %c0_i32_8 : i32
    scf.if %11 {
      %c0_9 = arith.constant 0 : index
      %c0_10 = arith.constant 0 : index
      %12 = vector.load %arg8[%c0_9, %c0_10] : memref<8x256xf32, #tpu.memory_space<vmem>>, vector<8x256xf32>
      %c0_11 = arith.constant 0 : index
      %c0_12 = arith.constant 0 : index
      %13 = vector.load %arg5[%c0_11, %c0_12] : memref<1x256xf32, #tpu.memory_space<vmem>>, vector<1x256xf32>
      %14 = vector.broadcast %13 : vector<1x256xf32> to vector<8x256xf32>
      %15 = arith.addf %12, %14 : vector<8x256xf32>
      %c0_13 = arith.constant 0 : index
      %c0_14 = arith.constant 0 : index
      %16 = vector.load %arg6[%c0_13, %c0_14] : memref<8x256xbf16, #tpu.memory_space<vmem>>, vector<8x256xbf16>
      %17 = arith.extf %16 : vector<8x256xbf16> to vector<8x256xf32>
      %18 = arith.addf %15, %17 : vector<8x256xf32>
      %cst_15 = arith.constant 0.000000e+00 : f32
      %19 = vector.broadcast %cst_15 : f32 to vector<8x256xf32>
      %20 = arith.maximumf %18, %19 : vector<8x256xf32>
      %21 = arith.truncf %20 : vector<8x256xf32> to vector<8x256xbf16>
      %c0_16 = arith.constant 0 : index
      %c0_17 = arith.constant 0 : index
      %22 = vector.load %arg7[%c0_16, %c0_17] : memref<8x256xbf16, #tpu.memory_space<vmem>>, vector<8x256xbf16>
      tpu.vector_store %arg7[%c0_16, %c0_17], %21 {strides = array<i32>} : memref<8x256xbf16, #tpu.memory_space<vmem>>, vector<8x256xbf16>,
    } else {
    }
    return
  }
  func.func @transform_0(%arg0: i32, %arg1: i32, %arg2: i32) -> (i32, i32) {
    %c0_i32 = arith.constant 0 : i32
    return %arg0, %arg2 : i32, i32
  }
  func.func @transform_1(%arg0: i32, %arg1: i32, %arg2: i32) -> (i32, i32) {
    %c0_i32 = arith.constant 0 : i32
    return %arg2, %arg1 : i32, i32
  }
  func.func @transform_2(%arg0: i32, %arg1: i32, %arg2: i32) -> (i32, i32) {
    %c0_i32 = arith.constant 0 : i32
    %c0_i32_0 = arith.constant 0 : i32
    return %c0_i32, %arg1 : i32, i32
  }
  func.func @transform_3(%arg0: i32, %arg1: i32, %arg2: i32) -> (i32, i32) {
    %c0_i32 = arith.constant 0 : i32
    return %arg0, %arg1 : i32, i32
  }
  func.func @transform_4(%arg0: i32, %arg1: i32, %arg2: i32) -> (i32, i32) {
    %c0_i32 = arith.constant 0 : i32
    return %arg0, %arg1 : i32, i32
  }
}

module attributes {stable_mosaic.version = 11 : i64} {
  func.func @_fused_matmul_kernel(%arg0: i32, %arg1: i32, %arg2: i32, %arg3: memref<8x128xbf16, #tpu.memory_space<vmem>>, %arg4: memref<128x256xbf16, #tpu.memory_space<vmem>>, %arg5: memref<1x256xf32, #tpu.memory_space<vmem>>, %arg6: memref<8x256xbf16, #tpu.memory_space<vmem>>, %arg7: memref<8x256xf32, #tpu.memory_space<vmem>>) attributes {dimension_semantics = [#tpu.dimension_semantics<parallel>, #tpu.dimension_semantics<parallel>, #tpu.dimension_semantics<arbitrary>], iteration_bounds = array<i64: 1, 1, 1>, scalar_prefetch = 0 : i64, scratch_operands = 1 : i64, tpu.core_type = #tpu.core_type<tc>, window_params = [{transform_indices = @transform_0, window_bounds = array<i64: 8, 128>}, {transform_indices = @transform_1, window_bounds = array<i64: 128, 256>}, {transform_indices = @transform_2, window_bounds = array<i64: 1, 256>}, {transform_indices = @transform_3, window_bounds = array<i64: 8, 256>}]} {
    %c0_i32 = arith.constant 0 : i32
    %0 = arith.cmpi eq, %arg2, %c0_i32 : i32
    %1 = arith.extui %0 : i1 to i32
    %c0_i32_0 = arith.constant 0 : i32
    %2 = arith.cmpi ne, %1, %c0_i32_0 : i32
    scf.if %2 {
      %cst_10 = arith.constant 0.000000e+00 : f32
      %12 = vector.broadcast %cst_10 : f32 to vector<8x256xf32>
      %c0_11 = arith.constant 0 : index
      %c0_12 = arith.constant 0 : index
      %13 = vector.load %arg7[%c0_11, %c0_12] : memref<8x256xf32, #tpu.memory_space<vmem>>, vector<8x256xf32>
      tpu.vector_store %arg7[%c0_11, %c0_12], %12 {strides = array<i32>} : memref<8x256xf32, #tpu.memory_space<vmem>>, vector<8x256xf32>,
    } else {
    }
    %c0 = arith.constant 0 : index
    %c0_1 = arith.constant 0 : index
    %3 = vector.load %arg7[%c0, %c0_1] : memref<8x256xf32, #tpu.memory_space<vmem>>, vector<8x256xf32>
    %c0_2 = arith.constant 0 : index
    %c0_3 = arith.constant 0 : index
    %4 = vector.load %arg3[%c0_2, %c0_3] : memref<8x128xbf16, #tpu.memory_space<vmem>>, vector<8x128xbf16>
    %c0_4 = arith.constant 0 : index
    %c0_5 = arith.constant 0 : index
    %5 = vector.load %arg4[%c0_4, %c0_5] : memref<128x256xbf16, #tpu.memory_space<vmem>>, vector<128x256xbf16>
    %cst = arith.constant dense<0.000000e+00> : vector<8x256xf32>
    %6 = tpu.matmul %4, %5, %cst {dimension_numbers = #tpu.dot_dimension_numbers<[1], [0], [0], [1], [0, 0, 1, 1], [], []>} : vector<8x128xbf16>, vector<128x256xbf16>, vector<8x256xf32> -> vector<8x256xf32>
    %7 = arith.addf %3, %6 : vector<8x256xf32>
    %c0_6 = arith.constant 0 : index
    %c0_7 = arith.constant 0 : index
    %8 = vector.load %arg7[%c0_6, %c0_7] : memref<8x256xf32, #tpu.memory_space<vmem>>, vector<8x256xf32>
    tpu.vector_store %arg7[%c0_6, %c0_7], %7 {strides = array<i32>} : memref<8x256xf32, #tpu.memory_space<vmem>>, vector<8x256xf32>,
    %c0_i32_8 = arith.constant 0 : i32
    %9 = arith.cmpi eq, %arg2, %c0_i32_8 : i32
    %10 = arith.extui %9 : i1 to i32
    %c0_i32_9 = arith.constant 0 : i32
    %11 = arith.cmpi ne, %10, %c0_i32_9 : i32
    scf.if %11 {
      %c0_10 = arith.constant 0 : index
      %c0_11 = arith.constant 0 : index
      %12 = vector.load %arg7[%c0_10, %c0_11] : memref<8x256xf32, #tpu.memory_space<vmem>>, vector<8x256xf32>
      %c0_12 = arith.constant 0 : index
      %c0_13 = arith.constant 0 : index
      %13 = vector.load %arg5[%c0_12, %c0_13] : memref<1x256xf32, #tpu.memory_space<vmem>>, vector<1x256xf32>
      %14 = vector.broadcast %13 : vector<1x256xf32> to vector<8x256xf32>
      %15 = arith.addf %12, %14 : vector<8x256xf32>
      %16 = arith.truncf %15 : vector<8x256xf32> to vector<8x256xbf16>
      %c0_14 = arith.constant 0 : index
      %c0_15 = arith.constant 0 : index
      %17 = vector.load %arg6[%c0_14, %c0_15] : memref<8x256xbf16, #tpu.memory_space<vmem>>, vector<8x256xbf16>
      tpu.vector_store %arg6[%c0_14, %c0_15], %16 {strides = array<i32>} : memref<8x256xbf16, #tpu.memory_space<vmem>>, vector<8x256xbf16>,
    } else {
    }
    return
  }
  func.func @transform_0(%arg0: i32, %arg1: i32, %arg2: i32) -> (i32, i32) {
    %c0_i32 = arith.constant 0 : i32
    return %arg0, %arg2 : i32, i32
  }
  func.func @transform_1(%arg0: i32, %arg1: i32, %arg2: i32) -> (i32, i32) {
    %c0_i32 = arith.constant 0 : i32
    return %arg2, %arg1 : i32, i32
  }
  func.func @transform_2(%arg0: i32, %arg1: i32, %arg2: i32) -> (i32, i32) {
    %c0_i32 = arith.constant 0 : i32
    %c0_i32_0 = arith.constant 0 : i32
    return %c0_i32, %arg1 : i32, i32
  }
  func.func @transform_3(%arg0: i32, %arg1: i32, %arg2: i32) -> (i32, i32) {
    %c0_i32 = arith.constant 0 : i32
    return %arg0, %arg1 : i32, i32
  }
}

module attributes {stable_mosaic.version = 11 : i64} {
  func.func @_fused_matmul_kernel(%arg0: i32, %arg1: i32, %arg2: i32, %arg3: memref<8x256xbf16, #tpu.memory_space<vmem>>, %arg4: memref<256x256xbf16, #tpu.memory_space<vmem>>, %arg5: memref<1x256xf32, #tpu.memory_space<vmem>>, %arg6: memref<8x256xbf16, #tpu.memory_space<vmem>>, %arg7: memref<8x256xf32, #tpu.memory_space<vmem>>) attributes {dimension_semantics = [#tpu.dimension_semantics<parallel>, #tpu.dimension_semantics<parallel>, #tpu.dimension_semantics<arbitrary>], iteration_bounds = array<i64: 1, 1, 9>, scalar_prefetch = 0 : i64, scratch_operands = 1 : i64, tpu.core_type = #tpu.core_type<tc>, window_params = [{transform_indices = @transform_0, window_bounds = array<i64: 8, 256>}, {transform_indices = @transform_1, window_bounds = array<i64: 256, 256>}, {transform_indices = @transform_2, window_bounds = array<i64: 1, 256>}, {transform_indices = @transform_3, window_bounds = array<i64: 8, 256>}]} {
    %c0_i32 = arith.constant 0 : i32
    %0 = arith.cmpi eq, %arg2, %c0_i32 : i32
    %1 = arith.extui %0 : i1 to i32
    %c0_i32_0 = arith.constant 0 : i32
    %2 = arith.cmpi ne, %1, %c0_i32_0 : i32
    scf.if %2 {
      %cst_9 = arith.constant 0.000000e+00 : f32
      %12 = vector.broadcast %cst_9 : f32 to vector<8x256xf32>
      %c0_10 = arith.constant 0 : index
      %c0_11 = arith.constant 0 : index
      %13 = vector.load %arg7[%c0_10, %c0_11] : memref<8x256xf32, #tpu.memory_space<vmem>>, vector<8x256xf32>
      tpu.vector_store %arg7[%c0_10, %c0_11], %12 {strides = array<i32>} : memref<8x256xf32, #tpu.memory_space<vmem>>, vector<8x256xf32>,
    } else {
    }
    %c0 = arith.constant 0 : index
    %c0_1 = arith.constant 0 : index
    %3 = vector.load %arg7[%c0, %c0_1] : memref<8x256xf32, #tpu.memory_space<vmem>>, vector<8x256xf32>
    %c0_2 = arith.constant 0 : index
    %c0_3 = arith.constant 0 : index
    %4 = vector.load %arg3[%c0_2, %c0_3] : memref<8x256xbf16, #tpu.memory_space<vmem>>, vector<8x256xbf16>
    %c0_4 = arith.constant 0 : index
    %c0_5 = arith.constant 0 : index
    %5 = vector.load %arg4[%c0_4, %c0_5] : memref<256x256xbf16, #tpu.memory_space<vmem>>, vector<256x256xbf16>
    %cst = arith.constant dense<0.000000e+00> : vector<8x256xf32>
    %6 = tpu.matmul %4, %5, %cst {dimension_numbers = #tpu.dot_dimension_numbers<[1], [0], [0], [1], [0, 0, 1, 1], [], []>} : vector<8x256xbf16>, vector<256x256xbf16>, vector<8x256xf32> -> vector<8x256xf32>
    %7 = arith.addf %3, %6 : vector<8x256xf32>
    %c0_6 = arith.constant 0 : index
    %c0_7 = arith.constant 0 : index
    %8 = vector.load %arg7[%c0_6, %c0_7] : memref<8x256xf32, #tpu.memory_space<vmem>>, vector<8x256xf32>
    tpu.vector_store %arg7[%c0_6, %c0_7], %7 {strides = array<i32>} : memref<8x256xf32, #tpu.memory_space<vmem>>, vector<8x256xf32>,
    %c8_i32 = arith.constant 8 : i32
    %9 = arith.cmpi eq, %arg2, %c8_i32 : i32
    %10 = arith.extui %9 : i1 to i32
    %c0_i32_8 = arith.constant 0 : i32
    %11 = arith.cmpi ne, %10, %c0_i32_8 : i32
    scf.if %11 {
      %c0_9 = arith.constant 0 : index
      %c0_10 = arith.constant 0 : index
      %12 = vector.load %arg7[%c0_9, %c0_10] : memref<8x256xf32, #tpu.memory_space<vmem>>, vector<8x256xf32>
      %c0_11 = arith.constant 0 : index
      %c0_12 = arith.constant 0 : index
      %13 = vector.load %arg5[%c0_11, %c0_12] : memref<1x256xf32, #tpu.memory_space<vmem>>, vector<1x256xf32>
      %14 = vector.broadcast %13 : vector<1x256xf32> to vector<8x256xf32>
      %15 = arith.addf %12, %14 : vector<8x256xf32>
      %cst_13 = arith.constant 0.000000e+00 : f32
      %16 = vector.broadcast %cst_13 : f32 to vector<8x256xf32>
      %17 = arith.maximumf %15, %16 : vector<8x256xf32>
      %18 = arith.truncf %17 : vector<8x256xf32> to vector<8x256xbf16>
      %c0_14 = arith.constant 0 : index
      %c0_15 = arith.constant 0 : index
      %19 = vector.load %arg6[%c0_14, %c0_15] : memref<8x256xbf16, #tpu.memory_space<vmem>>, vector<8x256xbf16>
      tpu.vector_store %arg6[%c0_14, %c0_15], %18 {strides = array<i32>} : memref<8x256xbf16, #tpu.memory_space<vmem>>, vector<8x256xbf16>,
    } else {
    }
    return
  }
  func.func @transform_0(%arg0: i32, %arg1: i32, %arg2: i32) -> (i32, i32) {
    %c0_i32 = arith.constant 0 : i32
    return %arg0, %arg2 : i32, i32
  }
  func.func @transform_1(%arg0: i32, %arg1: i32, %arg2: i32) -> (i32, i32) {
    %c0_i32 = arith.constant 0 : i32
    return %arg2, %arg1 : i32, i32
  }
  func.func @transform_2(%arg0: i32, %arg1: i32, %arg2: i32) -> (i32, i32) {
    %c0_i32 = arith.constant 0 : i32
    %c0_i32_0 = arith.constant 0 : i32
    return %c0_i32, %arg1 : i32, i32
  }
  func.func @transform_3(%arg0: i32, %arg1: i32, %arg2: i32) -> (i32, i32) {
    %c0_i32 = arith.constant 0 : i32
    return %arg0, %arg1 : i32, i32
  }
}

module attributes {stable_mosaic.version = 11 : i64} {
  func.func @_fused_matmul_kernel(%arg0: i32, %arg1: i32, %arg2: i32, %arg3: memref<8x256xbf16, #tpu.memory_space<vmem>>, %arg4: memref<256x256xbf16, #tpu.memory_space<vmem>>, %arg5: memref<1x256xf32, #tpu.memory_space<vmem>>, %arg6: memref<8x256xbf16, #tpu.memory_space<vmem>>, %arg7: memref<8x256xf32, #tpu.memory_space<vmem>>) attributes {dimension_semantics = [#tpu.dimension_semantics<parallel>, #tpu.dimension_semantics<parallel>, #tpu.dimension_semantics<arbitrary>], iteration_bounds = array<i64: 1, 2, 9>, scalar_prefetch = 0 : i64, scratch_operands = 1 : i64, tpu.core_type = #tpu.core_type<tc>, window_params = [{transform_indices = @transform_0, window_bounds = array<i64: 8, 256>}, {transform_indices = @transform_1, window_bounds = array<i64: 256, 256>}, {transform_indices = @transform_2, window_bounds = array<i64: 1, 256>}, {transform_indices = @transform_3, window_bounds = array<i64: 8, 256>}]} {
    %c0_i32 = arith.constant 0 : i32
    %0 = arith.cmpi eq, %arg2, %c0_i32 : i32
    %1 = arith.extui %0 : i1 to i32
    %c0_i32_0 = arith.constant 0 : i32
    %2 = arith.cmpi ne, %1, %c0_i32_0 : i32
    scf.if %2 {
      %cst_9 = arith.constant 0.000000e+00 : f32
      %12 = vector.broadcast %cst_9 : f32 to vector<8x256xf32>
      %c0_10 = arith.constant 0 : index
      %c0_11 = arith.constant 0 : index
      %13 = vector.load %arg7[%c0_10, %c0_11] : memref<8x256xf32, #tpu.memory_space<vmem>>, vector<8x256xf32>
      tpu.vector_store %arg7[%c0_10, %c0_11], %12 {strides = array<i32>} : memref<8x256xf32, #tpu.memory_space<vmem>>, vector<8x256xf32>,
    } else {
    }
    %c0 = arith.constant 0 : index
    %c0_1 = arith.constant 0 : index
    %3 = vector.load %arg7[%c0, %c0_1] : memref<8x256xf32, #tpu.memory_space<vmem>>, vector<8x256xf32>
    %c0_2 = arith.constant 0 : index
    %c0_3 = arith.constant 0 : index
    %4 = vector.load %arg3[%c0_2, %c0_3] : memref<8x256xbf16, #tpu.memory_space<vmem>>, vector<8x256xbf16>
    %c0_4 = arith.constant 0 : index
    %c0_5 = arith.constant 0 : index
    %5 = vector.load %arg4[%c0_4, %c0_5] : memref<256x256xbf16, #tpu.memory_space<vmem>>, vector<256x256xbf16>
    %cst = arith.constant dense<0.000000e+00> : vector<8x256xf32>
    %6 = tpu.matmul %4, %5, %cst {dimension_numbers = #tpu.dot_dimension_numbers<[1], [0], [0], [1], [0, 0, 1, 1], [], []>} : vector<8x256xbf16>, vector<256x256xbf16>, vector<8x256xf32> -> vector<8x256xf32>
    %7 = arith.addf %3, %6 : vector<8x256xf32>
    %c0_6 = arith.constant 0 : index
    %c0_7 = arith.constant 0 : index
    %8 = vector.load %arg7[%c0_6, %c0_7] : memref<8x256xf32, #tpu.memory_space<vmem>>, vector<8x256xf32>
    tpu.vector_store %arg7[%c0_6, %c0_7], %7 {strides = array<i32>} : memref<8x256xf32, #tpu.memory_space<vmem>>, vector<8x256xf32>,
    %c8_i32 = arith.constant 8 : i32
    %9 = arith.cmpi eq, %arg2, %c8_i32 : i32
    %10 = arith.extui %9 : i1 to i32
    %c0_i32_8 = arith.constant 0 : i32
    %11 = arith.cmpi ne, %10, %c0_i32_8 : i32
    scf.if %11 {
      %c0_9 = arith.constant 0 : index
      %c0_10 = arith.constant 0 : index
      %12 = vector.load %arg7[%c0_9, %c0_10] : memref<8x256xf32, #tpu.memory_space<vmem>>, vector<8x256xf32>
      %c0_11 = arith.constant 0 : index
      %c0_12 = arith.constant 0 : index
      %13 = vector.load %arg5[%c0_11, %c0_12] : memref<1x256xf32, #tpu.memory_space<vmem>>, vector<1x256xf32>
      %14 = vector.broadcast %13 : vector<1x256xf32> to vector<8x256xf32>
      %15 = arith.addf %12, %14 : vector<8x256xf32>
      %cst_13 = arith.constant 0.000000e+00 : f32
      %16 = vector.broadcast %cst_13 : f32 to vector<8x256xf32>
      %17 = arith.maximumf %15, %16 : vector<8x256xf32>
      %18 = arith.truncf %17 : vector<8x256xf32> to vector<8x256xbf16>
      %c0_14 = arith.constant 0 : index
      %c0_15 = arith.constant 0 : index
      %19 = vector.load %arg6[%c0_14, %c0_15] : memref<8x256xbf16, #tpu.memory_space<vmem>>, vector<8x256xbf16>
      tpu.vector_store %arg6[%c0_14, %c0_15], %18 {strides = array<i32>} : memref<8x256xbf16, #tpu.memory_space<vmem>>, vector<8x256xbf16>,
    } else {
    }
    return
  }
  func.func @transform_0(%arg0: i32, %arg1: i32, %arg2: i32) -> (i32, i32) {
    %c0_i32 = arith.constant 0 : i32
    return %arg0, %arg2 : i32, i32
  }
  func.func @transform_1(%arg0: i32, %arg1: i32, %arg2: i32) -> (i32, i32) {
    %c0_i32 = arith.constant 0 : i32
    return %arg2, %arg1 : i32, i32
  }
  func.func @transform_2(%arg0: i32, %arg1: i32, %arg2: i32) -> (i32, i32) {
    %c0_i32 = arith.constant 0 : i32
    %c0_i32_0 = arith.constant 0 : i32
    return %c0_i32, %arg1 : i32, i32
  }
  func.func @transform_3(%arg0: i32, %arg1: i32, %arg2: i32) -> (i32, i32) {
    %c0_i32 = arith.constant 0 : i32
    return %arg0, %arg1 : i32, i32
  }
}

module attributes {stable_mosaic.version = 11 : i64} {
  func.func @_fused_matmul_kernel(%arg0: i32, %arg1: i32, %arg2: i32, %arg3: memref<8x256xbf16, #tpu.memory_space<vmem>>, %arg4: memref<256x256xbf16, #tpu.memory_space<vmem>>, %arg5: memref<1x256xf32, #tpu.memory_space<vmem>>, %arg6: memref<8x256xbf16, #tpu.memory_space<vmem>>, %arg7: memref<8x256xf32, #tpu.memory_space<vmem>>) attributes {dimension_semantics = [#tpu.dimension_semantics<parallel>, #tpu.dimension_semantics<parallel>, #tpu.dimension_semantics<arbitrary>], iteration_bounds = array<i64: 1, 2, 1>, scalar_prefetch = 0 : i64, scratch_operands = 1 : i64, tpu.core_type = #tpu.core_type<tc>, window_params = [{transform_indices = @transform_0, window_bounds = array<i64: 8, 256>}, {transform_indices = @transform_1, window_bounds = array<i64: 256, 256>}, {transform_indices = @transform_2, window_bounds = array<i64: 1, 256>}, {transform_indices = @transform_3, window_bounds = array<i64: 8, 256>}]} {
    %c0_i32 = arith.constant 0 : i32
    %0 = arith.cmpi eq, %arg2, %c0_i32 : i32
    %1 = arith.extui %0 : i1 to i32
    %c0_i32_0 = arith.constant 0 : i32
    %2 = arith.cmpi ne, %1, %c0_i32_0 : i32
    scf.if %2 {
      %cst_10 = arith.constant 0.000000e+00 : f32
      %12 = vector.broadcast %cst_10 : f32 to vector<8x256xf32>
      %c0_11 = arith.constant 0 : index
      %c0_12 = arith.constant 0 : index
      %13 = vector.load %arg7[%c0_11, %c0_12] : memref<8x256xf32, #tpu.memory_space<vmem>>, vector<8x256xf32>
      tpu.vector_store %arg7[%c0_11, %c0_12], %12 {strides = array<i32>} : memref<8x256xf32, #tpu.memory_space<vmem>>, vector<8x256xf32>,
    } else {
    }
    %c0 = arith.constant 0 : index
    %c0_1 = arith.constant 0 : index
    %3 = vector.load %arg7[%c0, %c0_1] : memref<8x256xf32, #tpu.memory_space<vmem>>, vector<8x256xf32>
    %c0_2 = arith.constant 0 : index
    %c0_3 = arith.constant 0 : index
    %4 = vector.load %arg3[%c0_2, %c0_3] : memref<8x256xbf16, #tpu.memory_space<vmem>>, vector<8x256xbf16>
    %c0_4 = arith.constant 0 : index
    %c0_5 = arith.constant 0 : index
    %5 = vector.load %arg4[%c0_4, %c0_5] : memref<256x256xbf16, #tpu.memory_space<vmem>>, vector<256x256xbf16>
    %cst = arith.constant dense<0.000000e+00> : vector<8x256xf32>
    %6 = tpu.matmul %4, %5, %cst {dimension_numbers = #tpu.dot_dimension_numbers<[1], [0], [0], [1], [0, 0, 1, 1], [], []>} : vector<8x256xbf16>, vector<256x256xbf16>, vector<8x256xf32> -> vector<8x256xf32>
    %7 = arith.addf %3, %6 : vector<8x256xf32>
    %c0_6 = arith.constant 0 : index
    %c0_7 = arith.constant 0 : index
    %8 = vector.load %arg7[%c0_6, %c0_7] : memref<8x256xf32, #tpu.memory_space<vmem>>, vector<8x256xf32>
    tpu.vector_store %arg7[%c0_6, %c0_7], %7 {strides = array<i32>} : memref<8x256xf32, #tpu.memory_space<vmem>>, vector<8x256xf32>,
    %c0_i32_8 = arith.constant 0 : i32
    %9 = arith.cmpi eq, %arg2, %c0_i32_8 : i32
    %10 = arith.extui %9 : i1 to i32
    %c0_i32_9 = arith.constant 0 : i32
    %11 = arith.cmpi ne, %10, %c0_i32_9 : i32
    scf.if %11 {
      %c0_10 = arith.constant 0 : index
      %c0_11 = arith.constant 0 : index
      %12 = vector.load %arg7[%c0_10, %c0_11] : memref<8x256xf32, #tpu.memory_space<vmem>>, vector<8x256xf32>
      %c0_12 = arith.constant 0 : index
      %c0_13 = arith.constant 0 : index
      %13 = vector.load %arg5[%c0_12, %c0_13] : memref<1x256xf32, #tpu.memory_space<vmem>>, vector<1x256xf32>
      %14 = vector.broadcast %13 : vector<1x256xf32> to vector<8x256xf32>
      %15 = arith.addf %12, %14 : vector<8x256xf32>
      %16 = arith.truncf %15 : vector<8x256xf32> to vector<8x256xbf16>
      %c0_14 = arith.constant 0 : index
      %c0_15 = arith.constant 0 : index
      %17 = vector.load %arg6[%c0_14, %c0_15] : memref<8x256xbf16, #tpu.memory_space<vmem>>, vector<8x256xbf16>
      tpu.vector_store %arg6[%c0_14, %c0_15], %16 {strides = array<i32>} : memref<8x256xbf16, #tpu.memory_space<vmem>>, vector<8x256xbf16>,
    } else {
    }
    return
  }
  func.func @transform_0(%arg0: i32, %arg1: i32, %arg2: i32) -> (i32, i32) {
    %c0_i32 = arith.constant 0 : i32
    return %arg0, %arg2 : i32, i32
  }
  func.func @transform_1(%arg0: i32, %arg1: i32, %arg2: i32) -> (i32, i32) {
    %c0_i32 = arith.constant 0 : i32
    return %arg2, %arg1 : i32, i32
  }
  func.func @transform_2(%arg0: i32, %arg1: i32, %arg2: i32) -> (i32, i32) {
    %c0_i32 = arith.constant 0 : i32
    %c0_i32_0 = arith.constant 0 : i32
    return %c0_i32, %arg1 : i32, i32
  }
  func.func @transform_3(%arg0: i32, %arg1: i32, %arg2: i32) -> (i32, i32) {
    %c0_i32 = arith.constant 0 : i32
    return %arg0, %arg1 : i32, i32
  }
}

module attributes {stable_mosaic.version = 11 : i64} {
  func.func @_fused_matmul_kernel(%arg0: i32, %arg1: i32, %arg2: i32, %arg3: memref<8x512xbf16, #tpu.memory_space<vmem>>, %arg4: memref<512x256xbf16, #tpu.memory_space<vmem>>, %arg5: memref<1x256xf32, #tpu.memory_space<vmem>>, %arg6: memref<8x256xbf16, #tpu.memory_space<vmem>>, %arg7: memref<8x256xbf16, #tpu.memory_space<vmem>>, %arg8: memref<8x256xf32, #tpu.memory_space<vmem>>) attributes {dimension_semantics = [#tpu.dimension_semantics<parallel>, #tpu.dimension_semantics<parallel>, #tpu.dimension_semantics<arbitrary>], iteration_bounds = array<i64: 1, 2, 9>, scalar_prefetch = 0 : i64, scratch_operands = 1 : i64, tpu.core_type = #tpu.core_type<tc>, window_params = [{transform_indices = @transform_0, window_bounds = array<i64: 8, 512>}, {transform_indices = @transform_1, window_bounds = array<i64: 512, 256>}, {transform_indices = @transform_2, window_bounds = array<i64: 1, 256>}, {transform_indices = @transform_3, window_bounds = array<i64: 8, 256>}, {transform_indices = @transform_4, window_bounds = array<i64: 8, 256>}]} {
    %c0_i32 = arith.constant 0 : i32
    %0 = arith.cmpi eq, %arg2, %c0_i32 : i32
    %1 = arith.extui %0 : i1 to i32
    %c0_i32_0 = arith.constant 0 : i32
    %2 = arith.cmpi ne, %1, %c0_i32_0 : i32
    scf.if %2 {
      %cst_9 = arith.constant 0.000000e+00 : f32
      %12 = vector.broadcast %cst_9 : f32 to vector<8x256xf32>
      %c0_10 = arith.constant 0 : index
      %c0_11 = arith.constant 0 : index
      %13 = vector.load %arg8[%c0_10, %c0_11] : memref<8x256xf32, #tpu.memory_space<vmem>>, vector<8x256xf32>
      tpu.vector_store %arg8[%c0_10, %c0_11], %12 {strides = array<i32>} : memref<8x256xf32, #tpu.memory_space<vmem>>, vector<8x256xf32>,
    } else {
    }
    %c0 = arith.constant 0 : index
    %c0_1 = arith.constant 0 : index
    %3 = vector.load %arg8[%c0, %c0_1] : memref<8x256xf32, #tpu.memory_space<vmem>>, vector<8x256xf32>
    %c0_2 = arith.constant 0 : index
    %c0_3 = arith.constant 0 : index
    %4 = vector.load %arg3[%c0_2, %c0_3] : memref<8x512xbf16, #tpu.memory_space<vmem>>, vector<8x512xbf16>
    %c0_4 = arith.constant 0 : index
    %c0_5 = arith.constant 0 : index
    %5 = vector.load %arg4[%c0_4, %c0_5] : memref<512x256xbf16, #tpu.memory_space<vmem>>, vector<512x256xbf16>
    %cst = arith.constant dense<0.000000e+00> : vector<8x256xf32>
    %6 = tpu.matmul %4, %5, %cst {dimension_numbers = #tpu.dot_dimension_numbers<[1], [0], [0], [1], [0, 0, 1, 1], [], []>} : vector<8x512xbf16>, vector<512x256xbf16>, vector<8x256xf32> -> vector<8x256xf32>
    %7 = arith.addf %3, %6 : vector<8x256xf32>
    %c0_6 = arith.constant 0 : index
    %c0_7 = arith.constant 0 : index
    %8 = vector.load %arg8[%c0_6, %c0_7] : memref<8x256xf32, #tpu.memory_space<vmem>>, vector<8x256xf32>
    tpu.vector_store %arg8[%c0_6, %c0_7], %7 {strides = array<i32>} : memref<8x256xf32, #tpu.memory_space<vmem>>, vector<8x256xf32>,
    %c8_i32 = arith.constant 8 : i32
    %9 = arith.cmpi eq, %arg2, %c8_i32 : i32
    %10 = arith.extui %9 : i1 to i32
    %c0_i32_8 = arith.constant 0 : i32
    %11 = arith.cmpi ne, %10, %c0_i32_8 : i32
    scf.if %11 {
      %c0_9 = arith.constant 0 : index
      %c0_10 = arith.constant 0 : index
      %12 = vector.load %arg8[%c0_9, %c0_10] : memref<8x256xf32, #tpu.memory_space<vmem>>, vector<8x256xf32>
      %c0_11 = arith.constant 0 : index
      %c0_12 = arith.constant 0 : index
      %13 = vector.load %arg5[%c0_11, %c0_12] : memref<1x256xf32, #tpu.memory_space<vmem>>, vector<1x256xf32>
      %14 = vector.broadcast %13 : vector<1x256xf32> to vector<8x256xf32>
      %15 = arith.addf %12, %14 : vector<8x256xf32>
      %c0_13 = arith.constant 0 : index
      %c0_14 = arith.constant 0 : index
      %16 = vector.load %arg6[%c0_13, %c0_14] : memref<8x256xbf16, #tpu.memory_space<vmem>>, vector<8x256xbf16>
      %17 = arith.extf %16 : vector<8x256xbf16> to vector<8x256xf32>
      %18 = arith.addf %15, %17 : vector<8x256xf32>
      %cst_15 = arith.constant 0.000000e+00 : f32
      %19 = vector.broadcast %cst_15 : f32 to vector<8x256xf32>
      %20 = arith.maximumf %18, %19 : vector<8x256xf32>
      %21 = arith.truncf %20 : vector<8x256xf32> to vector<8x256xbf16>
      %c0_16 = arith.constant 0 : index
      %c0_17 = arith.constant 0 : index
      %22 = vector.load %arg7[%c0_16, %c0_17] : memref<8x256xbf16, #tpu.memory_space<vmem>>, vector<8x256xbf16>
      tpu.vector_store %arg7[%c0_16, %c0_17], %21 {strides = array<i32>} : memref<8x256xbf16, #tpu.memory_space<vmem>>, vector<8x256xbf16>,
    } else {
    }
    return
  }
  func.func @transform_0(%arg0: i32, %arg1: i32, %arg2: i32) -> (i32, i32) {
    %c0_i32 = arith.constant 0 : i32
    return %arg0, %arg2 : i32, i32
  }
  func.func @transform_1(%arg0: i32, %arg1: i32, %arg2: i32) -> (i32, i32) {
    %c0_i32 = arith.constant 0 : i32
    return %arg2, %arg1 : i32, i32
  }
  func.func @transform_2(%arg0: i32, %arg1: i32, %arg2: i32) -> (i32, i32) {
    %c0_i32 = arith.constant 0 : i32
    %c0_i32_0 = arith.constant 0 : i32
    return %c0_i32, %arg1 : i32, i32
  }
  func.func @transform_3(%arg0: i32, %arg1: i32, %arg2: i32) -> (i32, i32) {
    %c0_i32 = arith.constant 0 : i32
    return %arg0, %arg1 : i32, i32
  }
  func.func @transform_4(%arg0: i32, %arg1: i32, %arg2: i32) -> (i32, i32) {
    %c0_i32 = arith.constant 0 : i32
    return %arg0, %arg1 : i32, i32
  }
}

module attributes {stable_mosaic.version = 11 : i64} {
  func.func @_fused_matmul_kernel(%arg0: i32, %arg1: i32, %arg2: i32, %arg3: memref<8x512xbf16, #tpu.memory_space<vmem>>, %arg4: memref<512x256xbf16, #tpu.memory_space<vmem>>, %arg5: memref<1x256xf32, #tpu.memory_space<vmem>>, %arg6: memref<8x256xbf16, #tpu.memory_space<vmem>>, %arg7: memref<8x256xf32, #tpu.memory_space<vmem>>) attributes {dimension_semantics = [#tpu.dimension_semantics<parallel>, #tpu.dimension_semantics<parallel>, #tpu.dimension_semantics<arbitrary>], iteration_bounds = array<i64: 1, 2, 9>, scalar_prefetch = 0 : i64, scratch_operands = 1 : i64, tpu.core_type = #tpu.core_type<tc>, window_params = [{transform_indices = @transform_0, window_bounds = array<i64: 8, 512>}, {transform_indices = @transform_1, window_bounds = array<i64: 512, 256>}, {transform_indices = @transform_2, window_bounds = array<i64: 1, 256>}, {transform_indices = @transform_3, window_bounds = array<i64: 8, 256>}]} {
    %c0_i32 = arith.constant 0 : i32
    %0 = arith.cmpi eq, %arg2, %c0_i32 : i32
    %1 = arith.extui %0 : i1 to i32
    %c0_i32_0 = arith.constant 0 : i32
    %2 = arith.cmpi ne, %1, %c0_i32_0 : i32
    scf.if %2 {
      %cst_9 = arith.constant 0.000000e+00 : f32
      %12 = vector.broadcast %cst_9 : f32 to vector<8x256xf32>
      %c0_10 = arith.constant 0 : index
      %c0_11 = arith.constant 0 : index
      %13 = vector.load %arg7[%c0_10, %c0_11] : memref<8x256xf32, #tpu.memory_space<vmem>>, vector<8x256xf32>
      tpu.vector_store %arg7[%c0_10, %c0_11], %12 {strides = array<i32>} : memref<8x256xf32, #tpu.memory_space<vmem>>, vector<8x256xf32>,
    } else {
    }
    %c0 = arith.constant 0 : index
    %c0_1 = arith.constant 0 : index
    %3 = vector.load %arg7[%c0, %c0_1] : memref<8x256xf32, #tpu.memory_space<vmem>>, vector<8x256xf32>
    %c0_2 = arith.constant 0 : index
    %c0_3 = arith.constant 0 : index
    %4 = vector.load %arg3[%c0_2, %c0_3] : memref<8x512xbf16, #tpu.memory_space<vmem>>, vector<8x512xbf16>
    %c0_4 = arith.constant 0 : index
    %c0_5 = arith.constant 0 : index
    %5 = vector.load %arg4[%c0_4, %c0_5] : memref<512x256xbf16, #tpu.memory_space<vmem>>, vector<512x256xbf16>
    %cst = arith.constant dense<0.000000e+00> : vector<8x256xf32>
    %6 = tpu.matmul %4, %5, %cst {dimension_numbers = #tpu.dot_dimension_numbers<[1], [0], [0], [1], [0, 0, 1, 1], [], []>} : vector<8x512xbf16>, vector<512x256xbf16>, vector<8x256xf32> -> vector<8x256xf32>
    %7 = arith.addf %3, %6 : vector<8x256xf32>
    %c0_6 = arith.constant 0 : index
    %c0_7 = arith.constant 0 : index
    %8 = vector.load %arg7[%c0_6, %c0_7] : memref<8x256xf32, #tpu.memory_space<vmem>>, vector<8x256xf32>
    tpu.vector_store %arg7[%c0_6, %c0_7], %7 {strides = array<i32>} : memref<8x256xf32, #tpu.memory_space<vmem>>, vector<8x256xf32>,
    %c8_i32 = arith.constant 8 : i32
    %9 = arith.cmpi eq, %arg2, %c8_i32 : i32
    %10 = arith.extui %9 : i1 to i32
    %c0_i32_8 = arith.constant 0 : i32
    %11 = arith.cmpi ne, %10, %c0_i32_8 : i32
    scf.if %11 {
      %c0_9 = arith.constant 0 : index
      %c0_10 = arith.constant 0 : index
      %12 = vector.load %arg7[%c0_9, %c0_10] : memref<8x256xf32, #tpu.memory_space<vmem>>, vector<8x256xf32>
      %c0_11 = arith.constant 0 : index
      %c0_12 = arith.constant 0 : index
      %13 = vector.load %arg5[%c0_11, %c0_12] : memref<1x256xf32, #tpu.memory_space<vmem>>, vector<1x256xf32>
      %14 = vector.broadcast %13 : vector<1x256xf32> to vector<8x256xf32>
      %15 = arith.addf %12, %14 : vector<8x256xf32>
      %cst_13 = arith.constant 0.000000e+00 : f32
      %16 = vector.broadcast %cst_13 : f32 to vector<8x256xf32>
      %17 = arith.maximumf %15, %16 : vector<8x256xf32>
      %18 = arith.truncf %17 : vector<8x256xf32> to vector<8x256xbf16>
      %c0_14 = arith.constant 0 : index
      %c0_15 = arith.constant 0 : index
      %19 = vector.load %arg6[%c0_14, %c0_15] : memref<8x256xbf16, #tpu.memory_space<vmem>>, vector<8x256xbf16>
      tpu.vector_store %arg6[%c0_14, %c0_15], %18 {strides = array<i32>} : memref<8x256xbf16, #tpu.memory_space<vmem>>, vector<8x256xbf16>,
    } else {
    }
    return
  }
  func.func @transform_0(%arg0: i32, %arg1: i32, %arg2: i32) -> (i32, i32) {
    %c0_i32 = arith.constant 0 : i32
    return %arg0, %arg2 : i32, i32
  }
  func.func @transform_1(%arg0: i32, %arg1: i32, %arg2: i32) -> (i32, i32) {
    %c0_i32 = arith.constant 0 : i32
    return %arg2, %arg1 : i32, i32
  }
  func.func @transform_2(%arg0: i32, %arg1: i32, %arg2: i32) -> (i32, i32) {
    %c0_i32 = arith.constant 0 : i32
    %c0_i32_0 = arith.constant 0 : i32
    return %c0_i32, %arg1 : i32, i32
  }
  func.func @transform_3(%arg0: i32, %arg1: i32, %arg2: i32) -> (i32, i32) {
    %c0_i32 = arith.constant 0 : i32
    return %arg0, %arg1 : i32, i32
  }
}

module attributes {stable_mosaic.version = 11 : i64} {
  func.func @_global_mean_kernel(%arg0: i32, %arg1: memref<1x1x512xbf16, #tpu.memory_space<vmem>>, %arg2: memref<1x1x512xbf16, #tpu.memory_space<vmem>>) attributes {dimension_semantics = [#tpu.dimension_semantics<parallel>], iteration_bounds = array<i64: 2>, scalar_prefetch = 0 : i64, scratch_operands = 0 : i64, tpu.core_type = #tpu.core_type<tc>, window_params = [{transform_indices = @transform_0, window_bounds = array<i64: 1, 1, 512>}, {transform_indices = @transform_1, window_bounds = array<i64: 1, 1, 512>}]} {
    %c0 = arith.constant 0 : index
    %c0_0 = arith.constant 0 : index
    %c0_1 = arith.constant 0 : index
    %0 = vector.load %arg1[%c0, %c0_0, %c0_1] : memref<1x1x512xbf16, #tpu.memory_space<vmem>>, vector<1x1x512xbf16>
    %1 = vector.shape_cast %0 : vector<1x1x512xbf16> to vector<1x512xbf16>
    %2 = arith.extf %1 : vector<1x512xbf16> to vector<1x512xf32>
    %cst = arith.constant dense<0.000000e+00> : vector<512xf32>
    %3 = vector.multi_reduction <add>, %2, %cst [0] : vector<1x512xf32> to vector<512xf32>
    %4 = vector.shape_cast %3 : vector<512xf32> to vector<1x512xf32>
    %cst_2 = arith.constant 1.000000e+00 : f32
    %5 = vector.broadcast %cst_2 : f32 to vector<1x512xf32>
    %6 = arith.divf %4, %5 : vector<1x512xf32>
    %7 = arith.truncf %6 : vector<1x512xf32> to vector<1x512xbf16>
    %c0_3 = arith.constant 0 : index
    %c0_4 = arith.constant 0 : index
    %c0_5 = arith.constant 0 : index
    %8 = vector.load %arg2[%c0_3, %c0_4, %c0_5] : memref<1x1x512xbf16, #tpu.memory_space<vmem>>, vector<1x1x512xbf16>
    %9 = vector.shape_cast %8 : vector<1x1x512xbf16> to vector<1x512xbf16>
    %10 = vector.shape_cast %7 : vector<1x512xbf16> to vector<1x1x512xbf16>
    tpu.vector_store %arg2[%c0_3, %c0_4, %c0_5], %10 {strides = array<i32>} : memref<1x1x512xbf16, #tpu.memory_space<vmem>>, vector<1x1x512xbf16>,
    return
  }
  func.func @transform_0(%arg0: i32) -> (i32, i32, i32) {
    %c0_i32 = arith.constant 0 : i32
    %c0_i32_0 = arith.constant 0 : i32
    %c0_i32_1 = arith.constant 0 : i32
    return %arg0, %c0_i32, %c0_i32_0 : i32, i32, i32
  }
  func.func @transform_1(%arg0: i32) -> (i32, i32, i32) {
    %c0_i32 = arith.constant 0 : i32
    %c0_i32_0 = arith.constant 0 : i32
    %c0_i32_1 = arith.constant 0 : i32
    return %arg0, %c0_i32, %c0_i32_0 : i32, i32, i32
  }
}

module attributes {stable_mosaic.version = 11 : i64} {
  func.func @_fused_matmul_kernel(%arg0: i32, %arg1: i32, %arg2: i32, %arg3: memref<8x512xbf16, #tpu.memory_space<vmem>>, %arg4: memref<512x128xbf16, #tpu.memory_space<vmem>>, %arg5: memref<1x128xf32, #tpu.memory_space<vmem>>, %arg6: memref<8x128xf32, #tpu.memory_space<vmem>>, %arg7: memref<8x128xf32, #tpu.memory_space<vmem>>) attributes {dimension_semantics = [#tpu.dimension_semantics<parallel>, #tpu.dimension_semantics<parallel>, #tpu.dimension_semantics<arbitrary>], iteration_bounds = array<i64: 1, 1, 1>, scalar_prefetch = 0 : i64, scratch_operands = 1 : i64, tpu.core_type = #tpu.core_type<tc>, window_params = [{transform_indices = @transform_0, window_bounds = array<i64: 8, 512>}, {transform_indices = @transform_1, window_bounds = array<i64: 512, 128>}, {transform_indices = @transform_2, window_bounds = array<i64: 1, 128>}, {transform_indices = @transform_3, window_bounds = array<i64: 8, 128>}]} {
    %c0_i32 = arith.constant 0 : i32
    %0 = arith.cmpi eq, %arg2, %c0_i32 : i32
    %1 = arith.extui %0 : i1 to i32
    %c0_i32_0 = arith.constant 0 : i32
    %2 = arith.cmpi ne, %1, %c0_i32_0 : i32
    scf.if %2 {
      %cst_10 = arith.constant 0.000000e+00 : f32
      %12 = vector.broadcast %cst_10 : f32 to vector<8x128xf32>
      %c0_11 = arith.constant 0 : index
      %c0_12 = arith.constant 0 : index
      %13 = vector.load %arg7[%c0_11, %c0_12] : memref<8x128xf32, #tpu.memory_space<vmem>>, vector<8x128xf32>
      tpu.vector_store %arg7[%c0_11, %c0_12], %12 {strides = array<i32>} : memref<8x128xf32, #tpu.memory_space<vmem>>, vector<8x128xf32>,
    } else {
    }
    %c0 = arith.constant 0 : index
    %c0_1 = arith.constant 0 : index
    %3 = vector.load %arg7[%c0, %c0_1] : memref<8x128xf32, #tpu.memory_space<vmem>>, vector<8x128xf32>
    %c0_2 = arith.constant 0 : index
    %c0_3 = arith.constant 0 : index
    %4 = vector.load %arg3[%c0_2, %c0_3] : memref<8x512xbf16, #tpu.memory_space<vmem>>, vector<8x512xbf16>
    %c0_4 = arith.constant 0 : index
    %c0_5 = arith.constant 0 : index
    %5 = vector.load %arg4[%c0_4, %c0_5] : memref<512x128xbf16, #tpu.memory_space<vmem>>, vector<512x128xbf16>
    %cst = arith.constant dense<0.000000e+00> : vector<8x128xf32>
    %6 = tpu.matmul %4, %5, %cst {dimension_numbers = #tpu.dot_dimension_numbers<[1], [0], [0], [1], [0, 0, 1, 1], [], []>} : vector<8x512xbf16>, vector<512x128xbf16>, vector<8x128xf32> -> vector<8x128xf32>
    %7 = arith.addf %3, %6 : vector<8x128xf32>
    %c0_6 = arith.constant 0 : index
    %c0_7 = arith.constant 0 : index
    %8 = vector.load %arg7[%c0_6, %c0_7] : memref<8x128xf32, #tpu.memory_space<vmem>>, vector<8x128xf32>
    tpu.vector_store %arg7[%c0_6, %c0_7], %7 {strides = array<i32>} : memref<8x128xf32, #tpu.memory_space<vmem>>, vector<8x128xf32>,
    %c0_i32_8 = arith.constant 0 : i32
    %9 = arith.cmpi eq, %arg2, %c0_i32_8 : i32
    %10 = arith.extui %9 : i1 to i32
    %c0_i32_9 = arith.constant 0 : i32
    %11 = arith.cmpi ne, %10, %c0_i32_9 : i32
    scf.if %11 {
      %c0_10 = arith.constant 0 : index
      %c0_11 = arith.constant 0 : index
      %12 = vector.load %arg7[%c0_10, %c0_11] : memref<8x128xf32, #tpu.memory_space<vmem>>, vector<8x128xf32>
      %c0_12 = arith.constant 0 : index
      %c0_13 = arith.constant 0 : index
      %13 = vector.load %arg5[%c0_12, %c0_13] : memref<1x128xf32, #tpu.memory_space<vmem>>, vector<1x128xf32>
      %14 = vector.broadcast %13 : vector<1x128xf32> to vector<8x128xf32>
      %15 = arith.addf %12, %14 : vector<8x128xf32>
      %c0_14 = arith.constant 0 : index
      %c0_15 = arith.constant 0 : index
      %16 = vector.load %arg6[%c0_14, %c0_15] : memref<8x128xf32, #tpu.memory_space<vmem>>, vector<8x128xf32>
      tpu.vector_store %arg6[%c0_14, %c0_15], %15 {strides = array<i32>} : memref<8x128xf32, #tpu.memory_space<vmem>>, vector<8x128xf32>,
    } else {
    }
    return
  }
  func.func @transform_0(%arg0: i32, %arg1: i32, %arg2: i32) -> (i32, i32) {
    %c0_i32 = arith.constant 0 : i32
    return %arg0, %arg2 : i32, i32
  }
  func.func @transform_1(%arg0: i32, %arg1: i32, %arg2: i32) -> (i32, i32) {
    %c0_i32 = arith.constant 0 : i32
    return %arg2, %arg1 : i32, i32
  }
  func.func @transform_2(%arg0: i32, %arg1: i32, %arg2: i32) -> (i32, i32) {
    %c0_i32 = arith.constant 0 : i32
    %c0_i32_0 = arith.constant 0 : i32
    return %c0_i32, %arg1 : i32, i32
  }
  func.func @transform_3(%arg0: i32, %arg1: i32, %arg2: i32) -> (i32, i32) {
    %c0_i32 = arith.constant 0 : i32
    return %arg0, %arg1 : i32, i32
  }
}

</mosaic_0001>

<bundles_post_ra>
// kernel: resnet18_forward.23
= control target key start
LH: loop header
LB: loop body
LE: loop exit
PB: predicated region body
PF: predicated region fallthrough
CT: control target
= control target key end

     0   :  { %s1165_s12 = smov 0   ;;  %s1167_s13 = smov 0   ;;  %s1318_s0 = inlined_call_operand.vmem [shape: bf16[512,256], index: 0, kind: input, shape index: {}]   ;;  %s1319_s1 = inlined_call_operand.vmem [shape: bf16[256,128], index: 1, kind: input, shape index: {}]   ;;  %s1320_s2 = inlined_call_operand.vmem [shape: f32[1,128], index: 2, kind: input, shape index: {}]   ;;  %s1321_s3 = inlined_call_operand.vmem [shape: bf16[512,128], index: 3, kind: output, shape index: {}]  }
   0x1   :  { %s1169_s14 = smov 0  }
   0x2 LB: > { %s32_s15 = sadd.s32 1, %s1139_s13  ;;  %p864_p0 = scmp.ge.s32.totalorder %s1143_s14, 1  ;;  %s1143_s14 = sphi %s1169_s14, %s13_s14   ;;  %s1139_s13 = sphi %s1167_s13, %s1323_s13   ;;  %s1135_s12 = sphi %s1165_s12, %s1322_s12  }
   0x3   : > { %p34_p1 = scmp.ge.s32.totalorder %s32_s15, 4  ;;  %p191_p2 = scmp.lt.s32.totalorder %s1143_s14, 5 }
   0x5   : > { %s1325_s15 = smov (%p34_p1, %s32_s15), 0  ;;  %p192_p3 = pnand %p864_p0, %p191_p2 }
   0x6   : > { %s865_s28 = sshll.u32 (!%p192_p3), %s1135_s12, 4 }
   0x7   : > { %195 = sbr.rel (%p192_p3) target bundleno = 242 (0xf2), region = 32  ;;  %p236_p4 = scmp.lt.s32.totalorder (!%p192_p3), %s865_s28, 63 }
   0xc   : > { %v1024_v0 = vld [vmem:[%s1319_s1 + $0x38] sm:$0xff]  ;;  %v1023_v2 = vld [vmem:[%s1319_s1 + $0x30] sm:$0xff]  ;;  %v1022_v4 = vld [vmem:[%s1319_s1 + $0x28] sm:$0xff]  ;;  %s1327_s28 = smov (!%p236_p4, %s865_s28), 63 }
   0xd   : > { %v1032_v1 = vld [vmem:[%s1319_s1 + $0x78] sm:$0xff]  ;;  %527 = vmatpush.bf16.msra.mxu0 %v1024_v0  ;;  %1080 = vmatpush.bf16.msra.mxu2 %v1024_v0  ;;  %v1031_v3 = vld [vmem:[%s1319_s1 + $0x70] sm:$0xff]  ;;  %v1030_v5 = vld [vmem:[%s1319_s1 + $0x68] sm:$0xff]  ;;  %s1000_s17 = sshll.u32 %s1327_s28, 3  ;;  %s869_s5 = sshll.u32 %s1327_s28, 2 }
   0xe   : > { %576 = vmatpush.bf16.msra.mxu1 %v1032_v1  ;;  %1088 = vmatpush.bf16.msra.mxu3 %v1032_v1  ;;  %v1021_v6 = vld [vmem:[%s1319_s1 + $0x20] sm:$0xff]  ;;  %v1020_v8 = vld [vmem:[%s1319_s1 + $0x18] sm:$0xff]  ;;  %v1019_v10 = vld [vmem:[%s1319_s1 + $0x10] sm:$0xff]  ;;  %s1231_s22 = scalar_lea.vmem %s1318_s0, %s1000_s17  ;;  %s1285_s8 = scalar_lea.vmem %s1321_s3, %s869_s5 }
   0xf   : > { %v1029_v7 = vld [vmem:[%s1319_s1 + $0x60] sm:$0xff]  ;;  %v1028_v9 = vld [vmem:[%s1319_s1 + $0x58] sm:$0xff]  ;;  %v1027_v11 = vld [vmem:[%s1319_s1 + $0x50] sm:$0xff] }
  0x10   : > { %v1018_v12 = vld [vmem:[%s1319_s1 + $0x8] sm:$0xff]  ;;  %v1017_v14 = vld [vmem:[%s1319_s1] sm:$0xff]  ;;  %v880_v28 = vld [vmem:[%s1231_s22 + $0x10] sm:$0xf] }
  0x11   : > { %528 = vmatpush.bf16.msra.mxu0 %v1023_v2  ;;  %1081 = vmatpush.bf16.msra.mxu2 %v1023_v2  ;;  %v1026_v13 = vld [vmem:[%s1319_s1 + $0x48] sm:$0xff]  ;;  %v1025_v15 = vld [vmem:[%s1319_s1 + $0x40] sm:$0xff]  ;;  %v1004_v29 = vld [vmem:[%s1231_s22 + $0x14] sm:$0xf0] }
  0x12   : > { %577 = vmatpush.bf16.msra.mxu1 %v1031_v3  ;;  %1089 = vmatpush.bf16.msra.mxu3 %v1031_v3  ;;  %v872_v16 = vld [vmem:[%s1231_s22] sm:$0xf]  ;;  %v1002_v17 = vld [vmem:[%s1231_s22 + $0x4] sm:$0xf0]  ;;  %v1001_v20 = vld [vmem:[%s1231_s22 + $0x4] sm:$0xf]  ;;  %v881_v36 = vor.u32 %v1004_v29, %v880_v28 }
  0x13   : > { %v904_v18 = vld [vmem:[%s1231_s22 + $0x40] sm:$0xf]  ;;  %v1010_v19 = vld [vmem:[%s1231_s22 + $0x44] sm:$0xf0]  ;;  %v874_v21 = vld [vmem:[%s1231_s22 + $0x8] sm:$0xf0]  ;;  %v873_v24 = vor.u32 %v1002_v17, %v872_v16 }
  0x14   : > { %v1009_v22 = vld [vmem:[%s1231_s22 + $0x44] sm:$0xf]  ;;  %v906_v23 = vld [vmem:[%s1231_s22 + $0x48] sm:$0xf0]  ;;  %v905_v25 = vor.u32 %v1010_v19, %v904_v18  ;;  %v877_v26 = vor.u32 %v1001_v20, %v874_v21  ;;  %v912_v30 = vld [vmem:[%s1231_s22 + $0x50] sm:$0xf] }
  0x15   : > { %529 = vmatpush.bf16.msra.mxu0 %v1022_v4  ;;  %1082 = vmatpush.bf16.msra.mxu2 %v1022_v4  ;;  %v909_v27 = vor.u32 %v1009_v22, %v906_v23  ;;  %v1012_v31 = vld [vmem:[%s1231_s22 + $0x54] sm:$0xf0]  ;;  %v1003_v32 = vld [vmem:[%s1231_s22 + $0x14] sm:$0xf]  ;;  %v882_v33 = vld [vmem:[%s1231_s22 + $0x18] sm:$0xf0] }
  0x16   : > { %578 = vmatpush.bf16.msra.mxu1 %v1030_v5  ;;  %1090 = vmatpush.bf16.msra.mxu3 %v1030_v5  ;;  %v1011_v34 = vld [vmem:[%s1231_s22 + $0x54] sm:$0xf]  ;;  %v914_v35 = vld [vmem:[%s1231_s22 + $0x58] sm:$0xf0]  ;;  %v913_v37 = vor.u32 %v1012_v31, %v912_v30  ;;  %v885_v38 = vor.u32 %v1003_v32, %v882_v33  ;;  %v888_v40 = vld [vmem:[%s1231_s22 + $0x20] sm:$0xf] }
  0x17   : > { %v917_v39 = vor.u32 %v1011_v34, %v914_v35  ;;  %v1006_v41 = vld [vmem:[%s1231_s22 + $0x24] sm:$0xf0]  ;;  %v920_v42 = vld [vmem:[%s1231_s22 + $0x60] sm:$0xf]  ;;  %v1005_v44 = vld [vmem:[%s1231_s22 + $0x24] sm:$0xf] }
  0x18   : > { %v1014_v43 = vld [vmem:[%s1231_s22 + $0x64] sm:$0xf0]  ;;  %v890_v45 = vld [vmem:[%s1231_s22 + $0x28] sm:$0xf0]  ;;  %v1013_v46 = vld [vmem:[%s1231_s22 + $0x64] sm:$0xf]  ;;  %v889_v48 = vor.u32 %v1006_v41, %v888_v40 }
  0x19   : > { %530 = vmatpush.bf16.msra.mxu0 %v1021_v6  ;;  %1083 = vmatpush.bf16.msra.mxu2 %v1021_v6  ;;  %v922_v47 = vld [vmem:[%s1231_s22 + $0x68] sm:$0xf0]  ;;  %v921_v49 = vor.u32 %v1014_v43, %v920_v42  ;;  %v893_v50 = vor.u32 %v1005_v44, %v890_v45  ;;  %v896_v52 = vld [vmem:[%s1231_s22 + $0x30] sm:$0xf]  ;;  %v1008_v53 = vld [vmem:[%s1231_s22 + $0x34] sm:$0xf0] }
  0x1a   : > { %579 = vmatpush.bf16.msra.mxu1 %v1029_v7  ;;  %1091 = vmatpush.bf16.msra.mxu3 %v1029_v7  ;;  %v925_v51 = vor.u32 %v1013_v46, %v922_v47  ;;  %v928_v54 = vld [vmem:[%s1231_s22 + $0x70] sm:$0xf]  ;;  %v1016_v55 = vld [vmem:[%s1231_s22 + $0x74] sm:$0xf0]  ;;  %v1007_v56 = vld [vmem:[%s1231_s22 + $0x34] sm:$0xf]  ;;  %v897_v60 = vor.u32 %v1008_v53, %v896_v52 }
  0x1b   : > { %v898_v57 = vld [vmem:[%s1231_s22 + $0x38] sm:$0xf0]  ;;  %v1015_v58 = vld [vmem:[%s1231_s22 + $0x74] sm:$0xf]  ;;  %v929_v61 = vor.u32 %v1016_v55, %v928_v54  ;;  %v1277_v3 = vld [vmem:[%s1320_s2] ss:$0 sm:$0xff] }
  0x1c   : > { %v930_v59 = vld [vmem:[%s1231_s22 + $0x78] sm:$0xf0]  ;;  %v901_v62 = vor.u32 %v1007_v56, %v898_v57 }
  0x1d   : > { %531 = vmatpush.bf16.msra.mxu0 %v1020_v8  ;;  %1084 = vmatpush.bf16.msra.mxu2 %v1020_v8  ;;  %v933_v63 = vor.u32 %v1015_v58, %v930_v59 }
  0x1e   : > { %580 = vmatpush.bf16.msra.mxu1 %v1028_v9  ;;  %1092 = vmatpush.bf16.msra.mxu3 %v1028_v9 }
  0x21   : > { %532 = vmatpush.bf16.msra.mxu0 %v1019_v10  ;;  %1085 = vmatpush.bf16.msra.mxu2 %v1019_v10 }
  0x22   : > { %581 = vmatpush.bf16.msra.mxu1 %v1027_v11  ;;  %1093 = vmatpush.bf16.msra.mxu3 %v1027_v11 }
  0x25   : > { %533 = vmatpush.bf16.msra.mxu0 %v1018_v12  ;;  %1086 = vmatpush.bf16.msra.mxu2 %v1018_v12 }
  0x26   : > { %582 = vmatpush.bf16.msra.mxu1 %v1026_v13  ;;  %1094 = vmatpush.bf16.msra.mxu3 %v1026_v13 }
  0x29   : > { %534 = vmatpush.bf16.msra.mxu0 %v1017_v14  ;;  %1087 = vmatpush.bf16.msra.mxu2 %v1017_v14 }
  0x2a   : > { %583 = vmatpush.bf16.msra.mxu1 %v1025_v15  ;;  %1095 = vmatpush.bf16.msra.mxu3 %v1025_v15 }
  0x2c   : > { %535 = vmatmul.bf16.vlgmr.msra.gmra.mxu0 %v873_v24  ;;  %555 = vmatmul.bf16.vlgmr.msra.gmra.mxu2 %v905_v25 }
  0x2d   : > { %584 = vmatmul.bf16.vlgmr.msra.gmra.mxu1 %v877_v26  ;;  %604 = vmatmul.bf16.vlgmr.msra.gmra.mxu3 %v909_v27 }
  0x3c   : > { %540 = vmatmul.bf16.gmra.mxu0 %v881_v36  ;;  %560 = vmatmul.bf16.gmra.mxu2 %v913_v37 }
  0x3d   : > { %589 = vmatmul.bf16.gmra.mxu1 %v885_v38  ;;  %609 = vmatmul.bf16.gmra.mxu3 %v917_v39 }
  0x4c   : > { %545 = vmatmul.bf16.gmra.mxu0 %v889_v48  ;;  %565 = vmatmul.bf16.gmra.mxu2 %v921_v49 }
  0x4d   : > { %594 = vmatmul.bf16.gmra.mxu1 %v893_v50  ;;  %614 = vmatmul.bf16.gmra.mxu3 %v925_v51 }
  0x5c   : > { %550 = vmatmul.bf16.gmra.mxu0 %v897_v60  ;;  %570 = vmatmul.bf16.gmra.mxu2 %v929_v61 }
  0x5d   : > { %599 = vmatmul.bf16.gmra.mxu1 %v901_v62  ;;  %619 = vmatmul.bf16.gmra.mxu3 %v933_v63 }
  0xa9   : > { %v536_v0 = vpop.f32.mrf.mxu0 }
  0xaa   : > { %v585_v1 = vpop.f32.mrf.mxu1 }
  0xab   : > { %v586_v2 = vadd.f32 %v585_v1, %v536_v0 }
  0xad   : > { %v680_v8 = vadd.f32 %v1277_v3, %v586_v2 }
  0xaf   : > { %v556_v4 = vpop.f32.mrf.mxu2  ;;  %v696_v12 = vmax.f32 %v680_v8, 0.0 }
  0xb0   : > { %v605_v5 = vpop.f32.mrf.mxu3 }
  0xb1   : > { %v538_v6 = vpop.f32.mrf.mxu0  ;;  %v606_v10 = vadd.f32 %v605_v5, %v556_v4 }
  0xb2   : > { %v587_v7 = vpop.f32.mrf.mxu1 }
  0xb3   : > { %v588_v9 = vadd.f32 %v587_v7, %v538_v6  ;;  %v688_v16 = vadd.f32 %v1277_v3, %v606_v10 }
  0xb5   : > { %v681_v11 = vadd.f32 %v1277_v3, %v588_v9  ;;  %v704_v22 = vmax.f32 %v688_v16, 0.0 }
  0xb7   : > { %v697_v13 = vmax.f32 %v681_v11, 0.0  ;;  %v558_v14 = vpop.f32.mrf.mxu2 }
  0xb8   : > { %v607_v15 = vpop.f32.mrf.mxu3 }
  0xb9   : > { %v1036_v17 = vpack.c.bf16 %v697_v13, %v696_v12  ;;  %v608_v18 = vadd.f32 %v607_v15, %v558_v14  ;;  %v541_v19 = vpop.f32.mrf.mxu0 }
  0xba   : > { %v590_v20 = vpop.f32.mrf.mxu1 }
  0xbb   : > { %1037 = vst [vmem:[%s1285_s8] sm:$0xff] %v1036_v17   ;;  %v689_v21 = vadd.f32 %v1277_v3, %v608_v18  ;;  %v591_v25 = vadd.f32 %v590_v20, %v541_v19 }
  0xbd   : > { %v705_v23 = vmax.f32 %v689_v21, 0.0  ;;  %v682_v30 = vadd.f32 %v1277_v3, %v591_v25 }
  0xbf   : > { %v1056_v24 = vpack.c.bf16 %v705_v23, %v704_v22  ;;  %v561_v26 = vpop.f32.mrf.mxu2  ;;  %v698_v34 = vmax.f32 %v682_v30, 0.0 }
  0xc0   : > { %v610_v27 = vpop.f32.mrf.mxu3 }
  0xc1   : > { %1076 = vst [vmem:[%s1285_s8 + $0x20] sm:$0xff] %v1056_v24   ;;  %v543_v28 = vpop.f32.mrf.mxu0  ;;  %v611_v32 = vadd.f32 %v610_v27, %v561_v26 }
  0xc2   : > { %v592_v29 = vpop.f32.mrf.mxu1 }
  0xc3   : > { %v593_v31 = vadd.f32 %v592_v29, %v543_v28  ;;  %v690_v38 = vadd.f32 %v1277_v3, %v611_v32 }
  0xc5   : > { %v683_v33 = vadd.f32 %v1277_v3, %v593_v31  ;;  %v706_v44 = vmax.f32 %v690_v38, 0.0 }
  0xc7   : > { %v699_v35 = vmax.f32 %v683_v33, 0.0  ;;  %v563_v36 = vpop.f32.mrf.mxu2 }
  0xc8   : > { %v612_v37 = vpop.f32.mrf.mxu3 }
  0xc9   : > { %v1041_v39 = vpack.c.bf16 %v699_v35, %v698_v34  ;;  %v613_v40 = vadd.f32 %v612_v37, %v563_v36  ;;  %v546_v41 = vpop.f32.mrf.mxu0 }
  0xca   : > { %v595_v42 = vpop.f32.mrf.mxu1 }
  0xcb   : > { %1073 = vst [vmem:[%s1285_s8 + $0x8] sm:$0xff] %v1041_v39   ;;  %v691_v43 = vadd.f32 %v1277_v3, %v613_v40  ;;  %v596_v47 = vadd.f32 %v595_v42, %v546_v41 }
  0xcd   : > { %v707_v45 = vmax.f32 %v691_v43, 0.0  ;;  %v684_v52 = vadd.f32 %v1277_v3, %v596_v47 }
  0xcf   : > { %v1061_v46 = vpack.c.bf16 %v707_v45, %v706_v44  ;;  %v566_v48 = vpop.f32.mrf.mxu2  ;;  %v700_v56 = vmax.f32 %v684_v52, 0.0 }
  0xd0   : > { %v615_v49 = vpop.f32.mrf.mxu3 }
  0xd1   : > { %1077 = vst [vmem:[%s1285_s8 + $0x28] sm:$0xff] %v1061_v46   ;;  %v548_v50 = vpop.f32.mrf.mxu0  ;;  %v616_v54 = vadd.f32 %v615_v49, %v566_v48 }
  0xd2   : > { %v597_v51 = vpop.f32.mrf.mxu1 }
  0xd3   : > { %v598_v53 = vadd.f32 %v597_v51, %v548_v50  ;;  %v692_v60 = vadd.f32 %v1277_v3, %v616_v54 }
  0xd5   : > { %v685_v55 = vadd.f32 %v1277_v3, %v598_v53  ;;  %v708_v2 = vmax.f32 %v692_v60, 0.0 }
  0xd7   : > { %v701_v57 = vmax.f32 %v685_v55, 0.0  ;;  %v568_v58 = vpop.f32.mrf.mxu2 }
  0xd8   : > { %v617_v59 = vpop.f32.mrf.mxu3 }
  0xd9   : > { %v1046_v61 = vpack.c.bf16 %v701_v57, %v700_v56  ;;  %v618_v62 = vadd.f32 %v617_v59, %v568_v58  ;;  %v551_v63 = vpop.f32.mrf.mxu0 }
  0xda   : > { %v600_v0 = vpop.f32.mrf.mxu1 }
  0xdb   : > { %1074 = vst [vmem:[%s1285_s8 + $0x10] sm:$0xff] %v1046_v61   ;;  %v693_v1 = vadd.f32 %v1277_v3, %v618_v62  ;;  %v601_v6 = vadd.f32 %v600_v0, %v551_v63 }
  0xdd   : > { %v709_v4 = vmax.f32 %v693_v1, 0.0  ;;  %v686_v11 = vadd.f32 %v1277_v3, %v601_v6 }
  0xdf   : > { %v1066_v5 = vpack.c.bf16 %v709_v4, %v708_v2  ;;  %v571_v7 = vpop.f32.mrf.mxu2  ;;  %v702_v15 = vmax.f32 %v686_v11, 0.0 }
  0xe0   : > { %v620_v8 = vpop.f32.mrf.mxu3 }
  0xe1   : > { %1078 = vst [vmem:[%s1285_s8 + $0x30] sm:$0xff] %v1066_v5   ;;  %v553_v9 = vpop.f32.mrf.mxu0  ;;  %v621_v13 = vadd.f32 %v620_v8, %v571_v7 }
  0xe2   : > { %v602_v10 = vpop.f32.mrf.mxu1 }
  0xe3   : > { %v603_v12 = vadd.f32 %v602_v10, %v553_v9  ;;  %v694_v19 = vadd.f32 %v1277_v3, %v621_v13 }
  0xe5   : > { %v687_v14 = vadd.f32 %v1277_v3, %v603_v12  ;;  %v710_v23 = vmax.f32 %v694_v19, 0.0 }
  0xe7   : > { %v703_v16 = vmax.f32 %v687_v14, 0.0  ;;  %v573_v17 = vpop.f32.mrf.mxu2 }
  0xe8   : > { %v622_v18 = vpop.f32.mrf.mxu3 }
  0xe9   : > { %v1051_v20 = vpack.c.bf16 %v703_v16, %v702_v15  ;;  %v623_v21 = vadd.f32 %v622_v18, %v573_v17 }
  0xeb   : > { %1075 = vst [vmem:[%s1285_s8 + $0x18] sm:$0xff] %v1051_v20   ;;  %v695_v22 = vadd.f32 %v1277_v3, %v623_v21 }
  0xed   : > { %v711_v24 = vmax.f32 %v695_v22, 0.0 }
  0xef   : > { %v1071_v25 = vpack.c.bf16 %v711_v24, %v710_v23 }
  0xf1   : > { %1079 = vst [vmem:[%s1285_s8 + $0x38] sm:$0xff] %v1071_v25  }
  0xf2 PF: > { %s13_s14 = sadd.s32 1, %s1143_s14   ;;  %s1322_s12 = smov %s1139_s13 }
  0xf3   : > { %p10_p5 = scmp.ge.s32.totalorder %s13_s14, 6   ;;  %s1323_s13 = smov %s1325_s15 }
  0xf5   :  { %12 = sbr.rel (!%p10_p5) target bundleno = 2 (0x2), region = 76 }

// kernel: resnet18_forward.24
= control target key start
LH: loop header
LB: loop body
LE: loop exit
PB: predicated region body
PF: predicated region fallthrough
CT: control target
= control target key end

     0   :  { %s315_s6 = smov 0   ;;  %s348_s0 = inlined_call_operand.vmem [shape: bf16[2,9,2,9,128], index: 0, kind: input, shape index: {}]   ;;  %s349_s1 = inlined_call_operand.vmem [shape: bf16[2,8,8,64], index: 1, kind: output, shape index: {}]  }
   0x1 LB: > { %s247_s7 = sadd.s32 4294967295, %s298_s6   ;;  %p251_p0 = scmp.ge.s32.totalorder %s298_s6, 1  ;;  %s298_s6 = sphi %s315_s6, %s11_s6  }
   0x2   : > { %p87_p1 = scmp.lt.s32.totalorder %s298_s6, 3 }
   0x4   : > { %p88_p2 = pnand %p251_p0, %p87_p1 }
   0x5   : > { %p107_p3 = scmp.lt.s32.totalorder (!%p88_p2), %s247_s7, 1  ;;  %s333_s16 = smov (!%p88_p2), 0  }
   0x6   : > { %91 = sbr.rel (%p88_p2) target bundleno = 150 (0x96), region = 24 }
   0xb   : > { %s351_s7 = smov (!%p107_p3, %s247_s7), 1 }
   0xc   : > { %s270_s8 = smul.u32 144, %s351_s7  ;;  %s267_s9 = sshll.u32 %s351_s7, 5 }
   0xd   : > { %s326_s12 = scalar_lea.vmem %s349_s1, %s267_s9 }
   0xe   : > { %s331_s15 = scalar_lea.vmem %s348_s0, %s270_s8 }
   0xf LB: >> { %s268_s17 = sshll.u32 %s302_s16, 4  ;;  %s304_s19 = smov 64   ;;  %vm165_vm0 = vcmask 1046528   ;;  %vm174_vm1 = vcmask 519168   ;;  %s302_s16 = sphi %s333_s16, %s122_s16  }
  0x10   : >> { %s125_s18 = scalar_lea.vmem %s331_s15, %s268_s17  ;;  %s264_s20 = sshll.u32 %s302_s16, 2 }
  0x11   : >> { %v126_v0 = vld [vmem:[%s125_s18] sm:$0xf]  ;;  %v259_v1 = vld [vmem:[%s125_s18 + $0x8] sm:$0xf]  ;;  %v262_v2 = vld [vmem:[%s125_s18 + $0x10] sm:$0xf]  ;;  %s173_s21 = scalar_lea.vmem %s326_s12, %s264_s20 }
  0x12   : >> { %v139_v3 = vunpack.c.l.bf16 %v126_v0  ;;  %v141_v4 = vunpack.c.l.bf16 %v259_v1  ;;  %v149_v5 = vunpack.c.l.bf16 %v262_v2  ;;  %v127_v10 = vld [vmem:[%s125_s18 + $0x4] sm:$0x1]  ;;  %v260_v11 = vld [vmem:[%s125_s18 + $0xc] sm:$0x1]  ;;  %v263_v14 = vld [vmem:[%s125_s18 + $0x14] sm:$0x1] }
  0x13   : >> { %v140_v12 = vunpack.c.l.bf16 %v127_v10  ;;  %v142_v13 = vunpack.c.l.bf16 %v260_v11  ;;  %v150_v16 = vunpack.c.l.bf16 %v263_v14  ;;  %s122_s16 = sadd.s32 1, %s302_s16  }
  0x14   : >> { %v143_v6 = vmax.f32 %v139_v3, %v141_v4  ;;  %p119_p4 = scmp.ge.s32.totalorder %s122_s16, 8  }
  0x15   : >> { %v144_v15 = vmax.f32 %v140_v12, %v142_v13 }
  0x16   : >> { %v151_v7 = vmax.f32 %v143_v6, %v149_v5 }
  0x17   : >> { %v152_v17 = vmax.f32 %v144_v15, %v150_v16 }
  0x18   : >> { %v153_v8 = vpack.c.bf16 %v151_v7, %v151_v7 }
  0x19   : >> { %v167_v19 = vrot.slane %v152_v17, 1 }
  0x1a   : >> { %v155_v9 = vunpack.c.l.bf16 %v153_v8 }
  0x1c   : >> { %157 = vrot.lane.b32.xlu0 %v155_v9, %s304_s19  ;;  %v166_v18 = vrot.slane %v155_v9, 1 }
  0x1e   : >> { %v168_v21 = vsel %vm165_vm0, %v166_v18, %v167_v19 }
  0x8e   : >> { %v158_v20 = vpop.permute.xlu0 %157 }
  0x8f   : >> { %v160_v22 = vmax.f32 %v155_v9, %v158_v20 }
  0x91   : >> { %v170_v23 = vmax.f32 %v160_v22, %v168_v21  ;;  %121 = sbr.rel (!%p119_p4) target bundleno = 15 (0xf), region = 65 }
  0x93   : >> { %v171_v24 = vpack.c.bf16 %v170_v23, %v170_v23 }
  0x95   : >> { %175 = vst.msk [vmem:[%s173_s21] sm:$0xf] %vm174_vm1, %v171_v24 }
  0x96 PF: > { %s11_s6 = sadd.s32 1, %s298_s6  }
  0x97   : > { %p8_p5 = scmp.ge.s32.totalorder %s11_s6, 4  }
  0x99   :  { %10 = sbr.rel (!%p8_p5) target bundleno = 1 (0x1), region = 76 }

// kernel: resnet18_forward.25
= control target key start
LH: loop header
LB: loop body
LE: loop exit
PB: predicated region body
PF: predicated region fallthrough
CT: control target
= control target key end

     0   :  { %s1068_s12 = smov 0   ;;  %s1070_s13 = smov 0   ;;  %s1200_s0 = inlined_call_operand.vmem [shape: bf16[128,640], index: 0, kind: input, shape index: {}]   ;;  %s1201_s1 = inlined_call_operand.vmem [shape: bf16[640,128], index: 1, kind: input, shape index: {}]   ;;  %s1202_s2 = inlined_call_operand.vmem [shape: f32[1,128], index: 2, kind: input, shape index: {}]   ;;  %s1203_s3 = inlined_call_operand.vmem [shape: bf16[128,128], index: 3, kind: output, shape index: {}]  }
   0x1   :  { %s1072_s14 = smov 0   ;;  %s1074_s15 = smov 0  }
   0x2   :  { %s1076_s16 = smov 0  }
   0x3 LB: > { %s25_s17 = sadd.s32 1, %s1041_s15  ;;  %p48_p1 = scmp.ne.s32.totalorder %s1033_s13, %s1029_s12  ;;  %s1045_s16 = sphi %s1076_s16, %s13_s16   ;;  %s1041_s15 = sphi %s1074_s15, %s1207_s15   ;;  %s1037_s14 = sphi %s1072_s14, %s1206_s14   ;;  %s1033_s13 = sphi %s1070_s13, %s1205_s13   ;;  %s1029_s12 = sphi %s1068_s12, %s1204_s12  }
   0x4   : > { %p26_p0 = scmp.ge.s32.totalorder %s25_s17, 5  ;;  %p49_p2 = scmp.eq.s32.totalorder %s1045_s16, 0 }
   0x5   : > { %s41_s19 = sadd.s32 1, %s1033_s13  ;;  %p801_p5 = scmp.ge.s32.totalorder %s1045_s16, 5 }
   0x6   : > { %s1209_s17 = smov (%p26_p0, %s25_s17), 0  ;;  %p50_p3 = por %p49_p2, %p48_p1 }
   0x7   : > { %s37_s18 = ssub.s32 %s1041_s15, %s1209_s17  ;;  %162 = sbr.rel (%p801_p5) target bundleno = 32 (0x20), region = 20 }
   0x8   : > { %p39_p4 = scmp.eq.s32.totalorder %s37_s18, 0 }
   0xa   : > { %s1103_s20 = scalar_select %p39_p4, %s1033_s13, %s41_s19  }
   0xc   : > { %165 = sbr.rel (!%p50_p3) target bundleno = 32 (0x20), region = 24  ;;  %s167_s21 = sand.u32 (%p50_p3), 1, %s1033_s13  }
   0xd   : > { %s803_s22 = sshll.u32 (%p50_p3), %s1041_s15, 2  ;;  %s802_s23 = sshll.u32 (%p50_p3), %s167_s21, 6 }
   0xe   : > { %s1111_s26 = scalar_lea.vmem (%p50_p3), %s1200_s0, %s803_s22  ;;  %s169_s27 = scalar_lea.vmem (%p50_p3), [#allocation3], %s802_s23 }
   0xf   : > { %v191_v0 = vld [vmem:[%s1111_s26] sm:$0xf] (%p50_p3)  ;;  %v193_v1 = vld [vmem:[%s1111_s26 + $0x14] sm:$0xf] (%p50_p3)  ;;  %v195_v2 = vld [vmem:[%s1111_s26 + $0x28] sm:$0xf] (%p50_p3) }
  0x10   : > { %192 = vst [vmem:[%s169_s27] sm:$0xf] (%p50_p3), %v191_v0  ;;  %v197_v3 = vld [vmem:[%s1111_s26 + $0x3c] sm:$0xf] (%p50_p3)  ;;  %v199_v4 = vld [vmem:[%s1111_s26 + $0x50] sm:$0xf] (%p50_p3) }
  0x11   : > { %194 = vst [vmem:[%s169_s27 + $0x4] sm:$0xf] %v193_v1  ;;  %v201_v5 = vld [vmem:[%s1111_s26 + $0x64] sm:$0xf]  ;;  %v203_v6 = vld [vmem:[%s1111_s26 + $0x78] sm:$0xf] }
  0x12   : > { %196 = vst [vmem:[%s169_s27 + $0x8] sm:$0xf] %v195_v2  ;;  %v205_v7 = vld [vmem:[%s1111_s26 + $0x8c] sm:$0xf]  ;;  %v207_v8 = vld [vmem:[%s1111_s26 + $0xa0] sm:$0xf] }
  0x13   : > { %198 = vst [vmem:[%s169_s27 + $0xc] sm:$0xf] %v197_v3  ;;  %v209_v9 = vld [vmem:[%s1111_s26 + $0xb4] sm:$0xf]  ;;  %v211_v10 = vld [vmem:[%s1111_s26 + $0xc8] sm:$0xf] }
  0x14   : > { %200 = vst [vmem:[%s169_s27 + $0x10] sm:$0xf] %v199_v4  ;;  %v213_v11 = vld [vmem:[%s1111_s26 + $0xdc] sm:$0xf]  ;;  %v215_v12 = vld [vmem:[%s1111_s26 + $0xf0] sm:$0xf] }
  0x15   : > { %202 = vst [vmem:[%s169_s27 + $0x14] sm:$0xf] %v201_v5  ;;  %v217_v13 = vld [vmem:[%s1111_s26 + $0x104] sm:$0xf]  ;;  %v219_v14 = vld [vmem:[%s1111_s26 + $0x118] sm:$0xf] }
  0x16   : > { %204 = vst [vmem:[%s169_s27 + $0x18] sm:$0xf] %v203_v6  ;;  %v221_v15 = vld [vmem:[%s1111_s26 + $0x12c] sm:$0xf] }
  0x17   : > { %206 = vst [vmem:[%s169_s27 + $0x1c] sm:$0xf] %v205_v7 }
  0x18   : > { %208 = vst [vmem:[%s169_s27 + $0x20] sm:$0xf] %v207_v8 }
  0x19   : > { %210 = vst [vmem:[%s169_s27 + $0x24] sm:$0xf] %v209_v9 }
  0x1a   : > { %212 = vst [vmem:[%s169_s27 + $0x28] sm:$0xf] %v211_v10 }
  0x1b   : > { %214 = vst [vmem:[%s169_s27 + $0x2c] sm:$0xf] %v213_v11 }
  0x1c   : > { %216 = vst [vmem:[%s169_s27 + $0x30] sm:$0xf] %v215_v12 }
  0x1d   : > { %218 = vst [vmem:[%s169_s27 + $0x34] sm:$0xf] %v217_v13 }
  0x1e   : > { %220 = vst [vmem:[%s169_s27 + $0x38] sm:$0xf] %v219_v14 }
  0x1f   : > { %222 = vst [vmem:[%s169_s27 + $0x3c] sm:$0xf] %v221_v15 }
  0x20 PF: > { %p804_p6 = scmp.ge.s32.totalorder %s1045_s16, 1  ;;  %p289_p7 = scmp.lt.s32.totalorder %s1045_s16, 6 }
  0x22   : > { %p290_p8 = pnand %p804_p6, %p289_p7 }
  0x23   : > { %s296_s28 = sand.u32 (!%p290_p8), 1, %s1029_s12   ;;  %s806_s29 = sshll.u32 (!%p290_p8), %s1037_s14, 4 }
  0x24   : > { %293 = sbr.rel (%p290_p8) target bundleno = 272 (0x110), region = 69  ;;  %s805_s30 = sshll.u32 (!%p290_p8), %s296_s28, 6 }
  0x25   : > { %p335_p9 = scmp.lt.s32.totalorder (!%p290_p8), %s806_s29, 79  ;;  %s1138_s8 = scalar_lea.vmem (!%p290_p8), [#allocation3], %s805_s30 }
  0x26   : > { %p808_p10 = scmp.ne.s32.totalorder (!%p290_p8), %s1037_s14, 0 }
  0x29   : > { %s1211_s29 = smov (!%p335_p9, %s806_s29), 79  ;;  %358 = sbr.rel (%p808_p10) target bundleno = 63 (0x3f), region = 77 }
  0x2a   : > { %s807_s4 = sshll.u32 %s1211_s29, 2 }
  0x2b   : > { %s1136_s7 = scalar_lea.vmem %s1201_s1, %s807_s4 }
  0x2e   : > { %v1047_v16 = vmov 0.0  }
  0x2f   : > { %359 = vst [vmem:[#allocation2 + $0x30] sm:$0xff] %v1047_v16 }
  0x30   : > { %360 = vst [vmem:[#allocation2] sm:$0xff] %v1047_v16 }
  0x31   : > { %361 = vst [vmem:[#allocation2 + $0x58] sm:$0xff] %v1047_v16 }
  0x32   : > { %362 = vst [vmem:[#allocation2 + $0x18] sm:$0xff] %v1047_v16 }
  0x33   : > { %363 = vst [vmem:[#allocation2 + $0x50] sm:$0xff] %v1047_v16 }
  0x34   : > { %364 = vst [vmem:[#allocation2 + $0x68] sm:$0xff] %v1047_v16 }
  0x35   : > { %365 = vst [vmem:[#allocation2 + $0x8] sm:$0xff] %v1047_v16 }
  0x36   : > { %366 = vst [vmem:[#allocation2 + $0x48] sm:$0xff] %v1047_v16 }
  0x37   : > { %367 = vst [vmem:[#allocation2 + $0x40] sm:$0xff] %v1047_v16 }
  0x38   : > { %368 = vst [vmem:[#allocation2 + $0x20] sm:$0xff] %v1047_v16 }
  0x39   : > { %369 = vst [vmem:[#allocation2 + $0x10] sm:$0xff] %v1047_v16 }
  0x3a   : > { %370 = vst [vmem:[#allocation2 + $0x38] sm:$0xff] %v1047_v16 }
  0x3b   : > { %371 = vst [vmem:[#allocation2 + $0x60] sm:$0xff] %v1047_v16 }
  0x3c   : > { %372 = vst [vmem:[#allocation2 + $0x70] sm:$0xff] %v1047_v16 }
  0x3d   : > { %373 = vst [vmem:[#allocation2 + $0x78] sm:$0xff] %v1047_v16 }
  0x3e   : > { %374 = vst [vmem:[#allocation2 + $0x28] sm:$0xff] %v1047_v16 }
  0x3f PF: > { %v893_v17 = vld [vmem:[%s1136_s7 + $0x38] sm:$0xff]  ;;  %v892_v18 = vld [vmem:[%s1136_s7 + $0x30] sm:$0xff]  ;;  %v891_v19 = vld [vmem:[%s1136_s7 + $0x28] sm:$0xff]  ;;  %p873_p11 = scmp.ne.s32.totalorder %s1037_s14, 4 }
  0x40   : > { %519 = vmatpush.bf16.msra.mxu0 %v893_v17  ;;  %941 = vmatpush.bf16.msra.mxu1 %v893_v17  ;;  %v890_v20 = vld [vmem:[%s1136_s7 + $0x20] sm:$0xff]  ;;  %v889_v21 = vld [vmem:[%s1136_s7 + $0x18] sm:$0xff]  ;;  %v888_v22 = vld [vmem:[%s1136_s7 + $0x10] sm:$0xff] }
  0x41   : > { %942 = vmatpush.bf16.msra.mxu2 %v893_v17  ;;  %943 = vmatpush.bf16.msra.mxu3 %v893_v17  ;;  %v887_v23 = vld [vmem:[%s1136_s7 + $0x8] sm:$0xff]  ;;  %v886_v24 = vld [vmem:[%s1136_s7] sm:$0xff]  ;;  %v880_v26 = vld [vmem:[%s1138_s8 + $0x10] sm:$0xff] }
  0x42   : > { %v878_v25 = vld [vmem:[%s1138_s8] sm:$0xff]  ;;  %v884_v28 = vld [vmem:[%s1138_s8 + $0x30] sm:$0xff]  ;;  %v879_v29 = vld [vmem:[%s1138_s8 + $0x8] sm:$0xff] }
  0x43   : > { %v882_v27 = vld [vmem:[%s1138_s8 + $0x20] sm:$0xff]  ;;  %v881_v30 = vld [vmem:[%s1138_s8 + $0x18] sm:$0xff]  ;;  %v883_v31 = vld [vmem:[%s1138_s8 + $0x28] sm:$0xff] }
  0x44   : > { %520 = vmatpush.bf16.msra.mxu0 %v892_v18  ;;  %944 = vmatpush.bf16.msra.mxu1 %v892_v18  ;;  %v885_v32 = vld [vmem:[%s1138_s8 + $0x38] sm:$0xff]  ;;  %v375_v33 = vld [vmem:[#allocation2 + $0x30] sm:$0xff]  ;;  %v383_v39 = vld [vmem:[#allocation2 + $0x40] sm:$0xff] }
  0x45   : > { %945 = vmatpush.bf16.msra.mxu2 %v892_v18  ;;  %946 = vmatpush.bf16.msra.mxu3 %v892_v18  ;;  %v379_v34 = vld [vmem:[#allocation2 + $0x50] sm:$0xff]  ;;  %v387_v40 = vld [vmem:[#allocation2 + $0x60] sm:$0xff]  ;;  %v380_v42 = vld [vmem:[#allocation2 + $0x68] sm:$0xff] }
  0x46   : > { %v376_v41 = vld [vmem:[#allocation2] sm:$0xff]  ;;  %v388_v52 = vld [vmem:[#allocation2 + $0x70] sm:$0xff]  ;;  %v377_v53 = vld [vmem:[#allocation2 + $0x58] sm:$0xff] }
  0x47   : > { %v384_v51 = vld [vmem:[#allocation2 + $0x20] sm:$0xff]  ;;  %v381_v54 = vld [vmem:[#allocation2 + $0x8] sm:$0xff]  ;;  %v385_v63 = vld [vmem:[#allocation2 + $0x10] sm:$0xff] }
  0x48   : > { %521 = vmatpush.bf16.msra.mxu0 %v891_v19  ;;  %947 = vmatpush.bf16.msra.mxu1 %v891_v19  ;;  %v389_v0 = vld [vmem:[#allocation2 + $0x78] sm:$0xff]  ;;  %v382_v2 = vld [vmem:[#allocation2 + $0x48] sm:$0xff] }
  0x49   : > { %948 = vmatpush.bf16.msra.mxu2 %v891_v19  ;;  %949 = vmatpush.bf16.msra.mxu3 %v891_v19  ;;  %v378_v1 = vld [vmem:[#allocation2 + $0x18] sm:$0xff]  ;;  %v390_v12 = vld [vmem:[#allocation2 + $0x28] sm:$0xff] }
  0x4a   : > { %v386_v11 = vld [vmem:[#allocation2 + $0x38] sm:$0xff] }
  0x4c   : > { %522 = vmatpush.bf16.msra.mxu0 %v890_v20  ;;  %950 = vmatpush.bf16.msra.mxu1 %v890_v20 }
  0x4d   : > { %951 = vmatpush.bf16.msra.mxu2 %v890_v20  ;;  %952 = vmatpush.bf16.msra.mxu3 %v890_v20 }
  0x50   : > { %523 = vmatpush.bf16.msra.mxu0 %v889_v21  ;;  %953 = vmatpush.bf16.msra.mxu1 %v889_v21 }
  0x51   : > { %954 = vmatpush.bf16.msra.mxu2 %v889_v21  ;;  %955 = vmatpush.bf16.msra.mxu3 %v889_v21 }
  0x54   : > { %524 = vmatpush.bf16.msra.mxu0 %v888_v22  ;;  %956 = vmatpush.bf16.msra.mxu1 %v888_v22 }
  0x55   : > { %957 = vmatpush.bf16.msra.mxu2 %v888_v22  ;;  %958 = vmatpush.bf16.msra.mxu3 %v888_v22 }
  0x58   : > { %525 = vmatpush.bf16.msra.mxu0 %v887_v23  ;;  %959 = vmatpush.bf16.msra.mxu1 %v887_v23 }
  0x59   : > { %960 = vmatpush.bf16.msra.mxu2 %v887_v23  ;;  %961 = vmatpush.bf16.msra.mxu3 %v887_v23 }
  0x5c   : > { %526 = vmatpush.bf16.msra.mxu0 %v886_v24  ;;  %962 = vmatpush.bf16.msra.mxu1 %v886_v24 }
  0x5d   : > { %963 = vmatpush.bf16.msra.mxu2 %v886_v24  ;;  %964 = vmatpush.bf16.msra.mxu3 %v886_v24 }
  0x5f   : > { %527 = vmatmul.bf16.vlgmr.msra.gmra.mxu0 %v878_v25  ;;  %537 = vmatmul.bf16.vlgmr.msra.gmra.mxu1 %v880_v26 }
  0x60   : > { %547 = vmatmul.bf16.vlgmr.msra.gmra.mxu2 %v882_v27  ;;  %557 = vmatmul.bf16.vlgmr.msra.gmra.mxu3 %v884_v28 }
  0x6f   : > { %532 = vmatmul.bf16.gmra.mxu0 %v879_v29  ;;  %542 = vmatmul.bf16.gmra.mxu1 %v881_v30 }
  0x70   : > { %552 = vmatmul.bf16.gmra.mxu2 %v883_v31  ;;  %562 = vmatmul.bf16.gmra.mxu3 %v885_v32 }
  0xdc   : > { %v528_v35 = vpop.f32.mrf.mxu0  ;;  %v538_v36 = vpop.f32.mrf.mxu1 }
  0xdd   : > { %v568_v37 = vadd.f32 %v528_v35, %v375_v33  ;;  %v572_v38 = vadd.f32 %v538_v36, %v379_v34 }
  0xdf   : > { %584 = vst [vmem:[#allocation2 + $0x30] sm:$0xff] %v568_v37 }
  0xe0   : > { %588 = vst [vmem:[#allocation2 + $0x50] sm:$0xff] %v572_v38 }
  0xe3   : > { %v548_v43 = vpop.f32.mrf.mxu2  ;;  %v558_v44 = vpop.f32.mrf.mxu3 }
  0xe4   : > { %v576_v45 = vadd.f32 %v548_v43, %v383_v39  ;;  %v580_v46 = vadd.f32 %v558_v44, %v387_v40  ;;  %v530_v47 = vpop.f32.mrf.mxu0  ;;  %v540_v48 = vpop.f32.mrf.mxu1 }
  0xe5   : > { %v569_v49 = vadd.f32 %v530_v47, %v376_v41  ;;  %v573_v50 = vadd.f32 %v540_v48, %v380_v42 }
  0xe6   : > { %592 = vst [vmem:[#allocation2 + $0x40] sm:$0xff] %v576_v45 }
  0xe7   : > { %596 = vst [vmem:[#allocation2 + $0x60] sm:$0xff] %v580_v46 }
  0xe8   : > { %585 = vst [vmem:[#allocation2] sm:$0xff] %v569_v49 }
  0xe9   : > { %589 = vst [vmem:[#allocation2 + $0x68] sm:$0xff] %v573_v50 }
  0xeb   : > { %v550_v55 = vpop.f32.mrf.mxu2  ;;  %v560_v56 = vpop.f32.mrf.mxu3 }
  0xec   : > { %v577_v57 = vadd.f32 %v550_v55, %v384_v51  ;;  %v581_v58 = vadd.f32 %v560_v56, %v388_v52  ;;  %v533_v59 = vpop.f32.mrf.mxu0  ;;  %v543_v60 = vpop.f32.mrf.mxu1 }
  0xed   : > { %v570_v61 = vadd.f32 %v533_v59, %v377_v53  ;;  %v574_v62 = vadd.f32 %v543_v60, %v381_v54 }
  0xee   : > { %593 = vst [vmem:[#allocation2 + $0x20] sm:$0xff] %v577_v57 }
  0xef   : > { %597 = vst [vmem:[#allocation2 + $0x70] sm:$0xff] %v581_v58 }
  0xf0   : > { %586 = vst [vmem:[#allocation2 + $0x58] sm:$0xff] %v570_v61 }
  0xf1   : > { %590 = vst [vmem:[#allocation2 + $0x8] sm:$0xff] %v574_v62 }
  0xf3   : > { %v553_v3 = vpop.f32.mrf.mxu2  ;;  %v563_v4 = vpop.f32.mrf.mxu3 }
  0xf4   : > { %v578_v5 = vadd.f32 %v553_v3, %v385_v63  ;;  %v582_v6 = vadd.f32 %v563_v4, %v389_v0  ;;  %v535_v7 = vpop.f32.mrf.mxu0  ;;  %v545_v8 = vpop.f32.mrf.mxu1 }
  0xf5   : > { %v571_v9 = vadd.f32 %v535_v7, %v378_v1  ;;  %v575_v10 = vadd.f32 %v545_v8, %v382_v2 }
  0xf6   : > { %594 = vst [vmem:[#allocation2 + $0x10] sm:$0xff] %v578_v5 }
  0xf7   : > { %598 = vst [vmem:[#allocation2 + $0x78] sm:$0xff] %v582_v6 }
  0xf8   : > { %587 = vst [vmem:[#allocation2 + $0x18] sm:$0xff] %v571_v9 }
  0xf9   : > { %591 = vst [vmem:[#allocation2 + $0x48] sm:$0xff] %v575_v10 }
  0xfb   : > { %v555_v13 = vpop.f32.mrf.mxu2  ;;  %v565_v14 = vpop.f32.mrf.mxu3  ;;  %603 = sbr.rel (%p873_p11) target bundleno = 272 (0x110), region = 81 }
  0xfc   : > { %v579_v15 = vadd.f32 %v555_v13, %v386_v11  ;;  %v583_v16 = vadd.f32 %v565_v14, %v390_v12 }
  0xfe   : > { %595 = vst [vmem:[#allocation2 + $0x38] sm:$0xff] %v579_v15 }
  0xff   : > { %599 = vst [vmem:[#allocation2 + $0x28] sm:$0xff] %v583_v16 }
 0x100   : > { %v604_v17 = vld [vmem:[#allocation2 + $0x30] sm:$0xff]  ;;  %v605_v18 = vld [vmem:[#allocation2] sm:$0xff]  ;;  %v606_v20 = vld [vmem:[#allocation2 + $0x58] sm:$0xff] }
 0x101   : > { %v1006_v19 = vld [vmem:[%s1202_s2] ss:$0 sm:$0xff]  ;;  %v607_v21 = vld [vmem:[#allocation2 + $0x18] sm:$0xff]  ;;  %v608_v22 = vld [vmem:[#allocation2 + $0x50] sm:$0xff] }
 0x102   : > { %v609_v23 = vld [vmem:[#allocation2 + $0x68] sm:$0xff]  ;;  %v624_v25 = vadd.f32 %v1006_v19, %v604_v17  ;;  %v625_v26 = vadd.f32 %v1006_v19, %v605_v18  ;;  %v626_v27 = vadd.f32 %v1006_v19, %v606_v20  ;;  %v627_v28 = vadd.f32 %v1006_v19, %v607_v21  ;;  %v612_v34 = vld [vmem:[#allocation2 + $0x40] sm:$0xff]  ;;  %v614_v40 = vld [vmem:[#allocation2 + $0x10] sm:$0xff] }
 0x103   : > { %v610_v24 = vld [vmem:[#allocation2 + $0x8] sm:$0xff]  ;;  %v628_v30 = vadd.f32 %v1006_v19, %v608_v22  ;;  %v629_v31 = vadd.f32 %v1006_v19, %v609_v23  ;;  %v613_v35 = vld [vmem:[#allocation2 + $0x20] sm:$0xff]  ;;  %v617_v47 = vld [vmem:[#allocation2 + $0x70] sm:$0xff]  ;;  %v632_v50 = vadd.f32 %v1006_v19, %v612_v34  ;;  %v634_v56 = vadd.f32 %v1006_v19, %v614_v40 }
 0x104   : > { %v611_v29 = vld [vmem:[#allocation2 + $0x48] sm:$0xff]  ;;  %v630_v32 = vadd.f32 %v1006_v19, %v610_v24  ;;  %v640_v36 = vmax.f32 %v624_v25, 0.0  ;;  %v641_v37 = vmax.f32 %v625_v26, 0.0  ;;  %v642_v38 = vmax.f32 %v626_v27, 0.0  ;;  %v616_v46 = vld [vmem:[#allocation2 + $0x60] sm:$0xff]  ;;  %v618_v52 = vld [vmem:[#allocation2 + $0x78] sm:$0xff] }
 0x105   : > { %v631_v33 = vadd.f32 %v1006_v19, %v611_v29  ;;  %v643_v39 = vmax.f32 %v627_v28, 0.0  ;;  %v615_v41 = vld [vmem:[#allocation2 + $0x38] sm:$0xff]  ;;  %v644_v42 = vmax.f32 %v628_v30, 0.0  ;;  %v645_v43 = vmax.f32 %v629_v31, 0.0 }
 0x106   : > { %v646_v44 = vmax.f32 %v630_v32, 0.0  ;;  %v897_v48 = vpack.c.bf16 %v641_v37, %v640_v36  ;;  %v633_v51 = vadd.f32 %v1006_v19, %v613_v35  ;;  %v619_v53 = vld [vmem:[#allocation2 + $0x28] sm:$0xff]  ;;  %v635_v57 = vadd.f32 %v1006_v19, %v615_v41 }
 0x107   : > { %v647_v45 = vmax.f32 %v631_v33, 0.0  ;;  %v902_v49 = vpack.c.bf16 %v643_v39, %v642_v38  ;;  %v907_v54 = vpack.c.bf16 %v645_v43, %v644_v42  ;;  %v648_v58 = vmax.f32 %v632_v50, 0.0 }
 0x108   : > { %898 = vst [vmem:[%s1203_s3] sm:$0xff] %v897_v48   ;;  %v649_v59 = vmax.f32 %v633_v51, 0.0  ;;  %v636_v60 = vadd.f32 %v1006_v19, %v616_v46  ;;  %v637_v61 = vadd.f32 %v1006_v19, %v617_v47  ;;  %v650_v62 = vmax.f32 %v634_v56, 0.0 }
 0x109   : > { %v912_v55 = vpack.c.bf16 %v647_v45, %v646_v44  ;;  %934 = vst [vmem:[%s1203_s3 + $0x8] sm:$0xff] %v902_v49   ;;  %v651_v63 = vmax.f32 %v635_v57, 0.0  ;;  %v638_v0 = vadd.f32 %v1006_v19, %v618_v52  ;;  %v639_v1 = vadd.f32 %v1006_v19, %v619_v53 }
 0x10a   : > { %935 = vst [vmem:[%s1203_s3 + $0x10] sm:$0xff] %v907_v54   ;;  %v917_v2 = vpack.c.bf16 %v649_v59, %v648_v58  ;;  %v652_v3 = vmax.f32 %v636_v60, 0.0  ;;  %v653_v4 = vmax.f32 %v637_v61, 0.0 }
 0x10b   : > { %936 = vst [vmem:[%s1203_s3 + $0x18] sm:$0xff] %v912_v55   ;;  %v922_v5 = vpack.c.bf16 %v651_v63, %v650_v62  ;;  %v654_v6 = vmax.f32 %v638_v0, 0.0  ;;  %v655_v7 = vmax.f32 %v639_v1, 0.0 }
 0x10c   : > { %937 = vst [vmem:[%s1203_s3 + $0x20] sm:$0xff] %v917_v2   ;;  %v927_v8 = vpack.c.bf16 %v653_v4, %v652_v3 }
 0x10d   : > { %938 = vst [vmem:[%s1203_s3 + $0x28] sm:$0xff] %v922_v5   ;;  %v932_v9 = vpack.c.bf16 %v655_v7, %v654_v6 }
 0x10e   : > { %939 = vst [vmem:[%s1203_s3 + $0x30] sm:$0xff] %v927_v8  }
 0x10f   : > { %940 = vst [vmem:[%s1203_s3 + $0x38] sm:$0xff] %v932_v9  }
 0x110 PF: > { %s13_s16 = sadd.s32 1, %s1045_s16   ;;  %s1204_s12 = smov %s1033_s13 }
 0x111   : > { %p10_p12 = scmp.ge.s32.totalorder %s13_s16, 7   ;;  %s1205_s13 = smov %s1103_s20 }
 0x112   : > { %s1206_s14 = smov %s1041_s15  ;;  %s1207_s15 = smov %s1209_s17 }
 0x113   :  { %12 = sbr.rel (!%p10_p12) target bundleno = 3 (0x3), region = 122 }

// kernel: resnet18_forward.26
= control target key start
LH: loop header
LB: loop body
LE: loop exit
PB: predicated region body
PF: predicated region fallthrough
CT: control target
= control target key end

     0   :  { %s1239_s15 = smov 0   ;;  %s1241_s16 = smov 0   ;;  %s1413_s0 = inlined_call_operand.vmem [shape: bf16[128,640], index: 0, kind: input, shape index: {}]   ;;  %s1414_s1 = inlined_call_operand.vmem [shape: bf16[640,128], index: 1, kind: input, shape index: {}]   ;;  %s1415_s2 = inlined_call_operand.vmem [shape: f32[1,128], index: 2, kind: input, shape index: {}]   ;;  %s1416_s3 = inlined_call_operand.vmem [shape: bf16[128,128], index: 3, kind: input, shape index: {}]   ;;  %s1417_s4 = inlined_call_operand.vmem [shape: bf16[128,128], index: 4, kind: output, shape index: {}]  }
   0x1   :  { %s1243_s17 = smov 0   ;;  %s1245_s18 = smov 0  }
   0x2   :  { %s1247_s19 = smov 0  }
   0x3 LB: > { %s26_s20 = sadd.s32 1, %s1207_s18  ;;  %p49_p1 = scmp.ne.s32.totalorder %s1199_s16, %s1195_s15  ;;  %s1211_s19 = sphi %s1247_s19, %s14_s19   ;;  %s1207_s18 = sphi %s1245_s18, %s1421_s18   ;;  %s1203_s17 = sphi %s1243_s17, %s1420_s17   ;;  %s1199_s16 = sphi %s1241_s16, %s1419_s16   ;;  %s1195_s15 = sphi %s1239_s15, %s1418_s15  }
   0x4   : > { %p27_p0 = scmp.ge.s32.totalorder %s26_s20, 5  ;;  %p50_p2 = scmp.eq.s32.totalorder %s1211_s19, 0 }
   0x5   : > { %s42_s22 = sadd.s32 1, %s1199_s16  ;;  %p928_p5 = scmp.ge.s32.totalorder %s1211_s19, 5 }
   0x6   : > { %s1423_s20 = smov (%p27_p0, %s26_s20), 0  ;;  %p51_p3 = por %p50_p2, %p49_p1 }
   0x7   : > { %s38_s21 = ssub.s32 %s1207_s18, %s1423_s20  ;;  %203 = sbr.rel (%p928_p5) target bundleno = 32 (0x20), region = 24 }
   0x8   : > { %p40_p4 = scmp.eq.s32.totalorder %s38_s21, 0 }
   0xa   : > { %s1274_s23 = scalar_select %p40_p4, %s1199_s16, %s42_s22  }
   0xc   : > { %206 = sbr.rel (!%p51_p3) target bundleno = 32 (0x20), region = 28  ;;  %s208_s24 = sand.u32 (%p51_p3), 1, %s1199_s16  }
   0xd   : > { %s930_s25 = sshll.u32 (%p51_p3), %s1207_s18, 2  ;;  %s929_s26 = sshll.u32 (%p51_p3), %s208_s24, 6 }
   0xe   : > { %s1282_s29 = scalar_lea.vmem (%p51_p3), %s1413_s0, %s930_s25  ;;  %s210_s30 = scalar_lea.vmem (%p51_p3), [#allocation3], %s929_s26 }
   0xf   : > { %v232_v0 = vld [vmem:[%s1282_s29] sm:$0xf] (%p51_p3)  ;;  %v234_v1 = vld [vmem:[%s1282_s29 + $0x14] sm:$0xf] (%p51_p3)  ;;  %v236_v2 = vld [vmem:[%s1282_s29 + $0x28] sm:$0xf] (%p51_p3) }
  0x10   : > { %233 = vst [vmem:[%s210_s30] sm:$0xf] (%p51_p3), %v232_v0  ;;  %v238_v3 = vld [vmem:[%s1282_s29 + $0x3c] sm:$0xf] (%p51_p3)  ;;  %v240_v4 = vld [vmem:[%s1282_s29 + $0x50] sm:$0xf] (%p51_p3) }
  0x11   : > { %235 = vst [vmem:[%s210_s30 + $0x4] sm:$0xf] %v234_v1  ;;  %v242_v5 = vld [vmem:[%s1282_s29 + $0x64] sm:$0xf]  ;;  %v244_v6 = vld [vmem:[%s1282_s29 + $0x78] sm:$0xf] }
  0x12   : > { %237 = vst [vmem:[%s210_s30 + $0x8] sm:$0xf] %v236_v2  ;;  %v246_v7 = vld [vmem:[%s1282_s29 + $0x8c] sm:$0xf]  ;;  %v248_v8 = vld [vmem:[%s1282_s29 + $0xa0] sm:$0xf] }
  0x13   : > { %239 = vst [vmem:[%s210_s30 + $0xc] sm:$0xf] %v238_v3  ;;  %v250_v9 = vld [vmem:[%s1282_s29 + $0xb4] sm:$0xf]  ;;  %v252_v10 = vld [vmem:[%s1282_s29 + $0xc8] sm:$0xf] }
  0x14   : > { %241 = vst [vmem:[%s210_s30 + $0x10] sm:$0xf] %v240_v4  ;;  %v254_v11 = vld [vmem:[%s1282_s29 + $0xdc] sm:$0xf]  ;;  %v256_v12 = vld [vmem:[%s1282_s29 + $0xf0] sm:$0xf] }
  0x15   : > { %243 = vst [vmem:[%s210_s30 + $0x14] sm:$0xf] %v242_v5  ;;  %v258_v13 = vld [vmem:[%s1282_s29 + $0x104] sm:$0xf]  ;;  %v260_v14 = vld [vmem:[%s1282_s29 + $0x118] sm:$0xf] }
  0x16   : > { %245 = vst [vmem:[%s210_s30 + $0x18] sm:$0xf] %v244_v6  ;;  %v262_v15 = vld [vmem:[%s1282_s29 + $0x12c] sm:$0xf] }
  0x17   : > { %247 = vst [vmem:[%s210_s30 + $0x1c] sm:$0xf] %v246_v7 }
  0x18   : > { %249 = vst [vmem:[%s210_s30 + $0x20] sm:$0xf] %v248_v8 }
  0x19   : > { %251 = vst [vmem:[%s210_s30 + $0x24] sm:$0xf] %v250_v9 }
  0x1a   : > { %253 = vst [vmem:[%s210_s30 + $0x28] sm:$0xf] %v252_v10 }
  0x1b   : > { %255 = vst [vmem:[%s210_s30 + $0x2c] sm:$0xf] %v254_v11 }
  0x1c   : > { %257 = vst [vmem:[%s210_s30 + $0x30] sm:$0xf] %v256_v12 }
  0x1d   : > { %259 = vst [vmem:[%s210_s30 + $0x34] sm:$0xf] %v258_v13 }
  0x1e   : > { %261 = vst [vmem:[%s210_s30 + $0x38] sm:$0xf] %v260_v14 }
  0x1f   : > { %263 = vst [vmem:[%s210_s30 + $0x3c] sm:$0xf] %v262_v15 }
  0x20 PF: > { %p931_p6 = scmp.ge.s32.totalorder %s1211_s19, 1  ;;  %p330_p7 = scmp.lt.s32.totalorder %s1211_s19, 6 }
  0x22   : > { %p331_p8 = pnand %p931_p6, %p330_p7 }
  0x23   : > { %s337_s5 = sand.u32 (!%p331_p8), 1, %s1195_s15   ;;  %s933_s6 = sshll.u32 (!%p331_p8), %s1203_s17, 4 }
  0x24   : > { %334 = sbr.rel (%p331_p8) target bundleno = 282 (0x11a), region = 73  ;;  %s932_s7 = sshll.u32 (!%p331_p8), %s337_s5, 6 }
  0x25   : > { %p386_p9 = scmp.lt.s32.totalorder (!%p331_p8), %s933_s6, 79  ;;  %s1309_s12 = scalar_lea.vmem (!%p331_p8), [#allocation3], %s932_s7 }
  0x26   : > { %p935_p10 = scmp.ne.s32.totalorder (!%p331_p8), %s1203_s17, 0 }
  0x29   : > { %s1425_s6 = smov (!%p386_p9, %s933_s6), 79  ;;  %418 = sbr.rel (%p935_p10) target bundleno = 63 (0x3f), region = 81 }
  0x2a   : > { %s934_s8 = sshll.u32 %s1425_s6, 2 }
  0x2b   : > { %s1307_s11 = scalar_lea.vmem %s1414_s1, %s934_s8 }
  0x2e   : > { %v1213_v16 = vmov 0.0  }
  0x2f   : > { %419 = vst [vmem:[#allocation2 + $0x30] sm:$0xff] %v1213_v16 }
  0x30   : > { %420 = vst [vmem:[#allocation2] sm:$0xff] %v1213_v16 }
  0x31   : > { %421 = vst [vmem:[#allocation2 + $0x58] sm:$0xff] %v1213_v16 }
  0x32   : > { %422 = vst [vmem:[#allocation2 + $0x18] sm:$0xff] %v1213_v16 }
  0x33   : > { %423 = vst [vmem:[#allocation2 + $0x50] sm:$0xff] %v1213_v16 }
  0x34   : > { %424 = vst [vmem:[#allocation2 + $0x68] sm:$0xff] %v1213_v16 }
  0x35   : > { %425 = vst [vmem:[#allocation2 + $0x8] sm:$0xff] %v1213_v16 }
  0x36   : > { %426 = vst [vmem:[#allocation2 + $0x48] sm:$0xff] %v1213_v16 }
  0x37   : > { %427 = vst [vmem:[#allocation2 + $0x40] sm:$0xff] %v1213_v16 }
  0x38   : > { %428 = vst [vmem:[#allocation2 + $0x20] sm:$0xff] %v1213_v16 }
  0x39   : > { %429 = vst [vmem:[#allocation2 + $0x10] sm:$0xff] %v1213_v16 }
  0x3a   : > { %430 = vst [vmem:[#allocation2 + $0x38] sm:$0xff] %v1213_v16 }
  0x3b   : > { %431 = vst [vmem:[#allocation2 + $0x60] sm:$0xff] %v1213_v16 }
  0x3c   : > { %432 = vst [vmem:[#allocation2 + $0x70] sm:$0xff] %v1213_v16 }
  0x3d   : > { %433 = vst [vmem:[#allocation2 + $0x78] sm:$0xff] %v1213_v16 }
  0x3e   : > { %434 = vst [vmem:[#allocation2 + $0x28] sm:$0xff] %v1213_v16 }
  0x3f PF: > { %v1020_v17 = vld [vmem:[%s1307_s11 + $0x38] sm:$0xff]  ;;  %v1019_v18 = vld [vmem:[%s1307_s11 + $0x30] sm:$0xff]  ;;  %v1018_v19 = vld [vmem:[%s1307_s11 + $0x28] sm:$0xff]  ;;  %p1000_p11 = scmp.ne.s32.totalorder %s1203_s17, 4 }
  0x40   : > { %579 = vmatpush.bf16.msra.mxu0 %v1020_v17  ;;  %1107 = vmatpush.bf16.msra.mxu1 %v1020_v17  ;;  %v1017_v20 = vld [vmem:[%s1307_s11 + $0x20] sm:$0xff]  ;;  %v1016_v21 = vld [vmem:[%s1307_s11 + $0x18] sm:$0xff]  ;;  %v1015_v22 = vld [vmem:[%s1307_s11 + $0x10] sm:$0xff] }
  0x41   : > { %1108 = vmatpush.bf16.msra.mxu2 %v1020_v17  ;;  %1109 = vmatpush.bf16.msra.mxu3 %v1020_v17  ;;  %v1014_v23 = vld [vmem:[%s1307_s11 + $0x8] sm:$0xff]  ;;  %v1013_v24 = vld [vmem:[%s1307_s11] sm:$0xff]  ;;  %v1007_v26 = vld [vmem:[%s1309_s12 + $0x10] sm:$0xff] }
  0x42   : > { %v1005_v25 = vld [vmem:[%s1309_s12] sm:$0xff]  ;;  %v1011_v28 = vld [vmem:[%s1309_s12 + $0x30] sm:$0xff]  ;;  %v1006_v29 = vld [vmem:[%s1309_s12 + $0x8] sm:$0xff] }
  0x43   : > { %v1009_v27 = vld [vmem:[%s1309_s12 + $0x20] sm:$0xff]  ;;  %v1008_v30 = vld [vmem:[%s1309_s12 + $0x18] sm:$0xff]  ;;  %v1010_v31 = vld [vmem:[%s1309_s12 + $0x28] sm:$0xff] }
  0x44   : > { %580 = vmatpush.bf16.msra.mxu0 %v1019_v18  ;;  %1110 = vmatpush.bf16.msra.mxu1 %v1019_v18  ;;  %v1012_v32 = vld [vmem:[%s1309_s12 + $0x38] sm:$0xff]  ;;  %v435_v33 = vld [vmem:[#allocation2 + $0x30] sm:$0xff]  ;;  %v443_v39 = vld [vmem:[#allocation2 + $0x40] sm:$0xff] }
  0x45   : > { %1111 = vmatpush.bf16.msra.mxu2 %v1019_v18  ;;  %1112 = vmatpush.bf16.msra.mxu3 %v1019_v18  ;;  %v439_v34 = vld [vmem:[#allocation2 + $0x50] sm:$0xff]  ;;  %v447_v40 = vld [vmem:[#allocation2 + $0x60] sm:$0xff]  ;;  %v440_v42 = vld [vmem:[#allocation2 + $0x68] sm:$0xff] }
  0x46   : > { %v436_v41 = vld [vmem:[#allocation2] sm:$0xff]  ;;  %v448_v52 = vld [vmem:[#allocation2 + $0x70] sm:$0xff]  ;;  %v437_v53 = vld [vmem:[#allocation2 + $0x58] sm:$0xff] }
  0x47   : > { %v444_v51 = vld [vmem:[#allocation2 + $0x20] sm:$0xff]  ;;  %v441_v54 = vld [vmem:[#allocation2 + $0x8] sm:$0xff]  ;;  %v445_v63 = vld [vmem:[#allocation2 + $0x10] sm:$0xff] }
  0x48   : > { %581 = vmatpush.bf16.msra.mxu0 %v1018_v19  ;;  %1113 = vmatpush.bf16.msra.mxu1 %v1018_v19  ;;  %v449_v0 = vld [vmem:[#allocation2 + $0x78] sm:$0xff]  ;;  %v442_v2 = vld [vmem:[#allocation2 + $0x48] sm:$0xff] }
  0x49   : > { %1114 = vmatpush.bf16.msra.mxu2 %v1018_v19  ;;  %1115 = vmatpush.bf16.msra.mxu3 %v1018_v19  ;;  %v438_v1 = vld [vmem:[#allocation2 + $0x18] sm:$0xff]  ;;  %v450_v12 = vld [vmem:[#allocation2 + $0x28] sm:$0xff] }
  0x4a   : > { %v446_v11 = vld [vmem:[#allocation2 + $0x38] sm:$0xff] }
  0x4c   : > { %582 = vmatpush.bf16.msra.mxu0 %v1017_v20  ;;  %1116 = vmatpush.bf16.msra.mxu1 %v1017_v20 }
  0x4d   : > { %1117 = vmatpush.bf16.msra.mxu2 %v1017_v20  ;;  %1118 = vmatpush.bf16.msra.mxu3 %v1017_v20 }
  0x50   : > { %583 = vmatpush.bf16.msra.mxu0 %v1016_v21  ;;  %1119 = vmatpush.bf16.msra.mxu1 %v1016_v21 }
  0x51   : > { %1120 = vmatpush.bf16.msra.mxu2 %v1016_v21  ;;  %1121 = vmatpush.bf16.msra.mxu3 %v1016_v21 }
  0x54   : > { %584 = vmatpush.bf16.msra.mxu0 %v1015_v22  ;;  %1122 = vmatpush.bf16.msra.mxu1 %v1015_v22 }
  0x55   : > { %1123 = vmatpush.bf16.msra.mxu2 %v1015_v22  ;;  %1124 = vmatpush.bf16.msra.mxu3 %v1015_v22 }
  0x58   : > { %585 = vmatpush.bf16.msra.mxu0 %v1014_v23  ;;  %1125 = vmatpush.bf16.msra.mxu1 %v1014_v23 }
  0x59   : > { %1126 = vmatpush.bf16.msra.mxu2 %v1014_v23  ;;  %1127 = vmatpush.bf16.msra.mxu3 %v1014_v23 }
  0x5c   : > { %586 = vmatpush.bf16.msra.mxu0 %v1013_v24  ;;  %1128 = vmatpush.bf16.msra.mxu1 %v1013_v24 }
  0x5d   : > { %1129 = vmatpush.bf16.msra.mxu2 %v1013_v24  ;;  %1130 = vmatpush.bf16.msra.mxu3 %v1013_v24 }
  0x5f   : > { %587 = vmatmul.bf16.vlgmr.msra.gmra.mxu0 %v1005_v25  ;;  %597 = vmatmul.bf16.vlgmr.msra.gmra.mxu1 %v1007_v26 }
  0x60   : > { %607 = vmatmul.bf16.vlgmr.msra.gmra.mxu2 %v1009_v27  ;;  %617 = vmatmul.bf16.vlgmr.msra.gmra.mxu3 %v1011_v28 }
  0x6f   : > { %592 = vmatmul.bf16.gmra.mxu0 %v1006_v29  ;;  %602 = vmatmul.bf16.gmra.mxu1 %v1008_v30 }
  0x70   : > { %612 = vmatmul.bf16.gmra.mxu2 %v1010_v31  ;;  %622 = vmatmul.bf16.gmra.mxu3 %v1012_v32 }
  0xdc   : > { %v588_v35 = vpop.f32.mrf.mxu0  ;;  %v598_v36 = vpop.f32.mrf.mxu1 }
  0xdd   : > { %v628_v37 = vadd.f32 %v588_v35, %v435_v33  ;;  %v632_v38 = vadd.f32 %v598_v36, %v439_v34 }
  0xdf   : > { %644 = vst [vmem:[#allocation2 + $0x30] sm:$0xff] %v628_v37 }
  0xe0   : > { %648 = vst [vmem:[#allocation2 + $0x50] sm:$0xff] %v632_v38 }
  0xe3   : > { %v608_v43 = vpop.f32.mrf.mxu2  ;;  %v618_v44 = vpop.f32.mrf.mxu3 }
  0xe4   : > { %v636_v45 = vadd.f32 %v608_v43, %v443_v39  ;;  %v640_v46 = vadd.f32 %v618_v44, %v447_v40  ;;  %v590_v47 = vpop.f32.mrf.mxu0  ;;  %v600_v48 = vpop.f32.mrf.mxu1 }
  0xe5   : > { %v629_v49 = vadd.f32 %v590_v47, %v436_v41  ;;  %v633_v50 = vadd.f32 %v600_v48, %v440_v42 }
  0xe6   : > { %652 = vst [vmem:[#allocation2 + $0x40] sm:$0xff] %v636_v45 }
  0xe7   : > { %656 = vst [vmem:[#allocation2 + $0x60] sm:$0xff] %v640_v46 }
  0xe8   : > { %645 = vst [vmem:[#allocation2] sm:$0xff] %v629_v49 }
  0xe9   : > { %649 = vst [vmem:[#allocation2 + $0x68] sm:$0xff] %v633_v50 }
  0xeb   : > { %v610_v55 = vpop.f32.mrf.mxu2  ;;  %v620_v56 = vpop.f32.mrf.mxu3 }
  0xec   : > { %v637_v57 = vadd.f32 %v610_v55, %v444_v51  ;;  %v641_v58 = vadd.f32 %v620_v56, %v448_v52  ;;  %v593_v59 = vpop.f32.mrf.mxu0  ;;  %v603_v60 = vpop.f32.mrf.mxu1 }
  0xed   : > { %v630_v61 = vadd.f32 %v593_v59, %v437_v53  ;;  %v634_v62 = vadd.f32 %v603_v60, %v441_v54 }
  0xee   : > { %653 = vst [vmem:[#allocation2 + $0x20] sm:$0xff] %v637_v57 }
  0xef   : > { %657 = vst [vmem:[#allocation2 + $0x70] sm:$0xff] %v641_v58 }
  0xf0   : > { %646 = vst [vmem:[#allocation2 + $0x58] sm:$0xff] %v630_v61 }
  0xf1   : > { %650 = vst [vmem:[#allocation2 + $0x8] sm:$0xff] %v634_v62 }
  0xf3   : > { %v613_v3 = vpop.f32.mrf.mxu2  ;;  %v623_v4 = vpop.f32.mrf.mxu3 }
  0xf4   : > { %v638_v5 = vadd.f32 %v613_v3, %v445_v63  ;;  %v642_v6 = vadd.f32 %v623_v4, %v449_v0  ;;  %v595_v7 = vpop.f32.mrf.mxu0  ;;  %v605_v8 = vpop.f32.mrf.mxu1 }
  0xf5   : > { %v631_v9 = vadd.f32 %v595_v7, %v438_v1  ;;  %v635_v10 = vadd.f32 %v605_v8, %v442_v2 }
  0xf6   : > { %654 = vst [vmem:[#allocation2 + $0x10] sm:$0xff] %v638_v5 }
  0xf7   : > { %658 = vst [vmem:[#allocation2 + $0x78] sm:$0xff] %v642_v6 }
  0xf8   : > { %647 = vst [vmem:[#allocation2 + $0x18] sm:$0xff] %v631_v9 }
  0xf9   : > { %651 = vst [vmem:[#allocation2 + $0x48] sm:$0xff] %v635_v10 }
  0xfb   : > { %v615_v13 = vpop.f32.mrf.mxu2  ;;  %v625_v14 = vpop.f32.mrf.mxu3  ;;  %663 = sbr.rel (%p1000_p11) target bundleno = 282 (0x11a), region = 85 }
  0xfc   : > { %v639_v15 = vadd.f32 %v615_v13, %v446_v11  ;;  %v643_v16 = vadd.f32 %v625_v14, %v450_v12 }
  0xfe   : > { %655 = vst [vmem:[#allocation2 + $0x38] sm:$0xff] %v639_v15 }
  0xff   : > { %659 = vst [vmem:[#allocation2 + $0x28] sm:$0xff] %v643_v16 }
 0x100   : > { %v664_v17 = vld [vmem:[#allocation2 + $0x30] sm:$0xff]  ;;  %v665_v18 = vld [vmem:[#allocation2] sm:$0xff]  ;;  %v666_v21 = vld [vmem:[#allocation2 + $0x58] sm:$0xff] }
 0x101   : > { %v1332_v19 = vld [vmem:[%s1415_s2] ss:$0 sm:$0xff]  ;;  %v667_v24 = vld [vmem:[#allocation2 + $0x18] sm:$0xff]  ;;  %v1093_v25 = vld [vmem:[%s1416_s3 + $0x8] sm:$0xff]  }
 0x102   : > { %v1022_v20 = vld [vmem:[%s1416_s3] sm:$0xff]   ;;  %v668_v26 = vld [vmem:[#allocation2 + $0x50] sm:$0xff]  ;;  %v684_v27 = vadd.f32 %v1332_v19, %v664_v17  ;;  %v685_v28 = vadd.f32 %v1332_v19, %v665_v18  ;;  %v686_v29 = vadd.f32 %v1332_v19, %v666_v21  ;;  %v687_v30 = vadd.f32 %v1332_v19, %v667_v24  ;;  %v669_v31 = vld [vmem:[#allocation2 + $0x68] sm:$0xff] }
 0x103   : > { %v1023_v22 = vunpack.c.l.bf16 %v1022_v20  ;;  %v1024_v23 = vunpack.c.h.bf16 %v1022_v20  ;;  %v1094_v32 = vld [vmem:[%s1416_s3 + $0x10] sm:$0xff]   ;;  %v670_v33 = vld [vmem:[#allocation2 + $0x8] sm:$0xff]  ;;  %v1027_v34 = vunpack.c.l.bf16 %v1093_v25  ;;  %v1028_v35 = vunpack.c.h.bf16 %v1093_v25  ;;  %v1095_v43 = vld [vmem:[%s1416_s3 + $0x18] sm:$0xff]  }
 0x104   : > { %v688_v36 = vadd.f32 %v1332_v19, %v668_v26  ;;  %v689_v37 = vadd.f32 %v1332_v19, %v669_v31  ;;  %v671_v38 = vld [vmem:[#allocation2 + $0x48] sm:$0xff]  ;;  %v1031_v41 = vunpack.c.l.bf16 %v1094_v32  ;;  %v1032_v42 = vunpack.c.h.bf16 %v1094_v32  ;;  %v672_v48 = vld [vmem:[#allocation2 + $0x40] sm:$0xff]  ;;  %v674_v59 = vld [vmem:[#allocation2 + $0x10] sm:$0xff] }
 0x105   : > { %v732_v39 = vadd.f32 %v1023_v22, %v684_v27  ;;  %v733_v40 = vadd.f32 %v1024_v23, %v685_v28  ;;  %v734_v44 = vadd.f32 %v1027_v34, %v686_v29  ;;  %v735_v45 = vadd.f32 %v1028_v35, %v687_v30  ;;  %v673_v53 = vld [vmem:[#allocation2 + $0x20] sm:$0xff]  ;;  %v675_v0 = vld [vmem:[#allocation2 + $0x38] sm:$0xff]  ;;  %v1097_v1 = vld [vmem:[%s1416_s3 + $0x28] sm:$0xff]  }
 0x106   : > { %v690_v46 = vadd.f32 %v1332_v19, %v670_v33  ;;  %v691_v47 = vadd.f32 %v1332_v19, %v671_v38  ;;  %v736_v51 = vadd.f32 %v1031_v41, %v688_v36  ;;  %v737_v52 = vadd.f32 %v1032_v42, %v689_v37  ;;  %v1096_v58 = vld [vmem:[%s1416_s3 + $0x20] sm:$0xff]   ;;  %v677_v11 = vld [vmem:[#allocation2 + $0x70] sm:$0xff]  ;;  %v678_v22 = vld [vmem:[#allocation2 + $0x78] sm:$0xff] }
 0x107   : > { %v748_v49 = vmax.f32 %v732_v39, 0.0  ;;  %v749_v50 = vmax.f32 %v733_v40, 0.0  ;;  %v750_v54 = vmax.f32 %v734_v44, 0.0  ;;  %v751_v55 = vmax.f32 %v735_v45, 0.0  ;;  %v676_v6 = vld [vmem:[#allocation2 + $0x60] sm:$0xff]  ;;  %v1098_v12 = vld [vmem:[%s1416_s3 + $0x30] sm:$0xff]  }
 0x108   : > { %v1035_v56 = vunpack.c.l.bf16 %v1095_v43  ;;  %v1036_v57 = vunpack.c.h.bf16 %v1095_v43  ;;  %v752_v61 = vmax.f32 %v736_v51, 0.0  ;;  %v753_v62 = vmax.f32 %v737_v52, 0.0  ;;  %v679_v23 = vld [vmem:[#allocation2 + $0x28] sm:$0xff]  ;;  %v1099_v28 = vld [vmem:[%s1416_s3 + $0x38] sm:$0xff]  }
 0x109   : > { %v1056_v60 = vpack.c.bf16 %v749_v50, %v748_v49  ;;  %v692_v63 = vadd.f32 %v1332_v19, %v672_v48  ;;  %v1061_v2 = vpack.c.bf16 %v751_v55, %v750_v54  ;;  %v693_v5 = vadd.f32 %v1332_v19, %v673_v53 }
 0x10a   : > { %v738_v3 = vadd.f32 %v1035_v56, %v690_v46  ;;  %v739_v4 = vadd.f32 %v1036_v57, %v691_v47  ;;  %v1066_v7 = vpack.c.bf16 %v753_v62, %v752_v61  ;;  %v1039_v8 = vunpack.c.l.bf16 %v1096_v58 }
 0x10b   : > { %1057 = vst [vmem:[%s1417_s4] sm:$0xff] %v1056_v60   ;;  %v1040_v9 = vunpack.c.h.bf16 %v1096_v58  ;;  %v694_v10 = vadd.f32 %v1332_v19, %v674_v59  ;;  %v695_v15 = vadd.f32 %v1332_v19, %v675_v0  ;;  %v1043_v16 = vunpack.c.l.bf16 %v1097_v1 }
 0x10c   : > { %1100 = vst [vmem:[%s1417_s4 + $0x8] sm:$0xff] %v1061_v2   ;;  %v754_v13 = vmax.f32 %v738_v3, 0.0  ;;  %v755_v14 = vmax.f32 %v739_v4, 0.0  ;;  %v740_v17 = vadd.f32 %v1039_v8, %v692_v63  ;;  %v1044_v20 = vunpack.c.h.bf16 %v1097_v1 }
 0x10d   : > { %1101 = vst [vmem:[%s1417_s4 + $0x10] sm:$0xff] %v1066_v7   ;;  %v741_v18 = vadd.f32 %v1040_v9, %v693_v5  ;;  %v696_v21 = vadd.f32 %v1332_v19, %v676_v6  ;;  %v742_v25 = vadd.f32 %v1043_v16, %v694_v10  ;;  %v697_v26 = vadd.f32 %v1332_v19, %v677_v11 }
 0x10e   : > { %v1071_v24 = vpack.c.bf16 %v755_v14, %v754_v13  ;;  %v1047_v27 = vunpack.c.l.bf16 %v1098_v12  ;;  %v756_v29 = vmax.f32 %v740_v17, 0.0  ;;  %v743_v31 = vadd.f32 %v1044_v20, %v695_v15 }
 0x10f   : > { %v757_v30 = vmax.f32 %v741_v18, 0.0  ;;  %v1048_v32 = vunpack.c.h.bf16 %v1098_v12  ;;  %v758_v33 = vmax.f32 %v742_v25, 0.0  ;;  %v698_v35 = vadd.f32 %v1332_v19, %v678_v22 }
 0x110   : > { %1102 = vst [vmem:[%s1417_s4 + $0x18] sm:$0xff] %v1071_v24   ;;  %v744_v34 = vadd.f32 %v1047_v27, %v696_v21  ;;  %v699_v36 = vadd.f32 %v1332_v19, %v679_v23  ;;  %v759_v38 = vmax.f32 %v743_v31, 0.0  ;;  %v1051_v40 = vunpack.c.l.bf16 %v1099_v28 }
 0x111   : > { %v1076_v37 = vpack.c.bf16 %v757_v30, %v756_v29  ;;  %v745_v39 = vadd.f32 %v1048_v32, %v697_v26  ;;  %v1052_v42 = vunpack.c.h.bf16 %v1099_v28 }
 0x112   : > { %v760_v41 = vmax.f32 %v744_v34, 0.0  ;;  %v1081_v43 = vpack.c.bf16 %v759_v38, %v758_v33  ;;  %v746_v45 = vadd.f32 %v1051_v40, %v698_v35 }
 0x113   : > { %1103 = vst [vmem:[%s1417_s4 + $0x20] sm:$0xff] %v1076_v37   ;;  %v761_v44 = vmax.f32 %v745_v39, 0.0  ;;  %v747_v46 = vadd.f32 %v1052_v42, %v699_v36 }
 0x114   : > { %1104 = vst [vmem:[%s1417_s4 + $0x28] sm:$0xff] %v1081_v43   ;;  %v762_v19 = vmax.f32 %v746_v45, 0.0 }
 0x115   : > { %v1086_v47 = vpack.c.bf16 %v761_v44, %v760_v41  ;;  %v763_v48 = vmax.f32 %v747_v46, 0.0 }
 0x117   : > { %1105 = vst [vmem:[%s1417_s4 + $0x30] sm:$0xff] %v1086_v47   ;;  %v1091_v49 = vpack.c.bf16 %v763_v48, %v762_v19 }
 0x119   : > { %1106 = vst [vmem:[%s1417_s4 + $0x38] sm:$0xff] %v1091_v49  }
 0x11a PF: > { %s14_s19 = sadd.s32 1, %s1211_s19   ;;  %s1418_s15 = smov %s1199_s16 }
 0x11b   : > { %p11_p12 = scmp.ge.s32.totalorder %s14_s19, 7   ;;  %s1419_s16 = smov %s1274_s23 }
 0x11c   : > { %s1420_s17 = smov %s1207_s18  ;;  %s1421_s18 = smov %s1423_s20 }
 0x11d   :  { %13 = sbr.rel (!%p11_p12) target bundleno = 3 (0x3), region = 129 }

// kernel: resnet18_forward.29
= control target key start
LH: loop header
LB: loop body
LE: loop exit
PB: predicated region body
PF: predicated region fallthrough
CT: control target
= control target key end

     0   :  { %s752_s12 = smov 0   ;;  %s754_s13 = smov 0   ;;  %s845_s0 = inlined_call_operand.vmem [shape: bf16[32,640], index: 0, kind: input, shape index: {}]   ;;  %s846_s1 = inlined_call_operand.vmem [shape: bf16[640,128], index: 1, kind: input, shape index: {}]   ;;  %s847_s2 = inlined_call_operand.vmem [shape: f32[1,128], index: 2, kind: input, shape index: {}]   ;;  %s848_s3 = inlined_call_operand.vmem [shape: bf16[32,128], index: 3, kind: output, shape index: {}]  }
   0x1   :  { %s756_s14 = smov 0   ;;  %s758_s15 = smov 0  }
   0x2   :  { %s760_s16 = smov 0  }
   0x3 LB: > { %s25_s17 = sadd.s32 1, %s725_s15  ;;  %p48_p1 = scmp.ne.s32.totalorder %s717_s13, %s713_s12  ;;  %s729_s16 = sphi %s760_s16, %s13_s16   ;;  %s725_s15 = sphi %s758_s15, %s852_s15   ;;  %s721_s14 = sphi %s756_s14, %s851_s14   ;;  %s717_s13 = sphi %s754_s13, %s850_s13   ;;  %s713_s12 = sphi %s752_s12, %s849_s12  }
   0x4   : > { %p26_p0 = scmp.ge.s32.totalorder %s25_s17, 5  ;;  %p49_p2 = scmp.eq.s32.totalorder %s729_s16, 0 }
   0x5   : > { %s41_s19 = sadd.s32 1, %s717_s13  ;;  %p567_p5 = scmp.ge.s32.totalorder %s729_s16, 5 }
   0x6   : > { %s854_s17 = smov (%p26_p0, %s25_s17), 0  ;;  %p50_p3 = por %p49_p2, %p48_p1 }
   0x7   : > { %s37_s18 = ssub.s32 %s725_s15, %s854_s17  ;;  %162 = sbr.rel (%p567_p5) target bundleno = 20 (0x14), region = 20 }
   0x8   : > { %p39_p4 = scmp.eq.s32.totalorder %s37_s18, 0 }
   0xa   : > { %s787_s20 = scalar_select %p39_p4, %s717_s13, %s41_s19  }
   0xc   : > { %165 = sbr.rel (!%p50_p3) target bundleno = 20 (0x14), region = 24  ;;  %s167_s21 = sand.u32 (%p50_p3), 1, %s717_s13  }
   0xd   : > { %s569_s22 = sshll.u32 (%p50_p3), %s725_s15, 2  ;;  %s568_s23 = sshll.u32 (%p50_p3), %s167_s21, 4 }
   0xe   : > { %s174_s26 = scalar_lea.vmem (%p50_p3), %s845_s0, %s569_s22  ;;  %s169_s27 = scalar_lea.vmem (%p50_p3), [#allocation3], %s568_s23 }
   0xf   : > { %v191_v0 = vld [vmem:[%s174_s26] sm:$0xf] (%p50_p3)  ;;  %v193_v1 = vld [vmem:[%s174_s26 + $0x14] sm:$0xf] (%p50_p3)  ;;  %v195_v2 = vld [vmem:[%s174_s26 + $0x28] sm:$0xf] (%p50_p3) }
  0x10   : > { %192 = vst [vmem:[%s169_s27] sm:$0xf] (%p50_p3), %v191_v0  ;;  %v197_v3 = vld [vmem:[%s174_s26 + $0x3c] sm:$0xf] (%p50_p3) }
  0x11   : > { %194 = vst [vmem:[%s169_s27 + $0x4] sm:$0xf] %v193_v1 }
  0x12   : > { %196 = vst [vmem:[%s169_s27 + $0x8] sm:$0xf] %v195_v2 }
  0x13   : > { %198 = vst [vmem:[%s169_s27 + $0xc] sm:$0xf] %v197_v3 }
  0x14 PF: > { %p570_p6 = scmp.ge.s32.totalorder %s729_s16, 1  ;;  %p241_p7 = scmp.lt.s32.totalorder %s729_s16, 6 }
  0x16   : > { %p242_p8 = pnand %p570_p6, %p241_p7 }
  0x17   : > { %s248_s28 = sand.u32 (!%p242_p8), 1, %s713_s12   ;;  %s572_s29 = sshll.u32 (!%p242_p8), %s721_s14, 4 }
  0x18   : > { %245 = sbr.rel (%p242_p8) target bundleno = 223 (0xdf), region = 69  ;;  %s799_s30 = sshll.u32 (!%p242_p8), %s248_s28, 4 }
  0x19   : > { %p287_p9 = scmp.lt.s32.totalorder (!%p242_p8), %s572_s29, 79  ;;  %s250_s8 = scalar_lea.vmem (!%p242_p8), [#allocation3], %s799_s30 }
  0x1a   : > { %p574_p10 = scmp.ne.s32.totalorder (!%p242_p8), %s721_s14, 0 }
  0x1d   : > { %s856_s29 = smov (!%p287_p9, %s572_s29), 79  ;;  %310 = sbr.rel (%p574_p10) target bundleno = 39 (0x27), region = 77 }
  0x1e   : > { %s573_s4 = sshll.u32 %s856_s29, 2 }
  0x1f   : > { %s804_s7 = scalar_lea.vmem %s846_s1, %s573_s4 }
  0x22   : > { %v731_v4 = vmov 0.0  }
  0x23   : > { %311 = vst [vmem:[#allocation2 + $0x10] sm:$0xff] %v731_v4 }
  0x24   : > { %312 = vst [vmem:[#allocation2] sm:$0xff] %v731_v4 }
  0x25   : > { %313 = vst [vmem:[#allocation2 + $0x18] sm:$0xff] %v731_v4 }
  0x26   : > { %314 = vst [vmem:[#allocation2 + $0x8] sm:$0xff] %v731_v4 }
  0x27 PF: > { %v629_v5 = vld [vmem:[%s804_s7 + $0x38] sm:$0xff]  ;;  %v628_v6 = vld [vmem:[%s804_s7 + $0x30] sm:$0xff]  ;;  %v627_v7 = vld [vmem:[%s804_s7 + $0x28] sm:$0xff]  ;;  %p615_p11 = scmp.ne.s32.totalorder %s721_s14, 4 }
  0x28   : > { %399 = vmatpush.bf16.msra.mxu0 %v629_v5  ;;  %641 = vmatpush.bf16.msra.mxu1 %v629_v5  ;;  %v626_v8 = vld [vmem:[%s804_s7 + $0x20] sm:$0xff]  ;;  %v625_v9 = vld [vmem:[%s804_s7 + $0x18] sm:$0xff]  ;;  %v624_v10 = vld [vmem:[%s804_s7 + $0x10] sm:$0xff] }
  0x29   : > { %v623_v11 = vld [vmem:[%s804_s7 + $0x8] sm:$0xff]  ;;  %v622_v12 = vld [vmem:[%s804_s7] sm:$0xff] }
  0x2a   : > { %v620_v13 = vld [vmem:[%s250_s8] sm:$0xff]  ;;  %v621_v14 = vld [vmem:[%s250_s8 + $0x8] sm:$0xff] }
  0x2b   : > { %v315_v15 = vld [vmem:[#allocation2 + $0x10] sm:$0xff]  ;;  %v316_v21 = vld [vmem:[#allocation2] sm:$0xff] }
  0x2c   : > { %400 = vmatpush.bf16.msra.mxu0 %v628_v6  ;;  %642 = vmatpush.bf16.msra.mxu1 %v628_v6  ;;  %v317_v16 = vld [vmem:[#allocation2 + $0x18] sm:$0xff] }
  0x2d   : > { %v318_v22 = vld [vmem:[#allocation2 + $0x8] sm:$0xff] }
  0x30   : > { %401 = vmatpush.bf16.msra.mxu0 %v627_v7  ;;  %643 = vmatpush.bf16.msra.mxu1 %v627_v7 }
  0x34   : > { %402 = vmatpush.bf16.msra.mxu0 %v626_v8  ;;  %644 = vmatpush.bf16.msra.mxu1 %v626_v8 }
  0x38   : > { %403 = vmatpush.bf16.msra.mxu0 %v625_v9  ;;  %645 = vmatpush.bf16.msra.mxu1 %v625_v9 }
  0x3c   : > { %404 = vmatpush.bf16.msra.mxu0 %v624_v10  ;;  %646 = vmatpush.bf16.msra.mxu1 %v624_v10 }
  0x40   : > { %405 = vmatpush.bf16.msra.mxu0 %v623_v11  ;;  %647 = vmatpush.bf16.msra.mxu1 %v623_v11 }
  0x44   : > { %406 = vmatpush.bf16.msra.mxu0 %v622_v12  ;;  %648 = vmatpush.bf16.msra.mxu1 %v622_v12 }
  0x47   : > { %407 = vmatmul.bf16.vlgmr.msra.gmra.mxu0 %v620_v13  ;;  %412 = vmatmul.bf16.vlgmr.msra.gmra.mxu1 %v621_v14 }
  0xc4   : > { %v408_v17 = vpop.f32.mrf.mxu0  ;;  %v413_v18 = vpop.f32.mrf.mxu1 }
  0xc5   : > { %v418_v19 = vadd.f32 %v408_v17, %v315_v15  ;;  %v420_v20 = vadd.f32 %v413_v18, %v317_v16 }
  0xc7   : > { %422 = vst [vmem:[#allocation2 + $0x10] sm:$0xff] %v418_v19 }
  0xc8   : > { %424 = vst [vmem:[#allocation2 + $0x18] sm:$0xff] %v420_v20 }
  0xcc   : > { %v410_v23 = vpop.f32.mrf.mxu0  ;;  %v415_v24 = vpop.f32.mrf.mxu1  ;;  %429 = sbr.rel (%p615_p11) target bundleno = 223 (0xdf), region = 81 }
  0xcd   : > { %v419_v25 = vadd.f32 %v410_v23, %v316_v21  ;;  %v421_v26 = vadd.f32 %v415_v24, %v318_v22 }
  0xcf   : > { %423 = vst [vmem:[#allocation2] sm:$0xff] %v419_v25 }
  0xd0   : > { %425 = vst [vmem:[#allocation2 + $0x8] sm:$0xff] %v421_v26 }
  0xd1   : > { %v430_v27 = vld [vmem:[#allocation2 + $0x10] sm:$0xff]  ;;  %v690_v29 = vld [vmem:[%s847_s2] ss:$0 sm:$0xff]  ;;  %v432_v30 = vld [vmem:[#allocation2 + $0x18] sm:$0xff] }
  0xd2   : > { %v438_v32 = vadd.f32 %v690_v29, %v430_v27  ;;  %v440_v34 = vadd.f32 %v690_v29, %v432_v30 }
  0xd4   : > { %v442_v36 = vmax.f32 %v438_v32, 0.0  ;;  %v444_v38 = vmax.f32 %v440_v34, 0.0 }
  0xd6   : > { %v431_v28 = vld [vmem:[#allocation2] sm:$0xff] }
  0xd7   : > { %v433_v31 = vld [vmem:[#allocation2 + $0x8] sm:$0xff]  ;;  %v439_v33 = vadd.f32 %v690_v29, %v431_v28 }
  0xd8   : > { %v441_v35 = vadd.f32 %v690_v29, %v433_v31 }
  0xd9   : > { %v443_v37 = vmax.f32 %v439_v33, 0.0 }
  0xda   : > { %v445_v39 = vmax.f32 %v441_v35, 0.0 }
  0xdb   : > { %v633_v40 = vpack.c.bf16 %v443_v37, %v442_v36 }
  0xdc   : > { %v638_v41 = vpack.c.bf16 %v445_v39, %v444_v38 }
  0xdd   : > { %634 = vst [vmem:[%s848_s3] sm:$0xff] %v633_v40  }
  0xde   : > { %640 = vst [vmem:[%s848_s3 + $0x8] sm:$0xff] %v638_v41  }
  0xdf PF: > { %s13_s16 = sadd.s32 1, %s729_s16   ;;  %s849_s12 = smov %s717_s13 }
  0xe0   : > { %p10_p12 = scmp.ge.s32.totalorder %s13_s16, 7   ;;  %s850_s13 = smov %s787_s20 }
  0xe1   : > { %s851_s14 = smov %s725_s15  ;;  %s852_s15 = smov %s854_s17 }
  0xe2   :  { %12 = sbr.rel (!%p10_p12) target bundleno = 3 (0x3), region = 122 }

// kernel: resnet18_forward.30
= control target key start
LH: loop header
LB: loop body
LE: loop exit
PB: predicated region body
PF: predicated region fallthrough
CT: control target
= control target key end

     0   :  { %s289_s1 = inlined_call_operand.vmem [shape: bf16[128,128], index: 1, kind: input, shape index: {}]   ;;  %s290_s2 = inlined_call_operand.vmem [shape: f32[1,128], index: 2, kind: input, shape index: {}]   ;;  %s291_s0 = inlined_call_operand.vmem [shape: bf16[32,128], index: 0, kind: input, shape index: {}]   ;;  %s292_s3 = inlined_call_operand.vmem [shape: bf16[32,128], index: 3, kind: output, shape index: {}]  }
   0x1   :  { %v209_v0 = vld [vmem:[%s289_s1 + $0x38] sm:$0xff]  ;;  %v208_v1 = vld [vmem:[%s289_s1 + $0x30] sm:$0xff]  ;;  %v207_v2 = vld [vmem:[%s289_s1 + $0x28] sm:$0xff] }
   0x2   :  { %106 = vmatpush.bf16.msra.mxu0 %v209_v0  ;;  %221 = vmatpush.bf16.msra.mxu1 %v209_v0  ;;  %v206_v3 = vld [vmem:[%s289_s1 + $0x20] sm:$0xff]  ;;  %v205_v4 = vld [vmem:[%s289_s1 + $0x18] sm:$0xff]  ;;  %v204_v5 = vld [vmem:[%s289_s1 + $0x10] sm:$0xff] }
   0x3   :  { %v203_v6 = vld [vmem:[%s289_s1 + $0x8] sm:$0xff]  ;;  %v202_v7 = vld [vmem:[%s289_s1] sm:$0xff] }
   0x4   :  { %v200_v8 = vld [vmem:[%s291_s0] sm:$0xff]  ;;  %v201_v9 = vld [vmem:[%s291_s0 + $0x8] sm:$0xff] }
   0x5   :  { %v229_v12 = vld [vmem:[%s290_s2] ss:$0 sm:$0xff] }
   0x6   :  { %107 = vmatpush.bf16.msra.mxu0 %v208_v1  ;;  %222 = vmatpush.bf16.msra.mxu1 %v208_v1 }
   0xa   :  { %108 = vmatpush.bf16.msra.mxu0 %v207_v2  ;;  %223 = vmatpush.bf16.msra.mxu1 %v207_v2 }
   0xe   :  { %109 = vmatpush.bf16.msra.mxu0 %v206_v3  ;;  %224 = vmatpush.bf16.msra.mxu1 %v206_v3 }
  0x12   :  { %110 = vmatpush.bf16.msra.mxu0 %v205_v4  ;;  %225 = vmatpush.bf16.msra.mxu1 %v205_v4 }
  0x16   :  { %111 = vmatpush.bf16.msra.mxu0 %v204_v5  ;;  %226 = vmatpush.bf16.msra.mxu1 %v204_v5 }
  0x1a   :  { %112 = vmatpush.bf16.msra.mxu0 %v203_v6  ;;  %227 = vmatpush.bf16.msra.mxu1 %v203_v6 }
  0x1e   :  { %113 = vmatpush.bf16.msra.mxu0 %v202_v7  ;;  %228 = vmatpush.bf16.msra.mxu1 %v202_v7 }
  0x21   :  { %114 = vmatmul.bf16.vlgmr.msra.gmra.mxu0 %v200_v8  ;;  %119 = vmatmul.bf16.vlgmr.msra.gmra.mxu1 %v201_v9 }
  0x9e   :  { %v115_v10 = vpop.f32.mrf.mxu0  ;;  %v120_v11 = vpop.f32.mrf.mxu1 }
  0x9f   :  { %v144_v15 = vadd.f32 %v229_v12, %v115_v10  ;;  %v146_v16 = vadd.f32 %v229_v12, %v120_v11 }
  0xa6   :  { %v117_v13 = vpop.f32.mrf.mxu0  ;;  %v122_v14 = vpop.f32.mrf.mxu1 }
  0xa7   :  { %v145_v17 = vadd.f32 %v229_v12, %v117_v13  ;;  %v147_v18 = vadd.f32 %v229_v12, %v122_v14 }
  0xa9   :  { %v213_v19 = vpack.c.bf16 %v145_v17, %v144_v15  ;;  %v218_v20 = vpack.c.bf16 %v147_v18, %v146_v16 }
  0xab   :  { %214 = vst [vmem:[%s292_s3] sm:$0xff] %v213_v19  }
  0xac   :  { %220 = vst [vmem:[%s292_s3 + $0x8] sm:$0xff] %v218_v20  }

// kernel: resnet18_forward.31
= control target key start
LH: loop header
LB: loop body
LE: loop exit
PB: predicated region body
PF: predicated region fallthrough
CT: control target
= control target key end

     0   :  { %s857_s15 = smov 0   ;;  %s859_s16 = smov 0   ;;  %s956_s0 = inlined_call_operand.vmem [shape: bf16[32,1152], index: 0, kind: input, shape index: {}]   ;;  %s957_s1 = inlined_call_operand.vmem [shape: bf16[1152,128], index: 1, kind: input, shape index: {}]   ;;  %s958_s2 = inlined_call_operand.vmem [shape: f32[1,128], index: 2, kind: input, shape index: {}]   ;;  %s959_s3 = inlined_call_operand.vmem [shape: bf16[32,128], index: 3, kind: input, shape index: {}]   ;;  %s960_s4 = inlined_call_operand.vmem [shape: bf16[32,128], index: 4, kind: output, shape index: {}]  }
   0x1   :  { %s861_s17 = smov 0   ;;  %s863_s18 = smov 0  }
   0x2   :  { %s865_s19 = smov 0  }
   0x3 LB: > { %s26_s20 = sadd.s32 1, %s825_s18  ;;  %p49_p1 = scmp.ne.s32.totalorder %s817_s16, %s813_s15  ;;  %s829_s19 = sphi %s865_s19, %s14_s19   ;;  %s825_s18 = sphi %s863_s18, %s964_s18   ;;  %s821_s17 = sphi %s861_s17, %s963_s17   ;;  %s817_s16 = sphi %s859_s16, %s962_s16   ;;  %s813_s15 = sphi %s857_s15, %s961_s15  }
   0x4   : > { %p27_p0 = scmp.ge.s32.totalorder %s26_s20, 9  ;;  %p50_p2 = scmp.eq.s32.totalorder %s829_s19, 0 }
   0x5   : > { %s42_s22 = sadd.s32 1, %s817_s16  ;;  %p658_p5 = scmp.ge.s32.totalorder %s829_s19, 9 }
   0x6   : > { %s966_s20 = smov (%p27_p0, %s26_s20), 0  ;;  %p51_p3 = por %p50_p2, %p49_p1 }
   0x7   : > { %s38_s21 = ssub.s32 %s825_s18, %s966_s20  ;;  %203 = sbr.rel (%p658_p5) target bundleno = 20 (0x14), region = 24 }
   0x8   : > { %p40_p4 = scmp.eq.s32.totalorder %s38_s21, 0 }
   0xa   : > { %s892_s23 = scalar_select %p40_p4, %s817_s16, %s42_s22  }
   0xc   : > { %206 = sbr.rel (!%p51_p3) target bundleno = 20 (0x14), region = 28  ;;  %s208_s24 = sand.u32 (%p51_p3), 1, %s817_s16  }
   0xd   : > { %s660_s25 = sshll.u32 (%p51_p3), %s825_s18, 2  ;;  %s659_s26 = sshll.u32 (%p51_p3), %s208_s24, 4 }
   0xe   : > { %s215_s29 = scalar_lea.vmem (%p51_p3), %s956_s0, %s660_s25  ;;  %s210_s30 = scalar_lea.vmem (%p51_p3), [#allocation3], %s659_s26 }
   0xf   : > { %v232_v0 = vld [vmem:[%s215_s29] sm:$0xf] (%p51_p3)  ;;  %v234_v1 = vld [vmem:[%s215_s29 + $0x24] sm:$0xf] (%p51_p3)  ;;  %v236_v2 = vld [vmem:[%s215_s29 + $0x48] sm:$0xf] (%p51_p3) }
  0x10   : > { %233 = vst [vmem:[%s210_s30] sm:$0xf] (%p51_p3), %v232_v0  ;;  %v238_v3 = vld [vmem:[%s215_s29 + $0x6c] sm:$0xf] (%p51_p3) }
  0x11   : > { %235 = vst [vmem:[%s210_s30 + $0x4] sm:$0xf] %v234_v1 }
  0x12   : > { %237 = vst [vmem:[%s210_s30 + $0x8] sm:$0xf] %v236_v2 }
  0x13   : > { %239 = vst [vmem:[%s210_s30 + $0xc] sm:$0xf] %v238_v3 }
  0x14 PF: > { %p661_p6 = scmp.ge.s32.totalorder %s829_s19, 1  ;;  %p282_p7 = scmp.lt.s32.totalorder %s829_s19, 10 }
  0x16   : > { %p283_p8 = pnand %p661_p6, %p282_p7 }
  0x17   : > { %s289_s5 = sand.u32 (!%p283_p8), 1, %s813_s15   ;;  %s663_s6 = sshll.u32 (!%p283_p8), %s821_s17, 4 }
  0x18   : > { %286 = sbr.rel (%p283_p8) target bundleno = 225 (0xe1), region = 73  ;;  %s904_s7 = sshll.u32 (!%p283_p8), %s289_s5, 4 }
  0x19   : > { %p338_p9 = scmp.lt.s32.totalorder (!%p283_p8), %s663_s6, 143  ;;  %s291_s12 = scalar_lea.vmem (!%p283_p8), [#allocation3], %s904_s7 }
  0x1a   : > { %p665_p10 = scmp.ne.s32.totalorder (!%p283_p8), %s821_s17, 0 }
  0x1d   : > { %s968_s6 = smov (!%p338_p9, %s663_s6), 143  ;;  %370 = sbr.rel (%p665_p10) target bundleno = 39 (0x27), region = 81 }
  0x1e   : > { %s664_s8 = sshll.u32 %s968_s6, 2 }
  0x1f   : > { %s909_s11 = scalar_lea.vmem %s957_s1, %s664_s8 }
  0x22   : > { %v831_v4 = vmov 0.0  }
  0x23   : > { %371 = vst [vmem:[#allocation2 + $0x10] sm:$0xff] %v831_v4 }
  0x24   : > { %372 = vst [vmem:[#allocation2] sm:$0xff] %v831_v4 }
  0x25   : > { %373 = vst [vmem:[#allocation2 + $0x18] sm:$0xff] %v831_v4 }
  0x26   : > { %374 = vst [vmem:[#allocation2 + $0x8] sm:$0xff] %v831_v4 }
  0x27 PF: > { %v720_v5 = vld [vmem:[%s909_s11 + $0x38] sm:$0xff]  ;;  %v719_v6 = vld [vmem:[%s909_s11 + $0x30] sm:$0xff]  ;;  %v718_v7 = vld [vmem:[%s909_s11 + $0x28] sm:$0xff]  ;;  %p706_p11 = scmp.ne.s32.totalorder %s821_s17, 8 }
  0x28   : > { %459 = vmatpush.bf16.msra.mxu0 %v720_v5  ;;  %741 = vmatpush.bf16.msra.mxu1 %v720_v5  ;;  %v717_v8 = vld [vmem:[%s909_s11 + $0x20] sm:$0xff]  ;;  %v716_v9 = vld [vmem:[%s909_s11 + $0x18] sm:$0xff]  ;;  %v715_v10 = vld [vmem:[%s909_s11 + $0x10] sm:$0xff] }
  0x29   : > { %v714_v11 = vld [vmem:[%s909_s11 + $0x8] sm:$0xff]  ;;  %v713_v12 = vld [vmem:[%s909_s11] sm:$0xff] }
  0x2a   : > { %v711_v13 = vld [vmem:[%s291_s12] sm:$0xff]  ;;  %v712_v14 = vld [vmem:[%s291_s12 + $0x8] sm:$0xff] }
  0x2b   : > { %v375_v15 = vld [vmem:[#allocation2 + $0x10] sm:$0xff]  ;;  %v376_v21 = vld [vmem:[#allocation2] sm:$0xff] }
  0x2c   : > { %460 = vmatpush.bf16.msra.mxu0 %v719_v6  ;;  %742 = vmatpush.bf16.msra.mxu1 %v719_v6  ;;  %v377_v16 = vld [vmem:[#allocation2 + $0x18] sm:$0xff] }
  0x2d   : > { %v378_v22 = vld [vmem:[#allocation2 + $0x8] sm:$0xff] }
  0x30   : > { %461 = vmatpush.bf16.msra.mxu0 %v718_v7  ;;  %743 = vmatpush.bf16.msra.mxu1 %v718_v7 }
  0x34   : > { %462 = vmatpush.bf16.msra.mxu0 %v717_v8  ;;  %744 = vmatpush.bf16.msra.mxu1 %v717_v8 }
  0x38   : > { %463 = vmatpush.bf16.msra.mxu0 %v716_v9  ;;  %745 = vmatpush.bf16.msra.mxu1 %v716_v9 }
  0x3c   : > { %464 = vmatpush.bf16.msra.mxu0 %v715_v10  ;;  %746 = vmatpush.bf16.msra.mxu1 %v715_v10 }
  0x40   : > { %465 = vmatpush.bf16.msra.mxu0 %v714_v11  ;;  %747 = vmatpush.bf16.msra.mxu1 %v714_v11 }
  0x44   : > { %466 = vmatpush.bf16.msra.mxu0 %v713_v12  ;;  %748 = vmatpush.bf16.msra.mxu1 %v713_v12 }
  0x47   : > { %467 = vmatmul.bf16.vlgmr.msra.gmra.mxu0 %v711_v13  ;;  %472 = vmatmul.bf16.vlgmr.msra.gmra.mxu1 %v712_v14 }
  0xc4   : > { %v468_v17 = vpop.f32.mrf.mxu0  ;;  %v473_v18 = vpop.f32.mrf.mxu1 }
  0xc5   : > { %v478_v19 = vadd.f32 %v468_v17, %v375_v15  ;;  %v480_v20 = vadd.f32 %v473_v18, %v377_v16 }
  0xc7   : > { %482 = vst [vmem:[#allocation2 + $0x10] sm:$0xff] %v478_v19 }
  0xc8   : > { %484 = vst [vmem:[#allocation2 + $0x18] sm:$0xff] %v480_v20 }
  0xcc   : > { %v470_v23 = vpop.f32.mrf.mxu0  ;;  %v475_v24 = vpop.f32.mrf.mxu1  ;;  %489 = sbr.rel (%p706_p11) target bundleno = 225 (0xe1), region = 85 }
  0xcd   : > { %v479_v25 = vadd.f32 %v470_v23, %v376_v21  ;;  %v481_v26 = vadd.f32 %v475_v24, %v378_v22 }
  0xcf   : > { %483 = vst [vmem:[#allocation2] sm:$0xff] %v479_v25 }
  0xd0   : > { %485 = vst [vmem:[#allocation2 + $0x8] sm:$0xff] %v481_v26 }
  0xd1   : > { %v490_v27 = vld [vmem:[#allocation2 + $0x10] sm:$0xff]  ;;  %v790_v29 = vld [vmem:[%s958_s2] ss:$0 sm:$0xff]  ;;  %v492_v31 = vld [vmem:[#allocation2 + $0x18] sm:$0xff] }
  0xd2   : > { %v722_v30 = vld [vmem:[%s959_s3] sm:$0xff]   ;;  %v739_v35 = vld [vmem:[%s959_s3 + $0x8] sm:$0xff]   ;;  %v498_v36 = vadd.f32 %v790_v29, %v490_v27  ;;  %v500_v38 = vadd.f32 %v790_v29, %v492_v31 }
  0xd3   : > { %v723_v32 = vunpack.c.l.bf16 %v722_v30  ;;  %v724_v33 = vunpack.c.h.bf16 %v722_v30  ;;  %v727_v40 = vunpack.c.l.bf16 %v739_v35  ;;  %v728_v41 = vunpack.c.h.bf16 %v739_v35 }
  0xd5   : > { %v510_v42 = vadd.f32 %v723_v32, %v498_v36  ;;  %v512_v44 = vadd.f32 %v727_v40, %v500_v38 }
  0xd6   : > { %v491_v28 = vld [vmem:[#allocation2] sm:$0xff] }
  0xd7   : > { %v493_v34 = vld [vmem:[#allocation2 + $0x8] sm:$0xff]  ;;  %v499_v37 = vadd.f32 %v790_v29, %v491_v28  ;;  %v514_v46 = vmax.f32 %v510_v42, 0.0  ;;  %v516_v48 = vmax.f32 %v512_v44, 0.0 }
  0xd8   : > { %v501_v39 = vadd.f32 %v790_v29, %v493_v34 }
  0xd9   : > { %v511_v43 = vadd.f32 %v724_v33, %v499_v37 }
  0xda   : > { %v513_v45 = vadd.f32 %v728_v41, %v501_v39 }
  0xdb   : > { %v515_v47 = vmax.f32 %v511_v43, 0.0 }
  0xdc   : > { %v517_v49 = vmax.f32 %v513_v45, 0.0 }
  0xdd   : > { %v732_v50 = vpack.c.bf16 %v515_v47, %v514_v46 }
  0xde   : > { %v737_v51 = vpack.c.bf16 %v517_v49, %v516_v48 }
  0xdf   : > { %733 = vst [vmem:[%s960_s4] sm:$0xff] %v732_v50  }
  0xe0   : > { %740 = vst [vmem:[%s960_s4 + $0x8] sm:$0xff] %v737_v51  }
  0xe1 PF: > { %s14_s19 = sadd.s32 1, %s829_s19   ;;  %s961_s15 = smov %s817_s16 }
  0xe2   : > { %p11_p12 = scmp.ge.s32.totalorder %s14_s19, 11   ;;  %s962_s16 = smov %s892_s23 }
  0xe3   : > { %s963_s17 = smov %s825_s18  ;;  %s964_s18 = smov %s966_s20 }
  0xe4   :  { %13 = sbr.rel (!%p11_p12) target bundleno = 3 (0x3), region = 129 }

// kernel: resnet18_forward.32
= control target key start
LH: loop header
LB: loop body
LE: loop exit
PB: predicated region body
PF: predicated region fallthrough
CT: control target
= control target key end

     0   :  { %s752_s12 = smov 0   ;;  %s754_s13 = smov 0   ;;  %s845_s0 = inlined_call_operand.vmem [shape: bf16[32,1152], index: 0, kind: input, shape index: {}]   ;;  %s846_s1 = inlined_call_operand.vmem [shape: bf16[1152,128], index: 1, kind: input, shape index: {}]   ;;  %s847_s2 = inlined_call_operand.vmem [shape: f32[1,128], index: 2, kind: input, shape index: {}]   ;;  %s848_s3 = inlined_call_operand.vmem [shape: bf16[32,128], index: 3, kind: output, shape index: {}]  }
   0x1   :  { %s756_s14 = smov 0   ;;  %s758_s15 = smov 0  }
   0x2   :  { %s760_s16 = smov 0  }
   0x3 LB: > { %s25_s17 = sadd.s32 1, %s725_s15  ;;  %p48_p1 = scmp.ne.s32.totalorder %s717_s13, %s713_s12  ;;  %s729_s16 = sphi %s760_s16, %s13_s16   ;;  %s725_s15 = sphi %s758_s15, %s852_s15   ;;  %s721_s14 = sphi %s756_s14, %s851_s14   ;;  %s717_s13 = sphi %s754_s13, %s850_s13   ;;  %s713_s12 = sphi %s752_s12, %s849_s12  }
   0x4   : > { %p26_p0 = scmp.ge.s32.totalorder %s25_s17, 9  ;;  %p49_p2 = scmp.eq.s32.totalorder %s729_s16, 0 }
   0x5   : > { %s41_s19 = sadd.s32 1, %s717_s13  ;;  %p567_p5 = scmp.ge.s32.totalorder %s729_s16, 9 }
   0x6   : > { %s854_s17 = smov (%p26_p0, %s25_s17), 0  ;;  %p50_p3 = por %p49_p2, %p48_p1 }
   0x7   : > { %s37_s18 = ssub.s32 %s725_s15, %s854_s17  ;;  %162 = sbr.rel (%p567_p5) target bundleno = 20 (0x14), region = 20 }
   0x8   : > { %p39_p4 = scmp.eq.s32.totalorder %s37_s18, 0 }
   0xa   : > { %s787_s20 = scalar_select %p39_p4, %s717_s13, %s41_s19  }
   0xc   : > { %165 = sbr.rel (!%p50_p3) target bundleno = 20 (0x14), region = 24  ;;  %s167_s21 = sand.u32 (%p50_p3), 1, %s717_s13  }
   0xd   : > { %s569_s22 = sshll.u32 (%p50_p3), %s725_s15, 2  ;;  %s568_s23 = sshll.u32 (%p50_p3), %s167_s21, 4 }
   0xe   : > { %s174_s26 = scalar_lea.vmem (%p50_p3), %s845_s0, %s569_s22  ;;  %s169_s27 = scalar_lea.vmem (%p50_p3), [#allocation3], %s568_s23 }
   0xf   : > { %v191_v0 = vld [vmem:[%s174_s26] sm:$0xf] (%p50_p3)  ;;  %v193_v1 = vld [vmem:[%s174_s26 + $0x24] sm:$0xf] (%p50_p3)  ;;  %v195_v2 = vld [vmem:[%s174_s26 + $0x48] sm:$0xf] (%p50_p3) }
  0x10   : > { %192 = vst [vmem:[%s169_s27] sm:$0xf] (%p50_p3), %v191_v0  ;;  %v197_v3 = vld [vmem:[%s174_s26 + $0x6c] sm:$0xf] (%p50_p3) }
  0x11   : > { %194 = vst [vmem:[%s169_s27 + $0x4] sm:$0xf] %v193_v1 }
  0x12   : > { %196 = vst [vmem:[%s169_s27 + $0x8] sm:$0xf] %v195_v2 }
  0x13   : > { %198 = vst [vmem:[%s169_s27 + $0xc] sm:$0xf] %v197_v3 }
  0x14 PF: > { %p570_p6 = scmp.ge.s32.totalorder %s729_s16, 1  ;;  %p241_p7 = scmp.lt.s32.totalorder %s729_s16, 10 }
  0x16   : > { %p242_p8 = pnand %p570_p6, %p241_p7 }
  0x17   : > { %s248_s28 = sand.u32 (!%p242_p8), 1, %s713_s12   ;;  %s572_s29 = sshll.u32 (!%p242_p8), %s721_s14, 4 }
  0x18   : > { %245 = sbr.rel (%p242_p8) target bundleno = 223 (0xdf), region = 69  ;;  %s799_s30 = sshll.u32 (!%p242_p8), %s248_s28, 4 }
  0x19   : > { %p287_p9 = scmp.lt.s32.totalorder (!%p242_p8), %s572_s29, 143  ;;  %s250_s8 = scalar_lea.vmem (!%p242_p8), [#allocation3], %s799_s30 }
  0x1a   : > { %p574_p10 = scmp.ne.s32.totalorder (!%p242_p8), %s721_s14, 0 }
  0x1d   : > { %s856_s29 = smov (!%p287_p9, %s572_s29), 143  ;;  %310 = sbr.rel (%p574_p10) target bundleno = 39 (0x27), region = 77 }
  0x1e   : > { %s573_s4 = sshll.u32 %s856_s29, 2 }
  0x1f   : > { %s804_s7 = scalar_lea.vmem %s846_s1, %s573_s4 }
  0x22   : > { %v731_v4 = vmov 0.0  }
  0x23   : > { %311 = vst [vmem:[#allocation2 + $0x10] sm:$0xff] %v731_v4 }
  0x24   : > { %312 = vst [vmem:[#allocation2] sm:$0xff] %v731_v4 }
  0x25   : > { %313 = vst [vmem:[#allocation2 + $0x18] sm:$0xff] %v731_v4 }
  0x26   : > { %314 = vst [vmem:[#allocation2 + $0x8] sm:$0xff] %v731_v4 }
  0x27 PF: > { %v629_v5 = vld [vmem:[%s804_s7 + $0x38] sm:$0xff]  ;;  %v628_v6 = vld [vmem:[%s804_s7 + $0x30] sm:$0xff]  ;;  %v627_v7 = vld [vmem:[%s804_s7 + $0x28] sm:$0xff]  ;;  %p615_p11 = scmp.ne.s32.totalorder %s721_s14, 8 }
  0x28   : > { %399 = vmatpush.bf16.msra.mxu0 %v629_v5  ;;  %641 = vmatpush.bf16.msra.mxu1 %v629_v5  ;;  %v626_v8 = vld [vmem:[%s804_s7 + $0x20] sm:$0xff]  ;;  %v625_v9 = vld [vmem:[%s804_s7 + $0x18] sm:$0xff]  ;;  %v624_v10 = vld [vmem:[%s804_s7 + $0x10] sm:$0xff] }
  0x29   : > { %v623_v11 = vld [vmem:[%s804_s7 + $0x8] sm:$0xff]  ;;  %v622_v12 = vld [vmem:[%s804_s7] sm:$0xff] }
  0x2a   : > { %v620_v13 = vld [vmem:[%s250_s8] sm:$0xff]  ;;  %v621_v14 = vld [vmem:[%s250_s8 + $0x8] sm:$0xff] }
  0x2b   : > { %v315_v15 = vld [vmem:[#allocation2 + $0x10] sm:$0xff]  ;;  %v316_v21 = vld [vmem:[#allocation2] sm:$0xff] }
  0x2c   : > { %400 = vmatpush.bf16.msra.mxu0 %v628_v6  ;;  %642 = vmatpush.bf16.msra.mxu1 %v628_v6  ;;  %v317_v16 = vld [vmem:[#allocation2 + $0x18] sm:$0xff] }
  0x2d   : > { %v318_v22 = vld [vmem:[#allocation2 + $0x8] sm:$0xff] }
  0x30   : > { %401 = vmatpush.bf16.msra.mxu0 %v627_v7  ;;  %643 = vmatpush.bf16.msra.mxu1 %v627_v7 }
  0x34   : > { %402 = vmatpush.bf16.msra.mxu0 %v626_v8  ;;  %644 = vmatpush.bf16.msra.mxu1 %v626_v8 }
  0x38   : > { %403 = vmatpush.bf16.msra.mxu0 %v625_v9  ;;  %645 = vmatpush.bf16.msra.mxu1 %v625_v9 }
  0x3c   : > { %404 = vmatpush.bf16.msra.mxu0 %v624_v10  ;;  %646 = vmatpush.bf16.msra.mxu1 %v624_v10 }
  0x40   : > { %405 = vmatpush.bf16.msra.mxu0 %v623_v11  ;;  %647 = vmatpush.bf16.msra.mxu1 %v623_v11 }
  0x44   : > { %406 = vmatpush.bf16.msra.mxu0 %v622_v12  ;;  %648 = vmatpush.bf16.msra.mxu1 %v622_v12 }
  0x47   : > { %407 = vmatmul.bf16.vlgmr.msra.gmra.mxu0 %v620_v13  ;;  %412 = vmatmul.bf16.vlgmr.msra.gmra.mxu1 %v621_v14 }
  0xc4   : > { %v408_v17 = vpop.f32.mrf.mxu0  ;;  %v413_v18 = vpop.f32.mrf.mxu1 }
  0xc5   : > { %v418_v19 = vadd.f32 %v408_v17, %v315_v15  ;;  %v420_v20 = vadd.f32 %v413_v18, %v317_v16 }
  0xc7   : > { %422 = vst [vmem:[#allocation2 + $0x10] sm:$0xff] %v418_v19 }
  0xc8   : > { %424 = vst [vmem:[#allocation2 + $0x18] sm:$0xff] %v420_v20 }
  0xcc   : > { %v410_v23 = vpop.f32.mrf.mxu0  ;;  %v415_v24 = vpop.f32.mrf.mxu1  ;;  %429 = sbr.rel (%p615_p11) target bundleno = 223 (0xdf), region = 81 }
  0xcd   : > { %v419_v25 = vadd.f32 %v410_v23, %v316_v21  ;;  %v421_v26 = vadd.f32 %v415_v24, %v318_v22 }
  0xcf   : > { %423 = vst [vmem:[#allocation2] sm:$0xff] %v419_v25 }
  0xd0   : > { %425 = vst [vmem:[#allocation2 + $0x8] sm:$0xff] %v421_v26 }
  0xd1   : > { %v430_v27 = vld [vmem:[#allocation2 + $0x10] sm:$0xff]  ;;  %v690_v29 = vld [vmem:[%s847_s2] ss:$0 sm:$0xff]  ;;  %v432_v30 = vld [vmem:[#allocation2 + $0x18] sm:$0xff] }
  0xd2   : > { %v438_v32 = vadd.f32 %v690_v29, %v430_v27  ;;  %v440_v34 = vadd.f32 %v690_v29, %v432_v30 }
  0xd4   : > { %v442_v36 = vmax.f32 %v438_v32, 0.0  ;;  %v444_v38 = vmax.f32 %v440_v34, 0.0 }
  0xd6   : > { %v431_v28 = vld [vmem:[#allocation2] sm:$0xff] }
  0xd7   : > { %v433_v31 = vld [vmem:[#allocation2 + $0x8] sm:$0xff]  ;;  %v439_v33 = vadd.f32 %v690_v29, %v431_v28 }
  0xd8   : > { %v441_v35 = vadd.f32 %v690_v29, %v433_v31 }
  0xd9   : > { %v443_v37 = vmax.f32 %v439_v33, 0.0 }
  0xda   : > { %v445_v39 = vmax.f32 %v441_v35, 0.0 }
  0xdb   : > { %v633_v40 = vpack.c.bf16 %v443_v37, %v442_v36 }
  0xdc   : > { %v638_v41 = vpack.c.bf16 %v445_v39, %v444_v38 }
  0xdd   : > { %634 = vst [vmem:[%s848_s3] sm:$0xff] %v633_v40  }
  0xde   : > { %640 = vst [vmem:[%s848_s3 + $0x8] sm:$0xff] %v638_v41  }
  0xdf PF: > { %s13_s16 = sadd.s32 1, %s729_s16   ;;  %s849_s12 = smov %s717_s13 }
  0xe0   : > { %p10_p12 = scmp.ge.s32.totalorder %s13_s16, 11   ;;  %s850_s13 = smov %s787_s20 }
  0xe1   : > { %s851_s14 = smov %s725_s15  ;;  %s852_s15 = smov %s854_s17 }
  0xe2   :  { %12 = sbr.rel (!%p10_p12) target bundleno = 3 (0x3), region = 122 }

// kernel: resnet18_forward.34
= control target key start
LH: loop header
LB: loop body
LE: loop exit
PB: predicated region body
PF: predicated region fallthrough
CT: control target
= control target key end

     0   :  { %s708_s12 = smov 0   ;;  %s710_s13 = smov 0   ;;  %s791_s0 = inlined_call_operand.vmem [shape: bf16[8,1152], index: 0, kind: input, shape index: {}]   ;;  %s792_s1 = inlined_call_operand.vmem [shape: bf16[1152,256], index: 1, kind: input, shape index: {}]   ;;  %s793_s2 = inlined_call_operand.vmem [shape: f32[1,256], index: 2, kind: input, shape index: {}]   ;;  %s794_s3 = inlined_call_operand.vmem [shape: bf16[8,256], index: 3, kind: output, shape index: {}]  }
   0x1   :  { %s712_s14 = smov 0  }
   0x2 LB: > { %s25_s15 = sadd.s32 1, %s681_s13  ;;  %p546_p0 = scmp.ge.s32.totalorder %s685_s14, 1  ;;  %s685_s14 = sphi %s712_s14, %s13_s14   ;;  %s681_s13 = sphi %s710_s13, %s796_s13   ;;  %s677_s12 = sphi %s708_s12, %s795_s12  }
   0x3   : > { %p26_p1 = scmp.ge.s32.totalorder %s25_s15, 9  ;;  %p192_p2 = scmp.lt.s32.totalorder %s685_s14, 10 }
   0x5   : > { %s798_s15 = smov (%p26_p1, %s25_s15), 0  ;;  %p193_p3 = pnand %p546_p0, %p192_p2 }
   0x6   : > { %p239_p4 = scmp.lt.s32.totalorder (!%p193_p3), %s677_s12, 8  ;;  %s548_s16 = sshll.u32 (!%p193_p3), %s677_s12, 4 }
   0x7   : > { %196 = sbr.rel (%p193_p3) target bundleno = 201 (0xc9), region = 32  ;;  %p247_p5 = scmp.lt.s32.totalorder (!%p193_p3), %s548_s16, 143 }
   0x8   : > { %p551_p6 = scmp.ne.s32.totalorder (!%p193_p3), %s677_s12, 0 }
   0xc   : > { %s240_s17 = scalar_select %p239_p4, %s677_s12, 8 }
   0xd   : > { %s800_s16 = smov (!%p247_p5, %s548_s16), 143  ;;  %275 = sbr.rel (%p551_p6) target bundleno = 21 (0x15), region = 36 }
   0xe   : > { %s547_s18 = sshll.u32 %s240_s17, 2  ;;  %s621_s22 = sshll.u32 %s800_s16, 3 }
   0xf   : > { %s734_s21 = scalar_lea.vmem %s791_s0, %s547_s18  ;;  %s739_s25 = scalar_lea.vmem %s792_s1, %s621_s22 }
  0x12   : > { %v687_v0 = vmov 0.0  }
  0x13   : > { %276 = vst [vmem:[#allocation2] sm:$0xff] %v687_v0 }
  0x14   : > { %277 = vst [vmem:[#allocation2 + $0x8] sm:$0xff] %v687_v0 }
  0x15 PF: > { %v610_v1 = vld [vmem:[%s739_s25 + $0x70] sm:$0xf]  ;;  %v637_v2 = vld [vmem:[%s739_s25 + $0x74] sm:$0xf0]  ;;  %v636_v3 = vld [vmem:[%s739_s25 + $0x74] sm:$0xf] }
  0x16   : > { %v611_v4 = vor.u32 %v637_v2, %v610_v1  ;;  %v612_v5 = vld [vmem:[%s739_s25 + $0x78] sm:$0xf0]  ;;  %v602_v6 = vld [vmem:[%s739_s25 + $0x60] sm:$0xf]  ;;  %v635_v7 = vld [vmem:[%s739_s25 + $0x64] sm:$0xf0] }
  0x17   : > { %v615_v8 = vor.u32 %v636_v3, %v612_v5  ;;  %v634_v9 = vld [vmem:[%s739_s25 + $0x64] sm:$0xf]  ;;  %v604_v10 = vld [vmem:[%s739_s25 + $0x68] sm:$0xf0]  ;;  %v603_v11 = vor.u32 %v635_v7, %v602_v6  ;;  %v594_v13 = vld [vmem:[%s739_s25 + $0x50] sm:$0xf] }
  0x18   : > { %377 = vmatpush.bf16.msra.mxu0 %v611_v4  ;;  %v607_v12 = vor.u32 %v634_v9, %v604_v10  ;;  %v633_v14 = vld [vmem:[%s739_s25 + $0x54] sm:$0xf0]  ;;  %v632_v15 = vld [vmem:[%s739_s25 + $0x54] sm:$0xf]  ;;  %v596_v16 = vld [vmem:[%s739_s25 + $0x58] sm:$0xf0] }
  0x19   : > { %390 = vmatpush.bf16.msra.mxu1 %v615_v8  ;;  %v595_v17 = vor.u32 %v633_v14, %v594_v13  ;;  %v599_v18 = vor.u32 %v632_v15, %v596_v16  ;;  %v586_v19 = vld [vmem:[%s739_s25 + $0x40] sm:$0xf]  ;;  %v631_v20 = vld [vmem:[%s739_s25 + $0x44] sm:$0xf0]  ;;  %v630_v21 = vld [vmem:[%s739_s25 + $0x44] sm:$0xf] }
  0x1a   : > { %v588_v22 = vld [vmem:[%s739_s25 + $0x48] sm:$0xf0]  ;;  %v587_v23 = vor.u32 %v631_v20, %v586_v19  ;;  %v578_v25 = vld [vmem:[%s739_s25 + $0x30] sm:$0xf]  ;;  %v629_v26 = vld [vmem:[%s739_s25 + $0x34] sm:$0xf0] }
  0x1b   : > { %v591_v24 = vor.u32 %v630_v21, %v588_v22  ;;  %v628_v27 = vld [vmem:[%s739_s25 + $0x34] sm:$0xf]  ;;  %v580_v28 = vld [vmem:[%s739_s25 + $0x38] sm:$0xf0]  ;;  %v579_v29 = vor.u32 %v629_v26, %v578_v25  ;;  %v570_v31 = vld [vmem:[%s739_s25 + $0x20] sm:$0xf] }
  0x1c   : > { %378 = vmatpush.bf16.msra.mxu0 %v603_v11  ;;  %v583_v30 = vor.u32 %v628_v27, %v580_v28  ;;  %v627_v32 = vld [vmem:[%s739_s25 + $0x24] sm:$0xf0]  ;;  %v626_v33 = vld [vmem:[%s739_s25 + $0x24] sm:$0xf]  ;;  %v572_v34 = vld [vmem:[%s739_s25 + $0x28] sm:$0xf0] }
  0x1d   : > { %391 = vmatpush.bf16.msra.mxu1 %v607_v12  ;;  %v571_v35 = vor.u32 %v627_v32, %v570_v31  ;;  %v575_v36 = vor.u32 %v626_v33, %v572_v34  ;;  %v562_v37 = vld [vmem:[%s739_s25 + $0x10] sm:$0xf]  ;;  %v625_v38 = vld [vmem:[%s739_s25 + $0x14] sm:$0xf0]  ;;  %v624_v39 = vld [vmem:[%s739_s25 + $0x14] sm:$0xf] }
  0x1e   : > { %v564_v40 = vld [vmem:[%s739_s25 + $0x18] sm:$0xf0]  ;;  %v563_v41 = vor.u32 %v625_v38, %v562_v37  ;;  %v554_v43 = vld [vmem:[%s739_s25] sm:$0xf]  ;;  %v623_v44 = vld [vmem:[%s739_s25 + $0x4] sm:$0xf0] }
  0x1f   : > { %v567_v42 = vor.u32 %v624_v39, %v564_v40  ;;  %v622_v45 = vld [vmem:[%s739_s25 + $0x4] sm:$0xf]  ;;  %v556_v46 = vld [vmem:[%s739_s25 + $0x8] sm:$0xf0]  ;;  %v555_v47 = vor.u32 %v623_v44, %v554_v43  ;;  %v280_v49 = vld [vmem:[%s734_s21] sm:$0xf] }
  0x20   : > { %379 = vmatpush.bf16.msra.mxu0 %v595_v17  ;;  %v559_v48 = vor.u32 %v622_v45, %v556_v46  ;;  %v278_v50 = vld [vmem:[#allocation2] sm:$0xff]  ;;  %v279_v51 = vld [vmem:[#allocation2 + $0x8] sm:$0xff]  ;;  %p616_p7 = scmp.ne.s32.totalorder %s677_s12, 8 }
  0x21   : > { %392 = vmatpush.bf16.msra.mxu1 %v599_v18 }
  0x24   : > { %380 = vmatpush.bf16.msra.mxu0 %v587_v23 }
  0x25   : > { %393 = vmatpush.bf16.msra.mxu1 %v591_v24 }
  0x28   : > { %381 = vmatpush.bf16.msra.mxu0 %v579_v29 }
  0x29   : > { %394 = vmatpush.bf16.msra.mxu1 %v583_v30 }
  0x2c   : > { %382 = vmatpush.bf16.msra.mxu0 %v571_v35 }
  0x2d   : > { %395 = vmatpush.bf16.msra.mxu1 %v575_v36 }
  0x30   : > { %383 = vmatpush.bf16.msra.mxu0 %v563_v41 }
  0x31   : > { %396 = vmatpush.bf16.msra.mxu1 %v567_v42 }
  0x34   : > { %384 = vmatpush.bf16.msra.mxu0 %v555_v47 }
  0x35   : > { %397 = vmatpush.bf16.msra.mxu1 %v559_v48 }
  0x37   : > { %385 = vmatmul.bf16.vlgmr.msra.gmra.mxu0 %v280_v49 }
  0x38   : > { %398 = vmatmul.bf16.vlgmr.msra.gmra.mxu1 %v280_v49 }
  0xb4   : > { %v386_v52 = vpop.f32.mrf.mxu0 }
  0xb5   : > { %v403_v53 = vadd.f32 %v386_v52, %v278_v50  ;;  %v399_v54 = vpop.f32.mrf.mxu1 }
  0xb6   : > { %v404_v55 = vadd.f32 %v399_v54, %v279_v51 }
  0xb7   : > { %405 = vst [vmem:[#allocation2] sm:$0xff] %v403_v53 }
  0xb8   : > { %406 = vst [vmem:[#allocation2 + $0x8] sm:$0xff] %v404_v55 }
  0xb9   : > { %410 = sbr.rel (%p616_p7) target bundleno = 201 (0xc9), region = 40 }
  0xbc   : > { %v388_v56 = vpop.f32.mrf.mxu0 }
  0xbd   : > { %v401_v57 = vpop.f32.mrf.mxu1 }
  0xbe   : > { %v411_v58 = vld [vmem:[#allocation2] sm:$0xff] }
  0xbf   : > { %v412_v59 = vld [vmem:[#allocation2 + $0x8] sm:$0xff]  ;;  %v413_v60 = vld [vmem:[%s793_s2] sm:$0x3] }
  0xc0   : > { %v415_v61 = vperm.slane %v413_v60, 0  ;;  %v416_v62 = vperm.slane %v413_v60, 1 }
  0xc2   : > { %v419_v63 = vadd.f32 %v415_v61, %v411_v58  ;;  %v420_v0 = vadd.f32 %v416_v62, %v412_v59 }
  0xc4   : > { %v421_v1 = vmax.f32 %v419_v63, 0.0  ;;  %v422_v2 = vmax.f32 %v420_v0, 0.0 }
  0xc6   : > { %v423_v3 = vpack.c.bf16 %v422_v2, %v421_v1 }
  0xc8   : > { %424 = vst [vmem:[%s794_s3] sm:$0xff] %v423_v3 }
  0xc9 PF: > { %s13_s14 = sadd.s32 1, %s685_s14   ;;  %s795_s12 = smov %s681_s13 }
  0xca   : > { %p10_p8 = scmp.ge.s32.totalorder %s13_s14, 11   ;;  %s796_s13 = smov %s798_s15 }
  0xcc   :  { %12 = sbr.rel (!%p10_p8) target bundleno = 2 (0x2), region = 76 }

// kernel: resnet18_forward.36
= control target key start
LH: loop header
LB: loop body
LE: loop exit
PB: predicated region body
PF: predicated region fallthrough
CT: control target
= control target key end

     0   :  { %s1018_s15 = smov 0   ;;  %s1020_s16 = smov 0   ;;  %s1135_s0 = inlined_call_operand.vmem [shape: bf16[8,2304], index: 0, kind: input, shape index: {}]   ;;  %s1136_s1 = inlined_call_operand.vmem [shape: bf16[2304,256], index: 1, kind: input, shape index: {}]   ;;  %s1137_s2 = inlined_call_operand.vmem [shape: f32[1,256], index: 2, kind: input, shape index: {}]   ;;  %s1138_s3 = inlined_call_operand.vmem [shape: bf16[8,256], index: 3, kind: input, shape index: {}]   ;;  %s1139_s4 = inlined_call_operand.vmem [shape: bf16[8,256], index: 4, kind: output, shape index: {}]  }
   0x1   :  { %s1022_s17 = smov 0  }
   0x2 LB: > { %s26_s18 = sadd.s32 1, %s986_s16  ;;  %p770_p0 = scmp.ge.s32.totalorder %s990_s17, 1  ;;  %s990_s17 = sphi %s1022_s17, %s14_s17   ;;  %s986_s16 = sphi %s1020_s16, %s1141_s16   ;;  %s982_s15 = sphi %s1018_s15, %s1140_s15  }
   0x3   : > { %p27_p1 = scmp.ge.s32.totalorder %s26_s18, 9  ;;  %p236_p2 = scmp.lt.s32.totalorder %s990_s17, 10 }
   0x5   : > { %s1143_s18 = smov (%p27_p1, %s26_s18), 0  ;;  %p237_p3 = pnand %p770_p0, %p236_p2 }
   0x6   : > { %s771_s19 = sshll.u32 (!%p237_p3), %s982_s15, 1  ;;  %s773_s20 = sshll.u32 (!%p237_p3), %s982_s15, 5 }
   0x7   : > { %240 = sbr.rel (%p237_p3) target bundleno = 212 (0xd4), region = 36  ;;  %p296_p4 = scmp.lt.s32.totalorder (!%p237_p3), %s771_s19, 17 }
   0x8   : > { %p305_p5 = scmp.lt.s32.totalorder (!%p237_p3), %s773_s20, 287  ;;  %p776_p6 = scmp.ne.s32.totalorder (!%p237_p3), %s982_s15, 0 }
   0xc   : > { %s1145_s19 = smov (!%p296_p4, %s771_s19), 17  ;;  %s1147_s20 = smov (!%p305_p5, %s773_s20), 287 }
   0xd   : > { %s772_s21 = sshll.u32 %s1145_s19, 2  ;;  %s910_s25 = sshll.u32 %s1147_s20, 3 }
   0xe   : > { %s1043_s24 = scalar_lea.vmem %s1135_s0, %s772_s21  ;;  %s1048_s28 = scalar_lea.vmem %s1136_s1, %s910_s25 }
   0xf   : > { %343 = sbr.rel (%p776_p6) target bundleno = 23 (0x17), region = 40 }
  0x14   : > { %v992_v0 = vmov 0.0  }
  0x15   : > { %344 = vst [vmem:[#allocation2] sm:$0xff] %v992_v0 }
  0x16   : > { %345 = vst [vmem:[#allocation2 + $0x8] sm:$0xff] %v992_v0 }
  0x17 PF: > { %v835_v1 = vld [vmem:[%s1048_s28 + $0x70] sm:$0xf]  ;;  %v926_v2 = vld [vmem:[%s1048_s28 + $0x74] sm:$0xf0]  ;;  %v925_v6 = vld [vmem:[%s1048_s28 + $0x74] sm:$0xf] }
  0x18   : > { %v899_v3 = vld [vmem:[%s1048_s28 + $0xf0] sm:$0xf]  ;;  %v836_v4 = vor.u32 %v926_v2, %v835_v1  ;;  %v942_v5 = vld [vmem:[%s1048_s28 + $0xf4] sm:$0xf0]  ;;  %v837_v7 = vld [vmem:[%s1048_s28 + $0x78] sm:$0xf0] }
  0x19   : > { %v900_v8 = vor.u32 %v942_v5, %v899_v3  ;;  %v840_v9 = vor.u32 %v925_v6, %v837_v7  ;;  %v941_v10 = vld [vmem:[%s1048_s28 + $0xf4] sm:$0xf]  ;;  %v901_v11 = vld [vmem:[%s1048_s28 + $0xf8] sm:$0xf0]  ;;  %v827_v12 = vld [vmem:[%s1048_s28 + $0x60] sm:$0xf] }
  0x1a   : > { %548 = vmatpush.bf16.msra.mxu0 %v836_v4  ;;  %v904_v13 = vor.u32 %v941_v10, %v901_v11  ;;  %v924_v14 = vld [vmem:[%s1048_s28 + $0x64] sm:$0xf0]  ;;  %v891_v15 = vld [vmem:[%s1048_s28 + $0xe0] sm:$0xf]  ;;  %v923_v19 = vld [vmem:[%s1048_s28 + $0x64] sm:$0xf] }
  0x1b   : > { %v940_v16 = vld [vmem:[%s1048_s28 + $0xe4] sm:$0xf0]  ;;  %561 = vmatpush.bf16.msra.mxu1 %v900_v8  ;;  %574 = vmatpush.bf16.msra.mxu2 %v840_v9  ;;  %v828_v17 = vor.u32 %v924_v14, %v827_v12  ;;  %v829_v20 = vld [vmem:[%s1048_s28 + $0x68] sm:$0xf0]  ;;  %v939_v21 = vld [vmem:[%s1048_s28 + $0xe4] sm:$0xf] }
  0x1c   : > { %v892_v18 = vor.u32 %v940_v16, %v891_v15  ;;  %587 = vmatpush.bf16.msra.mxu3 %v904_v13  ;;  %v832_v22 = vor.u32 %v923_v19, %v829_v20  ;;  %v893_v23 = vld [vmem:[%s1048_s28 + $0xe8] sm:$0xf0]  ;;  %v819_v24 = vld [vmem:[%s1048_s28 + $0x50] sm:$0xf]  ;;  %v922_v25 = vld [vmem:[%s1048_s28 + $0x54] sm:$0xf0] }
  0x1d   : > { %v896_v26 = vor.u32 %v939_v21, %v893_v23  ;;  %v883_v27 = vld [vmem:[%s1048_s28 + $0xd0] sm:$0xf]  ;;  %v938_v28 = vld [vmem:[%s1048_s28 + $0xd4] sm:$0xf0]  ;;  %v921_v29 = vld [vmem:[%s1048_s28 + $0x54] sm:$0xf]  ;;  %v820_v30 = vor.u32 %v922_v25, %v819_v24 }
  0x1e   : > { %549 = vmatpush.bf16.msra.mxu0 %v828_v17  ;;  %v821_v31 = vld [vmem:[%s1048_s28 + $0x58] sm:$0xf0]  ;;  %v937_v32 = vld [vmem:[%s1048_s28 + $0xd4] sm:$0xf]  ;;  %v884_v34 = vor.u32 %v938_v28, %v883_v27  ;;  %v811_v36 = vld [vmem:[%s1048_s28 + $0x40] sm:$0xf] }
  0x1f   : > { %v885_v33 = vld [vmem:[%s1048_s28 + $0xd8] sm:$0xf0]  ;;  %562 = vmatpush.bf16.msra.mxu1 %v892_v18  ;;  %575 = vmatpush.bf16.msra.mxu2 %v832_v22  ;;  %v824_v35 = vor.u32 %v921_v29, %v821_v31  ;;  %v920_v37 = vld [vmem:[%s1048_s28 + $0x44] sm:$0xf0]  ;;  %v875_v38 = vld [vmem:[%s1048_s28 + $0xc0] sm:$0xf] }
  0x20   : > { %588 = vmatpush.bf16.msra.mxu3 %v896_v26  ;;  %v888_v39 = vor.u32 %v937_v32, %v885_v33  ;;  %v936_v40 = vld [vmem:[%s1048_s28 + $0xc4] sm:$0xf0]  ;;  %v919_v41 = vld [vmem:[%s1048_s28 + $0x44] sm:$0xf]  ;;  %v813_v42 = vld [vmem:[%s1048_s28 + $0x48] sm:$0xf0]  ;;  %v812_v45 = vor.u32 %v920_v37, %v811_v36 }
  0x21   : > { %v935_v43 = vld [vmem:[%s1048_s28 + $0xc4] sm:$0xf]  ;;  %v877_v44 = vld [vmem:[%s1048_s28 + $0xc8] sm:$0xf0]  ;;  %v876_v46 = vor.u32 %v936_v40, %v875_v38  ;;  %v816_v47 = vor.u32 %v919_v41, %v813_v42  ;;  %v803_v48 = vld [vmem:[%s1048_s28 + $0x30] sm:$0xf] }
  0x22   : > { %550 = vmatpush.bf16.msra.mxu0 %v820_v30  ;;  %v918_v49 = vld [vmem:[%s1048_s28 + $0x34] sm:$0xf0]  ;;  %v867_v50 = vld [vmem:[%s1048_s28 + $0xb0] sm:$0xf]  ;;  %v880_v51 = vor.u32 %v935_v43, %v877_v44  ;;  %v917_v53 = vld [vmem:[%s1048_s28 + $0x34] sm:$0xf] }
  0x23   : > { %563 = vmatpush.bf16.msra.mxu1 %v884_v34  ;;  %576 = vmatpush.bf16.msra.mxu2 %v824_v35  ;;  %v934_v52 = vld [vmem:[%s1048_s28 + $0xb4] sm:$0xf0]  ;;  %v805_v54 = vld [vmem:[%s1048_s28 + $0x38] sm:$0xf0]  ;;  %v933_v55 = vld [vmem:[%s1048_s28 + $0xb4] sm:$0xf]  ;;  %v804_v57 = vor.u32 %v918_v49, %v803_v48 }
  0x24   : > { %589 = vmatpush.bf16.msra.mxu3 %v888_v39  ;;  %v869_v56 = vld [vmem:[%s1048_s28 + $0xb8] sm:$0xf0]  ;;  %v868_v58 = vor.u32 %v934_v52, %v867_v50  ;;  %v808_v59 = vor.u32 %v917_v53, %v805_v54  ;;  %v795_v60 = vld [vmem:[%s1048_s28 + $0x20] sm:$0xf]  ;;  %v916_v61 = vld [vmem:[%s1048_s28 + $0x24] sm:$0xf0] }
  0x25   : > { %v859_v62 = vld [vmem:[%s1048_s28 + $0xa0] sm:$0xf]  ;;  %v872_v63 = vor.u32 %v933_v55, %v869_v56  ;;  %v932_v0 = vld [vmem:[%s1048_s28 + $0xa4] sm:$0xf0]  ;;  %v915_v1 = vld [vmem:[%s1048_s28 + $0x24] sm:$0xf]  ;;  %v796_v5 = vor.u32 %v916_v61, %v795_v60 }
  0x26   : > { %551 = vmatpush.bf16.msra.mxu0 %v812_v45  ;;  %v797_v2 = vld [vmem:[%s1048_s28 + $0x28] sm:$0xf0]  ;;  %v931_v3 = vld [vmem:[%s1048_s28 + $0xa4] sm:$0xf]  ;;  %v860_v6 = vor.u32 %v932_v0, %v859_v62  ;;  %v787_v8 = vld [vmem:[%s1048_s28 + $0x10] sm:$0xf] }
  0x27   : > { %564 = vmatpush.bf16.msra.mxu1 %v876_v46  ;;  %577 = vmatpush.bf16.msra.mxu2 %v816_v47  ;;  %v861_v4 = vld [vmem:[%s1048_s28 + $0xa8] sm:$0xf0]  ;;  %v800_v7 = vor.u32 %v915_v1, %v797_v2  ;;  %v914_v9 = vld [vmem:[%s1048_s28 + $0x14] sm:$0xf0]  ;;  %v851_v10 = vld [vmem:[%s1048_s28 + $0x90] sm:$0xf] }
  0x28   : > { %590 = vmatpush.bf16.msra.mxu3 %v880_v51  ;;  %v864_v11 = vor.u32 %v931_v3, %v861_v4  ;;  %v930_v12 = vld [vmem:[%s1048_s28 + $0x94] sm:$0xf0]  ;;  %v913_v13 = vld [vmem:[%s1048_s28 + $0x14] sm:$0xf]  ;;  %v789_v14 = vld [vmem:[%s1048_s28 + $0x18] sm:$0xf0]  ;;  %v788_v17 = vor.u32 %v914_v9, %v787_v8 }
  0x29   : > { %v929_v15 = vld [vmem:[%s1048_s28 + $0x94] sm:$0xf]  ;;  %v853_v16 = vld [vmem:[%s1048_s28 + $0x98] sm:$0xf0]  ;;  %v348_v18 = vld [vmem:[%s1043_s24] sm:$0xff]  ;;  %v852_v19 = vor.u32 %v930_v12, %v851_v10  ;;  %v792_v20 = vor.u32 %v913_v13, %v789_v14  ;;  %p905_p7 = scmp.ne.s32.totalorder %s982_s15, 8 }
  0x2a   : > { %552 = vmatpush.bf16.msra.mxu0 %v804_v57  ;;  %v779_v21 = vld [vmem:[%s1048_s28] sm:$0xf]  ;;  %v912_v22 = vld [vmem:[%s1048_s28 + $0x4] sm:$0xf0]  ;;  %v856_v24 = vor.u32 %v929_v15, %v853_v16  ;;  %v911_v26 = vld [vmem:[%s1048_s28 + $0x4] sm:$0xf]  ;;  %v382_v30 = vunpack.c.l.b16 %v348_v18  ;;  %v383_v32 = vunpack.c.h.b16 %v348_v18 }
  0x2b   : > { %565 = vmatpush.bf16.msra.mxu1 %v868_v58  ;;  %578 = vmatpush.bf16.msra.mxu2 %v808_v59  ;;  %v843_v23 = vld [vmem:[%s1048_s28 + $0x80] sm:$0xf]  ;;  %v928_v25 = vld [vmem:[%s1048_s28 + $0x84] sm:$0xf0]  ;;  %v781_v27 = vld [vmem:[%s1048_s28 + $0x8] sm:$0xf0]  ;;  %v780_v31 = vor.u32 %v912_v22, %v779_v21 }
  0x2c   : > { %591 = vmatpush.bf16.msra.mxu3 %v872_v63  ;;  %v927_v28 = vld [vmem:[%s1048_s28 + $0x84] sm:$0xf]  ;;  %v845_v29 = vld [vmem:[%s1048_s28 + $0x88] sm:$0xf0]  ;;  %v844_v33 = vor.u32 %v928_v25, %v843_v23  ;;  %v784_v34 = vor.u32 %v911_v26, %v781_v27  ;;  %v384_v36 = vpack.c.b16 %v382_v30, %v382_v30  ;;  %v385_v37 = vpack.c.b16 %v383_v32, %v383_v32 }
  0x2d   : > { %v848_v35 = vor.u32 %v927_v28, %v845_v29  ;;  %v346_v39 = vld [vmem:[#allocation2] sm:$0xff]  ;;  %v347_v44 = vld [vmem:[#allocation2 + $0x8] sm:$0xff] }
  0x2e   : > { %553 = vmatpush.bf16.msra.mxu0 %v796_v5 }
  0x2f   : > { %566 = vmatpush.bf16.msra.mxu1 %v860_v6  ;;  %579 = vmatpush.bf16.msra.mxu2 %v800_v7 }
  0x30   : > { %592 = vmatpush.bf16.msra.mxu3 %v864_v11 }
  0x32   : > { %554 = vmatpush.bf16.msra.mxu0 %v788_v17 }
  0x33   : > { %567 = vmatpush.bf16.msra.mxu1 %v852_v19  ;;  %580 = vmatpush.bf16.msra.mxu2 %v792_v20 }
  0x34   : > { %593 = vmatpush.bf16.msra.mxu3 %v856_v24 }
  0x36   : > { %555 = vmatpush.bf16.msra.mxu0 %v780_v31 }
  0x37   : > { %568 = vmatpush.bf16.msra.mxu1 %v844_v33  ;;  %581 = vmatpush.bf16.msra.mxu2 %v784_v34 }
  0x38   : > { %594 = vmatpush.bf16.msra.mxu3 %v848_v35 }
  0x39   : > { %556 = vmatmul.bf16.vlgmr.msra.gmra.mxu0 %v384_v36 }
  0x3a   : > { %569 = vmatmul.bf16.vlgmr.msra.gmra.mxu1 %v385_v37  ;;  %582 = vmatmul.bf16.vlgmr.msra.gmra.mxu2 %v384_v36 }
  0x3b   : > { %595 = vmatmul.bf16.vlgmr.msra.gmra.mxu3 %v385_v37 }
  0xb6   : > { %v557_v38 = vpop.f32.mrf.mxu0 }
  0xb7   : > { %v570_v40 = vpop.f32.mrf.mxu1 }
  0xb8   : > { %v571_v41 = vadd.f32 %v570_v40, %v557_v38 }
  0xba   : > { %v600_v42 = vadd.f32 %v571_v41, %v346_v39 }
  0xbc   : > { %602 = vst [vmem:[#allocation2] sm:$0xff] %v600_v42 }
  0xbd   : > { %v583_v43 = vpop.f32.mrf.mxu2 }
  0xbe   : > { %v596_v45 = vpop.f32.mrf.mxu3  ;;  %v559_v46 = vpop.f32.mrf.mxu0 }
  0xbf   : > { %v597_v47 = vadd.f32 %v596_v45, %v583_v43  ;;  %v572_v48 = vpop.f32.mrf.mxu1 }
  0xc1   : > { %v601_v49 = vadd.f32 %v597_v47, %v347_v44 }
  0xc2   : > { %607 = sbr.rel (%p905_p7) target bundleno = 212 (0xd4), region = 44 }
  0xc3   : > { %603 = vst [vmem:[#allocation2 + $0x8] sm:$0xff] %v601_v49 }
  0xc5   : > { %v585_v50 = vpop.f32.mrf.mxu2 }
  0xc6   : > { %v598_v51 = vpop.f32.mrf.mxu3 }
  0xc7   : > { %v608_v52 = vld [vmem:[#allocation2] sm:$0xff] }
  0xc8   : > { %v610_v54 = vld [vmem:[%s1137_s2] sm:$0x3] }
  0xc9   : > { %v612_v55 = vperm.slane %v610_v54, 0  ;;  %v613_v56 = vperm.slane %v610_v54, 1  ;;  %v618_v57 = vld [vmem:[%s1138_s3] sm:$0xff] }
  0xca   : > { %v609_v53 = vld [vmem:[#allocation2 + $0x8] sm:$0xff]  ;;  %v619_v58 = vunpack.c.l.bf16 %v618_v57  ;;  %v620_v59 = vunpack.c.h.bf16 %v618_v57 }
  0xcb   : > { %v616_v60 = vadd.f32 %v612_v55, %v608_v52  ;;  %v617_v61 = vadd.f32 %v613_v56, %v609_v53 }
  0xcd   : > { %v621_v62 = vadd.f32 %v619_v58, %v616_v60  ;;  %v622_v63 = vadd.f32 %v620_v59, %v617_v61 }
  0xcf   : > { %v623_v0 = vmax.f32 %v621_v62, 0.0  ;;  %v624_v1 = vmax.f32 %v622_v63, 0.0 }
  0xd1   : > { %v625_v2 = vpack.c.bf16 %v624_v1, %v623_v0 }
  0xd3   : > { %626 = vst [vmem:[%s1139_s4] sm:$0xff] %v625_v2 }
  0xd4 PF: > { %s14_s17 = sadd.s32 1, %s990_s17   ;;  %s1140_s15 = smov %s986_s16 }
  0xd5   : > { %p11_p8 = scmp.ge.s32.totalorder %s14_s17, 11   ;;  %s1141_s16 = smov %s1143_s18 }
  0xd7   :  { %13 = sbr.rel (!%p11_p8) target bundleno = 2 (0x2), region = 83 }

// kernel: resnet18_forward.35
= control target key start
LH: loop header
LB: loop body
LE: loop exit
PB: predicated region body
PF: predicated region fallthrough
CT: control target
= control target key end

     0   :  { %s373_s1 = inlined_call_operand.vmem [shape: bf16[128,256], index: 1, kind: input, shape index: {}]   ;;  %s374_s0 = inlined_call_operand.vmem [shape: bf16[8,128], index: 0, kind: input, shape index: {}]   ;;  %s375_s2 = inlined_call_operand.vmem [shape: f32[1,256], index: 2, kind: input, shape index: {}]   ;;  %s376_s3 = inlined_call_operand.vmem [shape: bf16[8,256], index: 3, kind: output, shape index: {}]  }
   0x1   :  { %v226_v0 = vld [vmem:[%s373_s1 + $0x70] sm:$0xf]  ;;  %v247_v1 = vld [vmem:[%s373_s1 + $0x74] sm:$0xf0]  ;;  %v246_v2 = vld [vmem:[%s373_s1 + $0x74] sm:$0xf] }
   0x2   :  { %v227_v3 = vor.u32 %v247_v1, %v226_v0  ;;  %v228_v4 = vld [vmem:[%s373_s1 + $0x78] sm:$0xf0]  ;;  %v218_v5 = vld [vmem:[%s373_s1 + $0x60] sm:$0xf]  ;;  %v245_v6 = vld [vmem:[%s373_s1 + $0x64] sm:$0xf0] }
   0x3   :  { %v231_v7 = vor.u32 %v246_v2, %v228_v4  ;;  %v244_v8 = vld [vmem:[%s373_s1 + $0x64] sm:$0xf]  ;;  %v220_v9 = vld [vmem:[%s373_s1 + $0x68] sm:$0xf0]  ;;  %v219_v10 = vor.u32 %v245_v6, %v218_v5  ;;  %v210_v12 = vld [vmem:[%s373_s1 + $0x50] sm:$0xf] }
   0x4   :  { %119 = vmatpush.bf16.msra.mxu0 %v227_v3  ;;  %v223_v11 = vor.u32 %v244_v8, %v220_v9  ;;  %v243_v13 = vld [vmem:[%s373_s1 + $0x54] sm:$0xf0]  ;;  %v242_v14 = vld [vmem:[%s373_s1 + $0x54] sm:$0xf]  ;;  %v212_v15 = vld [vmem:[%s373_s1 + $0x58] sm:$0xf0] }
   0x5   :  { %132 = vmatpush.bf16.msra.mxu1 %v231_v7  ;;  %v211_v16 = vor.u32 %v243_v13, %v210_v12  ;;  %v215_v17 = vor.u32 %v242_v14, %v212_v15  ;;  %v202_v18 = vld [vmem:[%s373_s1 + $0x40] sm:$0xf]  ;;  %v241_v19 = vld [vmem:[%s373_s1 + $0x44] sm:$0xf0]  ;;  %v240_v20 = vld [vmem:[%s373_s1 + $0x44] sm:$0xf] }
   0x6   :  { %v204_v21 = vld [vmem:[%s373_s1 + $0x48] sm:$0xf0]  ;;  %v203_v22 = vor.u32 %v241_v19, %v202_v18  ;;  %v194_v24 = vld [vmem:[%s373_s1 + $0x30] sm:$0xf]  ;;  %v239_v25 = vld [vmem:[%s373_s1 + $0x34] sm:$0xf0] }
   0x7   :  { %v207_v23 = vor.u32 %v240_v20, %v204_v21  ;;  %v238_v26 = vld [vmem:[%s373_s1 + $0x34] sm:$0xf]  ;;  %v196_v27 = vld [vmem:[%s373_s1 + $0x38] sm:$0xf0]  ;;  %v195_v28 = vor.u32 %v239_v25, %v194_v24  ;;  %v186_v30 = vld [vmem:[%s373_s1 + $0x20] sm:$0xf] }
   0x8   :  { %120 = vmatpush.bf16.msra.mxu0 %v219_v10  ;;  %v199_v29 = vor.u32 %v238_v26, %v196_v27  ;;  %v237_v31 = vld [vmem:[%s373_s1 + $0x24] sm:$0xf0]  ;;  %v236_v32 = vld [vmem:[%s373_s1 + $0x24] sm:$0xf]  ;;  %v188_v33 = vld [vmem:[%s373_s1 + $0x28] sm:$0xf0] }
   0x9   :  { %133 = vmatpush.bf16.msra.mxu1 %v223_v11  ;;  %v187_v34 = vor.u32 %v237_v31, %v186_v30  ;;  %v191_v35 = vor.u32 %v236_v32, %v188_v33  ;;  %v178_v36 = vld [vmem:[%s373_s1 + $0x10] sm:$0xf]  ;;  %v235_v37 = vld [vmem:[%s373_s1 + $0x14] sm:$0xf0]  ;;  %v234_v38 = vld [vmem:[%s373_s1 + $0x14] sm:$0xf] }
   0xa   :  { %v180_v39 = vld [vmem:[%s373_s1 + $0x18] sm:$0xf0]  ;;  %v179_v40 = vor.u32 %v235_v37, %v178_v36  ;;  %v170_v42 = vld [vmem:[%s373_s1] sm:$0xf]  ;;  %v233_v43 = vld [vmem:[%s373_s1 + $0x4] sm:$0xf0] }
   0xb   :  { %v183_v41 = vor.u32 %v234_v38, %v180_v39  ;;  %v232_v44 = vld [vmem:[%s373_s1 + $0x4] sm:$0xf]  ;;  %v172_v45 = vld [vmem:[%s373_s1 + $0x8] sm:$0xf0]  ;;  %v171_v46 = vor.u32 %v233_v43, %v170_v42  ;;  %v22_v48 = vld [vmem:[%s374_s0] sm:$0xf] }
   0xc   :  { %121 = vmatpush.bf16.msra.mxu0 %v211_v16  ;;  %v175_v47 = vor.u32 %v232_v44, %v172_v45  ;;  %v154_v49 = vld [vmem:[%s375_s2] sm:$0x3] }
   0xd   :  { %134 = vmatpush.bf16.msra.mxu1 %v215_v17  ;;  %v156_v50 = vperm.slane %v154_v49, 0  ;;  %v157_v51 = vperm.slane %v154_v49, 1 }
  0x10   :  { %122 = vmatpush.bf16.msra.mxu0 %v203_v22 }
  0x11   :  { %135 = vmatpush.bf16.msra.mxu1 %v207_v23 }
  0x14   :  { %123 = vmatpush.bf16.msra.mxu0 %v195_v28 }
  0x15   :  { %136 = vmatpush.bf16.msra.mxu1 %v199_v29 }
  0x18   :  { %124 = vmatpush.bf16.msra.mxu0 %v187_v34 }
  0x19   :  { %137 = vmatpush.bf16.msra.mxu1 %v191_v35 }
  0x1c   :  { %125 = vmatpush.bf16.msra.mxu0 %v179_v40 }
  0x1d   :  { %138 = vmatpush.bf16.msra.mxu1 %v183_v41 }
  0x20   :  { %126 = vmatpush.bf16.msra.mxu0 %v171_v46 }
  0x21   :  { %139 = vmatpush.bf16.msra.mxu1 %v175_v47 }
  0x23   :  { %127 = vmatmul.bf16.vlgmr.msra.gmra.mxu0 %v22_v48 }
  0x24   :  { %140 = vmatmul.bf16.vlgmr.msra.gmra.mxu1 %v22_v48 }
  0xa0   :  { %v128_v52 = vpop.f32.mrf.mxu0 }
  0xa1   :  { %v160_v53 = vadd.f32 %v156_v50, %v128_v52  ;;  %v141_v54 = vpop.f32.mrf.mxu1 }
  0xa2   :  { %v161_v55 = vadd.f32 %v157_v51, %v141_v54 }
  0xa4   :  { %v162_v56 = vpack.c.bf16 %v161_v55, %v160_v53 }
  0xa6   :  { %163 = vst [vmem:[%s376_s3] sm:$0xff] %v162_v56 }
  0xa8   :  { %v130_v57 = vpop.f32.mrf.mxu0 }
  0xa9   :  { %v143_v58 = vpop.f32.mrf.mxu1 }

// kernel: resnet18_forward.37
= control target key start
LH: loop header
LB: loop body
LE: loop exit
PB: predicated region body
PF: predicated region fallthrough
CT: control target
= control target key end

     0   :  { %s923_s12 = smov 0   ;;  %s925_s13 = smov 0   ;;  %s1037_s0 = inlined_call_operand.vmem [shape: bf16[8,2304], index: 0, kind: input, shape index: {}]   ;;  %s1038_s1 = inlined_call_operand.vmem [shape: bf16[2304,256], index: 1, kind: input, shape index: {}]   ;;  %s1039_s2 = inlined_call_operand.vmem [shape: f32[1,256], index: 2, kind: input, shape index: {}]   ;;  %s1040_s3 = inlined_call_operand.vmem [shape: bf16[8,256], index: 3, kind: output, shape index: {}]  }
   0x1   :  { %s927_s14 = smov 0  }
   0x2 LB: > { %s25_s15 = sadd.s32 1, %s896_s13  ;;  %p680_p0 = scmp.ge.s32.totalorder %s900_s14, 1  ;;  %s900_s14 = sphi %s927_s14, %s13_s14   ;;  %s896_s13 = sphi %s925_s13, %s1042_s13   ;;  %s892_s12 = sphi %s923_s12, %s1041_s12  }
   0x3   : > { %p26_p1 = scmp.ge.s32.totalorder %s25_s15, 9  ;;  %p194_p2 = scmp.lt.s32.totalorder %s900_s14, 10 }
   0x5   : > { %s1044_s15 = smov (%p26_p1, %s25_s15), 0  ;;  %p195_p3 = pnand %p680_p0, %p194_p2 }
   0x6   : > { %s681_s16 = sshll.u32 (!%p195_p3), %s892_s12, 1  ;;  %s683_s17 = sshll.u32 (!%p195_p3), %s892_s12, 5 }
   0x7   : > { %198 = sbr.rel (%p195_p3) target bundleno = 210 (0xd2), region = 32  ;;  %p243_p4 = scmp.lt.s32.totalorder (!%p195_p3), %s681_s16, 17 }
   0x8   : > { %p252_p5 = scmp.lt.s32.totalorder (!%p195_p3), %s683_s17, 287  ;;  %p686_p6 = scmp.ne.s32.totalorder (!%p195_p3), %s892_s12, 0 }
   0xc   : > { %s1046_s16 = smov (!%p243_p4, %s681_s16), 17  ;;  %s1048_s17 = smov (!%p252_p5, %s683_s17), 287 }
   0xd   : > { %s682_s18 = sshll.u32 %s1046_s16, 2  ;;  %s820_s22 = sshll.u32 %s1048_s17, 3 }
   0xe   : > { %s948_s21 = scalar_lea.vmem %s1037_s0, %s682_s18  ;;  %s953_s25 = scalar_lea.vmem %s1038_s1, %s820_s22 }
   0xf   : > { %280 = sbr.rel (%p686_p6) target bundleno = 23 (0x17), region = 36 }
  0x14   : > { %v902_v0 = vmov 0.0  }
  0x15   : > { %281 = vst [vmem:[#allocation2] sm:$0xff] %v902_v0 }
  0x16   : > { %282 = vst [vmem:[#allocation2 + $0x8] sm:$0xff] %v902_v0 }
  0x17 PF: > { %v745_v1 = vld [vmem:[%s953_s25 + $0x70] sm:$0xf]  ;;  %v836_v2 = vld [vmem:[%s953_s25 + $0x74] sm:$0xf0]  ;;  %v835_v6 = vld [vmem:[%s953_s25 + $0x74] sm:$0xf] }
  0x18   : > { %v809_v3 = vld [vmem:[%s953_s25 + $0xf0] sm:$0xf]  ;;  %v746_v4 = vor.u32 %v836_v2, %v745_v1  ;;  %v852_v5 = vld [vmem:[%s953_s25 + $0xf4] sm:$0xf0]  ;;  %v747_v7 = vld [vmem:[%s953_s25 + $0x78] sm:$0xf0] }
  0x19   : > { %v810_v8 = vor.u32 %v852_v5, %v809_v3  ;;  %v750_v9 = vor.u32 %v835_v6, %v747_v7  ;;  %v851_v10 = vld [vmem:[%s953_s25 + $0xf4] sm:$0xf]  ;;  %v811_v11 = vld [vmem:[%s953_s25 + $0xf8] sm:$0xf0]  ;;  %v737_v12 = vld [vmem:[%s953_s25 + $0x60] sm:$0xf] }
  0x1a   : > { %485 = vmatpush.bf16.msra.mxu0 %v746_v4  ;;  %v814_v13 = vor.u32 %v851_v10, %v811_v11  ;;  %v834_v14 = vld [vmem:[%s953_s25 + $0x64] sm:$0xf0]  ;;  %v801_v15 = vld [vmem:[%s953_s25 + $0xe0] sm:$0xf]  ;;  %v833_v19 = vld [vmem:[%s953_s25 + $0x64] sm:$0xf] }
  0x1b   : > { %v850_v16 = vld [vmem:[%s953_s25 + $0xe4] sm:$0xf0]  ;;  %498 = vmatpush.bf16.msra.mxu1 %v810_v8  ;;  %511 = vmatpush.bf16.msra.mxu2 %v750_v9  ;;  %v738_v17 = vor.u32 %v834_v14, %v737_v12  ;;  %v739_v20 = vld [vmem:[%s953_s25 + $0x68] sm:$0xf0]  ;;  %v849_v21 = vld [vmem:[%s953_s25 + $0xe4] sm:$0xf] }
  0x1c   : > { %v802_v18 = vor.u32 %v850_v16, %v801_v15  ;;  %524 = vmatpush.bf16.msra.mxu3 %v814_v13  ;;  %v742_v22 = vor.u32 %v833_v19, %v739_v20  ;;  %v803_v23 = vld [vmem:[%s953_s25 + $0xe8] sm:$0xf0]  ;;  %v729_v24 = vld [vmem:[%s953_s25 + $0x50] sm:$0xf]  ;;  %v832_v25 = vld [vmem:[%s953_s25 + $0x54] sm:$0xf0] }
  0x1d   : > { %v806_v26 = vor.u32 %v849_v21, %v803_v23  ;;  %v793_v27 = vld [vmem:[%s953_s25 + $0xd0] sm:$0xf]  ;;  %v848_v28 = vld [vmem:[%s953_s25 + $0xd4] sm:$0xf0]  ;;  %v831_v29 = vld [vmem:[%s953_s25 + $0x54] sm:$0xf]  ;;  %v730_v30 = vor.u32 %v832_v25, %v729_v24 }
  0x1e   : > { %486 = vmatpush.bf16.msra.mxu0 %v738_v17  ;;  %v731_v31 = vld [vmem:[%s953_s25 + $0x58] sm:$0xf0]  ;;  %v847_v32 = vld [vmem:[%s953_s25 + $0xd4] sm:$0xf]  ;;  %v794_v34 = vor.u32 %v848_v28, %v793_v27  ;;  %v721_v36 = vld [vmem:[%s953_s25 + $0x40] sm:$0xf] }
  0x1f   : > { %v795_v33 = vld [vmem:[%s953_s25 + $0xd8] sm:$0xf0]  ;;  %499 = vmatpush.bf16.msra.mxu1 %v802_v18  ;;  %512 = vmatpush.bf16.msra.mxu2 %v742_v22  ;;  %v734_v35 = vor.u32 %v831_v29, %v731_v31  ;;  %v830_v37 = vld [vmem:[%s953_s25 + $0x44] sm:$0xf0]  ;;  %v785_v38 = vld [vmem:[%s953_s25 + $0xc0] sm:$0xf] }
  0x20   : > { %525 = vmatpush.bf16.msra.mxu3 %v806_v26  ;;  %v798_v39 = vor.u32 %v847_v32, %v795_v33  ;;  %v846_v40 = vld [vmem:[%s953_s25 + $0xc4] sm:$0xf0]  ;;  %v829_v41 = vld [vmem:[%s953_s25 + $0x44] sm:$0xf]  ;;  %v723_v42 = vld [vmem:[%s953_s25 + $0x48] sm:$0xf0]  ;;  %v722_v45 = vor.u32 %v830_v37, %v721_v36 }
  0x21   : > { %v845_v43 = vld [vmem:[%s953_s25 + $0xc4] sm:$0xf]  ;;  %v787_v44 = vld [vmem:[%s953_s25 + $0xc8] sm:$0xf0]  ;;  %v786_v46 = vor.u32 %v846_v40, %v785_v38  ;;  %v726_v47 = vor.u32 %v829_v41, %v723_v42  ;;  %v713_v48 = vld [vmem:[%s953_s25 + $0x30] sm:$0xf] }
  0x22   : > { %487 = vmatpush.bf16.msra.mxu0 %v730_v30  ;;  %v828_v49 = vld [vmem:[%s953_s25 + $0x34] sm:$0xf0]  ;;  %v777_v50 = vld [vmem:[%s953_s25 + $0xb0] sm:$0xf]  ;;  %v790_v51 = vor.u32 %v845_v43, %v787_v44  ;;  %v827_v53 = vld [vmem:[%s953_s25 + $0x34] sm:$0xf] }
  0x23   : > { %500 = vmatpush.bf16.msra.mxu1 %v794_v34  ;;  %513 = vmatpush.bf16.msra.mxu2 %v734_v35  ;;  %v844_v52 = vld [vmem:[%s953_s25 + $0xb4] sm:$0xf0]  ;;  %v715_v54 = vld [vmem:[%s953_s25 + $0x38] sm:$0xf0]  ;;  %v843_v55 = vld [vmem:[%s953_s25 + $0xb4] sm:$0xf]  ;;  %v714_v57 = vor.u32 %v828_v49, %v713_v48 }
  0x24   : > { %526 = vmatpush.bf16.msra.mxu3 %v798_v39  ;;  %v779_v56 = vld [vmem:[%s953_s25 + $0xb8] sm:$0xf0]  ;;  %v778_v58 = vor.u32 %v844_v52, %v777_v50  ;;  %v718_v59 = vor.u32 %v827_v53, %v715_v54  ;;  %v705_v60 = vld [vmem:[%s953_s25 + $0x20] sm:$0xf]  ;;  %v826_v61 = vld [vmem:[%s953_s25 + $0x24] sm:$0xf0] }
  0x25   : > { %v769_v62 = vld [vmem:[%s953_s25 + $0xa0] sm:$0xf]  ;;  %v782_v63 = vor.u32 %v843_v55, %v779_v56  ;;  %v842_v0 = vld [vmem:[%s953_s25 + $0xa4] sm:$0xf0]  ;;  %v825_v1 = vld [vmem:[%s953_s25 + $0x24] sm:$0xf]  ;;  %v706_v5 = vor.u32 %v826_v61, %v705_v60 }
  0x26   : > { %488 = vmatpush.bf16.msra.mxu0 %v722_v45  ;;  %v707_v2 = vld [vmem:[%s953_s25 + $0x28] sm:$0xf0]  ;;  %v841_v3 = vld [vmem:[%s953_s25 + $0xa4] sm:$0xf]  ;;  %v770_v6 = vor.u32 %v842_v0, %v769_v62  ;;  %v697_v8 = vld [vmem:[%s953_s25 + $0x10] sm:$0xf] }
  0x27   : > { %501 = vmatpush.bf16.msra.mxu1 %v786_v46  ;;  %514 = vmatpush.bf16.msra.mxu2 %v726_v47  ;;  %v771_v4 = vld [vmem:[%s953_s25 + $0xa8] sm:$0xf0]  ;;  %v710_v7 = vor.u32 %v825_v1, %v707_v2  ;;  %v824_v9 = vld [vmem:[%s953_s25 + $0x14] sm:$0xf0]  ;;  %v761_v10 = vld [vmem:[%s953_s25 + $0x90] sm:$0xf] }
  0x28   : > { %527 = vmatpush.bf16.msra.mxu3 %v790_v51  ;;  %v774_v11 = vor.u32 %v841_v3, %v771_v4  ;;  %v840_v12 = vld [vmem:[%s953_s25 + $0x94] sm:$0xf0]  ;;  %v823_v13 = vld [vmem:[%s953_s25 + $0x14] sm:$0xf]  ;;  %v699_v14 = vld [vmem:[%s953_s25 + $0x18] sm:$0xf0]  ;;  %v698_v17 = vor.u32 %v824_v9, %v697_v8 }
  0x29   : > { %v839_v15 = vld [vmem:[%s953_s25 + $0x94] sm:$0xf]  ;;  %v763_v16 = vld [vmem:[%s953_s25 + $0x98] sm:$0xf0]  ;;  %v285_v18 = vld [vmem:[%s948_s21] sm:$0xff]  ;;  %v762_v19 = vor.u32 %v840_v12, %v761_v10  ;;  %v702_v20 = vor.u32 %v823_v13, %v699_v14  ;;  %p815_p7 = scmp.ne.s32.totalorder %s892_s12, 8 }
  0x2a   : > { %489 = vmatpush.bf16.msra.mxu0 %v714_v57  ;;  %v689_v21 = vld [vmem:[%s953_s25] sm:$0xf]  ;;  %v822_v22 = vld [vmem:[%s953_s25 + $0x4] sm:$0xf0]  ;;  %v766_v24 = vor.u32 %v839_v15, %v763_v16  ;;  %v821_v26 = vld [vmem:[%s953_s25 + $0x4] sm:$0xf]  ;;  %v319_v30 = vunpack.c.l.b16 %v285_v18  ;;  %v320_v32 = vunpack.c.h.b16 %v285_v18 }
  0x2b   : > { %502 = vmatpush.bf16.msra.mxu1 %v778_v58  ;;  %515 = vmatpush.bf16.msra.mxu2 %v718_v59  ;;  %v753_v23 = vld [vmem:[%s953_s25 + $0x80] sm:$0xf]  ;;  %v838_v25 = vld [vmem:[%s953_s25 + $0x84] sm:$0xf0]  ;;  %v691_v27 = vld [vmem:[%s953_s25 + $0x8] sm:$0xf0]  ;;  %v690_v31 = vor.u32 %v822_v22, %v689_v21 }
  0x2c   : > { %528 = vmatpush.bf16.msra.mxu3 %v782_v63  ;;  %v837_v28 = vld [vmem:[%s953_s25 + $0x84] sm:$0xf]  ;;  %v755_v29 = vld [vmem:[%s953_s25 + $0x88] sm:$0xf0]  ;;  %v754_v33 = vor.u32 %v838_v25, %v753_v23  ;;  %v694_v34 = vor.u32 %v821_v26, %v691_v27  ;;  %v321_v36 = vpack.c.b16 %v319_v30, %v319_v30  ;;  %v322_v37 = vpack.c.b16 %v320_v32, %v320_v32 }
  0x2d   : > { %v758_v35 = vor.u32 %v837_v28, %v755_v29  ;;  %v283_v39 = vld [vmem:[#allocation2] sm:$0xff]  ;;  %v284_v44 = vld [vmem:[#allocation2 + $0x8] sm:$0xff] }
  0x2e   : > { %490 = vmatpush.bf16.msra.mxu0 %v706_v5 }
  0x2f   : > { %503 = vmatpush.bf16.msra.mxu1 %v770_v6  ;;  %516 = vmatpush.bf16.msra.mxu2 %v710_v7 }
  0x30   : > { %529 = vmatpush.bf16.msra.mxu3 %v774_v11 }
  0x32   : > { %491 = vmatpush.bf16.msra.mxu0 %v698_v17 }
  0x33   : > { %504 = vmatpush.bf16.msra.mxu1 %v762_v19  ;;  %517 = vmatpush.bf16.msra.mxu2 %v702_v20 }
  0x34   : > { %530 = vmatpush.bf16.msra.mxu3 %v766_v24 }
  0x36   : > { %492 = vmatpush.bf16.msra.mxu0 %v690_v31 }
  0x37   : > { %505 = vmatpush.bf16.msra.mxu1 %v754_v33  ;;  %518 = vmatpush.bf16.msra.mxu2 %v694_v34 }
  0x38   : > { %531 = vmatpush.bf16.msra.mxu3 %v758_v35 }
  0x39   : > { %493 = vmatmul.bf16.vlgmr.msra.gmra.mxu0 %v321_v36 }
  0x3a   : > { %506 = vmatmul.bf16.vlgmr.msra.gmra.mxu1 %v322_v37  ;;  %519 = vmatmul.bf16.vlgmr.msra.gmra.mxu2 %v321_v36 }
  0x3b   : > { %532 = vmatmul.bf16.vlgmr.msra.gmra.mxu3 %v322_v37 }
  0xb6   : > { %v494_v38 = vpop.f32.mrf.mxu0 }
  0xb7   : > { %v507_v40 = vpop.f32.mrf.mxu1 }
  0xb8   : > { %v508_v41 = vadd.f32 %v507_v40, %v494_v38 }
  0xba   : > { %v537_v42 = vadd.f32 %v508_v41, %v283_v39 }
  0xbc   : > { %539 = vst [vmem:[#allocation2] sm:$0xff] %v537_v42 }
  0xbd   : > { %v520_v43 = vpop.f32.mrf.mxu2 }
  0xbe   : > { %v533_v45 = vpop.f32.mrf.mxu3  ;;  %v496_v46 = vpop.f32.mrf.mxu0 }
  0xbf   : > { %v534_v47 = vadd.f32 %v533_v45, %v520_v43  ;;  %v509_v48 = vpop.f32.mrf.mxu1 }
  0xc1   : > { %v538_v49 = vadd.f32 %v534_v47, %v284_v44 }
  0xc2   : > { %544 = sbr.rel (%p815_p7) target bundleno = 210 (0xd2), region = 40 }
  0xc3   : > { %540 = vst [vmem:[#allocation2 + $0x8] sm:$0xff] %v538_v49 }
  0xc5   : > { %v522_v50 = vpop.f32.mrf.mxu2 }
  0xc6   : > { %v535_v51 = vpop.f32.mrf.mxu3 }
  0xc7   : > { %v545_v52 = vld [vmem:[#allocation2] sm:$0xff] }
  0xc8   : > { %v547_v54 = vld [vmem:[%s1039_s2] sm:$0x3] }
  0xc9   : > { %v549_v55 = vperm.slane %v547_v54, 0  ;;  %v550_v56 = vperm.slane %v547_v54, 1 }
  0xca   : > { %v546_v53 = vld [vmem:[#allocation2 + $0x8] sm:$0xff] }
  0xcb   : > { %v553_v57 = vadd.f32 %v549_v55, %v545_v52  ;;  %v554_v58 = vadd.f32 %v550_v56, %v546_v53 }
  0xcd   : > { %v555_v59 = vmax.f32 %v553_v57, 0.0  ;;  %v556_v60 = vmax.f32 %v554_v58, 0.0 }
  0xcf   : > { %v557_v61 = vpack.c.bf16 %v556_v60, %v555_v59 }
  0xd1   : > { %558 = vst [vmem:[%s1040_s3] sm:$0xff] %v557_v61 }
  0xd2 PF: > { %s13_s14 = sadd.s32 1, %s900_s14   ;;  %s1041_s12 = smov %s896_s13 }
  0xd3   : > { %p10_p8 = scmp.ge.s32.totalorder %s13_s14, 11   ;;  %s1042_s13 = smov %s1044_s15 }
  0xd5   :  { %12 = sbr.rel (!%p10_p8) target bundleno = 2 (0x2), region = 76 }

// kernel: resnet18_forward.39
= control target key start
LH: loop header
LB: loop body
LE: loop exit
PB: predicated region body
PF: predicated region fallthrough
CT: control target
= control target key end

     0   :  { %s1143_s12 = smov 0   ;;  %s1145_s13 = smov 0   ;;  %s1389_s0 = inlined_call_operand.vmem [shape: bf16[8,2304], index: 0, kind: input, shape index: {}]   ;;  %s1390_s1 = inlined_call_operand.vmem [shape: bf16[2304,512], index: 1, kind: input, shape index: {}]   ;;  %s1391_s2 = inlined_call_operand.vmem [shape: f32[1,512], index: 2, kind: input, shape index: {}]   ;;  %s1392_s3 = inlined_call_operand.vmem [shape: bf16[8,512], index: 3, kind: output, shape index: {}]  }
   0x1   :  { %s1147_s14 = smov 0   ;;  %s1149_s15 = smov 0  }
   0x2   :  { %s1151_s16 = smov 0   ;;  %s1153_s17 = smov 0  }
   0x3   :  { %s1155_s18 = smov 0  }
   0x4 LB: > { %s25_s19 = sadd.s32 1, %s1112_s16  ;;  %s28_s20 = sadd.s32 1, %s1116_s17  ;;  %s1120_s18 = sphi %s1155_s18, %s13_s18   ;;  %s1116_s17 = sphi %s1153_s17, %s1398_s17   ;;  %s1112_s16 = sphi %s1151_s16, %s1397_s16   ;;  %s1108_s15 = sphi %s1149_s15, %s1396_s15   ;;  %s1104_s14 = sphi %s1147_s14, %s1395_s14   ;;  %s1100_s13 = sphi %s1145_s13, %s1394_s13   ;;  %s1096_s12 = sphi %s1143_s12, %s1393_s12  }
   0x5   : > { %p26_p0 = scmp.ge.s32.totalorder %s25_s19, 9  ;;  %p76_p1 = scmp.ne.s32.totalorder %s1100_s13, %s1096_s12 }
   0x6   : > { %p77_p2 = scmp.eq.s32.totalorder %s1120_s18, 0  ;;  %s69_s24 = sadd.s32 1, %s1100_s13 }
   0x7   : > { %s1400_s19 = smov (%p26_p0, %s25_s19), 0  ;;  %s1402_s20 = smov (!%p26_p0, %s28_s20), %s1116_s17 }
   0x8   : > { %p78_p3 = por %p77_p2, %p76_p1  ;;  %p30_p4 = scmp.ge.s32.totalorder %s1402_s20, 2 }
   0x9   : > { %s64_s21 = ssub.s32 %s1112_s16, %s1400_s19  ;;  %p831_p6 = scmp.ge.s32.totalorder %s1120_s18, 18 }
   0xa   : > { %s1404_s20 = smov (%p30_p4, %s1402_s20), 0 }
   0xb   : > { %s65_s22 = ssub.s32 %s1116_s17, %s1404_s20  ;;  %156 = sbr.rel (%p831_p6) target bundleno = 55 (0x37), region = 16 }
   0xc   : > { %s66_s23 = sor.u32 %s65_s22, %s64_s21 }
   0xd   : > { %p67_p5 = scmp.eq.s32.totalorder %s66_s23, 0 }
   0xf   : > { %s1194_s25 = scalar_select %p67_p5, %s1100_s13, %s69_s24  }
  0x10   : > { %172 = sbr.rel (!%p78_p3) target bundleno = 55 (0x37), region = 24  ;;  %s174_s26 = sand.u32 (%p78_p3), 1, %s1100_s13  }
  0x11   : > { %s834_s27 = sshll.u32 (%p78_p3), %s1116_s17, 1  ;;  %s832_s28 = sshll.u32 (%p78_p3), %s174_s26, 8 }
  0x12   : > { %s976_s29 = sshll.u32 (%p78_p3), %s1112_s16, 7  ;;  %s1208_s8 = scalar_lea.vmem (%p78_p3), [#allocation3], %s832_s28 }
  0x13   : > { %s180_s30 = sadd.s32 (%p78_p3), %s976_s29, %s834_s27 }
  0x14   : > { %s836_s4 = sshll.u32 (%p78_p3), %s180_s30, 2 }
  0x15   : > { %s1203_s7 = scalar_lea.vmem %s1390_s1, %s836_s4 }
  0x16   : > { %v273_v0 = vld [vmem:[%s1203_s7] sm:$0xff]  ;;  %v275_v1 = vld [vmem:[%s1203_s7 + $0x10] sm:$0xff] }
  0x17   : > { %v277_v2 = vld [vmem:[%s1203_s7 + $0x20] sm:$0xff]  ;;  %274 = vst [vmem:[%s1208_s8] sm:$0xff] %v273_v0  ;;  %v279_v3 = vld [vmem:[%s1203_s7 + $0x30] sm:$0xff] }
  0x18   : > { %276 = vst [vmem:[%s1208_s8 + $0x8] sm:$0xff] %v275_v1  ;;  %v281_v4 = vld [vmem:[%s1203_s7 + $0x40] sm:$0xff]  ;;  %v283_v5 = vld [vmem:[%s1203_s7 + $0x50] sm:$0xff] }
  0x19   : > { %278 = vst [vmem:[%s1208_s8 + $0x10] sm:$0xff] %v277_v2  ;;  %v285_v6 = vld [vmem:[%s1203_s7 + $0x60] sm:$0xff]  ;;  %v287_v7 = vld [vmem:[%s1203_s7 + $0x70] sm:$0xff] }
  0x1a   : > { %280 = vst [vmem:[%s1208_s8 + $0x18] sm:$0xff] %v279_v3  ;;  %v289_v8 = vld [vmem:[%s1203_s7 + $0x80] sm:$0xff]  ;;  %v291_v9 = vld [vmem:[%s1203_s7 + $0x90] sm:$0xff] }
  0x1b   : > { %282 = vst [vmem:[%s1208_s8 + $0x20] sm:$0xff] %v281_v4  ;;  %v293_v10 = vld [vmem:[%s1203_s7 + $0xa0] sm:$0xff]  ;;  %v295_v11 = vld [vmem:[%s1203_s7 + $0xb0] sm:$0xff] }
  0x1c   : > { %284 = vst [vmem:[%s1208_s8 + $0x28] sm:$0xff] %v283_v5  ;;  %v297_v12 = vld [vmem:[%s1203_s7 + $0xc0] sm:$0xff]  ;;  %v299_v13 = vld [vmem:[%s1203_s7 + $0xd0] sm:$0xff] }
  0x1d   : > { %286 = vst [vmem:[%s1208_s8 + $0x30] sm:$0xff] %v285_v6  ;;  %v301_v14 = vld [vmem:[%s1203_s7 + $0xe0] sm:$0xff]  ;;  %v303_v15 = vld [vmem:[%s1203_s7 + $0xf0] sm:$0xff] }
  0x1e   : > { %288 = vst [vmem:[%s1208_s8 + $0x38] sm:$0xff] %v287_v7  ;;  %v305_v16 = vld [vmem:[%s1203_s7 + $0x100] sm:$0xff]  ;;  %v307_v17 = vld [vmem:[%s1203_s7 + $0x110] sm:$0xff] }
  0x1f   : > { %290 = vst [vmem:[%s1208_s8 + $0x40] sm:$0xff] %v289_v8  ;;  %v309_v18 = vld [vmem:[%s1203_s7 + $0x120] sm:$0xff]  ;;  %v311_v19 = vld [vmem:[%s1203_s7 + $0x130] sm:$0xff] }
  0x20   : > { %292 = vst [vmem:[%s1208_s8 + $0x48] sm:$0xff] %v291_v9  ;;  %v313_v20 = vld [vmem:[%s1203_s7 + $0x140] sm:$0xff]  ;;  %v315_v21 = vld [vmem:[%s1203_s7 + $0x150] sm:$0xff] }
  0x21   : > { %294 = vst [vmem:[%s1208_s8 + $0x50] sm:$0xff] %v293_v10  ;;  %v317_v22 = vld [vmem:[%s1203_s7 + $0x160] sm:$0xff]  ;;  %v319_v23 = vld [vmem:[%s1203_s7 + $0x170] sm:$0xff] }
  0x22   : > { %296 = vst [vmem:[%s1208_s8 + $0x58] sm:$0xff] %v295_v11  ;;  %v321_v24 = vld [vmem:[%s1203_s7 + $0x180] sm:$0xff]  ;;  %v323_v25 = vld [vmem:[%s1203_s7 + $0x190] sm:$0xff] }
  0x23   : > { %298 = vst [vmem:[%s1208_s8 + $0x60] sm:$0xff] %v297_v12  ;;  %v325_v26 = vld [vmem:[%s1203_s7 + $0x1a0] sm:$0xff]  ;;  %v327_v27 = vld [vmem:[%s1203_s7 + $0x1b0] sm:$0xff] }
  0x24   : > { %300 = vst [vmem:[%s1208_s8 + $0x68] sm:$0xff] %v299_v13  ;;  %v329_v28 = vld [vmem:[%s1203_s7 + $0x1c0] sm:$0xff]  ;;  %v331_v29 = vld [vmem:[%s1203_s7 + $0x1d0] sm:$0xff] }
  0x25   : > { %302 = vst [vmem:[%s1208_s8 + $0x70] sm:$0xff] %v301_v14  ;;  %v333_v30 = vld [vmem:[%s1203_s7 + $0x1e0] sm:$0xff]  ;;  %v335_v31 = vld [vmem:[%s1203_s7 + $0x1f0] sm:$0xff] }
  0x26   : > { %304 = vst [vmem:[%s1208_s8 + $0x78] sm:$0xff] %v303_v15 }
  0x27   : > { %306 = vst [vmem:[%s1208_s8 + $0x80] sm:$0xff] %v305_v16 }
  0x28   : > { %308 = vst [vmem:[%s1208_s8 + $0x88] sm:$0xff] %v307_v17 }
  0x29   : > { %310 = vst [vmem:[%s1208_s8 + $0x90] sm:$0xff] %v309_v18 }
  0x2a   : > { %312 = vst [vmem:[%s1208_s8 + $0x98] sm:$0xff] %v311_v19 }
  0x2b   : > { %314 = vst [vmem:[%s1208_s8 + $0xa0] sm:$0xff] %v313_v20 }
  0x2c   : > { %316 = vst [vmem:[%s1208_s8 + $0xa8] sm:$0xff] %v315_v21 }
  0x2d   : > { %318 = vst [vmem:[%s1208_s8 + $0xb0] sm:$0xff] %v317_v22 }
  0x2e   : > { %320 = vst [vmem:[%s1208_s8 + $0xb8] sm:$0xff] %v319_v23 }
  0x2f   : > { %322 = vst [vmem:[%s1208_s8 + $0xc0] sm:$0xff] %v321_v24 }
  0x30   : > { %324 = vst [vmem:[%s1208_s8 + $0xc8] sm:$0xff] %v323_v25 }
  0x31   : > { %326 = vst [vmem:[%s1208_s8 + $0xd0] sm:$0xff] %v325_v26 }
  0x32   : > { %328 = vst [vmem:[%s1208_s8 + $0xd8] sm:$0xff] %v327_v27 }
  0x33   : > { %330 = vst [vmem:[%s1208_s8 + $0xe0] sm:$0xff] %v329_v28 }
  0x34   : > { %332 = vst [vmem:[%s1208_s8 + $0xe8] sm:$0xff] %v331_v29 }
  0x35   : > { %334 = vst [vmem:[%s1208_s8 + $0xf0] sm:$0xff] %v333_v30 }
  0x36   : > { %336 = vst [vmem:[%s1208_s8 + $0xf8] sm:$0xff] %v335_v31 }
  0x37 PF: > { %p837_p7 = scmp.ge.s32.totalorder %s1120_s18, 1  ;;  %p349_p8 = scmp.lt.s32.totalorder %s1120_s18, 19 }
  0x39   : > { %p350_p9 = pnand %p837_p7, %p349_p8 }
  0x3a   : > { %s356_s9 = sand.u32 (!%p350_p9), 1, %s1096_s12   ;;  %s839_s10 = sshll.u32 (!%p350_p9), %s1104_s14, 1 }
  0x3b   : > { %353 = sbr.rel (%p350_p9) target bundleno = 262 (0x106), region = 66  ;;  %s838_s11 = sshll.u32 (!%p350_p9), %s356_s9, 8 }
  0x3c   : > { %p399_p10 = scmp.lt.s32.totalorder (!%p350_p9), %s839_s10, 17  ;;  %s841_s21 = sshll.u32 (!%p350_p9), %s1108_s15, 1 }
  0x3d   : > { %p409_p11 = scmp.lt.s32.totalorder (!%p350_p9), %s841_s21, 3  ;;  %s1293_s5 = scalar_lea.vmem (!%p350_p9), [#allocation3], %s838_s11 }
  0x3e   : > { %p844_p12 = scmp.ne.s32.totalorder (!%p350_p9), %s1104_s14, 0 }
  0x40   : > { %s1406_s10 = smov (!%p399_p10, %s839_s10), 17  ;;  %s1408_s21 = smov (!%p409_p11, %s841_s21), 3 }
  0x41   : > { %s840_s22 = sshll.u32 %s1406_s10, 2  ;;  %s411_s12 = scalar_lea.vmem %s1391_s2, %s1408_s21 }
  0x42   : > { %s1279_s26 = scalar_lea.vmem %s1389_s0, %s840_s22  ;;  %s843_s29 = sshll.u32 %s1408_s21, 2 }
  0x43   : > { %s1291_s15 = scalar_lea.vmem %s1392_s3, %s843_s29  ;;  %426 = sbr.rel (%p844_p12) target bundleno = 75 (0x4b), region = 74 }
  0x48   : > { %v1122_v32 = vmov 0.0  }
  0x49   : > { %427 = vst [vmem:[#allocation2] sm:$0xff] %v1122_v32 }
  0x4a   : > { %428 = vst [vmem:[#allocation2 + $0x8] sm:$0xff] %v1122_v32 }
  0x4b PF: > { %v903_v33 = vld [vmem:[%s1293_s5 + $0x70] sm:$0xf]  ;;  %v992_v34 = vld [vmem:[%s1293_s5 + $0x74] sm:$0xf0]  ;;  %v991_v38 = vld [vmem:[%s1293_s5 + $0x74] sm:$0xf] }
  0x4c   : > { %v967_v35 = vld [vmem:[%s1293_s5 + $0xf0] sm:$0xf]  ;;  %v904_v36 = vor.u32 %v992_v34, %v903_v33  ;;  %v1008_v37 = vld [vmem:[%s1293_s5 + $0xf4] sm:$0xf0]  ;;  %v905_v39 = vld [vmem:[%s1293_s5 + $0x78] sm:$0xf0] }
  0x4d   : > { %v968_v40 = vor.u32 %v1008_v37, %v967_v35  ;;  %v908_v41 = vor.u32 %v991_v38, %v905_v39  ;;  %v1007_v42 = vld [vmem:[%s1293_s5 + $0xf4] sm:$0xf]  ;;  %v969_v43 = vld [vmem:[%s1293_s5 + $0xf8] sm:$0xf0]  ;;  %v895_v44 = vld [vmem:[%s1293_s5 + $0x60] sm:$0xf] }
  0x4e   : > { %631 = vmatpush.bf16.msra.mxu0 %v904_v36  ;;  %v972_v45 = vor.u32 %v1007_v42, %v969_v43  ;;  %v990_v46 = vld [vmem:[%s1293_s5 + $0x64] sm:$0xf0]  ;;  %v959_v47 = vld [vmem:[%s1293_s5 + $0xe0] sm:$0xf]  ;;  %v989_v51 = vld [vmem:[%s1293_s5 + $0x64] sm:$0xf] }
  0x4f   : > { %v1006_v48 = vld [vmem:[%s1293_s5 + $0xe4] sm:$0xf0]  ;;  %644 = vmatpush.bf16.msra.mxu1 %v968_v40  ;;  %657 = vmatpush.bf16.msra.mxu2 %v908_v41  ;;  %v896_v49 = vor.u32 %v990_v46, %v895_v44  ;;  %v897_v52 = vld [vmem:[%s1293_s5 + $0x68] sm:$0xf0]  ;;  %v1005_v53 = vld [vmem:[%s1293_s5 + $0xe4] sm:$0xf] }
  0x50   : > { %v960_v50 = vor.u32 %v1006_v48, %v959_v47  ;;  %670 = vmatpush.bf16.msra.mxu3 %v972_v45  ;;  %v900_v54 = vor.u32 %v989_v51, %v897_v52  ;;  %v961_v55 = vld [vmem:[%s1293_s5 + $0xe8] sm:$0xf0]  ;;  %v887_v56 = vld [vmem:[%s1293_s5 + $0x50] sm:$0xf]  ;;  %v988_v57 = vld [vmem:[%s1293_s5 + $0x54] sm:$0xf0] }
  0x51   : > { %v964_v58 = vor.u32 %v1005_v53, %v961_v55  ;;  %v951_v59 = vld [vmem:[%s1293_s5 + $0xd0] sm:$0xf]  ;;  %v1004_v60 = vld [vmem:[%s1293_s5 + $0xd4] sm:$0xf0]  ;;  %v987_v61 = vld [vmem:[%s1293_s5 + $0x54] sm:$0xf]  ;;  %v888_v62 = vor.u32 %v988_v57, %v887_v56 }
  0x52   : > { %632 = vmatpush.bf16.msra.mxu0 %v896_v49  ;;  %v889_v63 = vld [vmem:[%s1293_s5 + $0x58] sm:$0xf0]  ;;  %v1003_v0 = vld [vmem:[%s1293_s5 + $0xd4] sm:$0xf]  ;;  %v952_v2 = vor.u32 %v1004_v60, %v951_v59  ;;  %v879_v4 = vld [vmem:[%s1293_s5 + $0x40] sm:$0xf] }
  0x53   : > { %v953_v1 = vld [vmem:[%s1293_s5 + $0xd8] sm:$0xf0]  ;;  %645 = vmatpush.bf16.msra.mxu1 %v960_v50  ;;  %658 = vmatpush.bf16.msra.mxu2 %v900_v54  ;;  %v892_v3 = vor.u32 %v987_v61, %v889_v63  ;;  %v986_v5 = vld [vmem:[%s1293_s5 + $0x44] sm:$0xf0]  ;;  %v943_v6 = vld [vmem:[%s1293_s5 + $0xc0] sm:$0xf] }
  0x54   : > { %671 = vmatpush.bf16.msra.mxu3 %v964_v58  ;;  %v956_v7 = vor.u32 %v1003_v0, %v953_v1  ;;  %v1002_v8 = vld [vmem:[%s1293_s5 + $0xc4] sm:$0xf0]  ;;  %v985_v9 = vld [vmem:[%s1293_s5 + $0x44] sm:$0xf]  ;;  %v881_v10 = vld [vmem:[%s1293_s5 + $0x48] sm:$0xf0]  ;;  %v880_v13 = vor.u32 %v986_v5, %v879_v4 }
  0x55   : > { %v1001_v11 = vld [vmem:[%s1293_s5 + $0xc4] sm:$0xf]  ;;  %v945_v12 = vld [vmem:[%s1293_s5 + $0xc8] sm:$0xf0]  ;;  %v944_v14 = vor.u32 %v1002_v8, %v943_v6  ;;  %v884_v15 = vor.u32 %v985_v9, %v881_v10  ;;  %v871_v16 = vld [vmem:[%s1293_s5 + $0x30] sm:$0xf] }
  0x56   : > { %633 = vmatpush.bf16.msra.mxu0 %v888_v62  ;;  %v984_v17 = vld [vmem:[%s1293_s5 + $0x34] sm:$0xf0]  ;;  %v935_v18 = vld [vmem:[%s1293_s5 + $0xb0] sm:$0xf]  ;;  %v948_v19 = vor.u32 %v1001_v11, %v945_v12  ;;  %v983_v21 = vld [vmem:[%s1293_s5 + $0x34] sm:$0xf] }
  0x57   : > { %646 = vmatpush.bf16.msra.mxu1 %v952_v2  ;;  %659 = vmatpush.bf16.msra.mxu2 %v892_v3  ;;  %v1000_v20 = vld [vmem:[%s1293_s5 + $0xb4] sm:$0xf0]  ;;  %v873_v22 = vld [vmem:[%s1293_s5 + $0x38] sm:$0xf0]  ;;  %v999_v23 = vld [vmem:[%s1293_s5 + $0xb4] sm:$0xf]  ;;  %v872_v25 = vor.u32 %v984_v17, %v871_v16 }
  0x58   : > { %672 = vmatpush.bf16.msra.mxu3 %v956_v7  ;;  %v937_v24 = vld [vmem:[%s1293_s5 + $0xb8] sm:$0xf0]  ;;  %v936_v26 = vor.u32 %v1000_v20, %v935_v18  ;;  %v876_v27 = vor.u32 %v983_v21, %v873_v22  ;;  %v863_v28 = vld [vmem:[%s1293_s5 + $0x20] sm:$0xf]  ;;  %v982_v29 = vld [vmem:[%s1293_s5 + $0x24] sm:$0xf0] }
  0x59   : > { %v927_v30 = vld [vmem:[%s1293_s5 + $0xa0] sm:$0xf]  ;;  %v940_v31 = vor.u32 %v999_v23, %v937_v24  ;;  %v998_v32 = vld [vmem:[%s1293_s5 + $0xa4] sm:$0xf0]  ;;  %v981_v33 = vld [vmem:[%s1293_s5 + $0x24] sm:$0xf]  ;;  %v864_v37 = vor.u32 %v982_v29, %v863_v28 }
  0x5a   : > { %634 = vmatpush.bf16.msra.mxu0 %v880_v13  ;;  %v865_v34 = vld [vmem:[%s1293_s5 + $0x28] sm:$0xf0]  ;;  %v997_v35 = vld [vmem:[%s1293_s5 + $0xa4] sm:$0xf]  ;;  %v928_v38 = vor.u32 %v998_v32, %v927_v30  ;;  %v855_v40 = vld [vmem:[%s1293_s5 + $0x10] sm:$0xf] }
  0x5b   : > { %647 = vmatpush.bf16.msra.mxu1 %v944_v14  ;;  %660 = vmatpush.bf16.msra.mxu2 %v884_v15  ;;  %v929_v36 = vld [vmem:[%s1293_s5 + $0xa8] sm:$0xf0]  ;;  %v868_v39 = vor.u32 %v981_v33, %v865_v34  ;;  %v980_v41 = vld [vmem:[%s1293_s5 + $0x14] sm:$0xf0]  ;;  %v919_v42 = vld [vmem:[%s1293_s5 + $0x90] sm:$0xf] }
  0x5c   : > { %673 = vmatpush.bf16.msra.mxu3 %v948_v19  ;;  %v932_v43 = vor.u32 %v997_v35, %v929_v36  ;;  %v996_v44 = vld [vmem:[%s1293_s5 + $0x94] sm:$0xf0]  ;;  %v979_v45 = vld [vmem:[%s1293_s5 + $0x14] sm:$0xf]  ;;  %v857_v46 = vld [vmem:[%s1293_s5 + $0x18] sm:$0xf0]  ;;  %v856_v49 = vor.u32 %v980_v41, %v855_v40 }
  0x5d   : > { %v995_v47 = vld [vmem:[%s1293_s5 + $0x94] sm:$0xf]  ;;  %v921_v48 = vld [vmem:[%s1293_s5 + $0x98] sm:$0xf0]  ;;  %v920_v51 = vor.u32 %v996_v44, %v919_v42  ;;  %v860_v52 = vor.u32 %v979_v45, %v857_v46  ;;  %v847_v53 = vld [vmem:[%s1293_s5] sm:$0xf] }
  0x5e   : > { %635 = vmatpush.bf16.msra.mxu0 %v872_v25  ;;  %v431_v50 = vld [vmem:[%s1279_s26] sm:$0xff]  ;;  %v978_v54 = vld [vmem:[%s1293_s5 + $0x4] sm:$0xf0]  ;;  %v911_v55 = vld [vmem:[%s1293_s5 + $0x80] sm:$0xf]  ;;  %v924_v56 = vor.u32 %v995_v47, %v921_v48  ;;  %p973_p13 = scmp.ne.s32.totalorder %s1104_s14, 8 }
  0x5f   : > { %648 = vmatpush.bf16.msra.mxu1 %v936_v26  ;;  %661 = vmatpush.bf16.msra.mxu2 %v876_v27  ;;  %v994_v57 = vld [vmem:[%s1293_s5 + $0x84] sm:$0xf0]  ;;  %v977_v58 = vld [vmem:[%s1293_s5 + $0x4] sm:$0xf]  ;;  %v849_v59 = vld [vmem:[%s1293_s5 + $0x8] sm:$0xf0]  ;;  %v465_v62 = vunpack.c.l.b16 %v431_v50  ;;  %v848_v63 = vor.u32 %v978_v54, %v847_v53  ;;  %v466_v0 = vunpack.c.h.b16 %v431_v50 }
  0x60   : > { %674 = vmatpush.bf16.msra.mxu3 %v940_v31  ;;  %v993_v60 = vld [vmem:[%s1293_s5 + $0x84] sm:$0xf]  ;;  %v913_v61 = vld [vmem:[%s1293_s5 + $0x88] sm:$0xf0]  ;;  %v912_v1 = vor.u32 %v994_v57, %v911_v55  ;;  %v852_v2 = vor.u32 %v977_v58, %v849_v59  ;;  %v429_v7 = vld [vmem:[#allocation2] sm:$0xff] }
  0x61   : > { %v916_v3 = vor.u32 %v993_v60, %v913_v61  ;;  %v467_v4 = vpack.c.b16 %v465_v62, %v465_v62  ;;  %v468_v5 = vpack.c.b16 %v466_v0, %v466_v0  ;;  %v430_v12 = vld [vmem:[#allocation2 + $0x8] sm:$0xff] }
  0x62   : > { %636 = vmatpush.bf16.msra.mxu0 %v864_v37 }
  0x63   : > { %649 = vmatpush.bf16.msra.mxu1 %v928_v38  ;;  %662 = vmatpush.bf16.msra.mxu2 %v868_v39 }
  0x64   : > { %675 = vmatpush.bf16.msra.mxu3 %v932_v43 }
  0x66   : > { %637 = vmatpush.bf16.msra.mxu0 %v856_v49 }
  0x67   : > { %650 = vmatpush.bf16.msra.mxu1 %v920_v51  ;;  %663 = vmatpush.bf16.msra.mxu2 %v860_v52 }
  0x68   : > { %676 = vmatpush.bf16.msra.mxu3 %v924_v56 }
  0x6a   : > { %638 = vmatpush.bf16.msra.mxu0 %v848_v63 }
  0x6b   : > { %651 = vmatpush.bf16.msra.mxu1 %v912_v1  ;;  %664 = vmatpush.bf16.msra.mxu2 %v852_v2 }
  0x6c   : > { %677 = vmatpush.bf16.msra.mxu3 %v916_v3 }
  0x6d   : > { %639 = vmatmul.bf16.vlgmr.msra.gmra.mxu0 %v467_v4 }
  0x6e   : > { %652 = vmatmul.bf16.vlgmr.msra.gmra.mxu1 %v468_v5  ;;  %665 = vmatmul.bf16.vlgmr.msra.gmra.mxu2 %v467_v4 }
  0x6f   : > { %678 = vmatmul.bf16.vlgmr.msra.gmra.mxu3 %v468_v5 }
  0xea   : > { %v640_v6 = vpop.f32.mrf.mxu0 }
  0xeb   : > { %v653_v8 = vpop.f32.mrf.mxu1 }
  0xec   : > { %v654_v9 = vadd.f32 %v653_v8, %v640_v6 }
  0xee   : > { %v683_v10 = vadd.f32 %v654_v9, %v429_v7 }
  0xf0   : > { %685 = vst [vmem:[#allocation2] sm:$0xff] %v683_v10 }
  0xf1   : > { %v666_v11 = vpop.f32.mrf.mxu2 }
  0xf2   : > { %v679_v13 = vpop.f32.mrf.mxu3  ;;  %v642_v14 = vpop.f32.mrf.mxu0 }
  0xf3   : > { %v680_v15 = vadd.f32 %v679_v13, %v666_v11  ;;  %v655_v16 = vpop.f32.mrf.mxu1 }
  0xf5   : > { %v684_v17 = vadd.f32 %v680_v15, %v430_v12 }
  0xf6   : > { %690 = sbr.rel (%p973_p13) target bundleno = 262 (0x106), region = 78 }
  0xf7   : > { %686 = vst [vmem:[#allocation2 + $0x8] sm:$0xff] %v684_v17 }
  0xf9   : > { %v668_v18 = vpop.f32.mrf.mxu2 }
  0xfa   : > { %v681_v19 = vpop.f32.mrf.mxu3 }
  0xfb   : > { %v691_v20 = vld [vmem:[#allocation2] sm:$0xff] }
  0xfc   : > { %v693_v22 = vld [vmem:[%s411_s12] sm:$0x3] }
  0xfd   : > { %v695_v23 = vperm.slane %v693_v22, 0  ;;  %v696_v24 = vperm.slane %v693_v22, 1 }
  0xfe   : > { %v692_v21 = vld [vmem:[#allocation2 + $0x8] sm:$0xff] }
  0xff   : > { %v699_v25 = vadd.f32 %v695_v23, %v691_v20  ;;  %v700_v26 = vadd.f32 %v696_v24, %v692_v21 }
 0x101   : > { %v701_v27 = vmax.f32 %v699_v25, 0.0  ;;  %v702_v28 = vmax.f32 %v700_v26, 0.0 }
 0x103   : > { %v703_v29 = vpack.c.bf16 %v702_v28, %v701_v27 }
 0x105   : > { %704 = vst [vmem:[%s1291_s15] sm:$0xff] %v703_v29 }
 0x106 PF: > { %s13_s18 = sadd.s32 1, %s1120_s18   ;;  %s1393_s12 = smov %s1100_s13 }
 0x107   : > { %p10_p0 = scmp.ge.s32.totalorder %s13_s18, 20   ;;  %s1394_s13 = smov %s1194_s25 }
 0x108   : > { %s1395_s14 = smov %s1112_s16  ;;  %s1396_s15 = smov %s1116_s17 }
 0x109   : > { %s1397_s16 = smov %s1400_s19  ;;  %s1398_s17 = smov %s1404_s20 }
 0x10a   :  { %12 = sbr.rel (!%p10_p0) target bundleno = 4 (0x4), region = 119 }

// kernel: resnet18_forward.40
= control target key start
LH: loop header
LB: loop body
LE: loop exit
PB: predicated region body
PF: predicated region fallthrough
CT: control target
= control target key end

     0   :  { %s1101_s12 = smov 0   ;;  %s1103_s13 = smov 0   ;;  %s1306_s0 = inlined_call_operand.vmem [shape: bf16[8,256], index: 0, kind: input, shape index: {}]   ;;  %s1307_s1 = inlined_call_operand.vmem [shape: bf16[256,512], index: 1, kind: input, shape index: {}]   ;;  %s1308_s2 = inlined_call_operand.vmem [shape: f32[1,512], index: 2, kind: input, shape index: {}]   ;;  %s1309_s3 = inlined_call_operand.vmem [shape: bf16[8,512], index: 3, kind: output, shape index: {}]  }
   0x1   :  { %s1105_s14 = smov 0   ;;  %s1107_s15 = smov 0  }
   0x2   :  { %s1109_s16 = smov 0  }
   0x3 LB: > { %s28_s17 = sadd.s32 1, %s1075_s15  ;;  %p76_p1 = scmp.ne.s32.totalorder %s1067_s13, %s1063_s12  ;;  %s1079_s16 = sphi %s1109_s16, %s13_s16   ;;  %s1075_s15 = sphi %s1107_s15, %s1313_s15   ;;  %s1071_s14 = sphi %s1105_s14, %s1312_s14   ;;  %s1067_s13 = sphi %s1103_s13, %s1311_s13   ;;  %s1063_s12 = sphi %s1101_s12, %s1310_s12  }
   0x4   : > { %p30_p0 = scmp.ge.s32.totalorder %s28_s17, 2  ;;  %p77_p2 = scmp.eq.s32.totalorder %s1079_s16, 0 }
   0x5   : > { %s69_s19 = sadd.s32 1, %s1067_s13  ;;  %p829_p5 = scmp.ge.s32.totalorder %s1079_s16, 2 }
   0x6   : > { %s1315_s17 = smov (%p30_p0, %s28_s17), 0  ;;  %p78_p3 = por %p77_p2, %p76_p1 }
   0x7   : > { %s65_s18 = ssub.s32 %s1075_s15, %s1315_s17  ;;  %169 = sbr.rel (%p829_p5) target bundleno = 48 (0x30), region = 20 }
   0x8   : > { %p67_p4 = scmp.eq.s32.totalorder %s65_s18, 0 }
   0xa   : > { %s1136_s20 = scalar_select %p67_p4, %s1067_s13, %s69_s19  }
   0xc   : > { %172 = sbr.rel (!%p78_p3) target bundleno = 48 (0x30), region = 24  ;;  %s174_s21 = sand.u32 (%p78_p3), 1, %s1067_s13  }
   0xd   : > { %s968_s22 = sshll.u32 (%p78_p3), %s1075_s15, 3  ;;  %s830_s23 = sshll.u32 (%p78_p3), %s174_s21, 8 }
   0xe   : > { %s1144_s26 = scalar_lea.vmem (%p78_p3), %s1307_s1, %s968_s22  ;;  %s1149_s27 = scalar_lea.vmem (%p78_p3), [#allocation3], %s830_s23 }
   0xf   : > { %v273_v0 = vld [vmem:[%s1144_s26] sm:$0xff] (%p78_p3)  ;;  %v275_v1 = vld [vmem:[%s1144_s26 + $0x10] sm:$0xff] (%p78_p3) }
  0x10   : > { %v277_v2 = vld [vmem:[%s1144_s26 + $0x20] sm:$0xff] (%p78_p3)  ;;  %274 = vst [vmem:[%s1149_s27] sm:$0xff] (%p78_p3), %v273_v0  ;;  %v279_v3 = vld [vmem:[%s1144_s26 + $0x30] sm:$0xff] (%p78_p3) }
  0x11   : > { %276 = vst [vmem:[%s1149_s27 + $0x8] sm:$0xff] %v275_v1  ;;  %v281_v4 = vld [vmem:[%s1144_s26 + $0x40] sm:$0xff]  ;;  %v283_v5 = vld [vmem:[%s1144_s26 + $0x50] sm:$0xff] }
  0x12   : > { %278 = vst [vmem:[%s1149_s27 + $0x10] sm:$0xff] %v277_v2  ;;  %v285_v6 = vld [vmem:[%s1144_s26 + $0x60] sm:$0xff]  ;;  %v287_v7 = vld [vmem:[%s1144_s26 + $0x70] sm:$0xff] }
  0x13   : > { %280 = vst [vmem:[%s1149_s27 + $0x18] sm:$0xff] %v279_v3  ;;  %v289_v8 = vld [vmem:[%s1144_s26 + $0x80] sm:$0xff]  ;;  %v291_v9 = vld [vmem:[%s1144_s26 + $0x90] sm:$0xff] }
  0x14   : > { %282 = vst [vmem:[%s1149_s27 + $0x20] sm:$0xff] %v281_v4  ;;  %v293_v10 = vld [vmem:[%s1144_s26 + $0xa0] sm:$0xff]  ;;  %v295_v11 = vld [vmem:[%s1144_s26 + $0xb0] sm:$0xff] }
  0x15   : > { %284 = vst [vmem:[%s1149_s27 + $0x28] sm:$0xff] %v283_v5  ;;  %v297_v12 = vld [vmem:[%s1144_s26 + $0xc0] sm:$0xff]  ;;  %v299_v13 = vld [vmem:[%s1144_s26 + $0xd0] sm:$0xff] }
  0x16   : > { %286 = vst [vmem:[%s1149_s27 + $0x30] sm:$0xff] %v285_v6  ;;  %v301_v14 = vld [vmem:[%s1144_s26 + $0xe0] sm:$0xff]  ;;  %v303_v15 = vld [vmem:[%s1144_s26 + $0xf0] sm:$0xff] }
  0x17   : > { %288 = vst [vmem:[%s1149_s27 + $0x38] sm:$0xff] %v287_v7  ;;  %v305_v16 = vld [vmem:[%s1144_s26 + $0x100] sm:$0xff]  ;;  %v307_v17 = vld [vmem:[%s1144_s26 + $0x110] sm:$0xff] }
  0x18   : > { %290 = vst [vmem:[%s1149_s27 + $0x40] sm:$0xff] %v289_v8  ;;  %v309_v18 = vld [vmem:[%s1144_s26 + $0x120] sm:$0xff]  ;;  %v311_v19 = vld [vmem:[%s1144_s26 + $0x130] sm:$0xff] }
  0x19   : > { %292 = vst [vmem:[%s1149_s27 + $0x48] sm:$0xff] %v291_v9  ;;  %v313_v20 = vld [vmem:[%s1144_s26 + $0x140] sm:$0xff]  ;;  %v315_v21 = vld [vmem:[%s1144_s26 + $0x150] sm:$0xff] }
  0x1a   : > { %294 = vst [vmem:[%s1149_s27 + $0x50] sm:$0xff] %v293_v10  ;;  %v317_v22 = vld [vmem:[%s1144_s26 + $0x160] sm:$0xff]  ;;  %v319_v23 = vld [vmem:[%s1144_s26 + $0x170] sm:$0xff] }
  0x1b   : > { %296 = vst [vmem:[%s1149_s27 + $0x58] sm:$0xff] %v295_v11  ;;  %v321_v24 = vld [vmem:[%s1144_s26 + $0x180] sm:$0xff]  ;;  %v323_v25 = vld [vmem:[%s1144_s26 + $0x190] sm:$0xff] }
  0x1c   : > { %298 = vst [vmem:[%s1149_s27 + $0x60] sm:$0xff] %v297_v12  ;;  %v325_v26 = vld [vmem:[%s1144_s26 + $0x1a0] sm:$0xff]  ;;  %v327_v27 = vld [vmem:[%s1144_s26 + $0x1b0] sm:$0xff] }
  0x1d   : > { %300 = vst [vmem:[%s1149_s27 + $0x68] sm:$0xff] %v299_v13  ;;  %v329_v28 = vld [vmem:[%s1144_s26 + $0x1c0] sm:$0xff]  ;;  %v331_v29 = vld [vmem:[%s1144_s26 + $0x1d0] sm:$0xff] }
  0x1e   : > { %302 = vst [vmem:[%s1149_s27 + $0x70] sm:$0xff] %v301_v14  ;;  %v333_v30 = vld [vmem:[%s1144_s26 + $0x1e0] sm:$0xff]  ;;  %v335_v31 = vld [vmem:[%s1144_s26 + $0x1f0] sm:$0xff] }
  0x1f   : > { %304 = vst [vmem:[%s1149_s27 + $0x78] sm:$0xff] %v303_v15 }
  0x20   : > { %306 = vst [vmem:[%s1149_s27 + $0x80] sm:$0xff] %v305_v16 }
  0x21   : > { %308 = vst [vmem:[%s1149_s27 + $0x88] sm:$0xff] %v307_v17 }
  0x22   : > { %310 = vst [vmem:[%s1149_s27 + $0x90] sm:$0xff] %v309_v18 }
  0x23   : > { %312 = vst [vmem:[%s1149_s27 + $0x98] sm:$0xff] %v311_v19 }
  0x24   : > { %314 = vst [vmem:[%s1149_s27 + $0xa0] sm:$0xff] %v313_v20 }
  0x25   : > { %316 = vst [vmem:[%s1149_s27 + $0xa8] sm:$0xff] %v315_v21 }
  0x26   : > { %318 = vst [vmem:[%s1149_s27 + $0xb0] sm:$0xff] %v317_v22 }
  0x27   : > { %320 = vst [vmem:[%s1149_s27 + $0xb8] sm:$0xff] %v319_v23 }
  0x28   : > { %322 = vst [vmem:[%s1149_s27 + $0xc0] sm:$0xff] %v321_v24 }
  0x29   : > { %324 = vst [vmem:[%s1149_s27 + $0xc8] sm:$0xff] %v323_v25 }
  0x2a   : > { %326 = vst [vmem:[%s1149_s27 + $0xd0] sm:$0xff] %v325_v26 }
  0x2b   : > { %328 = vst [vmem:[%s1149_s27 + $0xd8] sm:$0xff] %v327_v27 }
  0x2c   : > { %330 = vst [vmem:[%s1149_s27 + $0xe0] sm:$0xff] %v329_v28 }
  0x2d   : > { %332 = vst [vmem:[%s1149_s27 + $0xe8] sm:$0xff] %v331_v29 }
  0x2e   : > { %334 = vst [vmem:[%s1149_s27 + $0xf0] sm:$0xff] %v333_v30 }
  0x2f   : > { %336 = vst [vmem:[%s1149_s27 + $0xf8] sm:$0xff] %v335_v31 }
  0x30 PF: > { %p833_p6 = scmp.ge.s32.totalorder %s1079_s16, 1  ;;  %p349_p7 = scmp.lt.s32.totalorder %s1079_s16, 3 }
  0x32   : > { %p350_p8 = pnand %p833_p6, %p349_p7 }
  0x33   : > { %s356_s28 = sand.u32 (!%p350_p8), 1, %s1063_s12   ;;  %s835_s6 = sshll.u32 (!%p350_p8), %s1071_s14, 1 }
  0x34   : > { %353 = sbr.rel (%p350_p8) target bundleno = 233 (0xe9), region = 66  ;;  %s834_s29 = sshll.u32 (!%p350_p8), %s356_s28, 8 }
  0x35   : > { %s1215_s30 = scalar_lea.vmem (!%p350_p8), [#allocation3], %s834_s29  ;;  %p409_p9 = scmp.lt.s32.totalorder (!%p350_p8), %s835_s6, 3 }
  0x39   : > { %v896_v32 = vld [vmem:[%s1215_s30 + $0x70] sm:$0xf]  ;;  %v984_v33 = vld [vmem:[%s1215_s30 + $0x74] sm:$0xf0]  ;;  %v983_v37 = vld [vmem:[%s1215_s30 + $0x74] sm:$0xf] }
  0x3a   : > { %v960_v34 = vld [vmem:[%s1215_s30 + $0xf0] sm:$0xf]  ;;  %v897_v35 = vor.u32 %v984_v33, %v896_v32  ;;  %v1000_v36 = vld [vmem:[%s1215_s30 + $0xf4] sm:$0xf0]  ;;  %v898_v38 = vld [vmem:[%s1215_s30 + $0x78] sm:$0xf0] }
  0x3b   : > { %v961_v39 = vor.u32 %v1000_v36, %v960_v34  ;;  %v901_v40 = vor.u32 %v983_v37, %v898_v38  ;;  %v999_v41 = vld [vmem:[%s1215_s30 + $0xf4] sm:$0xf]  ;;  %v962_v42 = vld [vmem:[%s1215_s30 + $0xf8] sm:$0xf0]  ;;  %v888_v43 = vld [vmem:[%s1215_s30 + $0x60] sm:$0xf] }
  0x3c   : > { %631 = vmatpush.bf16.msra.mxu0 %v897_v35  ;;  %v965_v44 = vor.u32 %v999_v41, %v962_v42  ;;  %v982_v45 = vld [vmem:[%s1215_s30 + $0x64] sm:$0xf0]  ;;  %v952_v46 = vld [vmem:[%s1215_s30 + $0xe0] sm:$0xf]  ;;  %v981_v50 = vld [vmem:[%s1215_s30 + $0x64] sm:$0xf] }
  0x3d   : > { %v998_v47 = vld [vmem:[%s1215_s30 + $0xe4] sm:$0xf0]  ;;  %644 = vmatpush.bf16.msra.mxu1 %v961_v39  ;;  %657 = vmatpush.bf16.msra.mxu2 %v901_v40  ;;  %v889_v48 = vor.u32 %v982_v45, %v888_v43  ;;  %v890_v51 = vld [vmem:[%s1215_s30 + $0x68] sm:$0xf0]  ;;  %v997_v52 = vld [vmem:[%s1215_s30 + $0xe4] sm:$0xf] }
  0x3e   : > { %v953_v49 = vor.u32 %v998_v47, %v952_v46  ;;  %670 = vmatpush.bf16.msra.mxu3 %v965_v44  ;;  %v893_v53 = vor.u32 %v981_v50, %v890_v51  ;;  %v954_v54 = vld [vmem:[%s1215_s30 + $0xe8] sm:$0xf0]  ;;  %v880_v55 = vld [vmem:[%s1215_s30 + $0x50] sm:$0xf]  ;;  %v980_v56 = vld [vmem:[%s1215_s30 + $0x54] sm:$0xf0] }
  0x3f   : > { %v957_v57 = vor.u32 %v997_v52, %v954_v54  ;;  %v944_v58 = vld [vmem:[%s1215_s30 + $0xd0] sm:$0xf]  ;;  %v996_v59 = vld [vmem:[%s1215_s30 + $0xd4] sm:$0xf0]  ;;  %v979_v60 = vld [vmem:[%s1215_s30 + $0x54] sm:$0xf]  ;;  %v881_v61 = vor.u32 %v980_v56, %v880_v55 }
  0x40   : > { %632 = vmatpush.bf16.msra.mxu0 %v889_v48  ;;  %v882_v62 = vld [vmem:[%s1215_s30 + $0x58] sm:$0xf0]  ;;  %v995_v63 = vld [vmem:[%s1215_s30 + $0xd4] sm:$0xf]  ;;  %v945_v1 = vor.u32 %v996_v59, %v944_v58  ;;  %v872_v3 = vld [vmem:[%s1215_s30 + $0x40] sm:$0xf] }
  0x41   : > { %v946_v0 = vld [vmem:[%s1215_s30 + $0xd8] sm:$0xf0]  ;;  %645 = vmatpush.bf16.msra.mxu1 %v953_v49  ;;  %658 = vmatpush.bf16.msra.mxu2 %v893_v53  ;;  %v885_v2 = vor.u32 %v979_v60, %v882_v62  ;;  %v978_v4 = vld [vmem:[%s1215_s30 + $0x44] sm:$0xf0]  ;;  %v936_v5 = vld [vmem:[%s1215_s30 + $0xc0] sm:$0xf] }
  0x42   : > { %671 = vmatpush.bf16.msra.mxu3 %v957_v57  ;;  %v949_v6 = vor.u32 %v995_v63, %v946_v0  ;;  %v994_v7 = vld [vmem:[%s1215_s30 + $0xc4] sm:$0xf0]  ;;  %v977_v8 = vld [vmem:[%s1215_s30 + $0x44] sm:$0xf]  ;;  %v874_v9 = vld [vmem:[%s1215_s30 + $0x48] sm:$0xf0]  ;;  %v873_v12 = vor.u32 %v978_v4, %v872_v3 }
  0x43   : > { %v993_v10 = vld [vmem:[%s1215_s30 + $0xc4] sm:$0xf]  ;;  %v938_v11 = vld [vmem:[%s1215_s30 + $0xc8] sm:$0xf0]  ;;  %v937_v13 = vor.u32 %v994_v7, %v936_v5  ;;  %v877_v14 = vor.u32 %v977_v8, %v874_v9  ;;  %v864_v15 = vld [vmem:[%s1215_s30 + $0x30] sm:$0xf] }
  0x44   : > { %633 = vmatpush.bf16.msra.mxu0 %v881_v61  ;;  %v976_v16 = vld [vmem:[%s1215_s30 + $0x34] sm:$0xf0]  ;;  %v928_v17 = vld [vmem:[%s1215_s30 + $0xb0] sm:$0xf]  ;;  %v941_v18 = vor.u32 %v993_v10, %v938_v11  ;;  %v975_v20 = vld [vmem:[%s1215_s30 + $0x34] sm:$0xf] }
  0x45   : > { %646 = vmatpush.bf16.msra.mxu1 %v945_v1  ;;  %659 = vmatpush.bf16.msra.mxu2 %v885_v2  ;;  %v992_v19 = vld [vmem:[%s1215_s30 + $0xb4] sm:$0xf0]  ;;  %v866_v21 = vld [vmem:[%s1215_s30 + $0x38] sm:$0xf0]  ;;  %v991_v22 = vld [vmem:[%s1215_s30 + $0xb4] sm:$0xf]  ;;  %v865_v24 = vor.u32 %v976_v16, %v864_v15 }
  0x46   : > { %672 = vmatpush.bf16.msra.mxu3 %v949_v6  ;;  %v930_v23 = vld [vmem:[%s1215_s30 + $0xb8] sm:$0xf0]  ;;  %v929_v25 = vor.u32 %v992_v19, %v928_v17  ;;  %v869_v26 = vor.u32 %v975_v20, %v866_v21  ;;  %v856_v27 = vld [vmem:[%s1215_s30 + $0x20] sm:$0xf]  ;;  %v974_v28 = vld [vmem:[%s1215_s30 + $0x24] sm:$0xf0] }
  0x47   : > { %v920_v29 = vld [vmem:[%s1215_s30 + $0xa0] sm:$0xf]  ;;  %v933_v30 = vor.u32 %v991_v22, %v930_v23  ;;  %v990_v31 = vld [vmem:[%s1215_s30 + $0xa4] sm:$0xf0]  ;;  %v973_v32 = vld [vmem:[%s1215_s30 + $0x24] sm:$0xf]  ;;  %v857_v36 = vor.u32 %v974_v28, %v856_v27 }
  0x48   : > { %634 = vmatpush.bf16.msra.mxu0 %v873_v12  ;;  %v858_v33 = vld [vmem:[%s1215_s30 + $0x28] sm:$0xf0]  ;;  %v989_v34 = vld [vmem:[%s1215_s30 + $0xa4] sm:$0xf]  ;;  %v921_v37 = vor.u32 %v990_v31, %v920_v29  ;;  %v848_v39 = vld [vmem:[%s1215_s30 + $0x10] sm:$0xf] }
  0x49   : > { %647 = vmatpush.bf16.msra.mxu1 %v937_v13  ;;  %660 = vmatpush.bf16.msra.mxu2 %v877_v14  ;;  %v922_v35 = vld [vmem:[%s1215_s30 + $0xa8] sm:$0xf0]  ;;  %v861_v38 = vor.u32 %v973_v32, %v858_v33  ;;  %v972_v40 = vld [vmem:[%s1215_s30 + $0x14] sm:$0xf0]  ;;  %v912_v41 = vld [vmem:[%s1215_s30 + $0x90] sm:$0xf] }
  0x4a   : > { %673 = vmatpush.bf16.msra.mxu3 %v941_v18  ;;  %v925_v42 = vor.u32 %v989_v34, %v922_v35  ;;  %v988_v43 = vld [vmem:[%s1215_s30 + $0x94] sm:$0xf0]  ;;  %v971_v44 = vld [vmem:[%s1215_s30 + $0x14] sm:$0xf]  ;;  %v850_v45 = vld [vmem:[%s1215_s30 + $0x18] sm:$0xf0]  ;;  %v849_v48 = vor.u32 %v972_v40, %v848_v39 }
  0x4b   : > { %v987_v46 = vld [vmem:[%s1215_s30 + $0x94] sm:$0xf]  ;;  %v914_v47 = vld [vmem:[%s1215_s30 + $0x98] sm:$0xf0]  ;;  %v431_v49 = vld [vmem:[%s1306_s0] sm:$0xff]  ;;  %v913_v50 = vor.u32 %v988_v43, %v912_v41  ;;  %v853_v51 = vor.u32 %v971_v44, %v850_v45  ;;  %s1317_s6 = smov (!%p409_p9, %s835_s6), 3 }
  0x4c   : > { %635 = vmatpush.bf16.msra.mxu0 %v865_v24  ;;  %v840_v52 = vld [vmem:[%s1215_s30] sm:$0xf]  ;;  %v970_v53 = vld [vmem:[%s1215_s30 + $0x4] sm:$0xf0]  ;;  %v917_v55 = vor.u32 %v987_v46, %v914_v47  ;;  %v969_v57 = vld [vmem:[%s1215_s30 + $0x4] sm:$0xf]  ;;  %v465_v61 = vunpack.c.l.b16 %v431_v49  ;;  %v466_v63 = vunpack.c.h.b16 %v431_v49  ;;  %s411_s9 = scalar_lea.vmem %s1308_s2, %s1317_s6 }
  0x4d   : > { %648 = vmatpush.bf16.msra.mxu1 %v929_v25  ;;  %661 = vmatpush.bf16.msra.mxu2 %v869_v26  ;;  %v904_v54 = vld [vmem:[%s1215_s30 + $0x80] sm:$0xf]  ;;  %v986_v56 = vld [vmem:[%s1215_s30 + $0x84] sm:$0xf0]  ;;  %v842_v58 = vld [vmem:[%s1215_s30 + $0x8] sm:$0xf0]  ;;  %v841_v62 = vor.u32 %v970_v53, %v840_v52 }
  0x4e   : > { %674 = vmatpush.bf16.msra.mxu3 %v933_v30  ;;  %v985_v59 = vld [vmem:[%s1215_s30 + $0x84] sm:$0xf]  ;;  %v906_v60 = vld [vmem:[%s1215_s30 + $0x88] sm:$0xf0]  ;;  %v905_v0 = vor.u32 %v986_v56, %v904_v54  ;;  %v845_v1 = vor.u32 %v969_v57, %v842_v58  ;;  %v467_v3 = vpack.c.b16 %v465_v61, %v465_v61  ;;  %v468_v4 = vpack.c.b16 %v466_v63, %v466_v63  ;;  %v692_v7 = vld [vmem:[%s411_s9] sm:$0x3] }
  0x4f   : > { %v909_v2 = vor.u32 %v985_v59, %v906_v60  ;;  %v694_v9 = vperm.slane %v692_v7, 0  ;;  %v695_v11 = vperm.slane %v692_v7, 1  ;;  %s837_s10 = sshll.u32 %s1317_s6, 2 }
  0x50   : > { %636 = vmatpush.bf16.msra.mxu0 %v857_v36  ;;  %s421_s14 = scalar_lea.vmem %s1309_s3, %s837_s10 }
  0x51   : > { %649 = vmatpush.bf16.msra.mxu1 %v921_v37  ;;  %662 = vmatpush.bf16.msra.mxu2 %v861_v38 }
  0x52   : > { %675 = vmatpush.bf16.msra.mxu3 %v925_v42 }
  0x54   : > { %637 = vmatpush.bf16.msra.mxu0 %v849_v48 }
  0x55   : > { %650 = vmatpush.bf16.msra.mxu1 %v913_v50  ;;  %663 = vmatpush.bf16.msra.mxu2 %v853_v51 }
  0x56   : > { %676 = vmatpush.bf16.msra.mxu3 %v917_v55 }
  0x58   : > { %638 = vmatpush.bf16.msra.mxu0 %v841_v62 }
  0x59   : > { %651 = vmatpush.bf16.msra.mxu1 %v905_v0  ;;  %664 = vmatpush.bf16.msra.mxu2 %v845_v1 }
  0x5a   : > { %677 = vmatpush.bf16.msra.mxu3 %v909_v2 }
  0x5b   : > { %639 = vmatmul.bf16.vlgmr.msra.gmra.mxu0 %v467_v3 }
  0x5c   : > { %652 = vmatmul.bf16.vlgmr.msra.gmra.mxu1 %v468_v4  ;;  %665 = vmatmul.bf16.vlgmr.msra.gmra.mxu2 %v467_v3 }
  0x5d   : > { %678 = vmatmul.bf16.vlgmr.msra.gmra.mxu3 %v468_v4 }
  0xd8   : > { %v640_v5 = vpop.f32.mrf.mxu0 }
  0xd9   : > { %v653_v6 = vpop.f32.mrf.mxu1 }
  0xda   : > { %v654_v8 = vadd.f32 %v653_v6, %v640_v5 }
  0xdc   : > { %v698_v14 = vadd.f32 %v694_v9, %v654_v8 }
  0xdf   : > { %v666_v10 = vpop.f32.mrf.mxu2 }
  0xe0   : > { %v679_v12 = vpop.f32.mrf.mxu3  ;;  %v642_v13 = vpop.f32.mrf.mxu0 }
  0xe1   : > { %v680_v15 = vadd.f32 %v679_v12, %v666_v10  ;;  %v655_v16 = vpop.f32.mrf.mxu1 }
  0xe3   : > { %v699_v17 = vadd.f32 %v695_v11, %v680_v15 }
  0xe5   : > { %v700_v18 = vpack.c.bf16 %v699_v17, %v698_v14 }
  0xe7   : > { %701 = vst [vmem:[%s421_s14] sm:$0xff] %v700_v18  ;;  %v668_v19 = vpop.f32.mrf.mxu2 }
  0xe8   : > { %v681_v20 = vpop.f32.mrf.mxu3 }
  0xe9 PF: > { %s13_s16 = sadd.s32 1, %s1079_s16   ;;  %s1310_s12 = smov %s1067_s13 }
  0xea   : > { %p10_p10 = scmp.ge.s32.totalorder %s13_s16, 4   ;;  %s1311_s13 = smov %s1136_s20 }
  0xeb   : > { %s1312_s14 = smov %s1075_s15  ;;  %s1313_s15 = smov %s1315_s17 }
  0xec   :  { %12 = sbr.rel (!%p10_p10) target bundleno = 3 (0x3), region = 119 }

// kernel: resnet18_forward.41
= control target key start
LH: loop header
LB: loop body
LE: loop exit
PB: predicated region body
PF: predicated region fallthrough
CT: control target
= control target key end

     0   :  { %s1776_s15 = smov 0   ;;  %s1778_s16 = smov 0   ;;  %s2173_s0 = inlined_call_operand.vmem [shape: bf16[8,4608], index: 0, kind: input, shape index: {}]   ;;  %s2174_s1 = inlined_call_operand.vmem [shape: bf16[4608,512], index: 1, kind: input, shape index: {}]   ;;  %s2175_s2 = inlined_call_operand.vmem [shape: f32[1,512], index: 2, kind: input, shape index: {}]   ;;  %s2176_s3 = inlined_call_operand.vmem [shape: bf16[8,512], index: 3, kind: input, shape index: {}]   ;;  %s2177_s4 = inlined_call_operand.vmem [shape: bf16[8,512], index: 4, kind: output, shape index: {}]  }
   0x1   :  { %s1780_s17 = smov 0   ;;  %s1782_s18 = smov 0  }
   0x2   :  { %s1784_s19 = smov 0   ;;  %s1786_s20 = smov 0  }
   0x3   :  { %s1788_s21 = smov 0  }
   0x4 LB: > { %s26_s22 = sadd.s32 1, %s1740_s19  ;;  %s29_s23 = sadd.s32 1, %s1744_s20  ;;  %s1748_s21 = sphi %s1788_s21, %s14_s21   ;;  %s1744_s20 = sphi %s1786_s20, %s2183_s20   ;;  %s1740_s19 = sphi %s1784_s19, %s2182_s19   ;;  %s1736_s18 = sphi %s1782_s18, %s2181_s18   ;;  %s1732_s17 = sphi %s1780_s17, %s2180_s17   ;;  %s1728_s16 = sphi %s1778_s16, %s2179_s16   ;;  %s1724_s15 = sphi %s1776_s15, %s2178_s15  }
   0x5   : > { %p27_p0 = scmp.ge.s32.totalorder %s26_s22, 9  ;;  %p77_p1 = scmp.ne.s32.totalorder %s1728_s16, %s1724_s15 }
   0x6   : > { %p78_p2 = scmp.eq.s32.totalorder %s1748_s21, 0  ;;  %s70_s27 = sadd.s32 1, %s1728_s16 }
   0x7   : > { %s2185_s22 = smov (%p27_p0, %s26_s22), 0  ;;  %s2187_s23 = smov (!%p27_p0, %s29_s23), %s1744_s20 }
   0x8   : > { %p79_p3 = por %p78_p2, %p77_p1  ;;  %p31_p4 = scmp.ge.s32.totalorder %s2187_s23, 2 }
   0x9   : > { %s65_s24 = ssub.s32 %s1740_s19, %s2185_s22  ;;  %p1297_p6 = scmp.ge.s32.totalorder %s1748_s21, 18 }
   0xa   : > { %s2189_s23 = smov (%p31_p4, %s2187_s23), 0 }
   0xb   : > { %s66_s25 = ssub.s32 %s1744_s20, %s2189_s23  ;;  %185 = sbr.rel (%p1297_p6) target bundleno = 87 (0x57), region = 16 }
   0xc   : > { %s67_s26 = sor.u32 %s66_s25, %s65_s24 }
   0xd   : > { %p68_p5 = scmp.eq.s32.totalorder %s67_s26, 0 }
   0xf   : > { %s1827_s28 = scalar_select %p68_p5, %s1728_s16, %s70_s27  }
  0x10   : > { %201 = sbr.rel (!%p79_p3) target bundleno = 87 (0x57), region = 24  ;;  %s203_s29 = sand.u32 (%p79_p3), 1, %s1728_s16  }
  0x11   : > { %s1300_s30 = sshll.u32 (%p79_p3), %s1744_s20, 1  ;;  %s1298_s5 = sshll.u32 (%p79_p3), %s203_s29, 9 }
  0x12   : > { %s1572_s6 = sshll.u32 (%p79_p3), %s1740_s19, 8  ;;  %s1841_s12 = scalar_lea.vmem (%p79_p3), [#allocation3], %s1298_s5 }
  0x13   : > { %s209_s7 = sadd.s32 (%p79_p3), %s1572_s6, %s1300_s30 }
  0x14   : > { %s1302_s8 = sshll.u32 (%p79_p3), %s209_s7, 2 }
  0x15   : > { %s1836_s11 = scalar_lea.vmem %s2174_s1, %s1302_s8 }
  0x16   : > { %v366_v0 = vld [vmem:[%s1836_s11] sm:$0xff]  ;;  %v368_v1 = vld [vmem:[%s1836_s11 + $0x10] sm:$0xff] }
  0x17   : > { %v370_v2 = vld [vmem:[%s1836_s11 + $0x20] sm:$0xff]  ;;  %367 = vst [vmem:[%s1841_s12] sm:$0xff] %v366_v0  ;;  %v372_v3 = vld [vmem:[%s1836_s11 + $0x30] sm:$0xff] }
  0x18   : > { %369 = vst [vmem:[%s1841_s12 + $0x8] sm:$0xff] %v368_v1  ;;  %v374_v4 = vld [vmem:[%s1836_s11 + $0x40] sm:$0xff]  ;;  %v376_v5 = vld [vmem:[%s1836_s11 + $0x50] sm:$0xff] }
  0x19   : > { %371 = vst [vmem:[%s1841_s12 + $0x10] sm:$0xff] %v370_v2  ;;  %v378_v6 = vld [vmem:[%s1836_s11 + $0x60] sm:$0xff]  ;;  %v380_v7 = vld [vmem:[%s1836_s11 + $0x70] sm:$0xff] }
  0x1a   : > { %373 = vst [vmem:[%s1841_s12 + $0x18] sm:$0xff] %v372_v3  ;;  %v382_v8 = vld [vmem:[%s1836_s11 + $0x80] sm:$0xff]  ;;  %v384_v9 = vld [vmem:[%s1836_s11 + $0x90] sm:$0xff] }
  0x1b   : > { %375 = vst [vmem:[%s1841_s12 + $0x20] sm:$0xff] %v374_v4  ;;  %v386_v10 = vld [vmem:[%s1836_s11 + $0xa0] sm:$0xff]  ;;  %v388_v11 = vld [vmem:[%s1836_s11 + $0xb0] sm:$0xff] }
  0x1c   : > { %377 = vst [vmem:[%s1841_s12 + $0x28] sm:$0xff] %v376_v5  ;;  %v390_v12 = vld [vmem:[%s1836_s11 + $0xc0] sm:$0xff]  ;;  %v392_v13 = vld [vmem:[%s1836_s11 + $0xd0] sm:$0xff] }
  0x1d   : > { %379 = vst [vmem:[%s1841_s12 + $0x30] sm:$0xff] %v378_v6  ;;  %v394_v14 = vld [vmem:[%s1836_s11 + $0xe0] sm:$0xff]  ;;  %v396_v15 = vld [vmem:[%s1836_s11 + $0xf0] sm:$0xff] }
  0x1e   : > { %381 = vst [vmem:[%s1841_s12 + $0x38] sm:$0xff] %v380_v7  ;;  %v398_v16 = vld [vmem:[%s1836_s11 + $0x100] sm:$0xff]  ;;  %v400_v17 = vld [vmem:[%s1836_s11 + $0x110] sm:$0xff] }
  0x1f   : > { %383 = vst [vmem:[%s1841_s12 + $0x40] sm:$0xff] %v382_v8  ;;  %v402_v18 = vld [vmem:[%s1836_s11 + $0x120] sm:$0xff]  ;;  %v404_v19 = vld [vmem:[%s1836_s11 + $0x130] sm:$0xff] }
  0x20   : > { %385 = vst [vmem:[%s1841_s12 + $0x48] sm:$0xff] %v384_v9  ;;  %v406_v20 = vld [vmem:[%s1836_s11 + $0x140] sm:$0xff]  ;;  %v408_v21 = vld [vmem:[%s1836_s11 + $0x150] sm:$0xff] }
  0x21   : > { %387 = vst [vmem:[%s1841_s12 + $0x50] sm:$0xff] %v386_v10  ;;  %v410_v22 = vld [vmem:[%s1836_s11 + $0x160] sm:$0xff]  ;;  %v412_v23 = vld [vmem:[%s1836_s11 + $0x170] sm:$0xff] }
  0x22   : > { %389 = vst [vmem:[%s1841_s12 + $0x58] sm:$0xff] %v388_v11  ;;  %v414_v24 = vld [vmem:[%s1836_s11 + $0x180] sm:$0xff]  ;;  %v416_v25 = vld [vmem:[%s1836_s11 + $0x190] sm:$0xff] }
  0x23   : > { %391 = vst [vmem:[%s1841_s12 + $0x60] sm:$0xff] %v390_v12  ;;  %v418_v26 = vld [vmem:[%s1836_s11 + $0x1a0] sm:$0xff]  ;;  %v420_v27 = vld [vmem:[%s1836_s11 + $0x1b0] sm:$0xff] }
  0x24   : > { %393 = vst [vmem:[%s1841_s12 + $0x68] sm:$0xff] %v392_v13  ;;  %v422_v28 = vld [vmem:[%s1836_s11 + $0x1c0] sm:$0xff]  ;;  %v424_v29 = vld [vmem:[%s1836_s11 + $0x1d0] sm:$0xff] }
  0x25   : > { %395 = vst [vmem:[%s1841_s12 + $0x70] sm:$0xff] %v394_v14  ;;  %v426_v30 = vld [vmem:[%s1836_s11 + $0x1e0] sm:$0xff]  ;;  %v428_v31 = vld [vmem:[%s1836_s11 + $0x1f0] sm:$0xff] }
  0x26   : > { %397 = vst [vmem:[%s1841_s12 + $0x78] sm:$0xff] %v396_v15  ;;  %v430_v32 = vld [vmem:[%s1836_s11 + $0x200] sm:$0xff]  ;;  %v432_v33 = vld [vmem:[%s1836_s11 + $0x210] sm:$0xff] }
  0x27   : > { %399 = vst [vmem:[%s1841_s12 + $0x80] sm:$0xff] %v398_v16  ;;  %v434_v34 = vld [vmem:[%s1836_s11 + $0x220] sm:$0xff]  ;;  %v436_v35 = vld [vmem:[%s1836_s11 + $0x230] sm:$0xff] }
  0x28   : > { %401 = vst [vmem:[%s1841_s12 + $0x88] sm:$0xff] %v400_v17  ;;  %v438_v36 = vld [vmem:[%s1836_s11 + $0x240] sm:$0xff]  ;;  %v440_v37 = vld [vmem:[%s1836_s11 + $0x250] sm:$0xff] }
  0x29   : > { %403 = vst [vmem:[%s1841_s12 + $0x90] sm:$0xff] %v402_v18  ;;  %v442_v38 = vld [vmem:[%s1836_s11 + $0x260] sm:$0xff]  ;;  %v444_v39 = vld [vmem:[%s1836_s11 + $0x270] sm:$0xff] }
  0x2a   : > { %405 = vst [vmem:[%s1841_s12 + $0x98] sm:$0xff] %v404_v19  ;;  %v446_v40 = vld [vmem:[%s1836_s11 + $0x280] sm:$0xff]  ;;  %v448_v41 = vld [vmem:[%s1836_s11 + $0x290] sm:$0xff] }
  0x2b   : > { %407 = vst [vmem:[%s1841_s12 + $0xa0] sm:$0xff] %v406_v20  ;;  %v450_v42 = vld [vmem:[%s1836_s11 + $0x2a0] sm:$0xff]  ;;  %v452_v43 = vld [vmem:[%s1836_s11 + $0x2b0] sm:$0xff] }
  0x2c   : > { %409 = vst [vmem:[%s1841_s12 + $0xa8] sm:$0xff] %v408_v21  ;;  %v454_v44 = vld [vmem:[%s1836_s11 + $0x2c0] sm:$0xff]  ;;  %v456_v45 = vld [vmem:[%s1836_s11 + $0x2d0] sm:$0xff] }
  0x2d   : > { %411 = vst [vmem:[%s1841_s12 + $0xb0] sm:$0xff] %v410_v22  ;;  %v458_v46 = vld [vmem:[%s1836_s11 + $0x2e0] sm:$0xff]  ;;  %v460_v47 = vld [vmem:[%s1836_s11 + $0x2f0] sm:$0xff] }
  0x2e   : > { %413 = vst [vmem:[%s1841_s12 + $0xb8] sm:$0xff] %v412_v23  ;;  %v462_v48 = vld [vmem:[%s1836_s11 + $0x300] sm:$0xff]  ;;  %v464_v49 = vld [vmem:[%s1836_s11 + $0x310] sm:$0xff] }
  0x2f   : > { %415 = vst [vmem:[%s1841_s12 + $0xc0] sm:$0xff] %v414_v24  ;;  %v466_v50 = vld [vmem:[%s1836_s11 + $0x320] sm:$0xff]  ;;  %v468_v51 = vld [vmem:[%s1836_s11 + $0x330] sm:$0xff] }
  0x30   : > { %417 = vst [vmem:[%s1841_s12 + $0xc8] sm:$0xff] %v416_v25  ;;  %v470_v52 = vld [vmem:[%s1836_s11 + $0x340] sm:$0xff]  ;;  %v472_v53 = vld [vmem:[%s1836_s11 + $0x350] sm:$0xff] }
  0x31   : > { %419 = vst [vmem:[%s1841_s12 + $0xd0] sm:$0xff] %v418_v26  ;;  %v474_v54 = vld [vmem:[%s1836_s11 + $0x360] sm:$0xff]  ;;  %v476_v55 = vld [vmem:[%s1836_s11 + $0x370] sm:$0xff] }
  0x32   : > { %421 = vst [vmem:[%s1841_s12 + $0xd8] sm:$0xff] %v420_v27  ;;  %v478_v56 = vld [vmem:[%s1836_s11 + $0x380] sm:$0xff]  ;;  %v480_v57 = vld [vmem:[%s1836_s11 + $0x390] sm:$0xff] }
  0x33   : > { %423 = vst [vmem:[%s1841_s12 + $0xe0] sm:$0xff] %v422_v28  ;;  %v482_v58 = vld [vmem:[%s1836_s11 + $0x3a0] sm:$0xff]  ;;  %v484_v59 = vld [vmem:[%s1836_s11 + $0x3b0] sm:$0xff] }
  0x34   : > { %425 = vst [vmem:[%s1841_s12 + $0xe8] sm:$0xff] %v424_v29  ;;  %v486_v60 = vld [vmem:[%s1836_s11 + $0x3c0] sm:$0xff]  ;;  %v488_v61 = vld [vmem:[%s1836_s11 + $0x3d0] sm:$0xff] }
  0x35   : > { %427 = vst [vmem:[%s1841_s12 + $0xf0] sm:$0xff] %v426_v30  ;;  %v490_v62 = vld [vmem:[%s1836_s11 + $0x3e0] sm:$0xff]  ;;  %v492_v63 = vld [vmem:[%s1836_s11 + $0x3f0] sm:$0xff] }
  0x36   : > { %429 = vst [vmem:[%s1841_s12 + $0xf8] sm:$0xff] %v428_v31 }
  0x37   : > { %431 = vst [vmem:[%s1841_s12 + $0x100] sm:$0xff] %v430_v32 }
  0x38   : > { %433 = vst [vmem:[%s1841_s12 + $0x108] sm:$0xff] %v432_v33 }
  0x39   : > { %435 = vst [vmem:[%s1841_s12 + $0x110] sm:$0xff] %v434_v34 }
  0x3a   : > { %437 = vst [vmem:[%s1841_s12 + $0x118] sm:$0xff] %v436_v35 }
  0x3b   : > { %439 = vst [vmem:[%s1841_s12 + $0x120] sm:$0xff] %v438_v36 }
  0x3c   : > { %441 = vst [vmem:[%s1841_s12 + $0x128] sm:$0xff] %v440_v37 }
  0x3d   : > { %443 = vst [vmem:[%s1841_s12 + $0x130] sm:$0xff] %v442_v38 }
  0x3e   : > { %445 = vst [vmem:[%s1841_s12 + $0x138] sm:$0xff] %v444_v39 }
  0x3f   : > { %447 = vst [vmem:[%s1841_s12 + $0x140] sm:$0xff] %v446_v40 }
  0x40   : > { %449 = vst [vmem:[%s1841_s12 + $0x148] sm:$0xff] %v448_v41 }
  0x41   : > { %451 = vst [vmem:[%s1841_s12 + $0x150] sm:$0xff] %v450_v42 }
  0x42   : > { %453 = vst [vmem:[%s1841_s12 + $0x158] sm:$0xff] %v452_v43 }
  0x43   : > { %455 = vst [vmem:[%s1841_s12 + $0x160] sm:$0xff] %v454_v44 }
  0x44   : > { %457 = vst [vmem:[%s1841_s12 + $0x168] sm:$0xff] %v456_v45 }
  0x45   : > { %459 = vst [vmem:[%s1841_s12 + $0x170] sm:$0xff] %v458_v46 }
  0x46   : > { %461 = vst [vmem:[%s1841_s12 + $0x178] sm:$0xff] %v460_v47 }
  0x47   : > { %463 = vst [vmem:[%s1841_s12 + $0x180] sm:$0xff] %v462_v48 }
  0x48   : > { %465 = vst [vmem:[%s1841_s12 + $0x188] sm:$0xff] %v464_v49 }
  0x49   : > { %467 = vst [vmem:[%s1841_s12 + $0x190] sm:$0xff] %v466_v50 }
  0x4a   : > { %469 = vst [vmem:[%s1841_s12 + $0x198] sm:$0xff] %v468_v51 }
  0x4b   : > { %471 = vst [vmem:[%s1841_s12 + $0x1a0] sm:$0xff] %v470_v52 }
  0x4c   : > { %473 = vst [vmem:[%s1841_s12 + $0x1a8] sm:$0xff] %v472_v53 }
  0x4d   : > { %475 = vst [vmem:[%s1841_s12 + $0x1b0] sm:$0xff] %v474_v54 }
  0x4e   : > { %477 = vst [vmem:[%s1841_s12 + $0x1b8] sm:$0xff] %v476_v55 }
  0x4f   : > { %479 = vst [vmem:[%s1841_s12 + $0x1c0] sm:$0xff] %v478_v56 }
  0x50   : > { %481 = vst [vmem:[%s1841_s12 + $0x1c8] sm:$0xff] %v480_v57 }
  0x51   : > { %483 = vst [vmem:[%s1841_s12 + $0x1d0] sm:$0xff] %v482_v58 }
  0x52   : > { %485 = vst [vmem:[%s1841_s12 + $0x1d8] sm:$0xff] %v484_v59 }
  0x53   : > { %487 = vst [vmem:[%s1841_s12 + $0x1e0] sm:$0xff] %v486_v60 }
  0x54   : > { %489 = vst [vmem:[%s1841_s12 + $0x1e8] sm:$0xff] %v488_v61 }
  0x55   : > { %491 = vst [vmem:[%s1841_s12 + $0x1f0] sm:$0xff] %v490_v62 }
  0x56   : > { %493 = vst [vmem:[%s1841_s12 + $0x1f8] sm:$0xff] %v492_v63 }
  0x57 PF: > { %p1303_p7 = scmp.ge.s32.totalorder %s1748_s21, 1  ;;  %p519_p8 = scmp.lt.s32.totalorder %s1748_s21, 19 }
  0x59   : > { %p520_p9 = pnand %p1303_p7, %p519_p8 }
  0x5a   : > { %s526_s13 = sand.u32 (!%p520_p9), 1, %s1724_s15   ;;  %s1305_s14 = sshll.u32 (!%p520_p9), %s1732_s17, 2 }
  0x5b   : > { %523 = sbr.rel (%p520_p9) target bundleno = 331 (0x14b), region = 70  ;;  %s1304_s24 = sshll.u32 (!%p520_p9), %s526_s13, 9 }
  0x5c   : > { %p580_p10 = scmp.lt.s32.totalorder (!%p520_p9), %s1305_s14, 35  ;;  %s1307_s25 = sshll.u32 (!%p520_p9), %s1736_s18, 1 }
  0x5d   : > { %p590_p11 = scmp.lt.s32.totalorder (!%p520_p9), %s1307_s25, 3  ;;  %s1995_s13 = scalar_lea.vmem (!%p520_p9), [#allocation3], %s1304_s24 }
  0x5e   : > { %p1312_p12 = scmp.ne.s32.totalorder (!%p520_p9), %s1732_s17, 0 }
  0x60   : > { %s2191_s14 = smov (!%p580_p10, %s1305_s14), 35  ;;  %s2193_s25 = smov (!%p590_p11, %s1307_s25), 3 }
  0x61   : > { %s1306_s26 = sshll.u32 %s2191_s14, 2  ;;  %s592_s15 = scalar_lea.vmem %s2175_s2, %s2193_s25 }
  0x62   : > { %s1976_s30 = scalar_lea.vmem %s2173_s0, %s1306_s26  ;;  %s1309_s7 = sshll.u32 %s2193_s25, 2 }
  0x63   : > { %s1988_s18 = scalar_lea.vmem %s2176_s3, %s1309_s7  ;;  %s1993_s12 = scalar_lea.vmem %s2177_s4, %s1309_s7 }
  0x64   : > { %617 = sbr.rel (%p1312_p12) target bundleno = 108 (0x6c), region = 78 }
  0x69   : > { %v1750_v0 = vmov 0.0  }
  0x6a   : > { %618 = vst [vmem:[#allocation2] sm:$0xff] %v1750_v0 }
  0x6b   : > { %619 = vst [vmem:[#allocation2 + $0x8] sm:$0xff] %v1750_v0 }
  0x6c PF: > { %v1371_v1 = vld [vmem:[%s1995_s13 + $0x70] sm:$0xf]  ;;  %v1588_v2 = vld [vmem:[%s1995_s13 + $0x74] sm:$0xf0]  ;;  %v1363_v12 = vld [vmem:[%s1995_s13 + $0x60] sm:$0xf] }
  0x6d   : > { %v1435_v3 = vld [vmem:[%s1995_s13 + $0xf0] sm:$0xf]  ;;  %v1372_v4 = vor.u32 %v1588_v2, %v1371_v1  ;;  %v1604_v5 = vld [vmem:[%s1995_s13 + $0xf4] sm:$0xf0]  ;;  %v1586_v14 = vld [vmem:[%s1995_s13 + $0x64] sm:$0xf0] }
  0x6e   : > { %v1499_v6 = vld [vmem:[%s1995_s13 + $0x170] sm:$0xf]  ;;  %v1620_v7 = vld [vmem:[%s1995_s13 + $0x174] sm:$0xf0]  ;;  %v1436_v8 = vor.u32 %v1604_v5, %v1435_v3  ;;  %v1427_v15 = vld [vmem:[%s1995_s13 + $0xe0] sm:$0xf]  ;;  %v1364_v17 = vor.u32 %v1586_v14, %v1363_v12 }
  0x6f   : > { %v1500_v9 = vor.u32 %v1620_v7, %v1499_v6  ;;  %v1563_v10 = vld [vmem:[%s1995_s13 + $0x1f0] sm:$0xf]  ;;  %v1636_v11 = vld [vmem:[%s1995_s13 + $0x1f4] sm:$0xf0]  ;;  %1022 = vmatpush.bf16.msra.mxu0 %v1372_v4  ;;  %v1602_v16 = vld [vmem:[%s1995_s13 + $0xe4] sm:$0xf0] }
  0x70   : > { %v1564_v13 = vor.u32 %v1636_v11, %v1563_v10  ;;  %1035 = vmatpush.bf16.msra.mxu1 %v1436_v8  ;;  %v1428_v18 = vor.u32 %v1602_v16, %v1427_v15  ;;  %v1491_v19 = vld [vmem:[%s1995_s13 + $0x160] sm:$0xf]  ;;  %v1618_v20 = vld [vmem:[%s1995_s13 + $0x164] sm:$0xf0]  ;;  %v1355_v24 = vld [vmem:[%s1995_s13 + $0x50] sm:$0xf] }
  0x71   : > { %1048 = vmatpush.bf16.msra.mxu2 %v1500_v9  ;;  %v1555_v21 = vld [vmem:[%s1995_s13 + $0x1e0] sm:$0xf]  ;;  %v1492_v22 = vor.u32 %v1618_v20, %v1491_v19  ;;  %v1634_v23 = vld [vmem:[%s1995_s13 + $0x1e4] sm:$0xf0]  ;;  %v1584_v25 = vld [vmem:[%s1995_s13 + $0x54] sm:$0xf0] }
  0x72   : > { %1061 = vmatpush.bf16.msra.mxu3 %v1564_v13  ;;  %v1556_v26 = vor.u32 %v1634_v23, %v1555_v21  ;;  %v1419_v27 = vld [vmem:[%s1995_s13 + $0xd0] sm:$0xf]  ;;  %v1600_v28 = vld [vmem:[%s1995_s13 + $0xd4] sm:$0xf0]  ;;  %v1356_v30 = vor.u32 %v1584_v25, %v1355_v24  ;;  %v1347_v36 = vld [vmem:[%s1995_s13 + $0x40] sm:$0xf] }
  0x73   : > { %v1483_v29 = vld [vmem:[%s1995_s13 + $0x150] sm:$0xf]  ;;  %1023 = vmatpush.bf16.msra.mxu0 %v1364_v17  ;;  %v1616_v31 = vld [vmem:[%s1995_s13 + $0x154] sm:$0xf0]  ;;  %v1420_v34 = vor.u32 %v1600_v28, %v1419_v27  ;;  %v1582_v37 = vld [vmem:[%s1995_s13 + $0x44] sm:$0xf0] }
  0x74   : > { %v1547_v32 = vld [vmem:[%s1995_s13 + $0x1d0] sm:$0xf]  ;;  %v1632_v33 = vld [vmem:[%s1995_s13 + $0x1d4] sm:$0xf0]  ;;  %1036 = vmatpush.bf16.msra.mxu1 %v1428_v18  ;;  %v1484_v35 = vor.u32 %v1616_v31, %v1483_v29  ;;  %v1411_v38 = vld [vmem:[%s1995_s13 + $0xc0] sm:$0xf]  ;;  %v1348_v45 = vor.u32 %v1582_v37, %v1347_v36 }
  0x75   : > { %1049 = vmatpush.bf16.msra.mxu2 %v1492_v22  ;;  %v1548_v39 = vor.u32 %v1632_v33, %v1547_v32  ;;  %v1598_v40 = vld [vmem:[%s1995_s13 + $0xc4] sm:$0xf0]  ;;  %v1475_v41 = vld [vmem:[%s1995_s13 + $0x140] sm:$0xf]  ;;  %v1339_v48 = vld [vmem:[%s1995_s13 + $0x30] sm:$0xf] }
  0x76   : > { %1062 = vmatpush.bf16.msra.mxu3 %v1556_v26  ;;  %v1614_v42 = vld [vmem:[%s1995_s13 + $0x144] sm:$0xf0]  ;;  %v1539_v43 = vld [vmem:[%s1995_s13 + $0x1c0] sm:$0xf]  ;;  %v1412_v46 = vor.u32 %v1598_v40, %v1411_v38  ;;  %v1580_v49 = vld [vmem:[%s1995_s13 + $0x34] sm:$0xf0] }
  0x77   : > { %v1630_v44 = vld [vmem:[%s1995_s13 + $0x1c4] sm:$0xf0]  ;;  %1024 = vmatpush.bf16.msra.mxu0 %v1356_v30  ;;  %v1476_v47 = vor.u32 %v1614_v42, %v1475_v41  ;;  %v1403_v50 = vld [vmem:[%s1995_s13 + $0xb0] sm:$0xf]  ;;  %v1596_v52 = vld [vmem:[%s1995_s13 + $0xb4] sm:$0xf0]  ;;  %v1340_v57 = vor.u32 %v1580_v49, %v1339_v48 }
  0x78   : > { %1037 = vmatpush.bf16.msra.mxu1 %v1420_v34  ;;  %v1540_v51 = vor.u32 %v1630_v44, %v1539_v43  ;;  %v1467_v53 = vld [vmem:[%s1995_s13 + $0x130] sm:$0xf]  ;;  %v1612_v54 = vld [vmem:[%s1995_s13 + $0x134] sm:$0xf0]  ;;  %v1404_v58 = vor.u32 %v1596_v52, %v1403_v50  ;;  %v1331_v60 = vld [vmem:[%s1995_s13 + $0x20] sm:$0xf] }
  0x79   : > { %1050 = vmatpush.bf16.msra.mxu2 %v1484_v35  ;;  %v1531_v55 = vld [vmem:[%s1995_s13 + $0x1b0] sm:$0xf]  ;;  %v1628_v56 = vld [vmem:[%s1995_s13 + $0x1b4] sm:$0xf0]  ;;  %v1468_v59 = vor.u32 %v1612_v54, %v1467_v53  ;;  %v1578_v61 = vld [vmem:[%s1995_s13 + $0x24] sm:$0xf0] }
  0x7a   : > { %1063 = vmatpush.bf16.msra.mxu3 %v1548_v39  ;;  %v1395_v62 = vld [vmem:[%s1995_s13 + $0xa0] sm:$0xf]  ;;  %v1532_v63 = vor.u32 %v1628_v56, %v1531_v55  ;;  %v1594_v0 = vld [vmem:[%s1995_s13 + $0xa4] sm:$0xf0]  ;;  %v1332_v5 = vor.u32 %v1578_v61, %v1331_v60  ;;  %v1323_v8 = vld [vmem:[%s1995_s13 + $0x10] sm:$0xf] }
  0x7b   : > { %1025 = vmatpush.bf16.msra.mxu0 %v1348_v45  ;;  %v1459_v1 = vld [vmem:[%s1995_s13 + $0x120] sm:$0xf]  ;;  %v1610_v2 = vld [vmem:[%s1995_s13 + $0x124] sm:$0xf0]  ;;  %v1396_v6 = vor.u32 %v1594_v0, %v1395_v62  ;;  %v1576_v9 = vld [vmem:[%s1995_s13 + $0x14] sm:$0xf0] }
  0x7c   : > { %1038 = vmatpush.bf16.msra.mxu1 %v1412_v46  ;;  %v1523_v3 = vld [vmem:[%s1995_s13 + $0x1a0] sm:$0xf]  ;;  %v1626_v4 = vld [vmem:[%s1995_s13 + $0x1a4] sm:$0xf0]  ;;  %v1460_v7 = vor.u32 %v1610_v2, %v1459_v1  ;;  %v1387_v10 = vld [vmem:[%s1995_s13 + $0x90] sm:$0xf]  ;;  %v1324_v17 = vor.u32 %v1576_v9, %v1323_v8 }
  0x7d   : > { %1051 = vmatpush.bf16.msra.mxu2 %v1476_v47  ;;  %v1524_v11 = vor.u32 %v1626_v4, %v1523_v3  ;;  %v1592_v12 = vld [vmem:[%s1995_s13 + $0x94] sm:$0xf0]  ;;  %v1451_v13 = vld [vmem:[%s1995_s13 + $0x110] sm:$0xf]  ;;  %v1315_v18 = vld [vmem:[%s1995_s13] sm:$0xf] }
  0x7e   : > { %1064 = vmatpush.bf16.msra.mxu3 %v1540_v51  ;;  %v1608_v14 = vld [vmem:[%s1995_s13 + $0x114] sm:$0xf0]  ;;  %v1515_v15 = vld [vmem:[%s1995_s13 + $0x190] sm:$0xf]  ;;  %v1574_v19 = vld [vmem:[%s1995_s13 + $0x4] sm:$0xf0]  ;;  %v1388_v21 = vor.u32 %v1592_v12, %v1387_v10 }
  0x7f   : > { %1026 = vmatpush.bf16.msra.mxu0 %v1340_v57  ;;  %v1624_v16 = vld [vmem:[%s1995_s13 + $0x194] sm:$0xf0]  ;;  %v1379_v20 = vld [vmem:[%s1995_s13 + $0x80] sm:$0xf]  ;;  %v1452_v22 = vor.u32 %v1608_v14, %v1451_v13  ;;  %v1590_v23 = vld [vmem:[%s1995_s13 + $0x84] sm:$0xf0]  ;;  %v1316_v33 = vor.u32 %v1574_v19, %v1315_v18 }
  0x80   : > { %1039 = vmatpush.bf16.msra.mxu1 %v1404_v58  ;;  %v1443_v24 = vld [vmem:[%s1995_s13 + $0x100] sm:$0xf]  ;;  %v1606_v25 = vld [vmem:[%s1995_s13 + $0x104] sm:$0xf0]  ;;  %v1516_v26 = vor.u32 %v1624_v16, %v1515_v15  ;;  %v1587_v29 = vld [vmem:[%s1995_s13 + $0x74] sm:$0xf]  ;;  %v1380_v38 = vor.u32 %v1590_v23, %v1379_v20 }
  0x81   : > { %1052 = vmatpush.bf16.msra.mxu2 %v1468_v59  ;;  %v1507_v27 = vld [vmem:[%s1995_s13 + $0x180] sm:$0xf]  ;;  %v1622_v28 = vld [vmem:[%s1995_s13 + $0x184] sm:$0xf0]  ;;  %v1373_v30 = vld [vmem:[%s1995_s13 + $0x78] sm:$0xf0]  ;;  %v1444_v39 = vor.u32 %v1606_v25, %v1443_v24 }
  0x82   : > { %1065 = vmatpush.bf16.msra.mxu3 %v1532_v63  ;;  %v1603_v31 = vld [vmem:[%s1995_s13 + $0xf4] sm:$0xf]  ;;  %v623_v32 = vld [vmem:[%s1976_s30 + $0x8] sm:$0xff]  ;;  %v1508_v43 = vor.u32 %v1622_v28, %v1507_v27  ;;  %v1376_v44 = vor.u32 %v1587_v29, %v1373_v30  ;;  %v1585_v48 = vld [vmem:[%s1995_s13 + $0x64] sm:$0xf]  ;;  %p1569_p13 = scmp.ne.s32.totalorder %s1732_s17, 8 }
  0x83   : > { %1027 = vmatpush.bf16.msra.mxu0 %v1332_v5  ;;  %v1437_v34 = vld [vmem:[%s1995_s13 + $0xf8] sm:$0xf0]  ;;  %v1619_v35 = vld [vmem:[%s1995_s13 + $0x174] sm:$0xf]  ;;  %v692_v37 = vunpack.c.l.b16 %v623_v32  ;;  %v693_v42 = vunpack.c.h.b16 %v623_v32  ;;  %v1365_v49 = vld [vmem:[%s1995_s13 + $0x68] sm:$0xf0] }
  0x84   : > { %1040 = vmatpush.bf16.msra.mxu1 %v1396_v6  ;;  %v1501_v36 = vld [vmem:[%s1995_s13 + $0x178] sm:$0xf0]  ;;  %v1635_v40 = vld [vmem:[%s1995_s13 + $0x1f4] sm:$0xf]  ;;  %v1440_v46 = vor.u32 %v1603_v31, %v1437_v34  ;;  %v1601_v50 = vld [vmem:[%s1995_s13 + $0xe4] sm:$0xf]  ;;  %v1368_v62 = vor.u32 %v1585_v48, %v1365_v49 }
  0x85   : > { %1053 = vmatpush.bf16.msra.mxu2 %v1460_v7  ;;  %v1565_v41 = vld [vmem:[%s1995_s13 + $0x1f8] sm:$0xf0]  ;;  %v622_v45 = vld [vmem:[%s1976_s30] sm:$0xff]  ;;  %v1504_v47 = vor.u32 %v1619_v35, %v1501_v36  ;;  %v1429_v54 = vld [vmem:[%s1995_s13 + $0xe8] sm:$0xf0]  ;;  %v2078_v57 = vpack.c.b16 %v692_v37, %v692_v37  ;;  %v2082_v60 = vpack.c.b16 %v693_v42, %v693_v42 }
  0x86   : > { %1066 = vmatpush.bf16.msra.mxu3 %v1524_v11  ;;  %v690_v51 = vunpack.c.l.b16 %v622_v45  ;;  %v691_v52 = vunpack.c.h.b16 %v622_v45  ;;  %v1568_v53 = vor.u32 %v1635_v40, %v1565_v41  ;;  %v1617_v55 = vld [vmem:[%s1995_s13 + $0x164] sm:$0xf]  ;;  %v1493_v56 = vld [vmem:[%s1995_s13 + $0x168] sm:$0xf0]  ;;  %v1432_v0 = vor.u32 %v1601_v50, %v1429_v54  ;;  %v1583_v2 = vld [vmem:[%s1995_s13 + $0x54] sm:$0xf] }
  0x87   : > { %1028 = vmatpush.bf16.msra.mxu0 %v1324_v17  ;;  %v1633_v58 = vld [vmem:[%s1995_s13 + $0x1e4] sm:$0xf]  ;;  %v1557_v59 = vld [vmem:[%s1995_s13 + $0x1e8] sm:$0xf0]  ;;  %v1496_v1 = vor.u32 %v1617_v55, %v1493_v56  ;;  %v1357_v3 = vld [vmem:[%s1995_s13 + $0x58] sm:$0xf0] }
  0x88   : > { %1041 = vmatpush.bf16.msra.mxu1 %v1388_v21  ;;  %v2084_v61 = vpack.c.b16 %v690_v51, %v690_v51  ;;  %v2086_v63 = vpack.c.b16 %v691_v52, %v691_v52  ;;  %v1599_v4 = vld [vmem:[%s1995_s13 + $0xd4] sm:$0xf]  ;;  %v1560_v5 = vor.u32 %v1633_v58, %v1557_v59  ;;  %v1421_v6 = vld [vmem:[%s1995_s13 + $0xd8] sm:$0xf0]  ;;  %v1360_v11 = vor.u32 %v1583_v2, %v1357_v3  ;;  %v1581_v14 = vld [vmem:[%s1995_s13 + $0x44] sm:$0xf] }
  0x89   : > { %1054 = vmatpush.bf16.msra.mxu2 %v1452_v22  ;;  %v1615_v7 = vld [vmem:[%s1995_s13 + $0x154] sm:$0xf]  ;;  %v1485_v8 = vld [vmem:[%s1995_s13 + $0x158] sm:$0xf0]  ;;  %v1424_v12 = vor.u32 %v1599_v4, %v1421_v6  ;;  %v1349_v15 = vld [vmem:[%s1995_s13 + $0x48] sm:$0xf0] }
  0x8a   : > { %1067 = vmatpush.bf16.msra.mxu3 %v1516_v26  ;;  %v1631_v9 = vld [vmem:[%s1995_s13 + $0x1d4] sm:$0xf]  ;;  %v1549_v10 = vld [vmem:[%s1995_s13 + $0x1d8] sm:$0xf0]  ;;  %v1488_v13 = vor.u32 %v1615_v7, %v1485_v8  ;;  %v1597_v16 = vld [vmem:[%s1995_s13 + $0xc4] sm:$0xf]  ;;  %v1352_v23 = vor.u32 %v1581_v14, %v1349_v15 }
  0x8b   : > { %1029 = vmatpush.bf16.msra.mxu0 %v1316_v33  ;;  %v1552_v17 = vor.u32 %v1631_v9, %v1549_v10  ;;  %v1413_v18 = vld [vmem:[%s1995_s13 + $0xc8] sm:$0xf0]  ;;  %v1613_v19 = vld [vmem:[%s1995_s13 + $0x144] sm:$0xf]  ;;  %v1579_v26 = vld [vmem:[%s1995_s13 + $0x34] sm:$0xf] }
  0x8c   : > { %1042 = vmatpush.bf16.msra.mxu1 %v1380_v38  ;;  %v1477_v20 = vld [vmem:[%s1995_s13 + $0x148] sm:$0xf0]  ;;  %v1629_v21 = vld [vmem:[%s1995_s13 + $0x1c4] sm:$0xf]  ;;  %v1416_v24 = vor.u32 %v1597_v16, %v1413_v18  ;;  %v1341_v27 = vld [vmem:[%s1995_s13 + $0x38] sm:$0xf0] }
  0x8d   : > { %1055 = vmatpush.bf16.msra.mxu2 %v1444_v39  ;;  %v1541_v22 = vld [vmem:[%s1995_s13 + $0x1c8] sm:$0xf0]  ;;  %v1480_v25 = vor.u32 %v1613_v19, %v1477_v20  ;;  %v1595_v28 = vld [vmem:[%s1995_s13 + $0xb4] sm:$0xf]  ;;  %v1405_v30 = vld [vmem:[%s1995_s13 + $0xb8] sm:$0xf0]  ;;  %v1344_v35 = vor.u32 %v1579_v26, %v1341_v27 }
  0x8e   : > { %1068 = vmatpush.bf16.msra.mxu3 %v1508_v43  ;;  %1030 = vmatmul.bf16.vlgmr.msra.gmra.mxu0 %v2084_v61  ;;  %v1544_v29 = vor.u32 %v1629_v21, %v1541_v22  ;;  %v1611_v31 = vld [vmem:[%s1995_s13 + $0x134] sm:$0xf]  ;;  %v1469_v32 = vld [vmem:[%s1995_s13 + $0x138] sm:$0xf0]  ;;  %v1408_v36 = vor.u32 %v1595_v28, %v1405_v30  ;;  %v1577_v38 = vld [vmem:[%s1995_s13 + $0x24] sm:$0xf] }
  0x8f   : > { %1074 = vmatpush.bf16.msrb.mxu0 %v1376_v44  ;;  %1043 = vmatmul.bf16.vlgmr.msra.gmra.mxu1 %v2086_v63  ;;  %v1627_v33 = vld [vmem:[%s1995_s13 + $0x1b4] sm:$0xf]  ;;  %v1533_v34 = vld [vmem:[%s1995_s13 + $0x1b8] sm:$0xf0]  ;;  %v1472_v37 = vor.u32 %v1611_v31, %v1469_v32  ;;  %v1333_v39 = vld [vmem:[%s1995_s13 + $0x28] sm:$0xf0] }
  0x90   : > { %1087 = vmatpush.bf16.msrb.mxu1 %v1440_v46  ;;  %1056 = vmatmul.bf16.vlgmr.msra.gmra.mxu2 %v2078_v57  ;;  %v1593_v40 = vld [vmem:[%s1995_s13 + $0xa4] sm:$0xf]  ;;  %v1536_v41 = vor.u32 %v1627_v33, %v1533_v34  ;;  %v1397_v42 = vld [vmem:[%s1995_s13 + $0xa8] sm:$0xf0]  ;;  %v1575_v50 = vld [vmem:[%s1995_s13 + $0x14] sm:$0xf] }
  0x91   : > { %1100 = vmatpush.bf16.msrb.mxu2 %v1504_v47  ;;  %1069 = vmatmul.bf16.vlgmr.msra.gmra.mxu3 %v2082_v60  ;;  %v1609_v43 = vld [vmem:[%s1995_s13 + $0x124] sm:$0xf]  ;;  %v1461_v44 = vld [vmem:[%s1995_s13 + $0x128] sm:$0xf0]  ;;  %v1336_v47 = vor.u32 %v1577_v38, %v1333_v39  ;;  %v1400_v48 = vor.u32 %v1593_v40, %v1397_v42  ;;  %v1325_v51 = vld [vmem:[%s1995_s13 + $0x18] sm:$0xf0] }
  0x92   : > { %1113 = vmatpush.bf16.msrb.mxu3 %v1568_v53  ;;  %v1625_v45 = vld [vmem:[%s1995_s13 + $0x1a4] sm:$0xf]  ;;  %v1525_v46 = vld [vmem:[%s1995_s13 + $0x1a8] sm:$0xf0]  ;;  %v1464_v49 = vor.u32 %v1609_v43, %v1461_v44  ;;  %v1591_v52 = vld [vmem:[%s1995_s13 + $0x94] sm:$0xf] }
  0x93   : > { %1075 = vmatpush.bf16.msrb.mxu0 %v1368_v62  ;;  %v1528_v53 = vor.u32 %v1625_v45, %v1525_v46  ;;  %v1389_v54 = vld [vmem:[%s1995_s13 + $0x98] sm:$0xf0]  ;;  %v1607_v55 = vld [vmem:[%s1995_s13 + $0x114] sm:$0xf]  ;;  %v1328_v62 = vor.u32 %v1575_v50, %v1325_v51  ;;  %v1573_v2 = vld [vmem:[%s1995_s13 + $0x4] sm:$0xf] }
  0x94   : > { %1088 = vmatpush.bf16.msrb.mxu1 %v1432_v0  ;;  %v1453_v56 = vld [vmem:[%s1995_s13 + $0x118] sm:$0xf0]  ;;  %v1623_v58 = vld [vmem:[%s1995_s13 + $0x194] sm:$0xf]  ;;  %v1392_v0 = vor.u32 %v1591_v52, %v1389_v54  ;;  %v1317_v3 = vld [vmem:[%s1995_s13 + $0x8] sm:$0xf0] }
  0x95   : > { %1101 = vmatpush.bf16.msrb.mxu2 %v1496_v1  ;;  %v1517_v59 = vld [vmem:[%s1995_s13 + $0x198] sm:$0xf0]  ;;  %v1456_v1 = vor.u32 %v1607_v55, %v1453_v56  ;;  %v1589_v4 = vld [vmem:[%s1995_s13 + $0x84] sm:$0xf]  ;;  %v1381_v6 = vld [vmem:[%s1995_s13 + $0x88] sm:$0xf0] }
  0x96   : > { %1114 = vmatpush.bf16.msrb.mxu3 %v1560_v5  ;;  %v1520_v5 = vor.u32 %v1623_v58, %v1517_v59  ;;  %v1605_v7 = vld [vmem:[%s1995_s13 + $0x104] sm:$0xf]  ;;  %v1445_v8 = vld [vmem:[%s1995_s13 + $0x108] sm:$0xf0]  ;;  %v620_v21 = vld [vmem:[#allocation2] sm:$0xff] }
  0x97   : > { %1076 = vmatpush.bf16.msrb.mxu0 %v1360_v11  ;;  %v1621_v9 = vld [vmem:[%s1995_s13 + $0x184] sm:$0xf]  ;;  %v1509_v10 = vld [vmem:[%s1995_s13 + $0x188] sm:$0xf0]  ;;  %v1320_v11 = vor.u32 %v1573_v2, %v1317_v3  ;;  %v621_v31 = vld [vmem:[#allocation2 + $0x8] sm:$0xff] }
  0x98   : > { %1089 = vmatpush.bf16.msrb.mxu1 %v1424_v12  ;;  %v1384_v12 = vor.u32 %v1589_v4, %v1381_v6  ;;  %v1512_v14 = vor.u32 %v1621_v9, %v1509_v10 }
  0x99   : > { %1102 = vmatpush.bf16.msrb.mxu2 %v1488_v13  ;;  %v1448_v13 = vor.u32 %v1605_v7, %v1445_v8 }
  0x9a   : > { %1115 = vmatpush.bf16.msrb.mxu3 %v1552_v17 }
  0x9b   : > { %1077 = vmatpush.bf16.msrb.mxu0 %v1352_v23 }
  0x9c   : > { %1090 = vmatpush.bf16.msrb.mxu1 %v1416_v24 }
  0x9d   : > { %1103 = vmatpush.bf16.msrb.mxu2 %v1480_v25 }
  0x9e   : > { %1116 = vmatpush.bf16.msrb.mxu3 %v1544_v29 }
  0x9f   : > { %1078 = vmatpush.bf16.msrb.mxu0 %v1344_v35 }
  0xa0   : > { %1091 = vmatpush.bf16.msrb.mxu1 %v1408_v36 }
  0xa1   : > { %1104 = vmatpush.bf16.msrb.mxu2 %v1472_v37 }
  0xa2   : > { %1117 = vmatpush.bf16.msrb.mxu3 %v1536_v41 }
  0xa3   : > { %1079 = vmatpush.bf16.msrb.mxu0 %v1336_v47 }
  0xa4   : > { %1092 = vmatpush.bf16.msrb.mxu1 %v1400_v48 }
  0xa5   : > { %1105 = vmatpush.bf16.msrb.mxu2 %v1464_v49 }
  0xa6   : > { %1118 = vmatpush.bf16.msrb.mxu3 %v1528_v53 }
  0xa7   : > { %1080 = vmatpush.bf16.msrb.mxu0 %v1328_v62 }
  0xa8   : > { %1093 = vmatpush.bf16.msrb.mxu1 %v1392_v0 }
  0xa9   : > { %1106 = vmatpush.bf16.msrb.mxu2 %v1456_v1 }
  0xaa   : > { %1119 = vmatpush.bf16.msrb.mxu3 %v1520_v5 }
  0xab   : > { %1081 = vmatpush.bf16.msrb.mxu0 %v1320_v11 }
  0xac   : > { %1094 = vmatpush.bf16.msrb.mxu1 %v1384_v12 }
  0xad   : > { %1107 = vmatpush.bf16.msrb.mxu2 %v1448_v13 }
  0xae   : > { %1120 = vmatpush.bf16.msrb.mxu3 %v1512_v14  ;;  %1082 = vmatmul.bf16.vlgmr.msrb.gmra.mxu0 %v2084_v61 }
  0xaf   : > { %1095 = vmatmul.bf16.vlgmr.msrb.gmra.mxu1 %v2086_v63 }
  0xb0   : > { %1108 = vmatmul.bf16.vlgmr.msrb.gmra.mxu2 %v2078_v57 }
  0xb1   : > { %1121 = vmatmul.bf16.vlgmr.msrb.gmra.mxu3 %v2082_v60 }
 0x10b   : > { %v1031_v15 = vpop.f32.mrf.mxu0 }
 0x10c   : > { %v1044_v16 = vpop.f32.mrf.mxu1 }
 0x10d   : > { %v1045_v17 = vadd.f32 %v1044_v16, %v1031_v15 }
 0x113   : > { %v1057_v18 = vpop.f32.mrf.mxu2  ;;  %v1033_v23 = vpop.f32.mrf.mxu0 }
 0x114   : > { %v1058_v19 = vadd.f32 %v1057_v18, %v1045_v17  ;;  %v1070_v20 = vpop.f32.mrf.mxu3  ;;  %v1046_v24 = vpop.f32.mrf.mxu1 }
 0x116   : > { %v1071_v22 = vadd.f32 %v1070_v20, %v1058_v19 }
 0x118   : > { %v1126_v25 = vadd.f32 %v1071_v22, %v620_v21 }
 0x11a   : > { %1128 = vst [vmem:[#allocation2] sm:$0xff] %v1126_v25 }
 0x11b   : > { %v1059_v26 = vpop.f32.mrf.mxu2 }
 0x11c   : > { %v1072_v61 = vpop.f32.mrf.mxu3 }
 0x12b   : > { %v1083_v27 = vpop.f32.mrf.mxu0 }
 0x12c   : > { %v1096_v63 = vpop.f32.mrf.mxu1 }
 0x12d   : > { %v1097_v28 = vadd.f32 %v1096_v63, %v1083_v27 }
 0x133   : > { %v1109_v57 = vpop.f32.mrf.mxu2  ;;  %v1085_v30 = vpop.f32.mrf.mxu0 }
 0x134   : > { %v1110_v29 = vadd.f32 %v1109_v57, %v1097_v28  ;;  %v1122_v60 = vpop.f32.mrf.mxu3  ;;  %v1098_v32 = vpop.f32.mrf.mxu1 }
 0x136   : > { %v1123_v33 = vadd.f32 %v1122_v60, %v1110_v29 }
 0x138   : > { %v1127_v34 = vadd.f32 %v1123_v33, %v621_v31  ;;  %1133 = sbr.rel (%p1569_p13) target bundleno = 331 (0x14b), region = 82 }
 0x13a   : > { %1129 = vst [vmem:[#allocation2 + $0x8] sm:$0xff] %v1127_v34 }
 0x13b   : > { %v1111_v35 = vpop.f32.mrf.mxu2 }
 0x13c   : > { %v1124_v36 = vpop.f32.mrf.mxu3 }
 0x13d   : > { %v1134_v37 = vld [vmem:[#allocation2] sm:$0xff] }
 0x13e   : > { %v1136_v39 = vld [vmem:[%s592_s15] sm:$0x3] }
 0x13f   : > { %v1138_v40 = vperm.slane %v1136_v39, 0  ;;  %v1139_v41 = vperm.slane %v1136_v39, 1  ;;  %v1144_v42 = vld [vmem:[%s1988_s18] sm:$0xff] }
 0x140   : > { %v1145_v43 = vunpack.c.l.bf16 %v1144_v42  ;;  %v1146_v44 = vunpack.c.h.bf16 %v1144_v42 }
 0x141   : > { %v1135_v38 = vld [vmem:[#allocation2 + $0x8] sm:$0xff]  ;;  %v1142_v45 = vadd.f32 %v1138_v40, %v1134_v37 }
 0x142   : > { %v1143_v46 = vadd.f32 %v1139_v41, %v1135_v38 }
 0x143   : > { %v1147_v47 = vadd.f32 %v1145_v43, %v1142_v45 }
 0x144   : > { %v1148_v48 = vadd.f32 %v1146_v44, %v1143_v46 }
 0x145   : > { %v1149_v49 = vmax.f32 %v1147_v47, 0.0 }
 0x146   : > { %v1150_v50 = vmax.f32 %v1148_v48, 0.0 }
 0x148   : > { %v1151_v51 = vpack.c.bf16 %v1150_v50, %v1149_v49 }
 0x14a   : > { %1152 = vst [vmem:[%s1993_s12] sm:$0xff] %v1151_v51 }
 0x14b PF: > { %s14_s21 = sadd.s32 1, %s1748_s21   ;;  %s2178_s15 = smov %s1728_s16 }
 0x14c   : > { %p11_p0 = scmp.ge.s32.totalorder %s14_s21, 20   ;;  %s2179_s16 = smov %s1827_s28 }
 0x14d   : > { %s2180_s17 = smov %s1740_s19  ;;  %s2181_s18 = smov %s1744_s20 }
 0x14e   : > { %s2182_s19 = smov %s2185_s22  ;;  %s2183_s20 = smov %s2189_s23 }
 0x14f   :  { %13 = sbr.rel (!%p11_p0) target bundleno = 4 (0x4), region = 126 }

// kernel: resnet18_forward.44
= control target key start
LH: loop header
LB: loop body
LE: loop exit
PB: predicated region body
PF: predicated region fallthrough
CT: control target
= control target key end

     0   :  { %s248_s6 = smov 0   ;;  %s281_s0 = inlined_call_operand.vmem [shape: bf16[2,1,512], index: 0, kind: input, shape index: {}]   ;;  %s282_s1 = inlined_call_operand.vmem [shape: bf16[2,1,512], index: 1, kind: output, shape index: {}]  }
   0x1 LB: > { %s213_s7 = sadd.s32 4294967295, %s236_s6   ;;  %p217_p0 = scmp.ge.s32.totalorder %s236_s6, 1  ;;  %s236_s6 = sphi %s248_s6, %s11_s6  }
   0x2   : > { %p86_p1 = scmp.lt.s32.totalorder %s236_s6, 3 }
   0x4   : > { %p87_p2 = pnand %p217_p0, %p86_p1 }
   0x5   : > { %p104_p3 = scmp.lt.s32.totalorder (!%p87_p2), %s213_s7, 1 }
   0x6   : > { %90 = sbr.rel (%p87_p2) target bundleno = 28 (0x1c), region = 24 }
   0xb   : > { %vm131_vm0 = vcmask 1040384   ;;  %vm143_vm1 = vsmask.f32 256  ;;  %vm145_vm2 = vcmask 1041409   ;;  %vm146_vm3 = vsmask.f32 1280 }
   0xc   : > { %s288_s7 = smov (!%p104_p3, %s213_s7), 1  ;;  %vm257_vm4 = vmand %vm131_vm0, %vm143_vm1  ;;  %vm135_vm6 = vcmask 1042434   ;;  %vm150_vm7 = vsmask.f32 2304  ;;  %vm153_vm10 = vcmask 1043459   ;;  %vm139_vm14 = vcmask 1041408  }
   0xd   : > { %vm261_vm5 = vmand %vm145_vm2, %vm146_vm3  ;;  %s218_s8 = sshll.u32 %s288_s7, 2  ;;  %vm154_vm11 = vsmask.f32 3328 }
   0xe   : > { %s107_s11 = scalar_lea.vmem %s281_s0, %s218_s8  ;;  %vm148_vm8 = vmor %vm261_vm5, %vm257_vm4  ;;  %s111_s14 = scalar_lea.vmem %s282_s1, %s218_s8 }
   0xf   : > { %v112_v2 = vld [vmem:[%s107_s11] sm:$0xf]  ;;  %vm151_vm9 = vmand %vm135_vm6, %vm150_vm7 }
  0x10   : > { %v113_v3 = vunpack.c.l.bf16 %v112_v2  ;;  %vm152_vm12 = vmor %vm151_vm9, %vm148_vm8  ;;  %v157_v13 = vld [vmem:[%s111_s14] sm:$0xf] }
  0x11   : > { %vm155_vm13 = vmand %vm153_vm10, %vm154_vm11 }
  0x12   : > { %v116_v4 = vperm.slane %v113_v3, 0  ;;  %v117_v5 = vperm.slane %v113_v3, 2  ;;  %v118_v6 = vperm.slane %v113_v3, 4  ;;  %v119_v7 = vperm.slane %v113_v3, 6  ;;  %vm156_vm15 = vmor %vm155_vm13, %vm152_vm12 }
  0x14   : > { %v124_v8 = vpack.c.bf16 %v117_v5, %v116_v4  ;;  %v125_v9 = vpack.c.bf16 %v119_v7, %v118_v6 }
  0x16   : > { %v128_v10 = vrot.slane %v124_v8, 3  ;;  %v129_v11 = vrot.slane %v125_v9, 6  ;;  %v130_v12 = vrot.slane %v125_v9, 1 }
  0x18   : > { %v134_v14 = vsel %vm131_vm0, %v124_v8, %v128_v10  ;;  %v138_v15 = vsel %vm135_vm6, %v129_v11, %v130_v12 }
  0x19   : > { %v140_v16 = vsel %vm139_vm14, %v134_v14, %v138_v15 }
  0x1a   : > { %v158_v17 = vsel %vm156_vm15, %v140_v16, %v157_v13 }
  0x1b   : > { %159 = vst [vmem:[%s111_s14] sm:$0xf] %v158_v17 }
  0x1c PF: > { %s11_s6 = sadd.s32 1, %s236_s6  }
  0x1d   : > { %p8_p4 = scmp.ge.s32.totalorder %s11_s6, 4  }
  0x1f   :  { %10 = sbr.rel (!%p8_p4) target bundleno = 1 (0x1), region = 54 }

// kernel: resnet18_forward.42
= control target key start
LH: loop header
LB: loop body
LE: loop exit
PB: predicated region body
PF: predicated region fallthrough
CT: control target
= control target key end

     0   :  { %s1683_s12 = smov 0   ;;  %s1685_s13 = smov 0   ;;  %s2074_s0 = inlined_call_operand.vmem [shape: bf16[8,4608], index: 0, kind: input, shape index: {}]   ;;  %s2075_s1 = inlined_call_operand.vmem [shape: bf16[4608,512], index: 1, kind: input, shape index: {}]   ;;  %s2076_s2 = inlined_call_operand.vmem [shape: f32[1,512], index: 2, kind: input, shape index: {}]   ;;  %s2077_s3 = inlined_call_operand.vmem [shape: bf16[8,512], index: 3, kind: output, shape index: {}]  }
   0x1   :  { %s1687_s14 = smov 0   ;;  %s1689_s15 = smov 0  }
   0x2   :  { %s1691_s16 = smov 0   ;;  %s1693_s17 = smov 0  }
   0x3   :  { %s1695_s18 = smov 0  }
   0x4 LB: > { %s25_s19 = sadd.s32 1, %s1652_s16  ;;  %s28_s20 = sadd.s32 1, %s1656_s17  ;;  %s1660_s18 = sphi %s1695_s18, %s13_s18   ;;  %s1656_s17 = sphi %s1693_s17, %s2083_s17   ;;  %s1652_s16 = sphi %s1691_s16, %s2082_s16   ;;  %s1648_s15 = sphi %s1689_s15, %s2081_s15   ;;  %s1644_s14 = sphi %s1687_s14, %s2080_s14   ;;  %s1640_s13 = sphi %s1685_s13, %s2079_s13   ;;  %s1636_s12 = sphi %s1683_s12, %s2078_s12  }
   0x5   : > { %p26_p0 = scmp.ge.s32.totalorder %s25_s19, 9  ;;  %p76_p1 = scmp.ne.s32.totalorder %s1640_s13, %s1636_s12 }
   0x6   : > { %p77_p2 = scmp.eq.s32.totalorder %s1660_s18, 0  ;;  %s69_s24 = sadd.s32 1, %s1640_s13 }
   0x7   : > { %s2085_s19 = smov (%p26_p0, %s25_s19), 0  ;;  %s2087_s20 = smov (!%p26_p0, %s28_s20), %s1656_s17 }
   0x8   : > { %p78_p3 = por %p77_p2, %p76_p1  ;;  %p30_p4 = scmp.ge.s32.totalorder %s2087_s20, 2 }
   0x9   : > { %s64_s21 = ssub.s32 %s1652_s16, %s2085_s19  ;;  %p1211_p6 = scmp.ge.s32.totalorder %s1660_s18, 18 }
   0xa   : > { %s2089_s20 = smov (%p30_p4, %s2087_s20), 0 }
   0xb   : > { %s65_s22 = ssub.s32 %s1656_s17, %s2089_s20  ;;  %156 = sbr.rel (%p1211_p6) target bundleno = 87 (0x57), region = 16 }
   0xc   : > { %s66_s23 = sor.u32 %s65_s22, %s64_s21 }
   0xd   : > { %p67_p5 = scmp.eq.s32.totalorder %s66_s23, 0 }
   0xf   : > { %s1734_s25 = scalar_select %p67_p5, %s1640_s13, %s69_s24  }
  0x10   : > { %172 = sbr.rel (!%p78_p3) target bundleno = 87 (0x57), region = 24  ;;  %s174_s26 = sand.u32 (%p78_p3), 1, %s1640_s13  }
  0x11   : > { %s1214_s27 = sshll.u32 (%p78_p3), %s1656_s17, 1  ;;  %s1212_s28 = sshll.u32 (%p78_p3), %s174_s26, 9 }
  0x12   : > { %s1484_s29 = sshll.u32 (%p78_p3), %s1652_s16, 8  ;;  %s1748_s8 = scalar_lea.vmem (%p78_p3), [#allocation3], %s1212_s28 }
  0x13   : > { %s180_s30 = sadd.s32 (%p78_p3), %s1484_s29, %s1214_s27 }
  0x14   : > { %s1216_s4 = sshll.u32 (%p78_p3), %s180_s30, 2 }
  0x15   : > { %s1743_s7 = scalar_lea.vmem %s2075_s1, %s1216_s4 }
  0x16   : > { %v337_v0 = vld [vmem:[%s1743_s7] sm:$0xff]  ;;  %v339_v1 = vld [vmem:[%s1743_s7 + $0x10] sm:$0xff] }
  0x17   : > { %v341_v2 = vld [vmem:[%s1743_s7 + $0x20] sm:$0xff]  ;;  %338 = vst [vmem:[%s1748_s8] sm:$0xff] %v337_v0  ;;  %v343_v3 = vld [vmem:[%s1743_s7 + $0x30] sm:$0xff] }
  0x18   : > { %340 = vst [vmem:[%s1748_s8 + $0x8] sm:$0xff] %v339_v1  ;;  %v345_v4 = vld [vmem:[%s1743_s7 + $0x40] sm:$0xff]  ;;  %v347_v5 = vld [vmem:[%s1743_s7 + $0x50] sm:$0xff] }
  0x19   : > { %342 = vst [vmem:[%s1748_s8 + $0x10] sm:$0xff] %v341_v2  ;;  %v349_v6 = vld [vmem:[%s1743_s7 + $0x60] sm:$0xff]  ;;  %v351_v7 = vld [vmem:[%s1743_s7 + $0x70] sm:$0xff] }
  0x1a   : > { %344 = vst [vmem:[%s1748_s8 + $0x18] sm:$0xff] %v343_v3  ;;  %v353_v8 = vld [vmem:[%s1743_s7 + $0x80] sm:$0xff]  ;;  %v355_v9 = vld [vmem:[%s1743_s7 + $0x90] sm:$0xff] }
  0x1b   : > { %346 = vst [vmem:[%s1748_s8 + $0x20] sm:$0xff] %v345_v4  ;;  %v357_v10 = vld [vmem:[%s1743_s7 + $0xa0] sm:$0xff]  ;;  %v359_v11 = vld [vmem:[%s1743_s7 + $0xb0] sm:$0xff] }
  0x1c   : > { %348 = vst [vmem:[%s1748_s8 + $0x28] sm:$0xff] %v347_v5  ;;  %v361_v12 = vld [vmem:[%s1743_s7 + $0xc0] sm:$0xff]  ;;  %v363_v13 = vld [vmem:[%s1743_s7 + $0xd0] sm:$0xff] }
  0x1d   : > { %350 = vst [vmem:[%s1748_s8 + $0x30] sm:$0xff] %v349_v6  ;;  %v365_v14 = vld [vmem:[%s1743_s7 + $0xe0] sm:$0xff]  ;;  %v367_v15 = vld [vmem:[%s1743_s7 + $0xf0] sm:$0xff] }
  0x1e   : > { %352 = vst [vmem:[%s1748_s8 + $0x38] sm:$0xff] %v351_v7  ;;  %v369_v16 = vld [vmem:[%s1743_s7 + $0x100] sm:$0xff]  ;;  %v371_v17 = vld [vmem:[%s1743_s7 + $0x110] sm:$0xff] }
  0x1f   : > { %354 = vst [vmem:[%s1748_s8 + $0x40] sm:$0xff] %v353_v8  ;;  %v373_v18 = vld [vmem:[%s1743_s7 + $0x120] sm:$0xff]  ;;  %v375_v19 = vld [vmem:[%s1743_s7 + $0x130] sm:$0xff] }
  0x20   : > { %356 = vst [vmem:[%s1748_s8 + $0x48] sm:$0xff] %v355_v9  ;;  %v377_v20 = vld [vmem:[%s1743_s7 + $0x140] sm:$0xff]  ;;  %v379_v21 = vld [vmem:[%s1743_s7 + $0x150] sm:$0xff] }
  0x21   : > { %358 = vst [vmem:[%s1748_s8 + $0x50] sm:$0xff] %v357_v10  ;;  %v381_v22 = vld [vmem:[%s1743_s7 + $0x160] sm:$0xff]  ;;  %v383_v23 = vld [vmem:[%s1743_s7 + $0x170] sm:$0xff] }
  0x22   : > { %360 = vst [vmem:[%s1748_s8 + $0x58] sm:$0xff] %v359_v11  ;;  %v385_v24 = vld [vmem:[%s1743_s7 + $0x180] sm:$0xff]  ;;  %v387_v25 = vld [vmem:[%s1743_s7 + $0x190] sm:$0xff] }
  0x23   : > { %362 = vst [vmem:[%s1748_s8 + $0x60] sm:$0xff] %v361_v12  ;;  %v389_v26 = vld [vmem:[%s1743_s7 + $0x1a0] sm:$0xff]  ;;  %v391_v27 = vld [vmem:[%s1743_s7 + $0x1b0] sm:$0xff] }
  0x24   : > { %364 = vst [vmem:[%s1748_s8 + $0x68] sm:$0xff] %v363_v13  ;;  %v393_v28 = vld [vmem:[%s1743_s7 + $0x1c0] sm:$0xff]  ;;  %v395_v29 = vld [vmem:[%s1743_s7 + $0x1d0] sm:$0xff] }
  0x25   : > { %366 = vst [vmem:[%s1748_s8 + $0x70] sm:$0xff] %v365_v14  ;;  %v397_v30 = vld [vmem:[%s1743_s7 + $0x1e0] sm:$0xff]  ;;  %v399_v31 = vld [vmem:[%s1743_s7 + $0x1f0] sm:$0xff] }
  0x26   : > { %368 = vst [vmem:[%s1748_s8 + $0x78] sm:$0xff] %v367_v15  ;;  %v401_v32 = vld [vmem:[%s1743_s7 + $0x200] sm:$0xff]  ;;  %v403_v33 = vld [vmem:[%s1743_s7 + $0x210] sm:$0xff] }
  0x27   : > { %370 = vst [vmem:[%s1748_s8 + $0x80] sm:$0xff] %v369_v16  ;;  %v405_v34 = vld [vmem:[%s1743_s7 + $0x220] sm:$0xff]  ;;  %v407_v35 = vld [vmem:[%s1743_s7 + $0x230] sm:$0xff] }
  0x28   : > { %372 = vst [vmem:[%s1748_s8 + $0x88] sm:$0xff] %v371_v17  ;;  %v409_v36 = vld [vmem:[%s1743_s7 + $0x240] sm:$0xff]  ;;  %v411_v37 = vld [vmem:[%s1743_s7 + $0x250] sm:$0xff] }
  0x29   : > { %374 = vst [vmem:[%s1748_s8 + $0x90] sm:$0xff] %v373_v18  ;;  %v413_v38 = vld [vmem:[%s1743_s7 + $0x260] sm:$0xff]  ;;  %v415_v39 = vld [vmem:[%s1743_s7 + $0x270] sm:$0xff] }
  0x2a   : > { %376 = vst [vmem:[%s1748_s8 + $0x98] sm:$0xff] %v375_v19  ;;  %v417_v40 = vld [vmem:[%s1743_s7 + $0x280] sm:$0xff]  ;;  %v419_v41 = vld [vmem:[%s1743_s7 + $0x290] sm:$0xff] }
  0x2b   : > { %378 = vst [vmem:[%s1748_s8 + $0xa0] sm:$0xff] %v377_v20  ;;  %v421_v42 = vld [vmem:[%s1743_s7 + $0x2a0] sm:$0xff]  ;;  %v423_v43 = vld [vmem:[%s1743_s7 + $0x2b0] sm:$0xff] }
  0x2c   : > { %380 = vst [vmem:[%s1748_s8 + $0xa8] sm:$0xff] %v379_v21  ;;  %v425_v44 = vld [vmem:[%s1743_s7 + $0x2c0] sm:$0xff]  ;;  %v427_v45 = vld [vmem:[%s1743_s7 + $0x2d0] sm:$0xff] }
  0x2d   : > { %382 = vst [vmem:[%s1748_s8 + $0xb0] sm:$0xff] %v381_v22  ;;  %v429_v46 = vld [vmem:[%s1743_s7 + $0x2e0] sm:$0xff]  ;;  %v431_v47 = vld [vmem:[%s1743_s7 + $0x2f0] sm:$0xff] }
  0x2e   : > { %384 = vst [vmem:[%s1748_s8 + $0xb8] sm:$0xff] %v383_v23  ;;  %v433_v48 = vld [vmem:[%s1743_s7 + $0x300] sm:$0xff]  ;;  %v435_v49 = vld [vmem:[%s1743_s7 + $0x310] sm:$0xff] }
  0x2f   : > { %386 = vst [vmem:[%s1748_s8 + $0xc0] sm:$0xff] %v385_v24  ;;  %v437_v50 = vld [vmem:[%s1743_s7 + $0x320] sm:$0xff]  ;;  %v439_v51 = vld [vmem:[%s1743_s7 + $0x330] sm:$0xff] }
  0x30   : > { %388 = vst [vmem:[%s1748_s8 + $0xc8] sm:$0xff] %v387_v25  ;;  %v441_v52 = vld [vmem:[%s1743_s7 + $0x340] sm:$0xff]  ;;  %v443_v53 = vld [vmem:[%s1743_s7 + $0x350] sm:$0xff] }
  0x31   : > { %390 = vst [vmem:[%s1748_s8 + $0xd0] sm:$0xff] %v389_v26  ;;  %v445_v54 = vld [vmem:[%s1743_s7 + $0x360] sm:$0xff]  ;;  %v447_v55 = vld [vmem:[%s1743_s7 + $0x370] sm:$0xff] }
  0x32   : > { %392 = vst [vmem:[%s1748_s8 + $0xd8] sm:$0xff] %v391_v27  ;;  %v449_v56 = vld [vmem:[%s1743_s7 + $0x380] sm:$0xff]  ;;  %v451_v57 = vld [vmem:[%s1743_s7 + $0x390] sm:$0xff] }
  0x33   : > { %394 = vst [vmem:[%s1748_s8 + $0xe0] sm:$0xff] %v393_v28  ;;  %v453_v58 = vld [vmem:[%s1743_s7 + $0x3a0] sm:$0xff]  ;;  %v455_v59 = vld [vmem:[%s1743_s7 + $0x3b0] sm:$0xff] }
  0x34   : > { %396 = vst [vmem:[%s1748_s8 + $0xe8] sm:$0xff] %v395_v29  ;;  %v457_v60 = vld [vmem:[%s1743_s7 + $0x3c0] sm:$0xff]  ;;  %v459_v61 = vld [vmem:[%s1743_s7 + $0x3d0] sm:$0xff] }
  0x35   : > { %398 = vst [vmem:[%s1748_s8 + $0xf0] sm:$0xff] %v397_v30  ;;  %v461_v62 = vld [vmem:[%s1743_s7 + $0x3e0] sm:$0xff]  ;;  %v463_v63 = vld [vmem:[%s1743_s7 + $0x3f0] sm:$0xff] }
  0x36   : > { %400 = vst [vmem:[%s1748_s8 + $0xf8] sm:$0xff] %v399_v31 }
  0x37   : > { %402 = vst [vmem:[%s1748_s8 + $0x100] sm:$0xff] %v401_v32 }
  0x38   : > { %404 = vst [vmem:[%s1748_s8 + $0x108] sm:$0xff] %v403_v33 }
  0x39   : > { %406 = vst [vmem:[%s1748_s8 + $0x110] sm:$0xff] %v405_v34 }
  0x3a   : > { %408 = vst [vmem:[%s1748_s8 + $0x118] sm:$0xff] %v407_v35 }
  0x3b   : > { %410 = vst [vmem:[%s1748_s8 + $0x120] sm:$0xff] %v409_v36 }
  0x3c   : > { %412 = vst [vmem:[%s1748_s8 + $0x128] sm:$0xff] %v411_v37 }
  0x3d   : > { %414 = vst [vmem:[%s1748_s8 + $0x130] sm:$0xff] %v413_v38 }
  0x3e   : > { %416 = vst [vmem:[%s1748_s8 + $0x138] sm:$0xff] %v415_v39 }
  0x3f   : > { %418 = vst [vmem:[%s1748_s8 + $0x140] sm:$0xff] %v417_v40 }
  0x40   : > { %420 = vst [vmem:[%s1748_s8 + $0x148] sm:$0xff] %v419_v41 }
  0x41   : > { %422 = vst [vmem:[%s1748_s8 + $0x150] sm:$0xff] %v421_v42 }
  0x42   : > { %424 = vst [vmem:[%s1748_s8 + $0x158] sm:$0xff] %v423_v43 }
  0x43   : > { %426 = vst [vmem:[%s1748_s8 + $0x160] sm:$0xff] %v425_v44 }
  0x44   : > { %428 = vst [vmem:[%s1748_s8 + $0x168] sm:$0xff] %v427_v45 }
  0x45   : > { %430 = vst [vmem:[%s1748_s8 + $0x170] sm:$0xff] %v429_v46 }
  0x46   : > { %432 = vst [vmem:[%s1748_s8 + $0x178] sm:$0xff] %v431_v47 }
  0x47   : > { %434 = vst [vmem:[%s1748_s8 + $0x180] sm:$0xff] %v433_v48 }
  0x48   : > { %436 = vst [vmem:[%s1748_s8 + $0x188] sm:$0xff] %v435_v49 }
  0x49   : > { %438 = vst [vmem:[%s1748_s8 + $0x190] sm:$0xff] %v437_v50 }
  0x4a   : > { %440 = vst [vmem:[%s1748_s8 + $0x198] sm:$0xff] %v439_v51 }
  0x4b   : > { %442 = vst [vmem:[%s1748_s8 + $0x1a0] sm:$0xff] %v441_v52 }
  0x4c   : > { %444 = vst [vmem:[%s1748_s8 + $0x1a8] sm:$0xff] %v443_v53 }
  0x4d   : > { %446 = vst [vmem:[%s1748_s8 + $0x1b0] sm:$0xff] %v445_v54 }
  0x4e   : > { %448 = vst [vmem:[%s1748_s8 + $0x1b8] sm:$0xff] %v447_v55 }
  0x4f   : > { %450 = vst [vmem:[%s1748_s8 + $0x1c0] sm:$0xff] %v449_v56 }
  0x50   : > { %452 = vst [vmem:[%s1748_s8 + $0x1c8] sm:$0xff] %v451_v57 }
  0x51   : > { %454 = vst [vmem:[%s1748_s8 + $0x1d0] sm:$0xff] %v453_v58 }
  0x52   : > { %456 = vst [vmem:[%s1748_s8 + $0x1d8] sm:$0xff] %v455_v59 }
  0x53   : > { %458 = vst [vmem:[%s1748_s8 + $0x1e0] sm:$0xff] %v457_v60 }
  0x54   : > { %460 = vst [vmem:[%s1748_s8 + $0x1e8] sm:$0xff] %v459_v61 }
  0x55   : > { %462 = vst [vmem:[%s1748_s8 + $0x1f0] sm:$0xff] %v461_v62 }
  0x56   : > { %464 = vst [vmem:[%s1748_s8 + $0x1f8] sm:$0xff] %v463_v63 }
  0x57 PF: > { %p1217_p7 = scmp.ge.s32.totalorder %s1660_s18, 1  ;;  %p477_p8 = scmp.lt.s32.totalorder %s1660_s18, 19 }
  0x59   : > { %p478_p9 = pnand %p1217_p7, %p477_p8 }
  0x5a   : > { %s484_s9 = sand.u32 (!%p478_p9), 1, %s1636_s12   ;;  %s1219_s10 = sshll.u32 (!%p478_p9), %s1644_s14, 2 }
  0x5b   : > { %481 = sbr.rel (%p478_p9) target bundleno = 328 (0x148), region = 66  ;;  %s1218_s11 = sshll.u32 (!%p478_p9), %s484_s9, 9 }
  0x5c   : > { %p527_p10 = scmp.lt.s32.totalorder (!%p478_p9), %s1219_s10, 35  ;;  %s1221_s21 = sshll.u32 (!%p478_p9), %s1648_s15, 1 }
  0x5d   : > { %p537_p11 = scmp.lt.s32.totalorder (!%p478_p9), %s1221_s21, 3  ;;  %s1897_s5 = scalar_lea.vmem (!%p478_p9), [#allocation3], %s1218_s11 }
  0x5e   : > { %p1224_p12 = scmp.ne.s32.totalorder (!%p478_p9), %s1644_s14, 0 }
  0x60   : > { %s2091_s10 = smov (!%p527_p10, %s1219_s10), 35  ;;  %s2093_s21 = smov (!%p537_p11, %s1221_s21), 3 }
  0x61   : > { %s1220_s22 = sshll.u32 %s2091_s10, 2  ;;  %s539_s12 = scalar_lea.vmem %s2076_s2, %s2093_s21 }
  0x62   : > { %s1883_s26 = scalar_lea.vmem %s2074_s0, %s1220_s22  ;;  %s1223_s29 = sshll.u32 %s2093_s21, 2 }
  0x63   : > { %s1895_s15 = scalar_lea.vmem %s2077_s3, %s1223_s29  ;;  %554 = sbr.rel (%p1224_p12) target bundleno = 107 (0x6b), region = 74 }
  0x68   : > { %v1662_v0 = vmov 0.0  }
  0x69   : > { %555 = vst [vmem:[#allocation2] sm:$0xff] %v1662_v0 }
  0x6a   : > { %556 = vst [vmem:[#allocation2 + $0x8] sm:$0xff] %v1662_v0 }
  0x6b PF: > { %v1283_v1 = vld [vmem:[%s1897_s5 + $0x70] sm:$0xf]  ;;  %v1500_v2 = vld [vmem:[%s1897_s5 + $0x74] sm:$0xf0]  ;;  %v1275_v12 = vld [vmem:[%s1897_s5 + $0x60] sm:$0xf] }
  0x6c   : > { %v1347_v3 = vld [vmem:[%s1897_s5 + $0xf0] sm:$0xf]  ;;  %v1284_v4 = vor.u32 %v1500_v2, %v1283_v1  ;;  %v1516_v5 = vld [vmem:[%s1897_s5 + $0xf4] sm:$0xf0]  ;;  %v1498_v14 = vld [vmem:[%s1897_s5 + $0x64] sm:$0xf0] }
  0x6d   : > { %v1411_v6 = vld [vmem:[%s1897_s5 + $0x170] sm:$0xf]  ;;  %v1532_v7 = vld [vmem:[%s1897_s5 + $0x174] sm:$0xf0]  ;;  %v1348_v8 = vor.u32 %v1516_v5, %v1347_v3  ;;  %v1339_v15 = vld [vmem:[%s1897_s5 + $0xe0] sm:$0xf]  ;;  %v1276_v17 = vor.u32 %v1498_v14, %v1275_v12 }
  0x6e   : > { %v1412_v9 = vor.u32 %v1532_v7, %v1411_v6  ;;  %v1475_v10 = vld [vmem:[%s1897_s5 + $0x1f0] sm:$0xf]  ;;  %v1548_v11 = vld [vmem:[%s1897_s5 + $0x1f4] sm:$0xf0]  ;;  %959 = vmatpush.bf16.msra.mxu0 %v1284_v4  ;;  %v1514_v16 = vld [vmem:[%s1897_s5 + $0xe4] sm:$0xf0] }
  0x6f   : > { %v1476_v13 = vor.u32 %v1548_v11, %v1475_v10  ;;  %972 = vmatpush.bf16.msra.mxu1 %v1348_v8  ;;  %v1340_v18 = vor.u32 %v1514_v16, %v1339_v15  ;;  %v1403_v19 = vld [vmem:[%s1897_s5 + $0x160] sm:$0xf]  ;;  %v1530_v20 = vld [vmem:[%s1897_s5 + $0x164] sm:$0xf0]  ;;  %v1267_v24 = vld [vmem:[%s1897_s5 + $0x50] sm:$0xf] }
  0x70   : > { %985 = vmatpush.bf16.msra.mxu2 %v1412_v9  ;;  %v1467_v21 = vld [vmem:[%s1897_s5 + $0x1e0] sm:$0xf]  ;;  %v1404_v22 = vor.u32 %v1530_v20, %v1403_v19  ;;  %v1546_v23 = vld [vmem:[%s1897_s5 + $0x1e4] sm:$0xf0]  ;;  %v1496_v25 = vld [vmem:[%s1897_s5 + $0x54] sm:$0xf0] }
  0x71   : > { %998 = vmatpush.bf16.msra.mxu3 %v1476_v13  ;;  %v1468_v26 = vor.u32 %v1546_v23, %v1467_v21  ;;  %v1331_v27 = vld [vmem:[%s1897_s5 + $0xd0] sm:$0xf]  ;;  %v1512_v28 = vld [vmem:[%s1897_s5 + $0xd4] sm:$0xf0]  ;;  %v1268_v30 = vor.u32 %v1496_v25, %v1267_v24  ;;  %v1259_v36 = vld [vmem:[%s1897_s5 + $0x40] sm:$0xf] }
  0x72   : > { %v1395_v29 = vld [vmem:[%s1897_s5 + $0x150] sm:$0xf]  ;;  %960 = vmatpush.bf16.msra.mxu0 %v1276_v17  ;;  %v1528_v31 = vld [vmem:[%s1897_s5 + $0x154] sm:$0xf0]  ;;  %v1332_v34 = vor.u32 %v1512_v28, %v1331_v27  ;;  %v1494_v37 = vld [vmem:[%s1897_s5 + $0x44] sm:$0xf0] }
  0x73   : > { %v1459_v32 = vld [vmem:[%s1897_s5 + $0x1d0] sm:$0xf]  ;;  %v1544_v33 = vld [vmem:[%s1897_s5 + $0x1d4] sm:$0xf0]  ;;  %973 = vmatpush.bf16.msra.mxu1 %v1340_v18  ;;  %v1396_v35 = vor.u32 %v1528_v31, %v1395_v29  ;;  %v1323_v38 = vld [vmem:[%s1897_s5 + $0xc0] sm:$0xf]  ;;  %v1260_v45 = vor.u32 %v1494_v37, %v1259_v36 }
  0x74   : > { %986 = vmatpush.bf16.msra.mxu2 %v1404_v22  ;;  %v1460_v39 = vor.u32 %v1544_v33, %v1459_v32  ;;  %v1510_v40 = vld [vmem:[%s1897_s5 + $0xc4] sm:$0xf0]  ;;  %v1387_v41 = vld [vmem:[%s1897_s5 + $0x140] sm:$0xf]  ;;  %v1251_v48 = vld [vmem:[%s1897_s5 + $0x30] sm:$0xf] }
  0x75   : > { %999 = vmatpush.bf16.msra.mxu3 %v1468_v26  ;;  %v1526_v42 = vld [vmem:[%s1897_s5 + $0x144] sm:$0xf0]  ;;  %v1451_v43 = vld [vmem:[%s1897_s5 + $0x1c0] sm:$0xf]  ;;  %v1324_v46 = vor.u32 %v1510_v40, %v1323_v38  ;;  %v1492_v49 = vld [vmem:[%s1897_s5 + $0x34] sm:$0xf0] }
  0x76   : > { %v1542_v44 = vld [vmem:[%s1897_s5 + $0x1c4] sm:$0xf0]  ;;  %961 = vmatpush.bf16.msra.mxu0 %v1268_v30  ;;  %v1388_v47 = vor.u32 %v1526_v42, %v1387_v41  ;;  %v1315_v50 = vld [vmem:[%s1897_s5 + $0xb0] sm:$0xf]  ;;  %v1508_v52 = vld [vmem:[%s1897_s5 + $0xb4] sm:$0xf0]  ;;  %v1252_v57 = vor.u32 %v1492_v49, %v1251_v48 }
  0x77   : > { %974 = vmatpush.bf16.msra.mxu1 %v1332_v34  ;;  %v1452_v51 = vor.u32 %v1542_v44, %v1451_v43  ;;  %v1379_v53 = vld [vmem:[%s1897_s5 + $0x130] sm:$0xf]  ;;  %v1524_v54 = vld [vmem:[%s1897_s5 + $0x134] sm:$0xf0]  ;;  %v1316_v58 = vor.u32 %v1508_v52, %v1315_v50  ;;  %v1243_v60 = vld [vmem:[%s1897_s5 + $0x20] sm:$0xf] }
  0x78   : > { %987 = vmatpush.bf16.msra.mxu2 %v1396_v35  ;;  %v1443_v55 = vld [vmem:[%s1897_s5 + $0x1b0] sm:$0xf]  ;;  %v1540_v56 = vld [vmem:[%s1897_s5 + $0x1b4] sm:$0xf0]  ;;  %v1380_v59 = vor.u32 %v1524_v54, %v1379_v53  ;;  %v1490_v61 = vld [vmem:[%s1897_s5 + $0x24] sm:$0xf0] }
  0x79   : > { %1000 = vmatpush.bf16.msra.mxu3 %v1460_v39  ;;  %v1307_v62 = vld [vmem:[%s1897_s5 + $0xa0] sm:$0xf]  ;;  %v1444_v63 = vor.u32 %v1540_v56, %v1443_v55  ;;  %v1506_v0 = vld [vmem:[%s1897_s5 + $0xa4] sm:$0xf0]  ;;  %v1244_v5 = vor.u32 %v1490_v61, %v1243_v60  ;;  %v1235_v8 = vld [vmem:[%s1897_s5 + $0x10] sm:$0xf] }
  0x7a   : > { %962 = vmatpush.bf16.msra.mxu0 %v1260_v45  ;;  %v1371_v1 = vld [vmem:[%s1897_s5 + $0x120] sm:$0xf]  ;;  %v1522_v2 = vld [vmem:[%s1897_s5 + $0x124] sm:$0xf0]  ;;  %v1308_v6 = vor.u32 %v1506_v0, %v1307_v62  ;;  %v1488_v9 = vld [vmem:[%s1897_s5 + $0x14] sm:$0xf0] }
  0x7b   : > { %975 = vmatpush.bf16.msra.mxu1 %v1324_v46  ;;  %v1435_v3 = vld [vmem:[%s1897_s5 + $0x1a0] sm:$0xf]  ;;  %v1538_v4 = vld [vmem:[%s1897_s5 + $0x1a4] sm:$0xf0]  ;;  %v1372_v7 = vor.u32 %v1522_v2, %v1371_v1  ;;  %v1299_v10 = vld [vmem:[%s1897_s5 + $0x90] sm:$0xf]  ;;  %v1236_v17 = vor.u32 %v1488_v9, %v1235_v8 }
  0x7c   : > { %988 = vmatpush.bf16.msra.mxu2 %v1388_v47  ;;  %v1436_v11 = vor.u32 %v1538_v4, %v1435_v3  ;;  %v1504_v12 = vld [vmem:[%s1897_s5 + $0x94] sm:$0xf0]  ;;  %v1363_v13 = vld [vmem:[%s1897_s5 + $0x110] sm:$0xf]  ;;  %v1227_v18 = vld [vmem:[%s1897_s5] sm:$0xf] }
  0x7d   : > { %1001 = vmatpush.bf16.msra.mxu3 %v1452_v51  ;;  %v1520_v14 = vld [vmem:[%s1897_s5 + $0x114] sm:$0xf0]  ;;  %v1427_v15 = vld [vmem:[%s1897_s5 + $0x190] sm:$0xf]  ;;  %v1486_v19 = vld [vmem:[%s1897_s5 + $0x4] sm:$0xf0]  ;;  %v1300_v21 = vor.u32 %v1504_v12, %v1299_v10 }
  0x7e   : > { %963 = vmatpush.bf16.msra.mxu0 %v1252_v57  ;;  %v1536_v16 = vld [vmem:[%s1897_s5 + $0x194] sm:$0xf0]  ;;  %v1291_v20 = vld [vmem:[%s1897_s5 + $0x80] sm:$0xf]  ;;  %v1364_v22 = vor.u32 %v1520_v14, %v1363_v13  ;;  %v1502_v23 = vld [vmem:[%s1897_s5 + $0x84] sm:$0xf0]  ;;  %v1228_v33 = vor.u32 %v1486_v19, %v1227_v18 }
  0x7f   : > { %976 = vmatpush.bf16.msra.mxu1 %v1316_v58  ;;  %v1355_v24 = vld [vmem:[%s1897_s5 + $0x100] sm:$0xf]  ;;  %v1518_v25 = vld [vmem:[%s1897_s5 + $0x104] sm:$0xf0]  ;;  %v1428_v26 = vor.u32 %v1536_v16, %v1427_v15  ;;  %v1499_v29 = vld [vmem:[%s1897_s5 + $0x74] sm:$0xf]  ;;  %v1292_v38 = vor.u32 %v1502_v23, %v1291_v20 }
  0x80   : > { %989 = vmatpush.bf16.msra.mxu2 %v1380_v59  ;;  %v1419_v27 = vld [vmem:[%s1897_s5 + $0x180] sm:$0xf]  ;;  %v1534_v28 = vld [vmem:[%s1897_s5 + $0x184] sm:$0xf0]  ;;  %v1285_v30 = vld [vmem:[%s1897_s5 + $0x78] sm:$0xf0]  ;;  %v1356_v39 = vor.u32 %v1518_v25, %v1355_v24 }
  0x81   : > { %1002 = vmatpush.bf16.msra.mxu3 %v1444_v63  ;;  %v1515_v31 = vld [vmem:[%s1897_s5 + $0xf4] sm:$0xf]  ;;  %v560_v32 = vld [vmem:[%s1883_s26 + $0x8] sm:$0xff]  ;;  %v1420_v43 = vor.u32 %v1534_v28, %v1419_v27  ;;  %v1288_v44 = vor.u32 %v1499_v29, %v1285_v30  ;;  %v1497_v48 = vld [vmem:[%s1897_s5 + $0x64] sm:$0xf]  ;;  %p1481_p13 = scmp.ne.s32.totalorder %s1644_s14, 8 }
  0x82   : > { %964 = vmatpush.bf16.msra.mxu0 %v1244_v5  ;;  %v1349_v34 = vld [vmem:[%s1897_s5 + $0xf8] sm:$0xf0]  ;;  %v1531_v35 = vld [vmem:[%s1897_s5 + $0x174] sm:$0xf]  ;;  %v629_v37 = vunpack.c.l.b16 %v560_v32  ;;  %v630_v42 = vunpack.c.h.b16 %v560_v32  ;;  %v1277_v49 = vld [vmem:[%s1897_s5 + $0x68] sm:$0xf0] }
  0x83   : > { %977 = vmatpush.bf16.msra.mxu1 %v1308_v6  ;;  %v1413_v36 = vld [vmem:[%s1897_s5 + $0x178] sm:$0xf0]  ;;  %v1547_v40 = vld [vmem:[%s1897_s5 + $0x1f4] sm:$0xf]  ;;  %v1352_v46 = vor.u32 %v1515_v31, %v1349_v34  ;;  %v1513_v50 = vld [vmem:[%s1897_s5 + $0xe4] sm:$0xf]  ;;  %v1280_v62 = vor.u32 %v1497_v48, %v1277_v49 }
  0x84   : > { %990 = vmatpush.bf16.msra.mxu2 %v1372_v7  ;;  %v1477_v41 = vld [vmem:[%s1897_s5 + $0x1f8] sm:$0xf0]  ;;  %v559_v45 = vld [vmem:[%s1883_s26] sm:$0xff]  ;;  %v1416_v47 = vor.u32 %v1531_v35, %v1413_v36  ;;  %v1341_v54 = vld [vmem:[%s1897_s5 + $0xe8] sm:$0xf0]  ;;  %v1980_v57 = vpack.c.b16 %v629_v37, %v629_v37  ;;  %v1984_v60 = vpack.c.b16 %v630_v42, %v630_v42 }
  0x85   : > { %1003 = vmatpush.bf16.msra.mxu3 %v1436_v11  ;;  %v627_v51 = vunpack.c.l.b16 %v559_v45  ;;  %v628_v52 = vunpack.c.h.b16 %v559_v45  ;;  %v1480_v53 = vor.u32 %v1547_v40, %v1477_v41  ;;  %v1529_v55 = vld [vmem:[%s1897_s5 + $0x164] sm:$0xf]  ;;  %v1405_v56 = vld [vmem:[%s1897_s5 + $0x168] sm:$0xf0]  ;;  %v1344_v0 = vor.u32 %v1513_v50, %v1341_v54  ;;  %v1495_v2 = vld [vmem:[%s1897_s5 + $0x54] sm:$0xf] }
  0x86   : > { %965 = vmatpush.bf16.msra.mxu0 %v1236_v17  ;;  %v1545_v58 = vld [vmem:[%s1897_s5 + $0x1e4] sm:$0xf]  ;;  %v1469_v59 = vld [vmem:[%s1897_s5 + $0x1e8] sm:$0xf0]  ;;  %v1408_v1 = vor.u32 %v1529_v55, %v1405_v56  ;;  %v1269_v3 = vld [vmem:[%s1897_s5 + $0x58] sm:$0xf0] }
  0x87   : > { %978 = vmatpush.bf16.msra.mxu1 %v1300_v21  ;;  %v1986_v61 = vpack.c.b16 %v627_v51, %v627_v51  ;;  %v1988_v63 = vpack.c.b16 %v628_v52, %v628_v52  ;;  %v1511_v4 = vld [vmem:[%s1897_s5 + $0xd4] sm:$0xf]  ;;  %v1472_v5 = vor.u32 %v1545_v58, %v1469_v59  ;;  %v1333_v6 = vld [vmem:[%s1897_s5 + $0xd8] sm:$0xf0]  ;;  %v1272_v11 = vor.u32 %v1495_v2, %v1269_v3  ;;  %v1493_v14 = vld [vmem:[%s1897_s5 + $0x44] sm:$0xf] }
  0x88   : > { %991 = vmatpush.bf16.msra.mxu2 %v1364_v22  ;;  %v1527_v7 = vld [vmem:[%s1897_s5 + $0x154] sm:$0xf]  ;;  %v1397_v8 = vld [vmem:[%s1897_s5 + $0x158] sm:$0xf0]  ;;  %v1336_v12 = vor.u32 %v1511_v4, %v1333_v6  ;;  %v1261_v15 = vld [vmem:[%s1897_s5 + $0x48] sm:$0xf0] }
  0x89   : > { %1004 = vmatpush.bf16.msra.mxu3 %v1428_v26  ;;  %v1543_v9 = vld [vmem:[%s1897_s5 + $0x1d4] sm:$0xf]  ;;  %v1461_v10 = vld [vmem:[%s1897_s5 + $0x1d8] sm:$0xf0]  ;;  %v1400_v13 = vor.u32 %v1527_v7, %v1397_v8  ;;  %v1509_v16 = vld [vmem:[%s1897_s5 + $0xc4] sm:$0xf]  ;;  %v1264_v23 = vor.u32 %v1493_v14, %v1261_v15 }
  0x8a   : > { %966 = vmatpush.bf16.msra.mxu0 %v1228_v33  ;;  %v1464_v17 = vor.u32 %v1543_v9, %v1461_v10  ;;  %v1325_v18 = vld [vmem:[%s1897_s5 + $0xc8] sm:$0xf0]  ;;  %v1525_v19 = vld [vmem:[%s1897_s5 + $0x144] sm:$0xf]  ;;  %v1491_v26 = vld [vmem:[%s1897_s5 + $0x34] sm:$0xf] }
  0x8b   : > { %979 = vmatpush.bf16.msra.mxu1 %v1292_v38  ;;  %v1389_v20 = vld [vmem:[%s1897_s5 + $0x148] sm:$0xf0]  ;;  %v1541_v21 = vld [vmem:[%s1897_s5 + $0x1c4] sm:$0xf]  ;;  %v1328_v24 = vor.u32 %v1509_v16, %v1325_v18  ;;  %v1253_v27 = vld [vmem:[%s1897_s5 + $0x38] sm:$0xf0] }
  0x8c   : > { %992 = vmatpush.bf16.msra.mxu2 %v1356_v39  ;;  %v1453_v22 = vld [vmem:[%s1897_s5 + $0x1c8] sm:$0xf0]  ;;  %v1392_v25 = vor.u32 %v1525_v19, %v1389_v20  ;;  %v1507_v28 = vld [vmem:[%s1897_s5 + $0xb4] sm:$0xf]  ;;  %v1317_v30 = vld [vmem:[%s1897_s5 + $0xb8] sm:$0xf0]  ;;  %v1256_v35 = vor.u32 %v1491_v26, %v1253_v27 }
  0x8d   : > { %1005 = vmatpush.bf16.msra.mxu3 %v1420_v43  ;;  %967 = vmatmul.bf16.vlgmr.msra.gmra.mxu0 %v1986_v61  ;;  %v1456_v29 = vor.u32 %v1541_v21, %v1453_v22  ;;  %v1523_v31 = vld [vmem:[%s1897_s5 + $0x134] sm:$0xf]  ;;  %v1381_v32 = vld [vmem:[%s1897_s5 + $0x138] sm:$0xf0]  ;;  %v1320_v36 = vor.u32 %v1507_v28, %v1317_v30  ;;  %v1489_v38 = vld [vmem:[%s1897_s5 + $0x24] sm:$0xf] }
  0x8e   : > { %1011 = vmatpush.bf16.msrb.mxu0 %v1288_v44  ;;  %980 = vmatmul.bf16.vlgmr.msra.gmra.mxu1 %v1988_v63  ;;  %v1539_v33 = vld [vmem:[%s1897_s5 + $0x1b4] sm:$0xf]  ;;  %v1445_v34 = vld [vmem:[%s1897_s5 + $0x1b8] sm:$0xf0]  ;;  %v1384_v37 = vor.u32 %v1523_v31, %v1381_v32  ;;  %v1245_v39 = vld [vmem:[%s1897_s5 + $0x28] sm:$0xf0] }
  0x8f   : > { %1024 = vmatpush.bf16.msrb.mxu1 %v1352_v46  ;;  %993 = vmatmul.bf16.vlgmr.msra.gmra.mxu2 %v1980_v57  ;;  %v1505_v40 = vld [vmem:[%s1897_s5 + $0xa4] sm:$0xf]  ;;  %v1448_v41 = vor.u32 %v1539_v33, %v1445_v34  ;;  %v1309_v42 = vld [vmem:[%s1897_s5 + $0xa8] sm:$0xf0]  ;;  %v1487_v50 = vld [vmem:[%s1897_s5 + $0x14] sm:$0xf] }
  0x90   : > { %1037 = vmatpush.bf16.msrb.mxu2 %v1416_v47  ;;  %1006 = vmatmul.bf16.vlgmr.msra.gmra.mxu3 %v1984_v60  ;;  %v1521_v43 = vld [vmem:[%s1897_s5 + $0x124] sm:$0xf]  ;;  %v1373_v44 = vld [vmem:[%s1897_s5 + $0x128] sm:$0xf0]  ;;  %v1248_v47 = vor.u32 %v1489_v38, %v1245_v39  ;;  %v1312_v48 = vor.u32 %v1505_v40, %v1309_v42  ;;  %v1237_v51 = vld [vmem:[%s1897_s5 + $0x18] sm:$0xf0] }
  0x91   : > { %1050 = vmatpush.bf16.msrb.mxu3 %v1480_v53  ;;  %v1537_v45 = vld [vmem:[%s1897_s5 + $0x1a4] sm:$0xf]  ;;  %v1437_v46 = vld [vmem:[%s1897_s5 + $0x1a8] sm:$0xf0]  ;;  %v1376_v49 = vor.u32 %v1521_v43, %v1373_v44  ;;  %v1503_v52 = vld [vmem:[%s1897_s5 + $0x94] sm:$0xf] }
  0x92   : > { %1012 = vmatpush.bf16.msrb.mxu0 %v1280_v62  ;;  %v1440_v53 = vor.u32 %v1537_v45, %v1437_v46  ;;  %v1301_v54 = vld [vmem:[%s1897_s5 + $0x98] sm:$0xf0]  ;;  %v1519_v55 = vld [vmem:[%s1897_s5 + $0x114] sm:$0xf]  ;;  %v1240_v62 = vor.u32 %v1487_v50, %v1237_v51  ;;  %v1485_v2 = vld [vmem:[%s1897_s5 + $0x4] sm:$0xf] }
  0x93   : > { %1025 = vmatpush.bf16.msrb.mxu1 %v1344_v0  ;;  %v1365_v56 = vld [vmem:[%s1897_s5 + $0x118] sm:$0xf0]  ;;  %v1535_v58 = vld [vmem:[%s1897_s5 + $0x194] sm:$0xf]  ;;  %v1304_v0 = vor.u32 %v1503_v52, %v1301_v54  ;;  %v1229_v3 = vld [vmem:[%s1897_s5 + $0x8] sm:$0xf0] }
  0x94   : > { %1038 = vmatpush.bf16.msrb.mxu2 %v1408_v1  ;;  %v1429_v59 = vld [vmem:[%s1897_s5 + $0x198] sm:$0xf0]  ;;  %v1368_v1 = vor.u32 %v1519_v55, %v1365_v56  ;;  %v1501_v4 = vld [vmem:[%s1897_s5 + $0x84] sm:$0xf]  ;;  %v1293_v6 = vld [vmem:[%s1897_s5 + $0x88] sm:$0xf0] }
  0x95   : > { %1051 = vmatpush.bf16.msrb.mxu3 %v1472_v5  ;;  %v1432_v5 = vor.u32 %v1535_v58, %v1429_v59  ;;  %v1517_v7 = vld [vmem:[%s1897_s5 + $0x104] sm:$0xf]  ;;  %v1357_v8 = vld [vmem:[%s1897_s5 + $0x108] sm:$0xf0]  ;;  %v557_v21 = vld [vmem:[#allocation2] sm:$0xff] }
  0x96   : > { %1013 = vmatpush.bf16.msrb.mxu0 %v1272_v11  ;;  %v1533_v9 = vld [vmem:[%s1897_s5 + $0x184] sm:$0xf]  ;;  %v1421_v10 = vld [vmem:[%s1897_s5 + $0x188] sm:$0xf0]  ;;  %v1232_v11 = vor.u32 %v1485_v2, %v1229_v3  ;;  %v558_v31 = vld [vmem:[#allocation2 + $0x8] sm:$0xff] }
  0x97   : > { %1026 = vmatpush.bf16.msrb.mxu1 %v1336_v12  ;;  %v1296_v12 = vor.u32 %v1501_v4, %v1293_v6  ;;  %v1424_v14 = vor.u32 %v1533_v9, %v1421_v10 }
  0x98   : > { %1039 = vmatpush.bf16.msrb.mxu2 %v1400_v13  ;;  %v1360_v13 = vor.u32 %v1517_v7, %v1357_v8 }
  0x99   : > { %1052 = vmatpush.bf16.msrb.mxu3 %v1464_v17 }
  0x9a   : > { %1014 = vmatpush.bf16.msrb.mxu0 %v1264_v23 }
  0x9b   : > { %1027 = vmatpush.bf16.msrb.mxu1 %v1328_v24 }
  0x9c   : > { %1040 = vmatpush.bf16.msrb.mxu2 %v1392_v25 }
  0x9d   : > { %1053 = vmatpush.bf16.msrb.mxu3 %v1456_v29 }
  0x9e   : > { %1015 = vmatpush.bf16.msrb.mxu0 %v1256_v35 }
  0x9f   : > { %1028 = vmatpush.bf16.msrb.mxu1 %v1320_v36 }
  0xa0   : > { %1041 = vmatpush.bf16.msrb.mxu2 %v1384_v37 }
  0xa1   : > { %1054 = vmatpush.bf16.msrb.mxu3 %v1448_v41 }
  0xa2   : > { %1016 = vmatpush.bf16.msrb.mxu0 %v1248_v47 }
  0xa3   : > { %1029 = vmatpush.bf16.msrb.mxu1 %v1312_v48 }
  0xa4   : > { %1042 = vmatpush.bf16.msrb.mxu2 %v1376_v49 }
  0xa5   : > { %1055 = vmatpush.bf16.msrb.mxu3 %v1440_v53 }
  0xa6   : > { %1017 = vmatpush.bf16.msrb.mxu0 %v1240_v62 }
  0xa7   : > { %1030 = vmatpush.bf16.msrb.mxu1 %v1304_v0 }
  0xa8   : > { %1043 = vmatpush.bf16.msrb.mxu2 %v1368_v1 }
  0xa9   : > { %1056 = vmatpush.bf16.msrb.mxu3 %v1432_v5 }
  0xaa   : > { %1018 = vmatpush.bf16.msrb.mxu0 %v1232_v11 }
  0xab   : > { %1031 = vmatpush.bf16.msrb.mxu1 %v1296_v12 }
  0xac   : > { %1044 = vmatpush.bf16.msrb.mxu2 %v1360_v13 }
  0xad   : > { %1057 = vmatpush.bf16.msrb.mxu3 %v1424_v14  ;;  %1019 = vmatmul.bf16.vlgmr.msrb.gmra.mxu0 %v1986_v61 }
  0xae   : > { %1032 = vmatmul.bf16.vlgmr.msrb.gmra.mxu1 %v1988_v63 }
  0xaf   : > { %1045 = vmatmul.bf16.vlgmr.msrb.gmra.mxu2 %v1980_v57 }
  0xb0   : > { %1058 = vmatmul.bf16.vlgmr.msrb.gmra.mxu3 %v1984_v60 }
 0x10a   : > { %v968_v15 = vpop.f32.mrf.mxu0 }
 0x10b   : > { %v981_v16 = vpop.f32.mrf.mxu1 }
 0x10c   : > { %v982_v17 = vadd.f32 %v981_v16, %v968_v15 }
 0x112   : > { %v994_v18 = vpop.f32.mrf.mxu2  ;;  %v970_v23 = vpop.f32.mrf.mxu0 }
 0x113   : > { %v995_v19 = vadd.f32 %v994_v18, %v982_v17  ;;  %v1007_v20 = vpop.f32.mrf.mxu3  ;;  %v983_v24 = vpop.f32.mrf.mxu1 }
 0x115   : > { %v1008_v22 = vadd.f32 %v1007_v20, %v995_v19 }
 0x117   : > { %v1063_v25 = vadd.f32 %v1008_v22, %v557_v21 }
 0x119   : > { %1065 = vst [vmem:[#allocation2] sm:$0xff] %v1063_v25 }
 0x11a   : > { %v996_v26 = vpop.f32.mrf.mxu2 }
 0x11b   : > { %v1009_v61 = vpop.f32.mrf.mxu3 }
 0x12a   : > { %v1020_v27 = vpop.f32.mrf.mxu0 }
 0x12b   : > { %v1033_v63 = vpop.f32.mrf.mxu1 }
 0x12c   : > { %v1034_v28 = vadd.f32 %v1033_v63, %v1020_v27 }
 0x132   : > { %v1046_v57 = vpop.f32.mrf.mxu2  ;;  %v1022_v30 = vpop.f32.mrf.mxu0 }
 0x133   : > { %v1047_v29 = vadd.f32 %v1046_v57, %v1034_v28  ;;  %v1059_v60 = vpop.f32.mrf.mxu3  ;;  %v1035_v32 = vpop.f32.mrf.mxu1 }
 0x135   : > { %v1060_v33 = vadd.f32 %v1059_v60, %v1047_v29 }
 0x137   : > { %v1064_v34 = vadd.f32 %v1060_v33, %v558_v31  ;;  %1070 = sbr.rel (%p1481_p13) target bundleno = 328 (0x148), region = 78 }
 0x139   : > { %1066 = vst [vmem:[#allocation2 + $0x8] sm:$0xff] %v1064_v34 }
 0x13a   : > { %v1048_v35 = vpop.f32.mrf.mxu2 }
 0x13b   : > { %v1061_v36 = vpop.f32.mrf.mxu3 }
 0x13c   : > { %v1071_v37 = vld [vmem:[#allocation2] sm:$0xff] }
 0x13d   : > { %v1073_v39 = vld [vmem:[%s539_s12] sm:$0x3] }
 0x13e   : > { %v1075_v40 = vperm.slane %v1073_v39, 0  ;;  %v1076_v41 = vperm.slane %v1073_v39, 1 }
 0x140   : > { %v1072_v38 = vld [vmem:[#allocation2 + $0x8] sm:$0xff]  ;;  %v1079_v42 = vadd.f32 %v1075_v40, %v1071_v37 }
 0x141   : > { %v1080_v43 = vadd.f32 %v1076_v41, %v1072_v38 }
 0x142   : > { %v1081_v44 = vmax.f32 %v1079_v42, 0.0 }
 0x143   : > { %v1082_v45 = vmax.f32 %v1080_v43, 0.0 }
 0x145   : > { %v1083_v46 = vpack.c.bf16 %v1082_v45, %v1081_v44 }
 0x147   : > { %1084 = vst [vmem:[%s1895_s15] sm:$0xff] %v1083_v46 }
 0x148 PF: > { %s13_s18 = sadd.s32 1, %s1660_s18   ;;  %s2078_s12 = smov %s1640_s13 }
 0x149   : > { %p10_p0 = scmp.ge.s32.totalorder %s13_s18, 20   ;;  %s2079_s13 = smov %s1734_s25 }
 0x14a   : > { %s2080_s14 = smov %s1652_s16  ;;  %s2081_s15 = smov %s1656_s17 }
 0x14b   : > { %s2082_s16 = smov %s2085_s19  ;;  %s2083_s17 = smov %s2089_s20 }
 0x14c   :  { %12 = sbr.rel (!%p10_p0) target bundleno = 4 (0x4), region = 119 }

// kernel: resnet18_forward.45
= control target key start
LH: loop header
LB: loop body
LE: loop exit
PB: predicated region body
PF: predicated region fallthrough
CT: control target
= control target key end

     0   :  { %s649_s1 = inlined_call_operand.vmem [shape: bf16[512,128], index: 1, kind: input, shape index: {}]   ;;  %s650_s0 = inlined_call_operand.vmem [shape: bf16[8,512], index: 0, kind: input, shape index: {}]   ;;  %s651_s2 = inlined_call_operand.vmem [shape: f32[1,128], index: 2, kind: input, shape index: {}]   ;;  %s652_s3 = inlined_call_operand.vmem [shape: f32[8,128], index: 3, kind: output, shape index: {}]  }
   0x1   :  { %v495_v0 = vld [vmem:[%s649_s1 + $0x38] sm:$0xff]  ;;  %v494_v4 = vld [vmem:[%s649_s1 + $0x30] sm:$0xff]  ;;  %v493_v8 = vld [vmem:[%s649_s1 + $0x28] sm:$0xff] }
   0x2   :  { %v503_v1 = vld [vmem:[%s649_s1 + $0x78] sm:$0xff]  ;;  %292 = vmatpush.bf16.msra.mxu0 %v495_v0  ;;  %v502_v5 = vld [vmem:[%s649_s1 + $0x70] sm:$0xff]  ;;  %v501_v9 = vld [vmem:[%s649_s1 + $0x68] sm:$0xff] }
   0x3   :  { %v511_v2 = vld [vmem:[%s649_s1 + $0xb8] sm:$0xff]  ;;  %305 = vmatpush.bf16.msra.mxu1 %v503_v1  ;;  %v510_v6 = vld [vmem:[%s649_s1 + $0xb0] sm:$0xff]  ;;  %v509_v10 = vld [vmem:[%s649_s1 + $0xa8] sm:$0xff] }
   0x4   :  { %v519_v3 = vld [vmem:[%s649_s1 + $0xf8] sm:$0xff]  ;;  %318 = vmatpush.bf16.msra.mxu2 %v511_v2  ;;  %v518_v7 = vld [vmem:[%s649_s1 + $0xf0] sm:$0xff]  ;;  %v517_v11 = vld [vmem:[%s649_s1 + $0xe8] sm:$0xff] }
   0x5   :  { %331 = vmatpush.bf16.msra.mxu3 %v519_v3  ;;  %v492_v12 = vld [vmem:[%s649_s1 + $0x20] sm:$0xff]  ;;  %v491_v16 = vld [vmem:[%s649_s1 + $0x18] sm:$0xff]  ;;  %v490_v20 = vld [vmem:[%s649_s1 + $0x10] sm:$0xff] }
   0x6   :  { %293 = vmatpush.bf16.msra.mxu0 %v494_v4  ;;  %v500_v13 = vld [vmem:[%s649_s1 + $0x60] sm:$0xff]  ;;  %v499_v17 = vld [vmem:[%s649_s1 + $0x58] sm:$0xff]  ;;  %v498_v21 = vld [vmem:[%s649_s1 + $0x50] sm:$0xff] }
   0x7   :  { %306 = vmatpush.bf16.msra.mxu1 %v502_v5  ;;  %v508_v14 = vld [vmem:[%s649_s1 + $0xa0] sm:$0xff]  ;;  %v507_v18 = vld [vmem:[%s649_s1 + $0x98] sm:$0xff]  ;;  %v506_v22 = vld [vmem:[%s649_s1 + $0x90] sm:$0xff] }
   0x8   :  { %319 = vmatpush.bf16.msra.mxu2 %v510_v6  ;;  %v516_v15 = vld [vmem:[%s649_s1 + $0xe0] sm:$0xff]  ;;  %v515_v19 = vld [vmem:[%s649_s1 + $0xd8] sm:$0xff]  ;;  %v514_v23 = vld [vmem:[%s649_s1 + $0xd0] sm:$0xff] }
   0x9   :  { %332 = vmatpush.bf16.msra.mxu3 %v518_v7  ;;  %v489_v24 = vld [vmem:[%s649_s1 + $0x8] sm:$0xff]  ;;  %v20_v26 = vld [vmem:[%s650_s0] sm:$0xff] }
   0xa   :  { %294 = vmatpush.bf16.msra.mxu0 %v493_v8  ;;  %v497_v25 = vld [vmem:[%s649_s1 + $0x48] sm:$0xff]  ;;  %v88_v30 = vunpack.c.l.b16 %v20_v26  ;;  %v89_v31 = vunpack.c.h.b16 %v20_v26  ;;  %v488_v32 = vld [vmem:[%s649_s1] sm:$0xff] }
   0xb   :  { %307 = vmatpush.bf16.msra.mxu1 %v501_v9  ;;  %v505_v27 = vld [vmem:[%s649_s1 + $0x88] sm:$0xff]  ;;  %v496_v33 = vld [vmem:[%s649_s1 + $0x40] sm:$0xff] }
   0xc   :  { %320 = vmatpush.bf16.msra.mxu2 %v509_v10  ;;  %v513_v28 = vld [vmem:[%s649_s1 + $0xc8] sm:$0xff]  ;;  %v504_v36 = vld [vmem:[%s649_s1 + $0x80] sm:$0xff]  ;;  %v92_v38 = vpack.c.b16 %v88_v30, %v88_v30  ;;  %v93_v39 = vpack.c.b16 %v89_v31, %v89_v31 }
   0xd   :  { %333 = vmatpush.bf16.msra.mxu3 %v517_v11  ;;  %v21_v29 = vld [vmem:[%s650_s0 + $0x8] sm:$0xff]  ;;  %v512_v37 = vld [vmem:[%s649_s1 + $0xc0] sm:$0xff] }
   0xe   :  { %295 = vmatpush.bf16.msra.mxu0 %v492_v12  ;;  %v90_v34 = vunpack.c.l.b16 %v21_v29  ;;  %v91_v35 = vunpack.c.h.b16 %v21_v29  ;;  %v520_v48 = vld [vmem:[%s651_s2] ss:$0 sm:$0xff] }
   0xf   :  { %308 = vmatpush.bf16.msra.mxu1 %v500_v13 }
  0x10   :  { %321 = vmatpush.bf16.msra.mxu2 %v508_v14  ;;  %v94_v40 = vpack.c.b16 %v90_v34, %v90_v34  ;;  %v95_v41 = vpack.c.b16 %v91_v35, %v91_v35 }
  0x11   :  { %334 = vmatpush.bf16.msra.mxu3 %v516_v15 }
  0x12   :  { %296 = vmatpush.bf16.msra.mxu0 %v491_v16 }
  0x13   :  { %309 = vmatpush.bf16.msra.mxu1 %v499_v17 }
  0x14   :  { %322 = vmatpush.bf16.msra.mxu2 %v507_v18 }
  0x15   :  { %335 = vmatpush.bf16.msra.mxu3 %v515_v19 }
  0x16   :  { %297 = vmatpush.bf16.msra.mxu0 %v490_v20 }
  0x17   :  { %310 = vmatpush.bf16.msra.mxu1 %v498_v21 }
  0x18   :  { %323 = vmatpush.bf16.msra.mxu2 %v506_v22 }
  0x19   :  { %336 = vmatpush.bf16.msra.mxu3 %v514_v23 }
  0x1a   :  { %298 = vmatpush.bf16.msra.mxu0 %v489_v24 }
  0x1b   :  { %311 = vmatpush.bf16.msra.mxu1 %v497_v25 }
  0x1c   :  { %324 = vmatpush.bf16.msra.mxu2 %v505_v27 }
  0x1d   :  { %337 = vmatpush.bf16.msra.mxu3 %v513_v28 }
  0x1e   :  { %299 = vmatpush.bf16.msra.mxu0 %v488_v32 }
  0x1f   :  { %312 = vmatpush.bf16.msra.mxu1 %v496_v33 }
  0x20   :  { %325 = vmatpush.bf16.msra.mxu2 %v504_v36 }
  0x21   :  { %338 = vmatpush.bf16.msra.mxu3 %v512_v37  ;;  %300 = vmatmul.bf16.vlgmr.msra.gmra.mxu0 %v92_v38 }
  0x22   :  { %313 = vmatmul.bf16.vlgmr.msra.gmra.mxu1 %v93_v39 }
  0x23   :  { %326 = vmatmul.bf16.vlgmr.msra.gmra.mxu2 %v94_v40 }
  0x24   :  { %339 = vmatmul.bf16.vlgmr.msra.gmra.mxu3 %v95_v41 }
  0x9e   :  { %v301_v42 = vpop.f32.mrf.mxu0 }
  0x9f   :  { %v314_v43 = vpop.f32.mrf.mxu1 }
  0xa0   :  { %v315_v44 = vadd.f32 %v314_v43, %v301_v42 }
  0xa6   :  { %v327_v45 = vpop.f32.mrf.mxu2  ;;  %v303_v49 = vpop.f32.mrf.mxu0 }
  0xa7   :  { %v340_v46 = vpop.f32.mrf.mxu3  ;;  %v328_v47 = vadd.f32 %v327_v45, %v315_v44  ;;  %v316_v50 = vpop.f32.mrf.mxu1 }
  0xa9   :  { %v341_v51 = vadd.f32 %v340_v46, %v328_v47 }
  0xab   :  { %v354_v52 = vadd.f32 %v520_v48, %v341_v51 }
  0xad   :  { %355 = vst [vmem:[%s652_s3] sm:$0xff] %v354_v52 }
  0xae   :  { %v329_v53 = vpop.f32.mrf.mxu2 }
  0xaf   :  { %v342_v54 = vpop.f32.mrf.mxu3 }

</bundles_post_ra>
